<compile_context>
chip_gen: v7x
topology: tpu7x:2x2x1
jax: 0.10.0
libtpu: 0.0.40
codegen_flags: <defaults>
</compile_context>

<pallas_src>
import math

import jax
import jax.numpy as jnp
from jax.experimental import pallas as pl
from jax.experimental.pallas import tpu as pltpu

_SCALING = 1000.0
_TWO_PI = 2.0 * math.pi


def _round_up(x: int, m: int) -> int:
    return ((x + m - 1) // m) * m


# ---------------------------------------------------------------------------
# Pallas kernel
# ---------------------------------------------------------------------------
def _fourier_encoding_kernel(pos_ref, p_ref, o_ref):
    # pos_ref: (TN, 2)  -- flattened token positions (already in [0, 1])
    # p_ref:   (3, F)   -- rows: y-coeff, x-coeff (both with 2*pi folded in,
    #                      duplicated across sin/cos halves), phase (0 | pi/2)
    # o_ref:   (TN, F)  -- sin(theta) * 1000, lane-dense output
    pos = pos_ref[...].astype(jnp.float32)
    p = p_ref[...]

    py = pos[:, 0:1]            # (TN, 1)
    px = pos[:, 1:2]            # (TN, 1)

    # K=2 projection + phase, all lane-dense over the full feature axis (VPU).
    theta = py * p[0:1, :] + px * p[1:2, :] + p[2:3, :]     # (TN, F)

    # Single transcendental (EUP) + scale (VPU) + one wide store.
    o_ref[...] = (jnp.sin(theta) * _SCALING).astype(o_ref.dtype)


# ---------------------------------------------------------------------------
# Wrapper
# ---------------------------------------------------------------------------
def subpixel_positional_encoding(positions, weight, *, tn=None):
    """positions: (..., 2) in [0, 1]; weight: (out_features//2, 2) Linear weight."""
    # TODO(synk): the PyTorch runtime assert (positions.min() >= 0 and <= 1) is a
    # data-dependent host-side check and is omitted here.
    *lead, two = positions.shape
    assert two == 2, "positions must have a trailing dimension of size 2"
    f2, in_dim = weight.shape
    assert in_dim == 2, "weight must be (out_features//2, 2)"
    out_features = 2 * f2

    pos = positions.reshape(-1, 2).astype(jnp.float32)
    n_tokens = pos.shape[0]

    # Pack coefficients (with 2*pi folded in) + phase into one (3, F) array so
    # the kernel sees a single lane-dense parameter block.
    w = weight.astype(jnp.float32) * _TWO_PI                       # (F2, 2)
    coeff = jnp.concatenate([w.T, w.T], axis=1)                    # (2, F)
    phase = jnp.concatenate(
        [jnp.zeros((1, f2), jnp.float32),
         jnp.full((1, f2), 0.5 * math.pi, jnp.float32)], axis=1)   # (1, F)
    params = jnp.concatenate([coeff, phase], axis=0)               # (3, F)

    # ---- tile-size selection: big, sublane-aligned, VMEM-budgeted ----------
    bytes_per_row = 4 * (2 + out_features)        # f32 pos row + f32 output row
    per_copy_budget = 6 * 1024 * 1024             # x2 for double buffering ~12 MiB
    if tn is None:
        tn = min(8192, per_copy_budget // bytes_per_row)
    tn = min(tn, _round_up(n_tokens, 8))
    tn = max(8, (tn // 8) * 8)                    # sublane-aligned

    n_pad = _round_up(n_tokens, tn)
    if n_pad != n_tokens:
        pos = jnp.pad(pos, ((0, n_pad - n_tokens), (0, 0)))

    grid = (n_pad // tn,)

    out = pl.pallas_call(
        _fourier_encoding_kernel,
        out_shape=jax.ShapeDtypeStruct((n_pad, out_features), positions.dtype),
        grid=grid,
        in_specs=[
            pl.BlockSpec((tn, 2), lambda i: (i, 0)),              # positions tile
            pl.BlockSpec((3, out_features), lambda i: (0, 0)),    # full (tiny) params
        ],
        out_specs=pl.BlockSpec((tn, out_features), lambda i: (i, 0)),
        compiler_params=pltpu.CompilerParams(
            dimension_semantics=("parallel",),    # v7x: split tokens over TCs
            vmem_limit_bytes=32 * 1024 * 1024,
        ),
    )(pos, params)

    if n_pad != n_tokens:
        out = out[:n_tokens]
    return out.reshape(*lead, out_features)


# ---------------------------------------------------------------------------
# Pure-JAX reference (mirrors the PyTorch forward)
# ---------------------------------------------------------------------------
def subpixel_positional_encoding_ref(positions, weight):
    proj = (positions * (2.0 * jnp.pi)) @ weight.T
    return jnp.concatenate([jnp.sin(proj), jnp.cos(proj)], axis=-1) * _SCALING


# ---------------------------------------------------------------------------
# Main
# ---------------------------------------------------------------------------
if __name__ == "__main__":
    key = jax.random.PRNGKey(0)
    k_pos, k_w, k_pos2 = jax.random.split(key, 3)

    out_features = 128
    B, S = 2, 256

    # subpixel positions in [0, 1]
    positions = jax.random.uniform(k_pos, (B, S, 2), dtype=jnp.float32)

    # nn.Linear(2, out_features//2, bias=False) default init ~ U(-1/sqrt(2), 1/sqrt(2))
    bound = 1.0 / math.sqrt(2.0)
    weight = jax.random.uniform(k_w, (out_features // 2, 2),
                                minval=-bound, maxval=bound, dtype=jnp.float32)

    # Case 1: default (large) tile, single grid step.
    out = jax.block_until_ready(subpixel_positional_encoding(positions, weight))
    ref = subpixel_positional_encoding_ref(positions, weight)
    assert out.shape == (B, S, out_features)
    assert jnp.allclose(out, ref, atol=1e-2, rtol=1e-4), (
        float(jnp.max(jnp.abs(out - ref))))

    # Case 2: multi-step grid with a ragged tail (N=500 tokens, tn=128 -> pad to 512).
    positions2 = jax.random.uniform(k_pos2, (5, 100, 2), dtype=jnp.float32)
    out2 = jax.block_until_ready(
        subpixel_positional_encoding(positions2, weight, tn=128))
    ref2 = subpixel_positional_encoding_ref(positions2, weight)
    assert out2.shape == (5, 100, out_features)
    assert jnp.allclose(out2, ref2, atol=1e-2, rtol=1e-4), (
        float(jnp.max(jnp.abs(out2 - ref2))))

    print("KERNEL_OK")
</pallas_src>

<mosaic_0001>
module attributes {stable_mosaic.version = 11 : i64} {
  func.func @_fourier_encoding_kernel(%arg0: i32, %arg1: memref<512x2xf32, #tpu.memory_space<vmem>>, %arg2: memref<3x128xf32, #tpu.memory_space<vmem>>, %arg3: memref<512x128xf32, #tpu.memory_space<vmem>>) attributes {dimension_semantics = [#tpu.dimension_semantics<parallel>], iteration_bounds = array<i64: 1>, scalar_prefetch = 0 : i64, scratch_operands = 0 : i64, tpu.core_type = #tpu.core_type<tc>, window_params = [{transform_indices = @transform_0, window_bounds = array<i64: 512, 2>}, {pipeline_mode = #tpu.pipeline_mode<synchronous>, transform_indices = @transform_1, window_bounds = array<i64: 3, 128>}, {transform_indices = @transform_2, window_bounds = array<i64: 512, 128>}]} {
    %c0 = arith.constant 0 : index
    %c0_0 = arith.constant 0 : index
    %0 = vector.load %arg1[%c0, %c0_0] : memref<512x2xf32, #tpu.memory_space<vmem>>, vector<512x2xf32>
    %c0_1 = arith.constant 0 : index
    %c0_2 = arith.constant 0 : index
    %1 = vector.load %arg2[%c0_1, %c0_2] : memref<3x128xf32, #tpu.memory_space<vmem>>, vector<3x128xf32>
    %2 = vector.extract_strided_slice %0 {offsets = [0, 0], sizes = [512, 1], strides = [1, 1]} : vector<512x2xf32> to vector<512x1xf32>
    %3 = vector.extract_strided_slice %0 {offsets = [0, 1], sizes = [512, 1], strides = [1, 1]} : vector<512x2xf32> to vector<512x1xf32>
    %4 = vector.extract_strided_slice %1 {offsets = [0, 0], sizes = [1, 128], strides = [1, 1]} : vector<3x128xf32> to vector<1x128xf32>
    %5 = vector.broadcast %2 : vector<512x1xf32> to vector<512x128xf32>
    %6 = vector.broadcast %4 : vector<1x128xf32> to vector<512x128xf32>
    %7 = arith.mulf %5, %6 : vector<512x128xf32>
    %8 = vector.extract_strided_slice %1 {offsets = [1, 0], sizes = [1, 128], strides = [1, 1]} : vector<3x128xf32> to vector<1x128xf32>
    %9 = vector.broadcast %3 : vector<512x1xf32> to vector<512x128xf32>
    %10 = vector.broadcast %8 : vector<1x128xf32> to vector<512x128xf32>
    %11 = arith.mulf %9, %10 : vector<512x128xf32>
    %12 = arith.addf %7, %11 : vector<512x128xf32>
    %13 = vector.extract_strided_slice %1 {offsets = [2, 0], sizes = [1, 128], strides = [1, 1]} : vector<3x128xf32> to vector<1x128xf32>
    %14 = vector.broadcast %13 : vector<1x128xf32> to vector<512x128xf32>
    %15 = arith.addf %12, %14 : vector<512x128xf32>
    %16 = math.sin %15 : vector<512x128xf32>
    %cst = arith.constant 1.000000e+03 : f32
    %17 = vector.broadcast %cst : f32 to vector<512x128xf32>
    %18 = arith.mulf %16, %17 : vector<512x128xf32>
    %c0_3 = arith.constant 0 : index
    %c0_4 = arith.constant 0 : index
    %19 = vector.load %arg3[%c0_3, %c0_4] : memref<512x128xf32, #tpu.memory_space<vmem>>, vector<512x128xf32>
    tpu.vector_store %arg3[%c0_3, %c0_4], %18 {strides = array<i32>} : memref<512x128xf32, #tpu.memory_space<vmem>>, vector<512x128xf32>,
    return
  }
  func.func @transform_0(%arg0: i32) -> (i32, i32) {
    %c0_i32 = arith.constant 0 : i32
    %c0_i32_0 = arith.constant 0 : i32
    return %arg0, %c0_i32 : i32, i32
  }
  func.func @transform_1(%arg0: i32) -> (i32, i32) {
    %c0_i32 = arith.constant 0 : i32
    %c0_i32_0 = arith.constant 0 : i32
    %c0_i32_1 = arith.constant 0 : i32
    return %c0_i32, %c0_i32_0 : i32, i32
  }
  func.func @transform_2(%arg0: i32) -> (i32, i32) {
    %c0_i32 = arith.constant 0 : i32
    %c0_i32_0 = arith.constant 0 : i32
    return %arg0, %c0_i32 : i32, i32
  }
}

</mosaic_0001>

<bundles_post_ra>
// kernel: tpu_custom_call.1
= control target key start
LH: loop header
LB: loop body
LE: loop exit
PB: predicated region body
PF: predicated region fallthrough
CT: control target
= control target key end

     0   :  { %v8528_v2 = vmov 0   ;;  %s14672_s0 = inlined_call_operand.vmem [shape: f32[512,2], index: 0, kind: input, shape index: {}]   ;;  %s14673_s1 = inlined_call_operand.vmem [shape: f32[3,128], index: 1, kind: input, shape index: {}]   ;;  %s14674_s2 = inlined_call_operand.hbm [shape: f32[512,128], index: 2, kind: output, shape index: {}]  }
   0x1   :  { %v8557_v0 = vld [vmem:[%s14672_s0 + $0x10] sm:$0xff]  ;;  %v8562_v1 = vld [vmem:[%s14672_s0] sm:$0xff]  ;;  %8245 = vset.pattern.permute.xlu1 %v8528_v2  ;;  %8244 = vset.pattern.permute.xlu0 %v8528_v2  ;;  %v8569_v3 = vld [vmem:[%s14672_s0 + $0x18] sm:$0xff] }
   0x2   :  { %89 = vperm.xlu1 %8245, %v8557_v0   ;;  %79 = vperm.xlu0 %8244, %v8562_v1   ;;  %v8574_v4 = vld [vmem:[%s14672_s0 + $0x8] sm:$0xff]  ;;  %v8586_v6 = vld [vmem:[%s14672_s0 + $0x20] sm:$0xff]  ;;  %v8593_v7 = vld [vmem:[%s14672_s0 + $0x38] sm:$0xff] }
   0x3   :  { %v8581_v5 = vld [vmem:[%s14672_s0 + $0x28] sm:$0xff]  ;;  %v8598_v8 = vld [vmem:[%s14672_s0 + $0x30] sm:$0xff]  ;;  %v8610_v10 = vld [vmem:[%s14672_s0 + $0x40] sm:$0xff] }
   0x4   :  { %v8605_v9 = vld [vmem:[%s14672_s0 + $0x48] sm:$0xff]  ;;  %v8617_v11 = vld [vmem:[%s14672_s0 + $0x58] sm:$0xff]  ;;  %v8622_v12 = vld [vmem:[%s14672_s0 + $0x50] sm:$0xff] }
   0x6   :  { %94 = vperm.xlu1 %8245, %v8569_v3   ;;  %84 = vperm.xlu0 %8244, %v8574_v4  }
   0xa   :  { %104 = vperm.xlu1 %8245, %v8581_v5   ;;  %99 = vperm.xlu0 %8244, %v8586_v6  }
   0xe   :  { %114 = vperm.xlu1 %8245, %v8593_v7   ;;  %109 = vperm.xlu0 %8244, %v8598_v8  }
  0x12   :  { %124 = vperm.xlu1 %8245, %v8605_v9   ;;  %119 = vperm.xlu0 %8244, %v8610_v10  }
  0x13   :  { %7 = vsyncpa [#allocation3], 0  ;;  %v8629_v13 = vld [vmem:[%s14672_s0 + $0x68] sm:$0xff]  ;;  %v8634_v14 = vld [vmem:[%s14672_s0 + $0x60] sm:$0xff] }
  0x14   :  { %v8641_v15 = vld [vmem:[%s14672_s0 + $0x78] sm:$0xff]  ;;  %v8646_v16 = vld [vmem:[%s14672_s0 + $0x70] sm:$0xff]  ;;  %v8653_v17 = vld [vmem:[%s14672_s0 + $0x88] sm:$0xff] }
  0x15   :  { %v8658_v18 = vld [vmem:[%s14672_s0 + $0x80] sm:$0xff]  ;;  %v8665_v19 = vld [vmem:[%s14672_s0 + $0x98] sm:$0xff]  ;;  %v8670_v20 = vld [vmem:[%s14672_s0 + $0x90] sm:$0xff] }
  0x16   :  { %134 = vperm.xlu1 %8245, %v8617_v11   ;;  %129 = vperm.xlu0 %8244, %v8622_v12   ;;  %v8677_v21 = vld [vmem:[%s14672_s0 + $0xa8] sm:$0xff]  ;;  %v8682_v22 = vld [vmem:[%s14672_s0 + $0xa0] sm:$0xff]  ;;  %v8689_v23 = vld [vmem:[%s14672_s0 + $0xb8] sm:$0xff] }
  0x17   :  { %v8694_v24 = vld [vmem:[%s14672_s0 + $0xb0] sm:$0xff]  ;;  %v8701_v25 = vld [vmem:[%s14672_s0 + $0xc8] sm:$0xff]  ;;  %v8706_v26 = vld [vmem:[%s14672_s0 + $0xc0] sm:$0xff] }
  0x18   :  { %v8713_v27 = vld [vmem:[%s14672_s0 + $0xd8] sm:$0xff]  ;;  %v8718_v28 = vld [vmem:[%s14672_s0 + $0xd0] sm:$0xff]  ;;  %v8725_v29 = vld [vmem:[%s14672_s0 + $0xe8] sm:$0xff] }
  0x19   :  { %v8730_v30 = vld [vmem:[%s14672_s0 + $0xe0] sm:$0xff]  ;;  %v8737_v31 = vld [vmem:[%s14672_s0 + $0xf8] sm:$0xff]  ;;  %v8742_v32 = vld [vmem:[%s14672_s0 + $0xf0] sm:$0xff] }
  0x1a   :  { %144 = vperm.xlu1 %8245, %v8629_v13   ;;  %139 = vperm.xlu0 %8244, %v8634_v14   ;;  %v8749_v33 = vld [vmem:[%s14672_s0 + $0x108] sm:$0xff]  ;;  %v8754_v34 = vld [vmem:[%s14672_s0 + $0x100] sm:$0xff]  ;;  %v8761_v35 = vld [vmem:[%s14672_s0 + $0x118] sm:$0xff] }
  0x1b   :  { %v8766_v36 = vld [vmem:[%s14672_s0 + $0x110] sm:$0xff]  ;;  %v8773_v37 = vld [vmem:[%s14672_s0 + $0x128] sm:$0xff]  ;;  %v8778_v38 = vld [vmem:[%s14672_s0 + $0x120] sm:$0xff] }
  0x1c   :  { %v8785_v39 = vld [vmem:[%s14672_s0 + $0x138] sm:$0xff]  ;;  %v8790_v40 = vld [vmem:[%s14672_s0 + $0x130] sm:$0xff]  ;;  %v8797_v41 = vld [vmem:[%s14672_s0 + $0x148] sm:$0xff] }
  0x1d   :  { %v8802_v42 = vld [vmem:[%s14672_s0 + $0x140] sm:$0xff]  ;;  %v8809_v43 = vld [vmem:[%s14672_s0 + $0x158] sm:$0xff]  ;;  %v8814_v44 = vld [vmem:[%s14672_s0 + $0x150] sm:$0xff] }
  0x1e   :  { %154 = vperm.xlu1 %8245, %v8641_v15   ;;  %149 = vperm.xlu0 %8244, %v8646_v16   ;;  %v8821_v45 = vld [vmem:[%s14672_s0 + $0x168] sm:$0xff]  ;;  %v8826_v46 = vld [vmem:[%s14672_s0 + $0x160] sm:$0xff]  ;;  %v8833_v47 = vld [vmem:[%s14672_s0 + $0x178] sm:$0xff] }
  0x1f   :  { %v8838_v48 = vld [vmem:[%s14672_s0 + $0x170] sm:$0xff]  ;;  %v8845_v49 = vld [vmem:[%s14672_s0 + $0x188] sm:$0xff]  ;;  %v8850_v50 = vld [vmem:[%s14672_s0 + $0x180] sm:$0xff] }
  0x20   :  { %v8857_v51 = vld [vmem:[%s14672_s0 + $0x198] sm:$0xff]  ;;  %v8862_v52 = vld [vmem:[%s14672_s0 + $0x190] sm:$0xff]  ;;  %v8869_v53 = vld [vmem:[%s14672_s0 + $0x1a8] sm:$0xff] }
  0x21   :  { %v8874_v54 = vld [vmem:[%s14672_s0 + $0x1a0] sm:$0xff]  ;;  %v8881_v55 = vld [vmem:[%s14672_s0 + $0x1b8] sm:$0xff]  ;;  %v8886_v56 = vld [vmem:[%s14672_s0 + $0x1b0] sm:$0xff] }
  0x22   :  { %164 = vperm.xlu1 %8245, %v8653_v17   ;;  %159 = vperm.xlu0 %8244, %v8658_v18   ;;  %v8893_v57 = vld [vmem:[%s14672_s0 + $0x1c8] sm:$0xff]  ;;  %v8898_v58 = vld [vmem:[%s14672_s0 + $0x1c0] sm:$0xff]  ;;  %v8905_v59 = vld [vmem:[%s14672_s0 + $0x1d8] sm:$0xff] }
  0x23   :  { %14695 = vst [vmem:[#allocation5_spill] sm:$0xff] %v8893_v57  ;;  %14696 = vst [vmem:[#allocation6_spill] sm:$0xff] %v8905_v59  ;;  %v8910_v60 = vld [vmem:[%s14672_s0 + $0x1d0] sm:$0xff]  ;;  %v8917_v61 = vld [vmem:[%s14672_s0 + $0x1e8] sm:$0xff] }
  0x24   :  { %14697 = vst [vmem:[#allocation7_spill] sm:$0xff] %v8910_v60  ;;  %14698 = vst [vmem:[#allocation8_spill] sm:$0xff] %v8917_v61  ;;  %v8922_v62 = vld [vmem:[%s14672_s0 + $0x1e0] sm:$0xff]  ;;  %v8929_v63 = vld [vmem:[%s14672_s0 + $0x1f8] sm:$0xff] }
  0x25   :  { %14699 = vst [vmem:[#allocation9_spill] sm:$0xff] %v8922_v62  ;;  %14700 = vst [vmem:[#allocation10_spill] sm:$0xff] %v8929_v63  ;;  %v8934_v2 = vld [vmem:[%s14672_s0 + $0x1f0] sm:$0xff] }
  0x26   :  { %174 = vperm.xlu1 %8245, %v8665_v19   ;;  %169 = vperm.xlu0 %8244, %v8670_v20  }
  0x2a   :  { %184 = vperm.xlu1 %8245, %v8677_v21   ;;  %179 = vperm.xlu0 %8244, %v8682_v22  }
  0x2e   :  { %194 = vperm.xlu1 %8245, %v8689_v23   ;;  %189 = vperm.xlu0 %8244, %v8694_v24  }
  0x32   :  { %204 = vperm.xlu1 %8245, %v8701_v25   ;;  %199 = vperm.xlu0 %8244, %v8706_v26  }
  0x36   :  { %214 = vperm.xlu1 %8245, %v8713_v27   ;;  %209 = vperm.xlu0 %8244, %v8718_v28  }
  0x3a   :  { %224 = vperm.xlu1 %8245, %v8725_v29   ;;  %219 = vperm.xlu0 %8244, %v8730_v30  }
  0x3e   :  { %234 = vperm.xlu1 %8245, %v8737_v31   ;;  %229 = vperm.xlu0 %8244, %v8742_v32  }
  0x42   :  { %244 = vperm.xlu1 %8245, %v8749_v33   ;;  %239 = vperm.xlu0 %8244, %v8754_v34  }
  0x46   :  { %254 = vperm.xlu1 %8245, %v8761_v35   ;;  %249 = vperm.xlu0 %8244, %v8766_v36  }
  0x4a   :  { %264 = vperm.xlu1 %8245, %v8773_v37   ;;  %259 = vperm.xlu0 %8244, %v8778_v38  }
  0x4e   :  { %274 = vperm.xlu1 %8245, %v8785_v39   ;;  %269 = vperm.xlu0 %8244, %v8790_v40  }
  0x52   :  { %284 = vperm.xlu1 %8245, %v8797_v41   ;;  %279 = vperm.xlu0 %8244, %v8802_v42  }
  0x56   :  { %294 = vperm.xlu1 %8245, %v8809_v43   ;;  %289 = vperm.xlu0 %8244, %v8814_v44  }
  0x5a   :  { %304 = vperm.xlu1 %8245, %v8821_v45   ;;  %299 = vperm.xlu0 %8244, %v8826_v46  }
  0x5e   :  { %314 = vperm.xlu1 %8245, %v8833_v47   ;;  %309 = vperm.xlu0 %8244, %v8838_v48  }
  0x62   :  { %324 = vperm.xlu1 %8245, %v8845_v49   ;;  %319 = vperm.xlu0 %8244, %v8850_v50  }
  0x66   :  { %334 = vperm.xlu1 %8245, %v8857_v51   ;;  %329 = vperm.xlu0 %8244, %v8862_v52  }
  0x6a   :  { %344 = vperm.xlu1 %8245, %v8869_v53   ;;  %339 = vperm.xlu0 %8244, %v8874_v54  }
  0x6e   :  { %354 = vperm.xlu1 %8245, %v8881_v55   ;;  %349 = vperm.xlu0 %8244, %v8886_v56  }
  0x72   :  { %364 = vperm.xlu1 %8245, %v8893_v57   ;;  %359 = vperm.xlu0 %8244, %v8898_v58  }
  0x76   :  { %374 = vperm.xlu1 %8245, %v8905_v59   ;;  %369 = vperm.xlu0 %8244, %v8910_v60  }
  0x7a   :  { %384 = vperm.xlu1 %8245, %v8917_v61   ;;  %379 = vperm.xlu0 %8244, %v8922_v62   ;;  %v8529_v61 = vmov 1  }
  0x7e   :  { %394 = vperm.xlu1 %8245, %v8929_v63   ;;  %389 = vperm.xlu0 %8244, %v8934_v2  }
  0x81   :  { %v8938_v59 = vpop.permute.xlu1 %89  ;;  %v8940_v60 = vpop.permute.xlu0 %79 }
  0x82   :  { %14701 = vst [vmem:[#allocation11_spill] sm:$0xff] %v8938_v59  ;;  %8247 = vset.pattern.permute.xlu1 %v8529_v61  ;;  %8246 = vset.pattern.permute.xlu0 %v8529_v61 }
  0x83   :  { %470 = vperm.xlu1 %8247, %v8574_v4   ;;  %466 = vperm.xlu0 %8246, %v8562_v1  }
  0x85   :  { %v8944_v62 = vpop.permute.xlu1 %94  ;;  %v8946_v57 = vpop.permute.xlu0 %84 }
  0x87   :  { %474 = vperm.xlu1 %8247, %v8557_v0   ;;  %478 = vperm.xlu0 %8246, %v8569_v3  }
  0x89   :  { %v8950_v63 = vpop.permute.xlu1 %104  ;;  %v8952_v59 = vpop.permute.xlu0 %99 }
  0x8b   :  { %482 = vperm.xlu1 %8247, %v8586_v6   ;;  %486 = vperm.xlu0 %8246, %v8581_v5  }
  0x8d   :  { %v8956_v61 = vpop.permute.xlu1 %114  ;;  %v8958_v4 = vpop.permute.xlu0 %109 }
  0x8f   :  { %490 = vperm.xlu1 %8247, %v8598_v8   ;;  %494 = vperm.xlu0 %8246, %v8593_v7  }
  0x91   :  { %v8962_v1 = vpop.permute.xlu1 %124  ;;  %v8964_v0 = vpop.permute.xlu0 %119 }
  0x93   :  { %498 = vperm.xlu1 %8247, %v8610_v10   ;;  %502 = vperm.xlu0 %8246, %v8605_v9  }
  0x95   :  { %v8968_v3 = vpop.permute.xlu1 %134  ;;  %v8970_v6 = vpop.permute.xlu0 %129 }
  0x97   :  { %506 = vperm.xlu1 %8247, %v8622_v12   ;;  %510 = vperm.xlu0 %8246, %v8617_v11  }
  0x99   :  { %v8974_v5 = vpop.permute.xlu1 %144  ;;  %v8976_v8 = vpop.permute.xlu0 %139 }
  0x9b   :  { %514 = vperm.xlu1 %8247, %v8634_v14   ;;  %518 = vperm.xlu0 %8246, %v8629_v13  }
  0x9d   :  { %v8980_v7 = vpop.permute.xlu1 %154  ;;  %v8982_v10 = vpop.permute.xlu0 %149 }
  0x9f   :  { %522 = vperm.xlu1 %8247, %v8646_v16   ;;  %526 = vperm.xlu0 %8246, %v8641_v15  }
  0xa1   :  { %v8986_v9 = vpop.permute.xlu1 %164  ;;  %v8988_v12 = vpop.permute.xlu0 %159 }
  0xa2   :  { %14702 = vst [vmem:[#allocation12_spill] sm:$0xff] %v8986_v9 }
  0xa3   :  { %530 = vperm.xlu1 %8247, %v8658_v18   ;;  %534 = vperm.xlu0 %8246, %v8653_v17  }
  0xa5   :  { %v8992_v11 = vpop.permute.xlu1 %174  ;;  %v8994_v14 = vpop.permute.xlu0 %169 }
  0xa6   :  { %14703 = vst [vmem:[#allocation13_spill] sm:$0xff] %v8992_v11  ;;  %14704 = vst [vmem:[#allocation14_spill] sm:$0xff] %v8994_v14 }
  0xa7   :  { %538 = vperm.xlu1 %8247, %v8670_v20   ;;  %542 = vperm.xlu0 %8246, %v8665_v19  }
  0xa9   :  { %v8998_v13 = vpop.permute.xlu1 %184  ;;  %v9000_v16 = vpop.permute.xlu0 %179 }
  0xaa   :  { %14705 = vst [vmem:[#allocation15_spill] sm:$0xff] %v8998_v13  ;;  %14706 = vst [vmem:[#allocation16_spill] sm:$0xff] %v9000_v16 }
  0xab   :  { %546 = vperm.xlu1 %8247, %v8682_v22   ;;  %550 = vperm.xlu0 %8246, %v8677_v21  }
  0xad   :  { %v9004_v15 = vpop.permute.xlu1 %194  ;;  %v9006_v18 = vpop.permute.xlu0 %189 }
  0xae   :  { %14707 = vst [vmem:[#allocation17_spill] sm:$0xff] %v9004_v15  ;;  %14708 = vst [vmem:[#allocation18_spill] sm:$0xff] %v9006_v18 }
  0xaf   :  { %554 = vperm.xlu1 %8247, %v8694_v24   ;;  %558 = vperm.xlu0 %8246, %v8689_v23  }
  0xb1   :  { %v9010_v17 = vpop.permute.xlu1 %204  ;;  %v9012_v20 = vpop.permute.xlu0 %199 }
  0xb2   :  { %14709 = vst [vmem:[#allocation19_spill] sm:$0xff] %v9010_v17  ;;  %14710 = vst [vmem:[#allocation20_spill] sm:$0xff] %v9012_v20 }
  0xb3   :  { %562 = vperm.xlu1 %8247, %v8706_v26   ;;  %566 = vperm.xlu0 %8246, %v8701_v25  }
  0xb5   :  { %v9016_v19 = vpop.permute.xlu1 %214  ;;  %v9018_v22 = vpop.permute.xlu0 %209 }
  0xb6   :  { %14711 = vst [vmem:[#allocation21_spill] sm:$0xff] %v9016_v19  ;;  %14712 = vst [vmem:[#allocation22_spill] sm:$0xff] %v9018_v22 }
  0xb7   :  { %570 = vperm.xlu1 %8247, %v8718_v28   ;;  %574 = vperm.xlu0 %8246, %v8713_v27  }
  0xb9   :  { %v9022_v21 = vpop.permute.xlu1 %224  ;;  %v9024_v24 = vpop.permute.xlu0 %219 }
  0xba   :  { %14713 = vst [vmem:[#allocation23_spill] sm:$0xff] %v9022_v21  ;;  %14714 = vst [vmem:[#allocation24_spill] sm:$0xff] %v9024_v24 }
  0xbb   :  { %578 = vperm.xlu1 %8247, %v8730_v30   ;;  %582 = vperm.xlu0 %8246, %v8725_v29  }
  0xbd   :  { %v9028_v23 = vpop.permute.xlu1 %234  ;;  %v9030_v26 = vpop.permute.xlu0 %229 }
  0xbe   :  { %14715 = vst [vmem:[#allocation25_spill] sm:$0xff] %v9028_v23  ;;  %14716 = vst [vmem:[#allocation26_spill] sm:$0xff] %v9030_v26 }
  0xbf   :  { %586 = vperm.xlu1 %8247, %v8742_v32   ;;  %590 = vperm.xlu0 %8246, %v8737_v31  }
  0xc1   :  { %v9034_v25 = vpop.permute.xlu1 %244  ;;  %v9036_v28 = vpop.permute.xlu0 %239 }
  0xc2   :  { %14717 = vst [vmem:[#allocation27_spill] sm:$0xff] %v9034_v25  ;;  %14718 = vst [vmem:[#allocation28_spill] sm:$0xff] %v9036_v28 }
  0xc3   :  { %594 = vperm.xlu1 %8247, %v8754_v34   ;;  %598 = vperm.xlu0 %8246, %v8749_v33  }
  0xc5   :  { %v9040_v27 = vpop.permute.xlu1 %254  ;;  %v9042_v30 = vpop.permute.xlu0 %249 }
  0xc6   :  { %14719 = vst [vmem:[#allocation29_spill] sm:$0xff] %v9040_v27  ;;  %14720 = vst [vmem:[#allocation30_spill] sm:$0xff] %v9042_v30 }
  0xc7   :  { %602 = vperm.xlu1 %8247, %v8766_v36   ;;  %606 = vperm.xlu0 %8246, %v8761_v35  }
  0xc9   :  { %v9046_v29 = vpop.permute.xlu1 %264  ;;  %v9048_v32 = vpop.permute.xlu0 %259 }
  0xca   :  { %14721 = vst [vmem:[#allocation31_spill] sm:$0xff] %v9046_v29  ;;  %14722 = vst [vmem:[#allocation32_spill] sm:$0xff] %v9048_v32  ;;  %v14693_v29 = vmov 1326507024  }
  0xcb   :  { %610 = vperm.xlu1 %8247, %v8778_v38   ;;  %614 = vperm.xlu0 %8246, %v8773_v37  }
  0xcd   :  { %v9052_v31 = vpop.permute.xlu1 %274  ;;  %v9054_v34 = vpop.permute.xlu0 %269 }
  0xce   :  { %14723 = vst [vmem:[#allocation33_spill] sm:$0xff] %v9052_v31  ;;  %14724 = vst [vmem:[#allocation34_spill] sm:$0xff] %v9054_v34 }
  0xcf   :  { %618 = vperm.xlu1 %8247, %v8790_v40   ;;  %622 = vperm.xlu0 %8246, %v8785_v39  }
  0xd1   :  { %v9058_v33 = vpop.permute.xlu1 %284  ;;  %v9060_v36 = vpop.permute.xlu0 %279 }
  0xd2   :  { %14725 = vst [vmem:[#allocation35_spill] sm:$0xff] %v9058_v33  ;;  %14726 = vst [vmem:[#allocation36_spill] sm:$0xff] %v9060_v36 }
  0xd3   :  { %626 = vperm.xlu1 %8247, %v8802_v42   ;;  %630 = vperm.xlu0 %8246, %v8797_v41  }
  0xd5   :  { %v9064_v35 = vpop.permute.xlu1 %294  ;;  %v9066_v38 = vpop.permute.xlu0 %289 }
  0xd6   :  { %14727 = vst [vmem:[#allocation37_spill] sm:$0xff] %v9064_v35  ;;  %14728 = vst [vmem:[#allocation38_spill] sm:$0xff] %v9066_v38 }
  0xd7   :  { %634 = vperm.xlu1 %8247, %v8814_v44   ;;  %638 = vperm.xlu0 %8246, %v8809_v43  }
  0xd9   :  { %v9070_v37 = vpop.permute.xlu1 %304  ;;  %v9072_v40 = vpop.permute.xlu0 %299 }
  0xda   :  { %14729 = vst [vmem:[#allocation39_spill] sm:$0xff] %v9070_v37  ;;  %14730 = vst [vmem:[#allocation40_spill] sm:$0xff] %v9072_v40 }
  0xdb   :  { %642 = vperm.xlu1 %8247, %v8826_v46   ;;  %646 = vperm.xlu0 %8246, %v8821_v45  }
  0xdd   :  { %v9076_v39 = vpop.permute.xlu1 %314  ;;  %v9078_v42 = vpop.permute.xlu0 %309 }
  0xde   :  { %14731 = vst [vmem:[#allocation41_spill] sm:$0xff] %v9076_v39  ;;  %14732 = vst [vmem:[#allocation42_spill] sm:$0xff] %v9078_v42 }
  0xdf   :  { %650 = vperm.xlu1 %8247, %v8838_v48   ;;  %654 = vperm.xlu0 %8246, %v8833_v47  }
  0xe1   :  { %v9082_v41 = vpop.permute.xlu1 %324  ;;  %v9084_v44 = vpop.permute.xlu0 %319 }
  0xe2   :  { %14733 = vst [vmem:[#allocation43_spill] sm:$0xff] %v9082_v41  ;;  %14734 = vst [vmem:[#allocation44_spill] sm:$0xff] %v9084_v44 }
  0xe3   :  { %658 = vperm.xlu1 %8247, %v8850_v50   ;;  %662 = vperm.xlu0 %8246, %v8845_v49  }
  0xe5   :  { %v9088_v43 = vpop.permute.xlu1 %334  ;;  %v9090_v46 = vpop.permute.xlu0 %329 }
  0xe6   :  { %14735 = vst [vmem:[#allocation45_spill] sm:$0xff] %v9088_v43  ;;  %14736 = vst [vmem:[#allocation46_spill] sm:$0xff] %v9090_v46  ;;  %v14751_v46 = vld [vmem:[#allocation8_spill] sm:$0xff] }
  0xe7   :  { %666 = vperm.xlu1 %8247, %v8862_v52   ;;  %670 = vperm.xlu0 %8246, %v8857_v51   ;;  %v397_v51 = vlaneseq }
  0xe9   :  { %v9094_v45 = vpop.permute.xlu1 %344  ;;  %v9096_v48 = vpop.permute.xlu0 %339 }
  0xea   :  { %14737 = vst [vmem:[#allocation47_spill] sm:$0xff] %v9094_v45  ;;  %14738 = vst [vmem:[#allocation48_spill] sm:$0xff] %v9096_v48  ;;  %v14743_v45 = vld [vmem:[#allocation5_spill] sm:$0xff]  ;;  %v14746_v48 = vld [vmem:[#allocation7_spill] sm:$0xff] }
  0xeb   :  { %674 = vperm.xlu1 %8247, %v8874_v54   ;;  %678 = vperm.xlu0 %8246, %v8869_v53  }
  0xed   :  { %v9100_v47 = vpop.permute.xlu1 %354  ;;  %v9102_v50 = vpop.permute.xlu0 %349 }
  0xee   :  { %14739 = vst [vmem:[#allocation49_spill] sm:$0xff] %v9100_v47  ;;  %14740 = vst [vmem:[#allocation50_spill] sm:$0xff] %v9102_v50  ;;  %v398_v47 = vshrl.u32 %v397_v51, 7  ;;  %v14747_v50 = vld [vmem:[#allocation6_spill] sm:$0xff] }
  0xef   :  { %682 = vperm.xlu1 %8247, %v8886_v56   ;;  %686 = vperm.xlu0 %8246, %v8881_v55  }
  0xf1   :  { %v9106_v49 = vpop.permute.xlu1 %364  ;;  %v9108_v52 = vpop.permute.xlu0 %359 }
  0xf2   :  { %14741 = vst [vmem:[#allocation51_spill] sm:$0xff] %v9106_v49  ;;  %14742 = vst [vmem:[#allocation52_spill] sm:$0xff] %v9108_v52  ;;  %v399_v49 = vsub.s32 0, %v398_v47  ;;  %v14750_v52 = vld [vmem:[#allocation9_spill] sm:$0xff] }
  0xf3   :  { %690 = vperm.xlu1 %8247, %v8898_v58   ;;  %694 = vperm.xlu0 %8246, %v14743_v45   ;;  %v723_v58 = vsub.s32 1, %v398_v47  ;;  %v76_v45 = vld [vmem:[%s14673_s1] sm:$0x7]  ;;  %s8536_s1 = smov [#allocation2]  }
  0xf4   :  { %s7710_s26 = sshll.u32 %s8536_s1, 4  ;;  %s7711_s26 = int_to_ptr.vmem [resolvable:$true] %s7710_s26 }
  0xf5   :  { %v9112_v54 = vpop.permute.xlu1 %374  ;;  %v9114_v53 = vpop.permute.xlu0 %369  ;;  %s8504_s27 = scalar_lea.vmem %s7711_s26, 8192  ;;  %p8509_p1 = scmp.lt.s32.totalorder %s7711_s26, %s7711_s26 }
  0xf6   :  { %14744 = vst [vmem:[#allocation5_spill] sm:$0xff] %v9112_v54  ;;  %14745 = vst [vmem:[#allocation53_spill] sm:$0xff] %v9114_v53  ;;  %p8505_p0 = scmp.ne.s32.totalorder %s7711_s26, %s8504_s27  ;;  %p8510_p2 = scmp.lt.s32.totalorder %s8504_s27, %s8504_s27 }
  0xf7   :  { %698 = vperm.xlu1 %8247, %v14746_v48   ;;  %702 = vperm.xlu0 %8246, %v14747_v50   ;;  %v855_v48 = vsub.s32 2, %v398_v47  ;;  %v9131_v50 = vrot.slane %v76_v45, %v399_v49 }
  0xf8   :  { %p8511_p3 = por %p8510_p2, %p8509_p1 }
  0xf9   :  { %v9118_v56 = vpop.permute.xlu1 %384  ;;  %v9120_v55 = vpop.permute.xlu0 %379  ;;  %v401_v43 = vmul.f32 %v9131_v50, %v8940_v60 }
  0xfa   :  { %14748 = vst [vmem:[#allocation7_spill] sm:$0xff] %v9118_v56  ;;  %14749 = vst [vmem:[#allocation6_spill] sm:$0xff] %v9120_v55  ;;  %v14754_v56 = vld [vmem:[#allocation10_spill] sm:$0xff]  ;;  %v9135_v55 = vrot.slane %v76_v45, %v723_v58  ;;  %p8512_p4 = pnand %p8511_p3, %p8505_p0 }
  0xfb   :  { %706 = vperm.xlu1 %8247, %v14750_v52   ;;  %710 = vperm.xlu0 %8246, %v14751_v46   ;;  %v9137_v52 = vrot.slane %v76_v45, %v855_v48  ;;  %v14755_v48 = vld [vmem:[#allocation11_spill] sm:$0xff] }
  0xfc   :  { %v403_v60 = vmul.f32 %v9131_v50, %v14755_v48 }
  0xfd   :  { %v9127_v53 = vpop.permute.xlu1 %394  ;;  %v9129_v51 = vpop.permute.xlu0 %389 }
  0xfe   :  { %14752 = vst [vmem:[#allocation9_spill] sm:$0xff] %v9127_v53  ;;  %14753 = vst [vmem:[#allocation8_spill] sm:$0xff] %v9129_v51  ;;  %v402_v53 = vmul.f32 %v9131_v50, %v8946_v57 }
  0xff   :  { %714 = vperm.xlu1 %8247, %v8934_v2   ;;  %718 = vperm.xlu0 %8246, %v14754_v56  }
 0x102   :  { %v471_v46 = vpop.permute.xlu1 %470  ;;  %v467_v54 = vpop.permute.xlu0 %466 }
 0x103   :  { %v726_v47 = vmul.f32 %v9135_v55, %v471_v46  ;;  %v725_v49 = vmul.f32 %v9135_v55, %v467_v54 }
 0x105   :  { %v790_v51 = vadd.f32 %v726_v47, %v402_v53  ;;  %v789_v2 = vadd.f32 %v725_v49, %v401_v43 }
 0x106   :  { %v475_v44 = vpop.permute.xlu1 %474 }
 0x107   :  { %v9146_v56 = vadd.f32 %v9137_v52, %v790_v51  ;;  %v9149_v58 = vadd.f32 %v9137_v52, %v789_v2  ;;  %v727_v45 = vmul.f32 %v9135_v55, %v475_v44  ;;  %v479_v2 = vpop.permute.xlu0 %478 }
 0x108   :  { %v728_v37 = vmul.f32 %v9135_v55, %v479_v2  ;;  %v14689_v2 = vmov 683565275  }
 0x109   :  { %v14682_v57 = vand.u32 2147483647, %v9146_v56  ;;  %v1028_v46 = vand.u32 2139095040, %v9146_v56  ;;  %v14681_v54 = vand.u32 2147483647, %v9149_v58  ;;  %v924_v43 = vand.u32 2139095040, %v9149_v58 }
 0x10a   :  { %v791_v47 = vadd.f32 %v727_v45, %v403_v60  ;;  %v404_v60 = vmul.f32 %v9131_v50, %v8944_v62  ;;  %vm1027_vm13 = vcmp.lt.s32.totalorder %v9146_v56, 0  ;;  %vm923_vm15 = vcmp.lt.s32.totalorder %v9149_v58, 0 }
 0x10b   :  { %v1029_v53 = vshrl.u32 %v1028_v46, 23  ;;  %v1032_v51 = vand.u32 8388607, %v14682_v57  ;;  %v925_v49 = vshrl.u32 %v924_v43, 23  ;;  %v928_v44 = vand.u32 8388607, %v14681_v54 }
 0x10c   :  { %v9163_v48 = vadd.f32 %v9137_v52, %v791_v47  ;;  %v9169_v35 = vadd.f32 %v728_v37, %v404_v60  ;;  %v14683_v37 = vmov 2131351028   ;;  %v14685_v60 = vmov 2102212464  }
 0x10d   :  { %v7725_v41 = vadd.s32 4294967169, %v1029_v53  ;;  %v7721_v42 = vadd.s32 4294967169, %v925_v49  ;;  %v1033_v40 = vor.u32 8388608, %v1032_v51  ;;  %v929_v38 = vor.u32 8388608, %v928_v44 }
 0x10e   :  { %v1132_v45 = vand.u32 2139095040, %v9163_v48 }
 0x10f   :  { %v1035_v39 = vadd.s32 1, %v7725_v41  ;;  %v931_v46 = vadd.s32 1, %v7721_v42  ;;  %v9171_v41 = vshll.u32 %v1033_v40, 8  ;;  %v9175_v51 = vshll.u32 %v929_v38, 8 }
 0x110   :  { %v1133_v54 = vshrl.u32 %v1132_v45, 23  ;;  %v14687_v45 = vmov 2475754826   ;;  %v14691_v38 = vmov 920167782  }
 0x111   :  { %vm1036_vm0 = vcmp.gt.s32.totalorder %v1035_v39, 0  ;;  %vm932_vm1 = vcmp.gt.s32.totalorder %v931_v46, 0 }
 0x112   :  { %v1037_v43 = vsel %vm1036_vm0, %v1035_v39, 0  ;;  %v933_v47 = vsel %vm932_vm1, %v931_v46, 0  ;;  %v9179_v33 = vadd.s32 4294967169, %v1133_v54 }
 0x113   :  { %v1038_v53 = vshrl.u32 %v1037_v43, 5  ;;  %v1039_v57 = vand.u32 31, %v1037_v43  ;;  %v9173_v49 = vshrl.u32 %v933_v47, 5  ;;  %v935_v39 = vand.u32 31, %v933_v47 }
 0x115   :  { %v1040_v44 = vsub.s32 32, %v1039_v57  ;;  %v1042_v62 = vshll.u32 %v14689_v2, %v1039_v57  ;;  %v1045_v46 = vshll.u32 %v14687_v45, %v1039_v57  ;;  %v1048_v40 = vshll.u32 %v14683_v37, %v1039_v57 }
 0x116   :  { %v1051_v43 = vshll.u32 %v14685_v60, %v1039_v57  ;;  %v1054_v36 = vshll.u32 %v14691_v38, %v1039_v57  ;;  %vm1057_vm2 = vcmp.lt.s32.totalorder %v1038_v53, 1  ;;  %vm1058_vm3 = vcmp.lt.s32.totalorder %v1038_v53, 2 }
 0x117   :  { %v1043_v42 = vshrl.u32 %v14687_v45, %v1040_v44  ;;  %v1046_v31 = vshrl.u32 %v14683_v37, %v1040_v44  ;;  %v1049_v47 = vshrl.u32 %v14685_v60, %v1040_v44  ;;  %v1041_v54 = vshrl.u32 %v14689_v2, %v1040_v44 }
 0x118   :  { %v1052_v34 = vshrl.u32 %v14691_v38, %v1040_v44  ;;  %v1055_v32 = vshrl.u32 %v14693_v29, %v1040_v44  ;;  %v936_v28 = vsub.s32 32, %v935_v39  ;;  %vm1059_vm4 = vcmp.lt.s32.totalorder %v1038_v53, 3 }
 0x119   :  { %v1044_v27 = vor.u32 %v1043_v42, %v1042_v62  ;;  %v1047_v30 = vor.u32 %v1046_v31, %v1045_v46  ;;  %v1050_v25 = vor.u32 %v1049_v47, %v1048_v40  ;;  %vm1060_vm5 = vcmp.lt.s32.totalorder %v1038_v53, 4 }
 0x11a   :  { %v1053_v57 = vor.u32 %v1052_v34, %v1051_v43  ;;  %v1056_v23 = vor.u32 %v1055_v32, %v1054_v36  ;;  %v14756_v44 = vmov 683565275   ;;  %v14757_v62 = vmov 2475754826  }
 0x11b   :  { %v1061_v37 = vsel %vm1057_vm2, %v1041_v54, %v1044_v27  ;;  %v1062_v60 = vsel %vm1060_vm5, %v1050_v25, 2102212464  ;;  %v1065_v45 = vsel %vm1057_vm2, %v1044_v27, %v1047_v30  ;;  %v1069_v2 = vsel %vm1057_vm2, %v1047_v30, %v1050_v25 }
 0x11c   :  { %v1063_v38 = vsel %vm1059_vm4, %v1047_v30, %v1062_v60  ;;  %v1066_v26 = vsel %vm1060_vm5, %v1053_v57, 920167782  ;;  %v1070_v21 = vsel %vm1060_vm5, %v1056_v23, 1326507024  ;;  %v938_v29 = vshll.u32 %v14756_v44, %v935_v39 }
 0x11d   :  { %v1067_v42 = vsel %vm1059_vm4, %v1050_v25, %v1066_v26  ;;  %v1071_v31 = vsel %vm1059_vm4, %v1053_v57, %v1070_v21  ;;  %v939_v46 = vshrl.u32 %v14757_v62, %v936_v28  ;;  %v941_v32 = vshll.u32 %v14757_v62, %v935_v39 }
 0x11e   :  { %v1064_v34 = vsel %vm1058_vm3, %v1061_v37, %v1063_v38  ;;  %v1068_v36 = vsel %vm1058_vm3, %v1065_v45, %v1067_v42  ;;  %v1072_v40 = vsel %vm1058_vm3, %v1069_v2, %v1071_v31  ;;  %v14758_v27 = vmov 2131351028  }
 0x11f   :  { %v942_v43 = vshrl.u32 %v14758_v27, %v936_v28  ;;  %v9202_v30 = vmul.u32.u64.low %v9171_v41, %v1072_v40  ;;  %v9203_v60 = vmul.u32.u64.high %v9171_v41, %v1072_v40, %v9202_v30  ;;  %v940_v21 = vor.u32 %v939_v46, %v938_v29 }
 0x120   :  { %v9206_v23 = vmul.u32.u64.low %v9171_v41, %v1068_v36  ;;  %v9207_v26 = vmul.u32.u64.high %v9171_v41, %v1068_v36, %v9206_v23  ;;  %v944_v47 = vshll.u32 %v14758_v27, %v935_v39  ;;  %v14759_v37 = vmov 2102212464  }
 0x121   :  { %v943_v25 = vor.u32 %v942_v43, %v941_v32  ;;  %v945_v38 = vshrl.u32 %v14759_v37, %v936_v28  ;;  %v937_v53 = vshrl.u32 %v14756_v44, %v936_v28  ;;  %v947_v2 = vshll.u32 %v14759_v37, %v935_v39 }
 0x122   :  { %v14760_v45 = vmov 920167782   ;;  %v14761_v57 = vmov 1326507024   ;;  %v1080_v31 = vmul.u32 %v9171_v41, %v1064_v34  ;;  %vm953_vm6 = vcmp.lt.s32.totalorder %v9173_v49, 1 }
 0x123   :  { %v948_v54 = vshrl.u32 %v14760_v45, %v936_v28  ;;  %v951_v42 = vshrl.u32 %v14761_v57, %v936_v28  ;;  %v946_v40 = vor.u32 %v945_v38, %v944_v47  ;;  %v950_v36 = vshll.u32 %v14760_v45, %v935_v39 }
 0x124   :  { %vm1082_vm7 = vc.u32 %v9203_v60, %v9206_v23  ;;  %v1083_v29 = vadd.s32 1, %v9207_v26  ;;  %vm954_vm8 = vcmp.lt.s32.totalorder %v9173_v49, 2  ;;  %vm955_vm9 = vcmp.lt.s32.totalorder %v9173_v49, 3 }
 0x125   :  { %v949_v46 = vor.u32 %v948_v54, %v947_v2  ;;  %v952_v32 = vor.u32 %v951_v42, %v950_v36  ;;  %vm956_vm10 = vcmp.lt.s32.totalorder %v9173_v49, 4  ;;  %v961_v28 = vsel %vm953_vm6, %v940_v21, %v943_v25 }
 0x126   :  { %v1084_v41 = vsel %vm1082_vm7, %v1083_v29, %v9207_v26  ;;  %v958_v34 = vsel %vm956_vm10, %v946_v40, 2102212464  ;;  %v965_v43 = vsel %vm953_vm6, %v943_v25, %v946_v40  ;;  %v957_v47 = vsel %vm953_vm6, %v937_v53, %v940_v21 }
 0x127   :  { %v962_v39 = vsel %vm956_vm10, %v949_v46, 920167782  ;;  %v1085_v30 = vadd.s32 %v1084_v41, %v1080_v31  ;;  %v966_v24 = vsel %vm956_vm10, %v952_v32, 1326507024  ;;  %v959_v19 = vsel %vm955_vm9, %v943_v25, %v958_v34  ;;  %v483_v34 = vpop.permute.xlu1 %482 }
 0x128   :  { %v963_v38 = vsel %vm955_vm9, %v946_v40, %v962_v39  ;;  %v967_v54 = vsel %vm955_vm9, %v949_v46, %v966_v24  ;;  %v1139_v42 = vadd.s32 1, %v9179_v33  ;;  %v14762_v25 = vand.u32 2147483647, %v9163_v48 }
 0x129   :  { %v964_v2 = vsel %vm954_vm8, %v961_v28, %v963_v38  ;;  %v1086_v36 = vadd.s32 536870912, %v1085_v30  ;;  %v968_v22 = vsel %vm954_vm8, %v965_v43, %v967_v54  ;;  %v960_v33 = vsel %vm954_vm8, %v957_v47, %v959_v19  ;;  %v487_v38 = vpop.permute.xlu0 %486 }
 0x12a   :  { %v9232_v26 = vmul.u32.u64.low %v9175_v51, %v964_v2  ;;  %v9233_v29 = vmul.u32.u64.high %v9175_v51, %v964_v2, %v9232_v26  ;;  %v9237_v21 = vmul.u32.u64.low %v9175_v51, %v968_v22  ;;  %v9238_v53 = vmul.u32.u64.high %v9175_v51, %v968_v22, %v9237_v21 }
 0x12b   :  { %v1136_v31 = vand.u32 8388607, %v14762_v25  ;;  %vm1140_vm11 = vcmp.gt.s32.totalorder %v1139_v42, 0  ;;  %v1087_v24 = vshrl.u32 %v1086_v36, 30  ;;  %v9247_v41 = vadd.f32 %v9137_v52, %v9169_v35 }
 0x12c   :  { %v1141_v40 = vsel %vm1140_vm11, %v1139_v42, 0  ;;  %v979_v28 = vadd.s32 1, %v9233_v29  ;;  %v976_v22 = vmul.u32 %v9175_v51, %v960_v33  ;;  %vm978_vm12 = vc.u32 %v9238_v53, %v9232_v26 }
 0x12d   :  { %v1143_v46 = vand.u32 31, %v1141_v40  ;;  %v1088_v32 = vshll.u32 %v1087_v24, 30  ;;  %v1137_v39 = vor.u32 8388608, %v1136_v31  ;;  %v9254_v19 = vmul.f32 %v9131_v50, %v8952_v59 }
 0x12e   :  { %v980_v35 = vsel %vm978_vm12, %v979_v28, %v9233_v29  ;;  %v14763_v47 = vand.u32 2147483647, %v9146_v56  ;;  %v1111_v2 = vsub.s32 4, %v1087_v24  ;;  %v9267_v42 = vmul.f32 %v9135_v55, %v483_v34 }
 0x12f   :  { %v1144_v43 = vsub.s32 32, %v1143_v46  ;;  %v9257_v49 = vsub.s32 %v1085_v30, %v1088_v32  ;;  %v981_v54 = vadd.s32 %v980_v35, %v976_v22  ;;  %v1081_v59 = vadd.s32 %v9206_v23, %v9203_v60 }
 0x130   :  { %vm9262_vm14 = vcmp.le.f32.partialorder %v14763_v47, 0.7853982  ;;  %v9274_v29 = vmul.f32 %v9135_v55, %v487_v38  ;;  %v9277_v31 = vshll.u32 %v1137_v39, 8  ;;  %v1236_v33 = vand.u32 2139095040, %v9247_v41 }
 0x131   :  { %v1091_v36 = vsub.s32 0, %v9257_v49  ;;  %v982_v21 = vadd.s32 536870912, %v981_v54  ;;  %v1147_v25 = vshrl.u32 %v14757_v62, %v1144_v43  ;;  %v9281_v28 = vshrl.u32 %v1141_v40, 5 }
 0x132   :  { %v1150_v60 = vshrl.u32 %v14758_v27, %v1144_v43  ;;  %v1153_v23 = vshrl.u32 %v14759_v37, %v1144_v43  ;;  %v9287_v34 = vsel %vm1027_vm13, %v1111_v2, %v1087_v24  ;;  %v1146_v38 = vshll.u32 %v14756_v44, %v1143_v46 }
 0x133   :  { %v7726_v32 = vmin.u32 %v1091_v36, %v9257_v49  ;;  %v983_v22 = vshrl.u32 %v982_v21, 30  ;;  %v1156_v39 = vshrl.u32 %v14760_v45, %v1144_v43  ;;  %v1149_v47 = vshll.u32 %v14757_v62, %v1143_v46 }
 0x134   :  { %v1152_v36 = vshll.u32 %v14758_v27, %v1143_v46  ;;  %v1159_v40 = vshrl.u32 %v14761_v57, %v1144_v43  ;;  %v1148_v17 = vor.u32 %v1147_v25, %v1146_v38  ;;  %v1155_v20 = vshll.u32 %v14759_v37, %v1143_v46 }
 0x135   :  { %v1093_v35 = vclz %v7726_v32  ;;  %v984_v30 = vshll.u32 %v983_v22, 30  ;;  %v1237_v15 = vshrl.u32 %v1236_v33, 23  ;;  %v1151_v24 = vor.u32 %v1150_v60, %v1149_v47 }
 0x136   :  { %v1154_v2 = vor.u32 %v1153_v23, %v1152_v36  ;;  %v1158_v21 = vshll.u32 %v14760_v45, %v1143_v46  ;;  %v1114_v32 = vsel %vm9262_vm14, 0, %v9287_v34  ;;  %v1145_v16 = vshrl.u32 %v14756_v44, %v1144_v43 }
 0x137   :  { %v7727_v18 = vadd.s32 4294967294, %v1093_v35  ;;  %v9300_v13 = vsub.s32 %v981_v54, %v984_v30  ;;  %v1157_v11 = vor.u32 %v1156_v39, %v1155_v20  ;;  %v1007_v25 = vsub.s32 4, %v983_v22 }
 0x138   :  { %v1160_v38 = vor.u32 %v1159_v40, %v1158_v21  ;;  %vm1161_vm1 = vcmp.lt.s32.totalorder %v9281_v28, 1  ;;  %vm1163_vm2 = vcmp.lt.s32.totalorder %v9281_v28, 3  ;;  %vm1164_vm3 = vcmp.lt.s32.totalorder %v9281_v28, 4 }
 0x139   :  { %vm7728_vm0 = vcmp.lt.s32.totalorder %v7727_v18, 0  ;;  %v987_v60 = vsub.s32 0, %v9300_v13  ;;  %v14766_v54 = vand.u32 2147483647, %v9149_v58  ;;  %v1166_v20 = vsel %vm1164_vm3, %v1154_v2, 2102212464 }
 0x13a   :  { %v1096_v33 = vsel %vm7728_vm0, 0, %v7727_v18  ;;  %v1169_v43 = vsel %vm1161_vm1, %v1148_v17, %v1151_v24  ;;  %v1170_v39 = vsel %vm1164_vm3, %v1157_v11, 920167782  ;;  %v1173_v35 = vsel %vm1161_vm1, %v1151_v24, %v1154_v2 }
 0x13b   :  { %v1097_v46 = vsub.s32 32, %v1096_v33  ;;  %v1101_v23 = vsub.s32 4294967266, %v1096_v33  ;;  %vm9309_vm4 = vcmp.le.f32.partialorder %v14766_v54, 0.7853982  ;;  %v1098_v18 = vshll.u32 %v9257_v49, %v1096_v33 }
 0x13c   :  { %v7722_v34 = vmin.u32 %v987_v60, %v9300_v13  ;;  %v1171_v40 = vsel %vm1163_vm2, %v1154_v2, %v1170_v39  ;;  %v1174_v21 = vsel %vm1164_vm3, %v1160_v38, 1326507024  ;;  %vm1162_vm5 = vcmp.lt.s32.totalorder %v9281_v28, 2 }
 0x13d   :  { %v1099_v47 = vshrl.u32 %v1081_v59, %v1097_v46  ;;  %v1102_v36 = vadd.s32 127, %v1101_v23  ;;  %v1165_v14 = vsel %vm1161_vm1, %v1145_v16, %v1148_v17  ;;  %v1167_v49 = vsel %vm1163_vm2, %v1151_v24, %v1166_v20 }
 0x13e   :  { %v989_v54 = vclz %v7722_v34  ;;  %v1172_v9 = vsel %vm1162_vm5, %v1169_v43, %v1171_v40  ;;  %v1175_v59 = vsel %vm1163_vm2, %v1157_v11, %v1174_v21  ;;  %v1008_v39 = vsel %vm923_vm15, %v1007_v25, %v983_v22 }
 0x13f   :  { %v1100_v33 = vor.u32 %v1099_v47, %v1098_v18  ;;  %v1103_v60 = vshll.u32 %v1102_v36, 23  ;;  %v1176_v23 = vsel %vm1162_vm5, %v1173_v35, %v1175_v59  ;;  %v977_v24 = vadd.s32 %v9232_v26, %v9238_v53 }
 0x140   :  { %v7723_v46 = vadd.s32 4294967294, %v989_v54  ;;  %v9329_v2 = vmul.u32.u64.low %v9277_v31, %v1172_v9  ;;  %v9330_v38 = vmul.u32.u64.high %v9277_v31, %v1172_v9, %v9329_v2  ;;  %v1168_v28 = vsel %vm1162_vm5, %v1165_v14, %v1167_v49 }
 0x141   :  { %v1104_v34 = vor.u32 4788187, %v1103_v60  ;;  %v9335_v16 = vmul.u32.u64.low %v9277_v31, %v1176_v23  ;;  %v9336_v17 = vmul.u32.u64.high %v9277_v31, %v1176_v23, %v9335_v16  ;;  %v7733_v11 = vadd.s32 4294967169, %v1237_v15 }
 0x142   :  { %vm7724_vm6 = vcmp.lt.s32.totalorder %v7723_v46, 0  ;;  %v1107_v43 = vcvt.s32.f32 %v1100_v33  ;;  %v1118_v18 = vadd.s32 3, %v1114_v32  ;;  %v1010_v36 = vsel %vm9309_vm4, 0, %v1008_v39 }
 0x143   :  { %v1105_v20 = vand.u32 2147483647, %v1104_v34  ;;  %v992_v35 = vsel %vm7724_vm6, 0, %v7723_v46  ;;  %v1187_v22 = vadd.s32 1, %v9330_v38  ;;  %v1184_v40 = vmul.u32 %v9277_v31, %v1168_v28 }
 0x144   :  { %v993_v9 = vsub.s32 32, %v992_v35  ;;  %v997_v47 = vsub.s32 4294967266, %v992_v35  ;;  %vm1186_vm7 = vc.u32 %v9336_v17, %v9329_v2  ;;  %v1243_v26 = vadd.s32 1, %v7733_v11 }
 0x145   :  { %v1108_v25 = vmul.f32 %v1107_v43, %v1105_v20  ;;  %v994_v14 = vshll.u32 %v9300_v13, %v992_v35  ;;  %v1188_v32 = vsel %vm1186_vm7, %v1187_v22, %v9330_v38  ;;  %v14769_v49 = vand.u32 2147483647, %v9247_v41 }
 0x146   :  { %v995_v15 = vshrl.u32 %v977_v24, %v993_v9  ;;  %v998_v53 = vadd.s32 127, %v997_v47  ;;  %v1189_v54 = vadd.s32 %v1188_v32, %v1184_v40  ;;  %vm1244_vm8 = vcmp.gt.s32.totalorder %v1243_v26, 0 }
 0x147   :  { %v1109_v21 = vxor.u32 2147483648, %v1108_v25  ;;  %v1240_v33 = vand.u32 8388607, %v14769_v49  ;;  %v1014_v46 = vadd.s32 3, %v1010_v36  ;;  %v1245_v23 = vsel %vm1244_vm8, %v1243_v26, 0 }
 0x148   :  { %v996_v60 = vor.u32 %v995_v15, %v994_v14  ;;  %v999_v59 = vshll.u32 %v998_v53, 23  ;;  %v1190_v34 = vadd.s32 536870912, %v1189_v54  ;;  %v1247_v39 = vand.u32 31, %v1245_v23 }
 0x149   :  { %v1110_v31 = vsel %vm1027_vm13, %v1109_v21, %v1108_v25  ;;  %v793_v13 = vadd.f32 %v9267_v42, %v9254_v19  ;;  %v406_v38 = vmul.f32 %v9131_v50, %v8950_v63  ;;  %v9358_v24 = vand.u32 3, %v1118_v18 }
 0x14a   :  { %v1113_v16 = vsel %vm9262_vm14, %v9146_v56, %v1110_v31  ;;  %v1000_v28 = vor.u32 4788187, %v999_v59  ;;  %v9360_v11 = vshrl.u32 %v1190_v34, 30  ;;  %v1241_v20 = vor.u32 8388608, %v1240_v33 }
 0x14b   :  { %8248 = vcosq.f32 %v1113_v16  ;;  %v1248_v43 = vsub.s32 32, %v1247_v39  ;;  %v1003_v9 = vcvt.s32.f32 %v996_v60  ;;  %v9362_v47 = vand.u32 3, %v1014_v46 }
 0x14c   :  { %8250 = vsinq.f32 %v1113_v16  ;;  %v1001_v35 = vand.u32 2147483647, %v1000_v28  ;;  %v1192_v19 = vshll.u32 %v9360_v11, 30  ;;  %v9367_v51 = vadd.f32 %v9137_v52, %v793_v13 }
 0x14d   :  { %v1251_v63 = vshrl.u32 %v14757_v62, %v1248_v43  ;;  %v9370_v42 = vadd.f32 %v9274_v29, %v406_v38  ;;  %v9373_v36 = vadd.s32 %v9329_v2, %v9336_v17  ;;  %v1254_v22 = vshrl.u32 %v14758_v27, %v1248_v43 }
 0x14e   :  { %v1004_v18 = vmul.f32 %v1003_v9, %v1001_v35  ;;  %v1257_v25 = vshrl.u32 %v14759_v37, %v1248_v43  ;;  %vm1124_vm9 = vcmp.eq.s32.totalorder %v9358_v24, 2  ;;  %v9378_v40 = vsub.s32 %v1189_v54, %v1192_v19 }
 0x14f   :  { %v1250_v26 = vshll.u32 %v14756_v44, %v1247_v39  ;;  %v1260_v14 = vshrl.u32 %v14760_v45, %v1248_v43  ;;  %v9382_v15 = vshll.u32 %v1241_v20, 8  ;;  %vm1121_vm10 = vcmp.eq.s32.totalorder %v9358_v24, 0 }
 0x150   :  { %v1005_v29 = vxor.u32 2147483648, %v1004_v18  ;;  %v9385_v53 = vshrl.u32 %v1245_v23, 5  ;;  %v1253_v2 = vshll.u32 %v14757_v62, %v1247_v39  ;;  %v1256_v17 = vshll.u32 %v14758_v27, %v1247_v39 }
 0x151   :  { %vm1120_vm11 = vcmp.lt.s32.totalorder %v9358_v24, 2  ;;  %v1195_v32 = vsub.s32 0, %v9378_v40  ;;  %v1252_v21 = vor.u32 %v1251_v63, %v1250_v26  ;;  %v1259_v54 = vshll.u32 %v14759_v37, %v1247_v39 }
 0x152   :  { %v1337_v49 = vand.u32 2147483647, %v9367_v51  ;;  %vm1117_vm12 = vweird.f32 %v9146_v56  ;;  %v1006_v33 = vsel %vm923_vm15, %v1005_v29, %v1004_v18  ;;  %v1255_v60 = vor.u32 %v1254_v22, %v1253_v2 }
 0x153   :  { %v1258_v59 = vor.u32 %v1257_v25, %v1256_v17  ;;  %v1263_v46 = vshrl.u32 %v14761_v57, %v1248_v43  ;;  %v1009_v23 = vsel %vm9309_vm4, %v9149_v58, %v1006_v33  ;;  %v7730_v31 = vmin.u32 %v1195_v32, %v9378_v40 }
 0x154   :  { %v1261_v34 = vor.u32 %v1260_v14, %v1259_v54  ;;  %v1262_v13 = vshll.u32 %v14760_v45, %v1247_v39  ;;  %8252 = vcosq.f32 %v1009_v23  ;;  %v1215_v38 = vsub.s32 4, %v9360_v11 }
 0x155   :  { %v1249_v16 = vshrl.u32 %v14756_v44, %v1248_v43  ;;  %vm1265_vm13 = vcmp.lt.s32.totalorder %v9385_v53, 1  ;;  %v8249_v28 = vpop.eup %8248  ;;  %8254 = vsinq.f32 %v1009_v23  ;;  %vm1131_vm14 = vcmp.lt.s32.totalorder %v9163_v48, 0 }
 0x156   :  { %v1197_v20 = vclz %v7730_v31  ;;  %v1264_v35 = vor.u32 %v1263_v46, %v1262_v13  ;;  %vm1266_vm15 = vcmp.lt.s32.totalorder %v9385_v53, 2  ;;  %v8251_v30 = vpop.eup %8250  ;;  %v1125_v9 = vxor.u32 2147483648, %v8249_v28 }
 0x157   :  { %vm1267_vm0 = vcmp.lt.s32.totalorder %v9385_v53, 3  ;;  %vm1268_vm1 = vcmp.lt.s32.totalorder %v9385_v53, 4  ;;  %v1273_v39 = vsel %vm1265_vm13, %v1252_v21, %v1255_v60  ;;  %v1122_v43 = vxor.u32 2147483648, %v8251_v30 }
 0x158   :  { %v7731_v19 = vadd.s32 4294967294, %v1197_v20  ;;  %v1270_v63 = vsel %vm1268_vm1, %v1258_v59, 2102212464  ;;  %v1274_v18 = vsel %vm1268_vm1, %v1261_v34, 920167782  ;;  %v1126_v22 = vsel %vm1124_vm9, %v1125_v9, %v8251_v30 }
 0x159   :  { %v14770_v25 = vand.u32 2147483647, %v9163_v48  ;;  %v1269_v14 = vsel %vm1265_vm13, %v1249_v16, %v1252_v21  ;;  %v1275_v29 = vsel %vm1267_vm0, %v1258_v59, %v1274_v18  ;;  %v1277_v2 = vsel %vm1265_vm13, %v1255_v60, %v1258_v59 }
 0x15a   :  { %v1123_v17 = vsel %vm1121_vm10, %v8249_v28, %v1122_v43  ;;  %vm7732_vm3 = vcmp.lt.s32.totalorder %v7731_v19, 0  ;;  %v1276_v32 = vsel %vm1266_vm15, %v1273_v39, %v1275_v29  ;;  %v1278_v54 = vsel %vm1268_vm1, %v1264_v35, 1326507024 }
 0x15b   :  { %vm9415_vm2 = vcmp.le.f32.partialorder %v14770_v25, 0.7853982  ;;  %v1127_v33 = vsel %vm1120_vm11, %v1123_v17, %v1126_v22  ;;  %vm1016_vm4 = vcmp.lt.s32.totalorder %v9362_v47, 2  ;;  %v1200_v21 = vsel %vm7732_vm3, 0, %v7731_v19 }
 0x15c   :  { %v1271_v46 = vsel %vm1267_vm0, %v1255_v60, %v1270_v63  ;;  %v1279_v59 = vsel %vm1267_vm0, %v1261_v34, %v1278_v54  ;;  %v1128_v23 = vsel %vm1117_vm12, nan, %v1127_v33  ;;  %vm1013_vm5 = vweird.f32 %v9149_v58 }
 0x15d   :  { %v1201_v31 = vsub.s32 32, %v1200_v21  ;;  %v1202_v13 = vshll.u32 %v9378_v40, %v1200_v21  ;;  %v1205_v16 = vsub.s32 4294967266, %v1200_v21  ;;  %v7578_v24 = vmul.f32 1000.0, %v1128_v23 }
 0x15e   :  { %v1280_v28 = vsel %vm1266_vm15, %v1277_v2, %v1279_v59  ;;  %v9443_v20 = vmul.u32.u64.low %v9382_v15, %v1276_v32  ;;  %v9444_v35 = vmul.u32.u64.high %v9382_v15, %v1276_v32, %v9443_v20  ;;  %v8253_v9 = vpop.eup %8252  ;;  %vm1017_vm6 = vcmp.eq.s32.totalorder %v9362_v47, 0 }
 0x15f   :  { %v1203_v60 = vshrl.u32 %v9373_v36, %v1201_v31  ;;  %v1206_v34 = vadd.s32 127, %v1205_v16  ;;  %v9448_v56 = vmul.u32.u64.low %v9382_v15, %v1280_v28  ;;  %v9449_v30 = vmul.u32.u64.high %v9382_v15, %v1280_v28, %v9448_v56  ;;  %7642 = vst [vmem:[#allocation2 + $0x8] sm:$0xff] %v7578_v24  ;;  %v8255_v43 = vpop.eup %8254 }
 0x160   :  { %vm1020_vm7 = vcmp.eq.s32.totalorder %v9362_v47, 2  ;;  %v1216_v40 = vsel %vm1131_vm14, %v1215_v38, %v9360_v11  ;;  %v1340_v39 = vand.u32 2139095040, %v9367_v51  ;;  %v1021_v19 = vxor.u32 2147483648, %v8253_v9 }
 0x161   :  { %v1204_v36 = vor.u32 %v1203_v60, %v1202_v13  ;;  %v1207_v63 = vshll.u32 %v1206_v34, 23  ;;  %v1272_v18 = vsel %vm1266_vm15, %v1269_v14, %v1271_v46  ;;  %v1018_v22 = vxor.u32 2147483648, %v8255_v43 }
 0x162   :  { %v1291_v25 = vadd.s32 1, %v9444_v35  ;;  %v1341_v29 = vshrl.u32 %v1340_v39, 23  ;;  %v9462_v2 = vadd.f32 %v9137_v52, %v9370_v42  ;;  %v1022_v17 = vsel %vm1020_vm7, %v1021_v19, %v8255_v43 }
 0x163   :  { %v1208_v32 = vor.u32 4788187, %v1207_v63  ;;  %v1218_v11 = vsel %vm9415_vm2, 0, %v1216_v40  ;;  %v1344_v38 = vand.u32 8388607, %v1337_v49  ;;  %v1019_v53 = vsel %vm1017_vm6, %v8253_v9, %v1018_v22 }
 0x164   :  { %v1288_v14 = vmul.u32 %v9382_v15, %v1272_v18  ;;  %vm1290_vm8 = vc.u32 %v9449_v30, %v9443_v20  ;;  %v7737_v54 = vadd.s32 4294967169, %v1341_v29  ;;  %v1023_v42 = vsel %vm1016_vm4, %v1019_v53, %v1022_v17 }
 0x165   :  { %v1209_v33 = vand.u32 2147483647, %v1208_v32  ;;  %v1211_v21 = vcvt.s32.f32 %v1204_v36  ;;  %v1292_v46 = vsel %vm1290_vm8, %v1291_v25, %v9444_v35  ;;  %v1024_v59 = vsel %vm1013_vm5, nan, %v1023_v42 }
 0x166   :  { %v1293_v23 = vadd.s32 %v1292_v46, %v1288_v14  ;;  %v1347_v31 = vadd.s32 1, %v7737_v54  ;;  %v7577_v13 = vmul.f32 1000.0, %v1024_v59  ;;  %v1222_v24 = vadd.s32 3, %v1218_v11  ;;  %v491_v14 = vpop.permute.xlu1 %490 }
 0x167   :  { %v1212_v16 = vmul.f32 %v1211_v21, %v1209_v33  ;;  %v1345_v28 = vor.u32 8388608, %v1344_v38  ;;  %v1444_v47 = vand.u32 2139095040, %v9462_v2  ;;  %v14773_v56 = vand.u32 2147483647, %v9247_v41 }
 0x168   :  { %v1294_v15 = vadd.s32 536870912, %v1293_v23  ;;  %vm1348_vm9 = vcmp.gt.s32.totalorder %v1347_v31, 0  ;;  %7641 = vst [vmem:[#allocation2] sm:$0xff] %v7577_v13  ;;  %vm1235_vm11 = vcmp.lt.s32.totalorder %v9247_v41, 0  ;;  %v9487_v39 = vand.u32 3, %v1222_v24 }
 0x169   :  { %v1213_v60 = vxor.u32 2147483648, %v1212_v16  ;;  %v1349_v34 = vsel %vm1348_vm9, %v1347_v31, 0  ;;  %vm9480_vm10 = vcmp.le.f32.partialorder %v14773_v56, 0.7853982  ;;  %v9490_v43 = vadd.s32 %v9443_v20, %v9449_v30 }
 0x16a   :  { %v1295_v58 = vshrl.u32 %v1294_v15, 30  ;;  %v1351_v9 = vand.u32 31, %v1349_v34  ;;  %v9492_v19 = vshll.u32 %v1345_v28, 8  ;;  %v1350_v25 = vshrl.u32 %v1349_v34, 5 }
 0x16b   :  { %v1214_v40 = vsel %vm1131_vm14, %v1213_v60, %v1212_v16  ;;  %v1441_v29 = vand.u32 2147483647, %v9462_v2  ;;  %v1445_v17 = vshrl.u32 %v1444_v47, 23  ;;  %vm1228_vm12 = vcmp.eq.s32.totalorder %v9487_v39, 2 }
 0x16c   :  { %v1217_v36 = vsel %vm9415_vm2, %v9163_v48, %v1214_v40  ;;  %v1296_v63 = vshll.u32 %v1295_v58, 30  ;;  %v1319_v18 = vsub.s32 4, %v1295_v58  ;;  %v1352_v22 = vsub.s32 32, %v1351_v9 }
 0x16d   :  { %8256 = vcosq.f32 %v1217_v36  ;;  %v1354_v20 = vshll.u32 %v14756_v44, %v1351_v9  ;;  %v1357_v30 = vshll.u32 %v14757_v62, %v1351_v9  ;;  %v1360_v38 = vshll.u32 %v14758_v27, %v1351_v9 }
 0x16e   :  { %8258 = vsinq.f32 %v1217_v36  ;;  %v9498_v32 = vsub.s32 %v1293_v23, %v1296_v63  ;;  %v1355_v11 = vshrl.u32 %v14757_v62, %v1352_v22  ;;  %v1358_v26 = vshrl.u32 %v14758_v27, %v1352_v22 }
 0x16f   :  { %v1361_v53 = vshrl.u32 %v14759_v37, %v1352_v22  ;;  %v9509_v42 = vsel %vm1235_vm11, %v1319_v18, %v1295_v58  ;;  %v1363_v33 = vshll.u32 %v14759_v37, %v1351_v9  ;;  %v1364_v21 = vshrl.u32 %v14760_v45, %v1352_v22 }
 0x170   :  { %v1299_v54 = vsub.s32 0, %v9498_v32  ;;  %v1356_v46 = vor.u32 %v1355_v11, %v1354_v20  ;;  %v1359_v59 = vor.u32 %v1358_v26, %v1357_v30  ;;  %v9516_v31 = vand.u32 8388607, %v1441_v29 }
 0x171   :  { %v1362_v23 = vor.u32 %v1361_v53, %v1360_v38  ;;  %vm1225_vm13 = vcmp.eq.s32.totalorder %v9487_v39, 0  ;;  %v1365_v16 = vor.u32 %v1364_v21, %v1363_v33  ;;  %v1367_v24 = vshrl.u32 %v14761_v57, %v1352_v22 }
 0x172   :  { %v7734_v13 = vmin.u32 %v1299_v54, %v9498_v32  ;;  %v731_v28 = vmul.f32 %v9135_v55, %v491_v14  ;;  %vm1224_vm14 = vcmp.lt.s32.totalorder %v9487_v39, 2  ;;  %v1322_v15 = vsel %vm9480_vm10, 0, %v9509_v42 }
 0x173   :  { %v1353_v60 = vshrl.u32 %v14756_v44, %v1352_v22  ;;  %v1366_v34 = vshll.u32 %v14760_v45, %v1351_v9  ;;  %v7741_v47 = vadd.s32 4294967169, %v1445_v17  ;;  %vm1221_vm15 = vweird.f32 %v9163_v48 }
 0x174   :  { %v1301_v56 = vclz %v7734_v13  ;;  %vm1369_vm0 = vcmp.lt.s32.totalorder %v1350_v25, 1  ;;  %vm1371_vm1 = vcmp.lt.s32.totalorder %v1350_v25, 3  ;;  %vm1372_vm2 = vcmp.lt.s32.totalorder %v1350_v25, 4 }
 0x175   :  { %v1368_v58 = vor.u32 %v1367_v24, %v1366_v34  ;;  %v1373_v40 = vsel %vm1369_vm0, %v1353_v60, %v1356_v46  ;;  %v1374_v36 = vsel %vm1372_vm2, %v1362_v23, 2102212464  ;;  %v1377_v63 = vsel %vm1369_vm0, %v1356_v46, %v1359_v59 }
 0x176   :  { %v7735_v18 = vadd.s32 4294967294, %v1301_v56  ;;  %v1375_v20 = vsel %vm1371_vm1, %v1359_v59, %v1374_v36  ;;  %v1378_v30 = vsel %vm1372_vm2, %v1365_v16, 920167782  ;;  %v1381_v11 = vsel %vm1369_vm0, %v1359_v59, %v1362_v23 }
 0x177   :  { %v8257_v26 = vpop.eup %8256  ;;  %vm1370_vm3 = vcmp.lt.s32.totalorder %v1350_v25, 2  ;;  %v1379_v9 = vsel %vm1371_vm1, %v1362_v23, %v1378_v30  ;;  %v1382_v22 = vsel %vm1372_vm2, %v1368_v58, 1326507024  ;;  %v1451_v17 = vadd.s32 1, %v7741_v47 }
 0x178   :  { %v8259_v38 = vpop.eup %8258  ;;  %v1229_v53 = vxor.u32 2147483648, %v8257_v26  ;;  %vm7736_vm4 = vcmp.lt.s32.totalorder %v7735_v18, 0  ;;  %v1376_v14 = vsel %vm1370_vm3, %v1373_v40, %v1375_v20  ;;  %v1383_v54 = vsel %vm1371_vm1, %v1365_v16, %v1382_v22 }
 0x179   :  { %v1226_v42 = vxor.u32 2147483648, %v8259_v38  ;;  %v1304_v33 = vsel %vm7736_vm4, 0, %v7735_v18  ;;  %v1380_v21 = vsel %vm1370_vm3, %v1377_v63, %v1379_v9  ;;  %v1384_v46 = vsel %vm1370_vm3, %v1381_v11, %v1383_v54 }
 0x17a   :  { %v1230_v13 = vsel %vm1228_vm12, %v1229_v53, %v8259_v38  ;;  %v1305_v59 = vsub.s32 32, %v1304_v33  ;;  %v1306_v24 = vshll.u32 %v9498_v32, %v1304_v33  ;;  %v1309_v60 = vsub.s32 4294967266, %v1304_v33 }
 0x17b   :  { %v1227_v23 = vsel %vm1225_vm13, %v8257_v26, %v1226_v42  ;;  %v9538_v34 = vmul.u32.u64.low %v9492_v19, %v1384_v46  ;;  %v9539_v47 = vmul.u32.u64.high %v9492_v19, %v1384_v46, %v9538_v34  ;;  %vm1452_vm5 = vcmp.gt.s32.totalorder %v1451_v17, 0 }
 0x17c   :  { %v1231_v25 = vsel %vm1224_vm14, %v1227_v23, %v1230_v13  ;;  %v1307_v16 = vshrl.u32 %v9490_v43, %v1305_v59  ;;  %v1310_v56 = vadd.s32 127, %v1309_v60  ;;  %v1453_v58 = vsel %vm1452_vm5, %v1451_v17, 0 }
 0x17d   :  { %v407_v40 = vmul.f32 %v9131_v50, %v8958_v4  ;;  %v1232_v32 = vsel %vm1221_vm15, nan, %v1231_v25  ;;  %v9549_v36 = vmul.u32.u64.low %v9492_v19, %v1380_v21  ;;  %v9550_v63 = vmul.u32.u64.high %v9492_v19, %v1380_v21, %v9549_v36 }
 0x17e   :  { %v7579_v18 = vmul.f32 1000.0, %v1232_v32  ;;  %v1308_v20 = vor.u32 %v1307_v16, %v1306_v24  ;;  %v1311_v30 = vshll.u32 %v1310_v56, 23  ;;  %v1455_v39 = vand.u32 31, %v1453_v58 }
 0x17f   :  { %v1326_v11 = vadd.s32 3, %v1322_v15  ;;  %v1392_v43 = vmul.u32 %v9492_v19, %v1376_v14  ;;  %v1449_v26 = vor.u32 8388608, %v9516_v31  ;;  %v795_v9 = vadd.f32 %v731_v28, %v407_v40 }
 0x180   :  { %7643 = vst [vmem:[#allocation2 + $0x10] sm:$0xff] %v7579_v18  ;;  %v1312_v4 = vor.u32 4788187, %v1311_v30  ;;  %vm1394_vm6 = vc.u32 %v9539_v47, %v9549_v36  ;;  %v9557_v48 = vshrl.u32 %v1453_v58, 5  ;;  %v1456_v22 = vsub.s32 32, %v1455_v39 }
 0x181   :  { %v1315_v17 = vcvt.s32.f32 %v1308_v20  ;;  %v1395_v38 = vadd.s32 1, %v9550_v63  ;;  %v1458_v53 = vshll.u32 %v14756_v44, %v1455_v39  ;;  %v1461_v15 = vshll.u32 %v14757_v62, %v1455_v39 }
 0x182   :  { %v1313_v54 = vand.u32 2147483647, %v1312_v4  ;;  %v1459_v19 = vshrl.u32 %v14757_v62, %v1456_v22  ;;  %v1462_v31 = vshrl.u32 %v14758_v27, %v1456_v22  ;;  %v1464_v28 = vshll.u32 %v14758_v27, %v1455_v39 }
 0x183   :  { %v1396_v14 = vsel %vm1394_vm6, %v1395_v38, %v9550_v63  ;;  %v1465_v42 = vshrl.u32 %v14759_v37, %v1456_v22  ;;  %v1467_v33 = vshll.u32 %v14759_v37, %v1455_v39  ;;  %v1468_v21 = vshrl.u32 %v14760_v45, %v1456_v22 }
 0x184   :  { %v1316_v46 = vmul.f32 %v1315_v17, %v1313_v54  ;;  %v1397_v13 = vadd.s32 %v1396_v14, %v1392_v43  ;;  %v1460_v59 = vor.u32 %v1459_v19, %v1458_v53  ;;  %v1463_v24 = vor.u32 %v1462_v31, %v1461_v15  ;;  %v495_v17 = vpop.permute.xlu0 %494 }
 0x185   :  { %v1466_v60 = vor.u32 %v1465_v42, %v1464_v28  ;;  %v1469_v23 = vor.u32 %v1468_v21, %v1467_v33  ;;  %v1470_v34 = vshll.u32 %v14760_v45, %v1455_v39  ;;  %v1471_v25 = vshrl.u32 %v14761_v57, %v1456_v22 }
 0x186   :  { %v1317_v16 = vxor.u32 2147483648, %v1316_v46  ;;  %v1398_v56 = vadd.s32 536870912, %v1397_v13  ;;  %vm1473_vm7 = vcmp.lt.s32.totalorder %v9557_v48, 1  ;;  %vm1476_vm8 = vcmp.lt.s32.totalorder %v9557_v48, 4 }
 0x187   :  { %v1472_v58 = vor.u32 %v1471_v25, %v1470_v34  ;;  %vm1475_vm9 = vcmp.lt.s32.totalorder %v9557_v48, 3  ;;  %v1481_v40 = vsel %vm1473_vm7, %v1460_v59, %v1463_v24  ;;  %v1482_v32 = vsel %vm1476_vm8, %v1469_v23, 920167782 }
 0x188   :  { %v1318_v63 = vsel %vm1235_vm11, %v1317_v16, %v1316_v46  ;;  %v1399_v18 = vshrl.u32 %v1398_v56, 30  ;;  %vm1474_vm12 = vcmp.lt.s32.totalorder %v9557_v48, 2  ;;  %v1483_v20 = vsel %vm1475_vm9, %v1466_v60, %v1482_v32 }
 0x189   :  { %v1321_v30 = vsel %vm9480_vm10, %v9247_v41, %v1318_v63  ;;  %v1457_v39 = vshrl.u32 %v14756_v44, %v1456_v22  ;;  %v1478_v43 = vsel %vm1476_vm8, %v1466_v60, 2102212464  ;;  %v1485_v4 = vsel %vm1473_vm7, %v1463_v24, %v1466_v60 }
 0x18a   :  { %8260 = vcosq.f32 %v1321_v30  ;;  %v1400_v38 = vshll.u32 %v1399_v18, 30  ;;  %v1484_v53 = vsel %vm1474_vm12, %v1481_v40, %v1483_v20  ;;  %v1486_v15 = vsel %vm1476_vm8, %v1472_v58, 1326507024 }
 0x18b   :  { %8262 = vsinq.f32 %v1321_v30  ;;  %v1487_v35 = vsel %vm1475_vm9, %v1469_v23, %v1486_v15  ;;  %v1489_v22 = vshll.u32 %v1449_v26, 8  ;;  %v9598_v54 = vadd.f32 %v9137_v52, %v795_v9 }
 0x18c   :  { %v9600_v19 = vsub.s32 %v1397_v13, %v1400_v38  ;;  %v1488_v31 = vsel %vm1474_vm12, %v1485_v4, %v1487_v35  ;;  %v732_v28 = vmul.f32 %v9135_v55, %v495_v17  ;;  %v1327_v14 = vand.u32 3, %v1326_v11 }
 0x18d   :  { %v1477_v42 = vsel %vm1473_vm7, %v1457_v39, %v1460_v59  ;;  %v9607_v33 = vmul.u32.u64.low %v1489_v22, %v1488_v31  ;;  %v9608_v21 = vmul.u32.u64.high %v1489_v22, %v1488_v31, %v9607_v33  ;;  %v1479_v26 = vsel %vm1475_vm9, %v1463_v24, %v1478_v43 }
 0x18e   :  { %v1403_v46 = vsub.s32 0, %v9600_v19  ;;  %v9613_v9 = vmul.u32.u64.low %v1489_v22, %v1484_v53  ;;  %v9614_v13 = vmul.u32.u64.high %v1489_v22, %v1484_v53, %v9613_v9  ;;  %v408_v60 = vmul.f32 %v9131_v50, %v8956_v61 }
 0x18f   :  { %v1548_v11 = vand.u32 2139095040, %v9598_v54  ;;  %v1423_v59 = vsub.s32 4, %v1399_v18  ;;  %vm1325_vm10 = vweird.f32 %v9247_v41  ;;  %vm9624_vm11 = vcmp.le.f32.partialorder %v1337_v49, 0.7853982 }
 0x190   :  { %v7738_v23 = vmin.u32 %v1403_v46, %v9600_v19  ;;  %v1480_v24 = vsel %vm1474_vm12, %v1477_v42, %v1479_v26  ;;  %v796_v16 = vadd.f32 %v732_v28, %v408_v60  ;;  %vm1328_vm13 = vcmp.lt.s32.totalorder %v1327_v14, 2 }
 0x191   :  { %v1549_v25 = vshrl.u32 %v1548_v11, 23  ;;  %vm1339_vm14 = vcmp.lt.s32.totalorder %v9367_v51, 0  ;;  %vm1498_vm15 = vc.u32 %v9608_v21, %v9613_v9  ;;  %vm1329_vm0 = vcmp.eq.s32.totalorder %v1327_v14, 0 }
 0x192   :  { %v1405_v61 = vclz %v7738_v23  ;;  %v1499_v56 = vadd.s32 1, %v9614_v13  ;;  %v1545_v49 = vand.u32 2147483647, %v9598_v54  ;;  %vm1332_vm1 = vcmp.eq.s32.totalorder %v1327_v14, 2 }
 0x193   :  { %v7745_v58 = vadd.s32 4294967169, %v1549_v25  ;;  %v1424_v48 = vsel %vm1339_vm14, %v1423_v59, %v1399_v18  ;;  %v1496_v63 = vmul.u32 %v1489_v22, %v1480_v24  ;;  %v9639_v4 = vadd.f32 %v9137_v52, %v796_v16 }
 0x194   :  { %v8261_v40 = vpop.eup %8260  ;;  %v7739_v32 = vadd.s32 4294967294, %v1405_v61  ;;  %v1500_v39 = vsel %vm1498_vm15, %v1499_v56, %v9614_v13  ;;  %v1393_v38 = vadd.s32 %v9549_v36, %v9539_v47  ;;  %v1552_v18 = vand.u32 8388607, %v1545_v49 }
 0x195   :  { %v8263_v20 = vpop.eup %8262  ;;  %v1333_v30 = vxor.u32 2147483648, %v8261_v40  ;;  %v1555_v43 = vadd.s32 1, %v7745_v58  ;;  %v1501_v53 = vadd.s32 %v1500_v39, %v1496_v63  ;;  %v1426_v42 = vsel %vm9624_vm11, 0, %v1424_v48 }
 0x196   :  { %v1330_v17 = vxor.u32 2147483648, %v8263_v20  ;;  %vm7740_vm2 = vcmp.lt.s32.totalorder %v7739_v32, 0  ;;  %v1652_v47 = vand.u32 2139095040, %v9639_v4  ;;  %v1553_v24 = vor.u32 8388608, %v1552_v18 }
 0x197   :  { %v1334_v15 = vsel %vm1332_vm1, %v1333_v30, %v8263_v20  ;;  %v1408_v35 = vsel %vm7740_vm2, 0, %v7739_v32  ;;  %vm1556_vm3 = vcmp.gt.s32.totalorder %v1555_v43, 0  ;;  %v1502_v46 = vadd.s32 536870912, %v1501_v53 }
 0x198   :  { %v1331_v22 = vsel %vm1329_vm0, %v8261_v40, %v1330_v17  ;;  %v1409_v31 = vsub.s32 32, %v1408_v35  ;;  %v1413_v28 = vsub.s32 4294967266, %v1408_v35  ;;  %v1557_v26 = vsel %vm1556_vm3, %v1555_v43, 0 }
 0x199   :  { %v1335_v33 = vsel %vm1328_vm13, %v1331_v22, %v1334_v15  ;;  %v1410_v13 = vshll.u32 %v9600_v19, %v1408_v35  ;;  %v9653_v59 = vshrl.u32 %v1502_v46, 30  ;;  %v1559_v25 = vand.u32 31, %v1557_v26 }
 0x19a   :  { %v1336_v36 = vsel %vm1325_vm10, nan, %v1335_v33  ;;  %v1411_v60 = vshrl.u32 %v1393_v38, %v1409_v31  ;;  %v1414_v11 = vadd.s32 127, %v1413_v28  ;;  %v9657_v14 = vmul.f32 %v9131_v50, %v8962_v1 }
 0x19b   :  { %v7580_v23 = vmul.f32 1000.0, %v1336_v36  ;;  %v9661_v56 = vmul.f32 %v9131_v50, %v8964_v0  ;;  %v1504_v41 = vshll.u32 %v9653_v59, 30  ;;  %v1560_v19 = vsub.s32 32, %v1559_v25 }
 0x19c   :  { %v1412_v16 = vor.u32 %v1411_v60, %v1410_v13  ;;  %v1415_v61 = vshll.u32 %v1414_v11, 23  ;;  %v1653_v58 = vshrl.u32 %v1652_v47, 23  ;;  %v1430_v32 = vadd.s32 3, %v1426_v42 }
 0x19d   :  { %7644 = vst [vmem:[#allocation2 + $0x18] sm:$0xff] %v7580_v23  ;;  %v1497_v48 = vadd.s32 %v9613_v9, %v9608_v21  ;;  %v1649_v63 = vand.u32 2147483647, %v9639_v4  ;;  %v9667_v1 = vsub.s32 %v1501_v53, %v1504_v41  ;;  %v9669_v20 = vshrl.u32 %v1557_v26, 5 }
 0x19e   :  { %v1416_v40 = vor.u32 4788187, %v1415_v61  ;;  %v1563_v30 = vshrl.u32 %v14757_v62, %v1560_v19  ;;  %v9672_v0 = vshll.u32 %v1553_v24, 8  ;;  %v1419_v43 = vcvt.s32.f32 %v1412_v16 }
 0x19f   :  { %v1566_v17 = vshrl.u32 %v14758_v27, %v1560_v19  ;;  %v1569_v38 = vshrl.u32 %v14759_v37, %v1560_v19  ;;  %v1507_v15 = vsub.s32 0, %v9667_v1  ;;  %v1562_v21 = vshll.u32 %v14756_v44, %v1559_v25 }
 0x1a0   :  { %v1417_v39 = vand.u32 2147483647, %v1416_v40  ;;  %v1565_v9 = vshll.u32 %v14757_v62, %v1559_v25  ;;  %v7749_v53 = vadd.s32 4294967169, %v1653_v58  ;;  %v1568_v18 = vshll.u32 %v14758_v27, %v1559_v25 }
 0x1a1   :  { %v1571_v22 = vshll.u32 %v14759_v37, %v1559_v25  ;;  %v1572_v31 = vshrl.u32 %v14760_v45, %v1560_v19  ;;  %v7742_v28 = vmin.u32 %v1507_v15, %v9667_v1  ;;  %v1564_v42 = vor.u32 %v1563_v30, %v1562_v21 }
 0x1a2   :  { %v1420_v35 = vmul.f32 %v1419_v43, %v1417_v39  ;;  %v1567_v33 = vor.u32 %v1566_v17, %v1565_v9  ;;  %v1575_v46 = vshrl.u32 %v14761_v57, %v1560_v19  ;;  %v1570_v47 = vor.u32 %v1569_v38, %v1568_v18 }
 0x1a3   :  { %v1573_v36 = vor.u32 %v1572_v31, %v1571_v22  ;;  %v1574_v13 = vshll.u32 %v14760_v45, %v1559_v25  ;;  %vm1443_vm4 = vcmp.lt.s32.totalorder %v9462_v2, 0  ;;  %v1509_v60 = vclz %v7742_v28 }
 0x1a4   :  { %v1421_v26 = vxor.u32 2147483648, %v1420_v35  ;;  %v1527_v11 = vsub.s32 4, %v9653_v59  ;;  %vm1577_vm5 = vcmp.lt.s32.totalorder %v9669_v20, 1  ;;  %vm1578_vm6 = vcmp.lt.s32.totalorder %v9669_v20, 2 }
 0x1a5   :  { %v1561_v24 = vshrl.u32 %v14756_v44, %v1560_v19  ;;  %v1576_v16 = vor.u32 %v1575_v46, %v1574_v13  ;;  %vm1579_vm7 = vcmp.lt.s32.totalorder %v9669_v20, 3  ;;  %v7743_v61 = vadd.s32 4294967294, %v1509_v60 }
 0x1a6   :  { %v1422_v23 = vsel %vm1339_vm14, %v1421_v26, %v1420_v35  ;;  %vm1580_vm8 = vcmp.lt.s32.totalorder %v9669_v20, 4  ;;  %v1585_v41 = vsel %vm1577_vm5, %v1564_v42, %v1567_v33  ;;  %v1589_v30 = vsel %vm1577_vm5, %v1567_v33, %v1570_v47 }
 0x1a7   :  { %v1425_v25 = vsel %vm9624_vm11, %v9367_v51, %v1422_v23  ;;  %v1582_v58 = vsel %vm1580_vm8, %v1570_v47, 2102212464  ;;  %v1586_v40 = vsel %vm1580_vm8, %v1573_v36, 920167782  ;;  %vm7744_vm9 = vcmp.lt.s32.totalorder %v7743_v61, 0 }
 0x1a8   :  { %8264 = vcosq.f32 %v1425_v25  ;;  %v1587_v19 = vsel %vm1579_vm7, %v1570_v47, %v1586_v40  ;;  %v1590_v39 = vsel %vm1580_vm8, %v1576_v16, 1326507024  ;;  %v1512_v34 = vsel %vm7744_vm9, 0, %v7743_v61 }
 0x1a9   :  { %8266 = vsinq.f32 %v1425_v25  ;;  %v1581_v43 = vsel %vm1577_vm5, %v1561_v24, %v1564_v42  ;;  %v1588_v17 = vsel %vm1578_vm6, %v1585_v41, %v1587_v19  ;;  %v1591_v38 = vsel %vm1579_vm7, %v1573_v36, %v1590_v39  ;;  %v499_v42 = vpop.permute.xlu1 %498 }
 0x1aa   :  { %v1513_v15 = vsub.s32 32, %v1512_v34  ;;  %v1517_v21 = vsub.s32 4294967266, %v1512_v34  ;;  %v1583_v9 = vsel %vm1579_vm7, %v1567_v33, %v1582_v58  ;;  %v1592_v35 = vsel %vm1578_vm6, %v1589_v30, %v1591_v38 }
 0x1ab   :  { %v9714_v18 = vmul.u32.u64.low %v9672_v0, %v1592_v35  ;;  %v9715_v22 = vmul.u32.u64.high %v9672_v0, %v1592_v35, %v9714_v18  ;;  %v9718_v31 = vmul.u32.u64.low %v9672_v0, %v1588_v17  ;;  %v9719_v28 = vmul.u32.u64.high %v9672_v0, %v1588_v17, %v9718_v31 }
 0x1ac   :  { %v1514_v46 = vshll.u32 %v9667_v1, %v1512_v34  ;;  %v1515_v26 = vshrl.u32 %v1497_v48, %v1513_v15  ;;  %v1518_v47 = vadd.s32 127, %v1517_v21  ;;  %v1659_v36 = vadd.s32 1, %v7749_v53 }
 0x1ad   :  { %v1431_v13 = vand.u32 3, %v1430_v32  ;;  %vm9725_vm12 = vcmp.le.f32.partialorder %v1441_v29, 0.7853982  ;;  %v1528_v60 = vsel %vm1443_vm4, %v1527_v11, %v9653_v59  ;;  %v1584_v23 = vsel %vm1578_vm6, %v1581_v43, %v1583_v9 }
 0x1ae   :  { %vm1429_vm10 = vweird.f32 %v9367_v51  ;;  %v1516_v1 = vor.u32 %v1515_v26, %v1514_v46  ;;  %v1519_v48 = vshll.u32 %v1518_v47, 23  ;;  %vm1660_vm11 = vcmp.gt.s32.totalorder %v1659_v36, 0 }
 0x1af   :  { %v733_v32 = vmul.f32 %v9135_v55, %v499_v42  ;;  %vm1602_vm13 = vc.u32 %v9715_v22, %v9718_v31  ;;  %v1603_v29 = vadd.s32 1, %v9719_v28  ;;  %v1656_v53 = vand.u32 8388607, %v1649_v63 }
 0x1b0   :  { %v1661_v24 = vsel %vm1660_vm11, %v1659_v36, 0  ;;  %v1520_v59 = vor.u32 4788187, %v1519_v48  ;;  %v1530_v20 = vsel %vm9725_vm12, 0, %v1528_v60  ;;  %v1600_v11 = vmul.u32 %v9672_v0, %v1584_v23 }
 0x1b1   :  { %v1663_v16 = vand.u32 31, %v1661_v24  ;;  %vm1432_vm14 = vcmp.lt.s32.totalorder %v1431_v13, 2  ;;  %vm1433_vm15 = vcmp.eq.s32.totalorder %v1431_v13, 0  ;;  %v1523_v61 = vcvt.s32.f32 %v1516_v1 }
 0x1b2   :  { %v8265_v25 = vpop.eup %8264  ;;  %v1604_v41 = vsel %vm1602_vm13, %v1603_v29, %v9719_v28  ;;  %v1521_v30 = vand.u32 2147483647, %v1520_v59  ;;  %vm1436_vm0 = vcmp.eq.s32.totalorder %v1431_v13, 2  ;;  %v1534_v43 = vadd.s32 3, %v1530_v20 }
 0x1b3   :  { %v8267_v58 = vpop.eup %8266  ;;  %v1437_v40 = vxor.u32 2147483648, %v8265_v25  ;;  %v1605_v19 = vadd.s32 %v1604_v41, %v1600_v11  ;;  %v1664_v39 = vsub.s32 32, %v1663_v16  ;;  %v1657_v17 = vor.u32 8388608, %v1656_v53  ;;  %v503_v11 = vpop.permute.xlu0 %502 }
 0x1b4   :  { %v1434_v34 = vxor.u32 2147483648, %v8267_v58  ;;  %v1524_v15 = vmul.f32 %v1523_v61, %v1521_v30  ;;  %v9745_v0 = vshrl.u32 %v1661_v24, 5  ;;  %v1666_v35 = vshll.u32 %v14756_v44, %v1663_v16 }
 0x1b5   :  { %v1438_v38 = vsel %vm1436_vm0, %v1437_v40, %v8267_v58  ;;  %v1606_v21 = vadd.s32 536870912, %v1605_v19  ;;  %v1667_v18 = vshrl.u32 %v14757_v62, %v1664_v39  ;;  %v1670_v28 = vshrl.u32 %v14758_v27, %v1664_v39 }
 0x1b6   :  { %v1435_v9 = vsel %vm1433_vm15, %v8265_v25, %v1434_v34  ;;  %v1525_v46 = vxor.u32 2147483648, %v1524_v15  ;;  %v1673_v47 = vshrl.u32 %v14759_v37, %v1664_v39  ;;  %v1669_v60 = vshll.u32 %v14757_v62, %v1663_v16 }
 0x1b7   :  { %v1439_v42 = vsel %vm1432_vm14, %v1435_v9, %v1438_v38  ;;  %v9752_v26 = vshrl.u32 %v1606_v21, 30  ;;  %v1672_v23 = vshll.u32 %v14758_v27, %v1663_v16  ;;  %v1675_v1 = vshll.u32 %v14759_v37, %v1663_v16 }
 0x1b8   :  { %v1440_v36 = vsel %vm1429_vm10, nan, %v1439_v42  ;;  %v1526_v29 = vsel %vm1443_vm4, %v1525_v46, %v1524_v15  ;;  %v1668_v53 = vor.u32 %v1667_v18, %v1666_v35  ;;  %v1676_v51 = vshrl.u32 %v14760_v45, %v1664_v39 }
 0x1b9   :  { %v7581_v48 = vmul.f32 1000.0, %v1440_v36  ;;  %v1608_v13 = vshll.u32 %v9752_v26, 30  ;;  %v1529_v24 = vsel %vm9725_vm12, %v9462_v2, %v1526_v29  ;;  %v1678_v59 = vshll.u32 %v14760_v45, %v1663_v16 }
 0x1ba   :  { %v1679_v20 = vshrl.u32 %v14761_v57, %v1664_v39  ;;  %8268 = vcosq.f32 %v1529_v24  ;;  %v1671_v61 = vor.u32 %v1670_v28, %v1669_v60  ;;  %v1674_v41 = vor.u32 %v1673_v47, %v1672_v23 }
 0x1bb   :  { %7645 = vst [vmem:[#allocation2 + $0x20] sm:$0xff] %v7581_v48  ;;  %v9769_v25 = vsub.s32 %v1605_v19, %v1608_v13  ;;  %8270 = vsinq.f32 %v1529_v24  ;;  %v1677_v58 = vor.u32 %v1676_v51, %v1675_v1  ;;  %v797_v30 = vadd.f32 %v733_v32, %v9661_v56 }
 0x1bc   :  { %v1680_v40 = vor.u32 %v1679_v20, %v1678_v59  ;;  %v1535_v33 = vand.u32 3, %v1534_v43  ;;  %vm1547_vm1 = vcmp.lt.s32.totalorder %v9598_v54, 0  ;;  %v1697_v16 = vshll.u32 %v1657_v17, 8 }
 0x1bd   :  { %v1611_v34 = vsub.s32 0, %v9769_v25  ;;  %v734_v38 = vmul.f32 %v9135_v55, %v503_v11  ;;  %v1665_v15 = vshrl.u32 %v14756_v44, %v1664_v39  ;;  %vm1681_vm2 = vcmp.lt.s32.totalorder %v9745_v0, 1 }
 0x1be   :  { %vm1683_vm3 = vcmp.lt.s32.totalorder %v9745_v0, 3  ;;  %vm1684_vm4 = vcmp.lt.s32.totalorder %v9745_v0, 4  ;;  %v1689_v56 = vsel %vm1681_vm2, %v1668_v53, %v1671_v61  ;;  %v1693_v9 = vsel %vm1681_vm2, %v1671_v61, %v1674_v41 }
 0x1bf   :  { %v7746_v19 = vmin.u32 %v1611_v34, %v9769_v25  ;;  %v1686_v21 = vsel %vm1684_vm4, %v1674_v41, 2102212464  ;;  %v1690_v32 = vsel %vm1684_vm4, %v1677_v58, 920167782  ;;  %v1694_v17 = vsel %vm1684_vm4, %v1680_v40, 1326507024 }
 0x1c0   :  { %v1691_v43 = vsel %vm1683_vm3, %v1674_v41, %v1690_v32  ;;  %v9783_v35 = vadd.f32 %v9137_v52, %v797_v30  ;;  %vm1536_vm5 = vcmp.lt.s32.totalorder %v1535_v33, 2  ;;  %vm9787_vm6 = vcmp.le.f32.partialorder %v1545_v49, 0.7853982 }
 0x1c1   :  { %v1613_v18 = vclz %v7746_v19  ;;  %vm1682_vm7 = vcmp.lt.s32.totalorder %v9745_v0, 2  ;;  %v1685_v28 = vsel %vm1681_vm2, %v1665_v15, %v1668_v53  ;;  %v1687_v42 = vsel %vm1683_vm3, %v1671_v61, %v1686_v21 }
 0x1c2   :  { %vm1537_vm8 = vcmp.eq.s32.totalorder %v1535_v33, 0  ;;  %v1631_v46 = vsub.s32 4, %v9752_v26  ;;  %v1692_v47 = vsel %vm1682_vm7, %v1689_v56, %v1691_v43  ;;  %v1695_v36 = vsel %vm1683_vm3, %v1677_v58, %v1694_v17 }
 0x1c3   :  { %v7747_v60 = vadd.s32 4294967294, %v1613_v18  ;;  %v1696_v23 = vsel %vm1682_vm7, %v1693_v9, %v1695_v36  ;;  %v9797_v49 = vmul.u32.u64.low %v1697_v16, %v1692_v47  ;;  %v9798_v1 = vmul.u32.u64.high %v1697_v16, %v1692_v47, %v9797_v49 }
 0x1c4   :  { %vm1540_vm9 = vcmp.eq.s32.totalorder %v1535_v33, 2  ;;  %v1688_v48 = vsel %vm1682_vm7, %v1685_v28, %v1687_v42  ;;  %v9801_v29 = vmul.u32.u64.low %v1697_v16, %v1696_v23  ;;  %v9802_v13 = vmul.u32.u64.high %v1697_v16, %v1696_v23, %v9801_v29  ;;  %v8269_v53 = vpop.eup %8268 }
 0x1c5   :  { %v1601_v24 = vadd.s32 %v9718_v31, %v9715_v22  ;;  %vm7748_vm12 = vcmp.lt.s32.totalorder %v7747_v60, 0  ;;  %v1756_v51 = vand.u32 2139095040, %v9783_v35  ;;  %v798_v0 = vadd.f32 %v734_v38, %v9657_v14  ;;  %v8271_v59 = vpop.eup %8270 }
 0x1c6   :  { %v1541_v20 = vxor.u32 2147483648, %v8269_v53  ;;  %v1616_v11 = vsel %vm7748_vm12, 0, %v7747_v60  ;;  %v1632_v61 = vsel %vm1547_vm1, %v1631_v46, %v9752_v26  ;;  %v1753_v41 = vand.u32 2147483647, %v9783_v35 }
 0x1c7   :  { %v1538_v58 = vxor.u32 2147483648, %v8271_v59  ;;  %v1617_v40 = vsub.s32 32, %v1616_v11  ;;  %v1621_v30 = vsub.s32 4294967266, %v1616_v11  ;;  %v1704_v34 = vmul.u32 %v1697_v16, %v1688_v48 }
 0x1c8   :  { %v1542_v22 = vsel %vm1540_vm9, %v1541_v20, %v8271_v59  ;;  %v1618_v31 = vshll.u32 %v9769_v25, %v1616_v11  ;;  %vm1706_vm10 = vc.u32 %v9802_v13, %v9797_v49  ;;  %v1707_v14 = vadd.s32 1, %v9798_v1 }
 0x1c9   :  { %v1539_v38 = vsel %vm1537_vm8, %v8269_v53, %v1538_v58  ;;  %v1619_v15 = vshrl.u32 %v1601_v24, %v1617_v40  ;;  %v1622_v19 = vadd.s32 127, %v1621_v30  ;;  %v1757_v26 = vshrl.u32 %v1756_v51, 23 }
 0x1ca   :  { %vm1533_vm11 = vweird.f32 %v9462_v2  ;;  %v1543_v21 = vsel %vm1536_vm5, %v1539_v38, %v1542_v22  ;;  %v1634_v16 = vsel %vm9787_vm6, 0, %v1632_v61  ;;  %v1708_v56 = vsel %vm1706_vm10, %v1707_v14, %v9798_v1  ;;  %v507_v2 = vpop.permute.xlu1 %506 }
 0x1cb   :  { %v1544_v25 = vsel %vm1533_vm11, nan, %v1543_v21  ;;  %v1620_v32 = vor.u32 %v1619_v15, %v1618_v31  ;;  %v1623_v43 = vshll.u32 %v1622_v19, 23  ;;  %v1709_v9 = vadd.s32 %v1708_v56, %v1704_v34 }
 0x1cc   :  { %v7582_v17 = vmul.f32 1000.0, %v1544_v25  ;;  %v7753_v18 = vadd.s32 4294967169, %v1757_v26  ;;  %v1760_v28 = vand.u32 8388607, %v1753_v41  ;;  %v9826_v42 = vadd.f32 %v9137_v52, %v798_v0 }
 0x1cd   :  { %v1624_v33 = vor.u32 4788187, %v1623_v43  ;;  %v1710_v46 = vadd.s32 536870912, %v1709_v9  ;;  %v9830_v47 = vmul.f32 %v9131_v50, %v8968_v3  ;;  %v1638_v36 = vadd.s32 3, %v1634_v16 }
 0x1ce   :  { %7646 = vst [vmem:[#allocation2 + $0x28] sm:$0xff] %v7582_v17  ;;  %v1763_v60 = vadd.s32 1, %v7753_v18  ;;  %v1627_v1 = vcvt.s32.f32 %v1620_v32  ;;  %v735_v29 = vmul.f32 %v9135_v55, %v507_v2  ;;  %v1761_v53 = vor.u32 8388608, %v1760_v28 }
 0x1cf   :  { %v1625_v23 = vand.u32 2147483647, %v1624_v33  ;;  %v1711_v48 = vshrl.u32 %v1710_v46, 30  ;;  %v1857_v24 = vand.u32 2147483647, %v9826_v42  ;;  %v1860_v51 = vand.u32 2139095040, %v9826_v42 }
 0x1d0   :  { %vm1764_vm13 = vcmp.gt.s32.totalorder %v1763_v60, 0  ;;  %v411_v0 = vmul.f32 %v9131_v50, %v8970_v6  ;;  %v9839_v11 = vmul.f32 %v9131_v50, %v8974_v5  ;;  %v9841_v61 = vand.u32 3, %v1638_v36 }
 0x1d1   :  { %v1628_v59 = vmul.f32 %v1627_v1, %v1625_v23  ;;  %v1712_v3 = vshll.u32 %v1711_v48, 30  ;;  %v1765_v20 = vsel %vm1764_vm13, %v1763_v60, 0  ;;  %vm1651_vm14 = vcmp.lt.s32.totalorder %v9639_v4, 0 }
 0x1d2   :  { %v1767_v58 = vand.u32 31, %v1765_v20  ;;  %v1705_v30 = vadd.s32 %v9797_v49, %v9802_v13  ;;  %v9848_v22 = vadd.f32 %v735_v29, %v411_v0  ;;  %v9850_v31 = vshll.u32 %v1761_v53, 8 }
 0x1d3   :  { %v1629_v40 = vxor.u32 2147483648, %v1628_v59  ;;  %v9846_v34 = vsub.s32 %v1709_v9, %v1712_v3  ;;  %v1861_v14 = vshrl.u32 %v1860_v51, 23  ;;  %v9854_v5 = vand.u32 8388607, %v1857_v24 }
 0x1d4   :  { %v1768_v6 = vsub.s32 32, %v1767_v58  ;;  %v1735_v19 = vsub.s32 4, %v1711_v48  ;;  %v1766_v26 = vshrl.u32 %v1765_v20, 5  ;;  %v1770_v13 = vshll.u32 %v14756_v44, %v1767_v58 }
 0x1d5   :  { %v1630_v38 = vsel %vm1547_vm1, %v1629_v40, %v1628_v59  ;;  %v1715_v15 = vsub.s32 0, %v9846_v34  ;;  %v1773_v25 = vshll.u32 %v14757_v62, %v1767_v58  ;;  %v1776_v9 = vshll.u32 %v14758_v27, %v1767_v58 }
 0x1d6   :  { %v1633_v49 = vsel %vm9787_vm6, %v9598_v54, %v1630_v38  ;;  %v1771_v21 = vshrl.u32 %v14757_v62, %v1768_v6  ;;  %v1774_v16 = vshrl.u32 %v14758_v27, %v1768_v6  ;;  %v1777_v32 = vshrl.u32 %v14759_v37, %v1768_v6 }
 0x1d7   :  { %8272 = vcosq.f32 %v1633_v49  ;;  %v7750_v56 = vmin.u32 %v1715_v15, %v9846_v34  ;;  %v7757_v17 = vadd.s32 4294967169, %v1861_v14  ;;  %v1769_v18 = vshrl.u32 %v14756_v44, %v1768_v6 }
 0x1d8   :  { %8274 = vsinq.f32 %v1633_v49  ;;  %v1772_v43 = vor.u32 %v1771_v21, %v1770_v13  ;;  %v1775_v28 = vor.u32 %v1774_v16, %v1773_v25  ;;  %v1779_v2 = vshll.u32 %v14759_v37, %v1767_v58 }
 0x1d9   :  { %v1717_v39 = vclz %v7750_v56  ;;  %v1778_v33 = vor.u32 %v1777_v32, %v1776_v9  ;;  %v1780_v46 = vshrl.u32 %v14760_v45, %v1768_v6  ;;  %v1782_v36 = vshll.u32 %v14760_v45, %v1767_v58 }
 0x1da   :  { %v1783_v60 = vshrl.u32 %v14761_v57, %v1768_v6  ;;  %vm1644_vm15 = vcmp.eq.s32.totalorder %v9841_v61, 2  ;;  %v9877_v1 = vsel %vm1651_vm14, %v1735_v19, %v1711_v48  ;;  %vm1785_vm0 = vcmp.lt.s32.totalorder %v1766_v26, 1 }
 0x1db   :  { %v7751_v23 = vadd.s32 4294967294, %v1717_v39  ;;  %vm1787_vm1 = vcmp.lt.s32.totalorder %v1766_v26, 3  ;;  %vm1641_vm2 = vcmp.eq.s32.totalorder %v9841_v61, 0  ;;  %vm9882_vm3 = vcmp.le.f32.partialorder %v1649_v63, 0.7853982 }
 0x1dc   :  { %v1781_v53 = vor.u32 %v1780_v46, %v1779_v2  ;;  %v1784_v51 = vor.u32 %v1783_v60, %v1782_v36  ;;  %vm1788_vm4 = vcmp.lt.s32.totalorder %v1766_v26, 4  ;;  %v1789_v0 = vsel %vm1785_vm0, %v1769_v18, %v1772_v43 }
 0x1dd   :  { %vm1640_vm5 = vcmp.lt.s32.totalorder %v9841_v61, 2  ;;  %vm7752_vm6 = vcmp.lt.s32.totalorder %v7751_v23, 0  ;;  %v1790_v59 = vsel %vm1788_vm4, %v1778_v33, 2102212464  ;;  %v1793_v48 = vsel %vm1785_vm0, %v1772_v43, %v1775_v28 }
 0x1de   :  { %v1797_v3 = vsel %vm1785_vm0, %v1775_v28, %v1778_v33  ;;  %vm1637_vm7 = vweird.f32 %v9598_v54  ;;  %v1720_v20 = vsel %vm7752_vm6, 0, %v7751_v23  ;;  %v1791_v58 = vsel %vm1787_vm1, %v1775_v28, %v1790_v59 }
 0x1df   :  { %v1794_v40 = vsel %vm1788_vm4, %v1781_v53, 920167782  ;;  %v1798_v63 = vsel %vm1788_vm4, %v1784_v51, 1326507024  ;;  %v1721_v6 = vsub.s32 32, %v1720_v20  ;;  %v1722_v14 = vshll.u32 %v9846_v34, %v1720_v20 }
 0x1e0   :  { %v1725_v38 = vsub.s32 4294967266, %v1720_v20  ;;  %vm1786_vm8 = vcmp.lt.s32.totalorder %v1766_v26, 2  ;;  %v1795_v19 = vsel %vm1787_vm1, %v1778_v33, %v1794_v40  ;;  %v1799_v49 = vsel %vm1787_vm1, %v1781_v53, %v1798_v63 }
 0x1e1   :  { %v1792_v15 = vsel %vm1786_vm8, %v1789_v0, %v1791_v58  ;;  %v1867_v13 = vadd.s32 1, %v7757_v17  ;;  %v8273_v21 = vpop.eup %8272  ;;  %v1723_v16 = vshrl.u32 %v1705_v30, %v1721_v6  ;;  %v1796_v25 = vsel %vm1786_vm8, %v1793_v48, %v1795_v19 }
 0x1e2   :  { %v1726_v56 = vadd.s32 127, %v1725_v38  ;;  %v1800_v32 = vsel %vm1786_vm8, %v1797_v3, %v1799_v49  ;;  %v8275_v43 = vpop.eup %8274  ;;  %v1645_v9 = vxor.u32 2147483648, %v8273_v21  ;;  %v9905_v33 = vadd.f32 %v9137_v52, %v9848_v22 }
 0x1e3   :  { %v9893_v39 = vmul.u32.u64.low %v9850_v31, %v1800_v32  ;;  %v9894_v18 = vmul.u32.u64.high %v9850_v31, %v1800_v32, %v9893_v39  ;;  %vm1868_vm9 = vcmp.gt.s32.totalorder %v1867_v13, 0  ;;  %v1642_v34 = vxor.u32 2147483648, %v8275_v43 }
 0x1e4   :  { %v1724_v28 = vor.u32 %v1723_v16, %v1722_v14  ;;  %v1727_v2 = vshll.u32 %v1726_v56, 23  ;;  %v1869_v46 = vsel %vm1868_vm9, %v1867_v13, 0  ;;  %v1646_v26 = vsel %vm1644_vm15, %v1645_v9, %v8275_v43 }
 0x1e5   :  { %v9899_v17 = vmul.u32.u64.low %v9850_v31, %v1796_v25  ;;  %v9900_v30 = vmul.u32.u64.high %v9850_v31, %v1796_v25, %v9899_v17  ;;  %v1643_v36 = vsel %vm1641_vm2, %v8273_v21, %v1642_v34  ;;  %v1738_v23 = vsel %vm9882_vm3, 0, %v9877_v1 }
 0x1e6   :  { %v1728_v60 = vor.u32 4788187, %v1727_v2  ;;  %v1871_v53 = vand.u32 31, %v1869_v46  ;;  %v1647_v51 = vsel %vm1640_vm5, %v1643_v36, %v1646_v26  ;;  %v1731_v0 = vcvt.s32.f32 %v1724_v28 }
 0x1e7   :  { %v1808_v59 = vmul.u32 %v9850_v31, %v1792_v15  ;;  %v9915_v48 = vshrl.u32 %v1869_v46, 5  ;;  %v1648_v22 = vsel %vm1637_vm7, nan, %v1647_v51  ;;  %vm1810_vm12 = vc.u32 %v9894_v18, %v9899_v17  ;;  %v511_v51 = vpop.permute.xlu0 %510 }
 0x1e8   :  { %v1729_v3 = vand.u32 2147483647, %v1728_v60  ;;  %v1872_v20 = vsub.s32 32, %v1871_v53  ;;  %v7583_v58 = vmul.f32 1000.0, %v1648_v22  ;;  %v1811_v1 = vadd.s32 1, %v9900_v30 }
 0x1e9   :  { %v1874_v40 = vshll.u32 %v14756_v44, %v1871_v53  ;;  %v1877_v61 = vshll.u32 %v14757_v62, %v1871_v53  ;;  %v1880_v54 = vshll.u32 %v14758_v27, %v1871_v53  ;;  %v1883_v15 = vshll.u32 %v14759_v37, %v1871_v53 }
 0x1ea   :  { %v1732_v63 = vmul.f32 %v1731_v0, %v1729_v3  ;;  %v1875_v31 = vshrl.u32 %v14757_v62, %v1872_v20  ;;  %v1878_v6 = vshrl.u32 %v14758_v27, %v1872_v20  ;;  %7647 = vst [vmem:[#allocation2 + $0x30] sm:$0xff] %v7583_v58  ;;  %v1812_v14 = vsel %vm1810_vm12, %v1811_v1, %v9900_v30 }
 0x1eb   :  { %v1881_v38 = vshrl.u32 %v14759_v37, %v1872_v20  ;;  %v1884_v19 = vshrl.u32 %v14760_v45, %v1872_v20  ;;  %v1813_v13 = vadd.s32 %v1812_v14, %v1808_v59  ;;  %v1886_v32 = vshll.u32 %v14760_v45, %v1871_v53 }
 0x1ec   :  { %v1733_v49 = vxor.u32 2147483648, %v1732_v63  ;;  %v1876_v21 = vor.u32 %v1875_v31, %v1874_v40  ;;  %v1879_v16 = vor.u32 %v1878_v6, %v1877_v61  ;;  %v1887_v43 = vshrl.u32 %v14761_v57, %v1872_v20 }
 0x1ed   :  { %v1882_v56 = vor.u32 %v1881_v38, %v1880_v54  ;;  %v1885_v25 = vor.u32 %v1884_v19, %v1883_v15  ;;  %v1742_v39 = vadd.s32 3, %v1738_v23  ;;  %v1814_v34 = vadd.s32 536870912, %v1813_v13 }
 0x1ee   :  { %v1734_v9 = vsel %vm1651_vm14, %v1733_v49, %v1732_v63  ;;  %v1865_v28 = vor.u32 8388608, %v9854_v5  ;;  %v1873_v46 = vshrl.u32 %v14756_v44, %v1872_v20  ;;  %v1888_v26 = vor.u32 %v1887_v43, %v1886_v32 }
 0x1ef   :  { %v1737_v2 = vsel %vm9882_vm3, %v9639_v4, %v1734_v9  ;;  %vm1889_vm10 = vcmp.lt.s32.totalorder %v9915_v48, 1  ;;  %v1815_v30 = vshrl.u32 %v1814_v34, 30  ;;  %vm1892_vm11 = vcmp.lt.s32.totalorder %v9915_v48, 4 }
 0x1f0   :  { %8276 = vcosq.f32 %v1737_v2  ;;  %v1897_v36 = vsel %vm1889_vm10, %v1876_v21, %v1879_v16  ;;  %vm1891_vm13 = vcmp.lt.s32.totalorder %v9915_v48, 3  ;;  %v1894_v60 = vsel %vm1892_vm11, %v1882_v56, 2102212464 }
 0x1f1   :  { %8278 = vsinq.f32 %v1737_v2  ;;  %v1898_v23 = vsel %vm1892_vm11, %v1885_v25, 920167782  ;;  %v1816_v5 = vshll.u32 %v1815_v30, 30  ;;  %vm1890_vm14 = vcmp.lt.s32.totalorder %v9915_v48, 2 }
 0x1f2   :  { %v1899_v29 = vsel %vm1891_vm13, %v1882_v56, %v1898_v23  ;;  %v1901_v53 = vsel %vm1889_vm10, %v1879_v16, %v1882_v56  ;;  %v1893_v0 = vsel %vm1889_vm10, %v1873_v46, %v1876_v21  ;;  %v1902_v22 = vsel %vm1892_vm11, %v1888_v26, 1326507024 }
 0x1f3   :  { %v1900_v59 = vsel %vm1890_vm14, %v1897_v36, %v1899_v29  ;;  %v1905_v3 = vshll.u32 %v1865_v28, 8  ;;  %v9946_v20 = vsub.s32 %v1813_v13, %v1816_v5  ;;  %v1839_v58 = vsub.s32 4, %v1815_v30 }
 0x1f4   :  { %v1895_v1 = vsel %vm1891_vm13, %v1879_v16, %v1894_v60  ;;  %v1903_v40 = vsel %vm1891_vm13, %v1885_v25, %v1902_v22  ;;  %v736_v6 = vmul.f32 %v9135_v55, %v511_v51  ;;  %v1743_v54 = vand.u32 3, %v1742_v39 }
 0x1f5   :  { %v1904_v61 = vsel %vm1890_vm14, %v1901_v53, %v1903_v40  ;;  %v9950_v63 = vmul.u32.u64.low %v1905_v3, %v1900_v59  ;;  %v9951_v31 = vmul.u32.u64.high %v1905_v3, %v1900_v59, %v9950_v63  ;;  %v1819_v14 = vsub.s32 0, %v9946_v20  ;;  %v515_v40 = vpop.permute.xlu1 %514 }
 0x1f6   :  { %v9956_v38 = vmul.u32.u64.low %v1905_v3, %v1904_v61  ;;  %v9957_v15 = vmul.u32.u64.high %v1905_v3, %v1904_v61, %v9956_v38  ;;  %v9961_v19 = vmul.f32 %v9131_v50, %v8976_v8  ;;  %vm1755_vm15 = vcmp.lt.s32.totalorder %v9783_v35, 0 }
 0x1f7   :  { %v1896_v49 = vsel %vm1890_vm14, %v1893_v0, %v1895_v1  ;;  %v1964_v13 = vand.u32 2139095040, %v9905_v33  ;;  %vm1741_vm0 = vweird.f32 %v9639_v4  ;;  %vm9970_vm1 = vcmp.le.f32.partialorder %v1753_v41, 0.7853982 }
 0x1f8   :  { %v7754_v16 = vmin.u32 %v1819_v14, %v9946_v20  ;;  %v1840_v8 = vsel %vm1755_vm15, %v1839_v58, %v1815_v30  ;;  %v1915_v56 = vadd.s32 1, %v9951_v31  ;;  %v1961_v48 = vand.u32 2147483647, %v9905_v33 }
 0x1f9   :  { %v1965_v25 = vshrl.u32 %v1964_v13, 23  ;;  %v800_v32 = vadd.f32 %v736_v6, %v9830_v47  ;;  %vm1744_vm2 = vcmp.lt.s32.totalorder %v1743_v54, 2  ;;  %vm1745_vm3 = vcmp.eq.s32.totalorder %v1743_v54, 0 }
 0x1fa   :  { %v8277_v43 = vpop.eup %8276  ;;  %v1821_v9 = vclz %v7754_v16  ;;  %v1912_v41 = vmul.u32 %v1905_v3, %v1896_v49  ;;  %v1842_v28 = vsel %vm9970_vm1, 0, %v1840_v8  ;;  %vm1914_vm4 = vc.u32 %v9957_v15, %v9950_v63 }
 0x1fb   :  { %v8279_v39 = vpop.eup %8278  ;;  %v1749_v34 = vxor.u32 2147483648, %v8277_v43  ;;  %v7761_v2 = vadd.s32 4294967169, %v1965_v25  ;;  %vm1748_vm5 = vcmp.eq.s32.totalorder %v1743_v54, 2  ;;  %v1916_v30 = vsel %vm1914_vm4, %v1915_v56, %v9951_v31 }
 0x1fc   :  { %v1746_v46 = vxor.u32 2147483648, %v8279_v39  ;;  %v7755_v26 = vadd.s32 4294967294, %v1821_v9  ;;  %v1917_v36 = vadd.s32 %v1916_v30, %v1912_v41  ;;  %v9986_v23 = vadd.f32 %v9137_v52, %v800_v32 }
 0x1fd   :  { %v1750_v47 = vsel %vm1748_vm5, %v1749_v34, %v8279_v39  ;;  %v1971_v60 = vadd.s32 1, %v7761_v2  ;;  %v1809_v29 = vadd.s32 %v9899_v17, %v9894_v18  ;;  %v1846_v53 = vadd.s32 3, %v1842_v28 }
 0x1fe   :  { %v1747_v5 = vsel %vm1745_vm3, %v8277_v43, %v1746_v46  ;;  %vm7756_vm6 = vcmp.lt.s32.totalorder %v7755_v26, 0  ;;  %v1918_v59 = vadd.s32 536870912, %v1917_v36  ;;  %v1968_v1 = vand.u32 8388607, %v1961_v48 }
 0x1ff   :  { %v1751_v51 = vsel %vm1744_vm2, %v1747_v5, %v1750_v47  ;;  %v1824_v0 = vsel %vm7756_vm6, 0, %v7755_v26  ;;  %vm1972_vm7 = vcmp.gt.s32.totalorder %v1971_v60, 0  ;;  %v2068_v18 = vand.u32 2139095040, %v9986_v23 }
 0x200   :  { %v1752_v22 = vsel %vm1741_vm0, nan, %v1751_v51  ;;  %v1825_v3 = vsub.s32 32, %v1824_v0  ;;  %v1829_v58 = vsub.s32 4294967266, %v1824_v0  ;;  %v1919_v31 = vshrl.u32 %v1918_v59, 30 }
 0x201   :  { %v7584_v61 = vmul.f32 1000.0, %v1752_v22  ;;  %v1973_v6 = vsel %vm1972_vm7, %v1971_v60, 0  ;;  %v1826_v17 = vshll.u32 %v9946_v20, %v1824_v0  ;;  %vm10000_vm8 = vcmp.le.f32.partialorder %v1857_v24, 0.7853982 }
 0x202   :  { %v1827_v54 = vshrl.u32 %v1809_v29, %v1825_v3  ;;  %v1830_v14 = vadd.s32 127, %v1829_v58  ;;  %v1975_v38 = vand.u32 31, %v1973_v6  ;;  %vm1859_vm9 = vcmp.lt.s32.totalorder %v9826_v42, 0 }
 0x203   :  { %7648 = vst [vmem:[#allocation2 + $0x38] sm:$0xff] %v7584_v61  ;;  %v1920_v49 = vshll.u32 %v1919_v31, 30  ;;  %v10006_v13 = vmul.f32 %v9135_v55, %v515_v40  ;;  %v10008_v56 = vand.u32 3, %v1846_v53  ;;  %v1913_v25 = vadd.s32 %v9950_v63, %v9957_v15 }
 0x204   :  { %v1828_v16 = vor.u32 %v1827_v54, %v1826_v17  ;;  %v1831_v8 = vshll.u32 %v1830_v14, 23  ;;  %v1976_v20 = vsub.s32 32, %v1975_v38  ;;  %v1943_v24 = vsub.s32 4, %v1919_v31 }
 0x205   :  { %v10012_v32 = vsub.s32 %v1917_v36, %v1920_v49  ;;  %v1969_v43 = vor.u32 8388608, %v1968_v1  ;;  %v10014_v41 = vshrl.u32 %v1973_v6, 5  ;;  %v1978_v39 = vshll.u32 %v14756_v44, %v1975_v38 }
 0x206   :  { %v1832_v9 = vor.u32 4788187, %v1831_v8  ;;  %v2069_v34 = vshrl.u32 %v2068_v18, 23  ;;  %v1979_v2 = vshrl.u32 %v14757_v62, %v1976_v20  ;;  %v1982_v46 = vshrl.u32 %v14758_v27, %v1976_v20 }
 0x207   :  { %v1923_v28 = vsub.s32 0, %v10012_v32  ;;  %v1984_v26 = vshll.u32 %v14758_v27, %v1975_v38  ;;  %v1835_v63 = vcvt.s32.f32 %v1828_v16  ;;  %v1985_v15 = vshrl.u32 %v14759_v37, %v1976_v20 }
 0x208   :  { %v1833_v30 = vand.u32 2147483647, %v1832_v9  ;;  %v1988_v47 = vshrl.u32 %v14760_v45, %v1976_v20  ;;  %v1944_v60 = vsel %vm1859_vm9, %v1943_v24, %v1919_v31  ;;  %v1981_v5 = vshll.u32 %v14757_v62, %v1975_v38 }
 0x209   :  { %v7758_v36 = vmin.u32 %v1923_v28, %v10012_v32  ;;  %v1987_v29 = vshll.u32 %v14759_v37, %v1975_v38  ;;  %v1986_v51 = vor.u32 %v1985_v15, %v1984_v26  ;;  %v10028_v0 = vshll.u32 %v1969_v43, 8 }
 0x20a   :  { %v1836_v53 = vmul.f32 %v1835_v63, %v1833_v30  ;;  %v7765_v59 = vadd.s32 4294967169, %v2069_v34  ;;  %v1980_v3 = vor.u32 %v1979_v2, %v1978_v39  ;;  %v1983_v58 = vor.u32 %v1982_v46, %v1981_v5 }
 0x20b   :  { %v1925_v22 = vclz %v7758_v36  ;;  %v1989_v1 = vor.u32 %v1988_v47, %v1987_v29  ;;  %v1946_v61 = vsel %vm10000_vm8, 0, %v1944_v60  ;;  %v1990_v6 = vshll.u32 %v14760_v45, %v1975_v38 }
 0x20c   :  { %v1837_v40 = vxor.u32 2147483648, %v1836_v53  ;;  %v1991_v31 = vshrl.u32 %v14761_v57, %v1976_v20  ;;  %v1977_v17 = vshrl.u32 %v14756_v44, %v1976_v20  ;;  %vm1993_vm12 = vcmp.lt.s32.totalorder %v10014_v41, 1 }
 0x20d   :  { %v7759_v18 = vadd.s32 4294967294, %v1925_v22  ;;  %vm1996_vm10 = vcmp.lt.s32.totalorder %v10014_v41, 4  ;;  %vm1995_vm11 = vcmp.lt.s32.totalorder %v10014_v41, 3  ;;  %v2001_v16 = vsel %vm1993_vm12, %v1980_v3, %v1983_v58 }
 0x20e   :  { %v1838_v54 = vsel %vm1755_vm15, %v1837_v40, %v1836_v53  ;;  %v1992_v14 = vor.u32 %v1991_v31, %v1990_v6  ;;  %v1998_v49 = vsel %vm1996_vm10, %v1986_v51, 2102212464  ;;  %v2002_v8 = vsel %vm1996_vm10, %v1989_v1, 920167782 }
 0x20f   :  { %v1841_v38 = vsel %vm9970_vm1, %v9783_v35, %v1838_v54  ;;  %vm7760_vm13 = vcmp.lt.s32.totalorder %v7759_v18, 0  ;;  %vm1994_vm14 = vcmp.lt.s32.totalorder %v10014_v41, 2  ;;  %v2003_v24 = vsel %vm1995_vm11, %v1986_v51, %v2002_v8 }
 0x210   :  { %8280 = vcosq.f32 %v1841_v38  ;;  %v1928_v20 = vsel %vm7760_vm13, 0, %v7759_v18  ;;  %v1997_v21 = vsel %vm1993_vm12, %v1977_v17, %v1980_v3  ;;  %v1999_v39 = vsel %vm1995_vm11, %v1983_v58, %v1998_v49 }
 0x211   :  { %8282 = vsinq.f32 %v1841_v38  ;;  %v1929_v43 = vsub.s32 32, %v1928_v20  ;;  %v1933_v9 = vsub.s32 4294967266, %v1928_v20  ;;  %v2004_v34 = vsel %vm1994_vm14, %v2001_v16, %v2003_v24 }
 0x212   :  { %v2005_v28 = vsel %vm1993_vm12, %v1983_v58, %v1986_v51  ;;  %v2006_v2 = vsel %vm1996_vm10, %v1992_v14, 1326507024  ;;  %v1930_v46 = vshll.u32 %v10012_v32, %v1928_v20  ;;  %v2075_v60 = vadd.s32 1, %v7765_v59 }
 0x213   :  { %v1931_v26 = vshrl.u32 %v1913_v25, %v1929_v43  ;;  %v1934_v30 = vadd.s32 127, %v1933_v9  ;;  %v2007_v63 = vsel %vm1995_vm11, %v1989_v1, %v2006_v2  ;;  %v1950_v25 = vadd.s32 3, %v1946_v61 }
 0x214   :  { %v2008_v15 = vsel %vm1994_vm14, %v2005_v28, %v2007_v63  ;;  %v10068_v47 = vmul.u32.u64.low %v10028_v0, %v2004_v34  ;;  %v10069_v36 = vmul.u32.u64.high %v10028_v0, %v2004_v34, %v10068_v47  ;;  %v2000_v32 = vsel %vm1994_vm14, %v1997_v21, %v1999_v39 }
 0x215   :  { %v1932_v5 = vor.u32 %v1931_v26, %v1930_v46  ;;  %v1935_v29 = vshll.u32 %v1934_v30, 23  ;;  %v10073_v53 = vmul.u32.u64.low %v10028_v0, %v2008_v15  ;;  %v10074_v51 = vmul.u32.u64.high %v10028_v0, %v2008_v15, %v10073_v53 }
 0x216   :  { %v2065_v22 = vand.u32 2147483647, %v9986_v23  ;;  %vm2076_vm15 = vcmp.gt.s32.totalorder %v2075_v60, 0  ;;  %vm1845_vm0 = vweird.f32 %v9783_v35  ;;  %vm1848_vm1 = vcmp.lt.s32.totalorder %v10008_v56, 2  ;;  %v519_v53 = vpop.permute.xlu0 %518 }
 0x217   :  { %v1936_v3 = vor.u32 4788187, %v1935_v29  ;;  %v2077_v58 = vsel %vm2076_vm15, %v2075_v60, 0  ;;  %v801_v59 = vadd.f32 %v10006_v13, %v9961_v19  ;;  %vm1849_vm2 = vcmp.eq.s32.totalorder %v10008_v56, 0 }
 0x218   :  { %vm1852_vm3 = vcmp.eq.s32.totalorder %v10008_v56, 2  ;;  %v2019_v1 = vadd.s32 1, %v10069_v36  ;;  %v2079_v41 = vand.u32 31, %v2077_v58  ;;  %v1939_v61 = vcvt.s32.f32 %v1932_v5 }
 0x219   :  { %v1937_v40 = vand.u32 2147483647, %v1936_v3  ;;  %v2016_v6 = vmul.u32 %v10028_v0, %v2000_v32  ;;  %vm2018_vm4 = vc.u32 %v10074_v51, %v10068_v47  ;;  %v10089_v18 = vand.u32 3, %v1950_v25 }
 0x21a   :  { %v8281_v31 = vpop.eup %8280  ;;  %v2020_v17 = vsel %vm2018_vm4, %v2019_v1, %v10069_v36  ;;  %v10094_v19 = vand.u32 8388607, %v2065_v22  ;;  %v2080_v13 = vsub.s32 32, %v2079_v41  ;;  %v2082_v16 = vshll.u32 %v14756_v44, %v2079_v41 }
 0x21b   :  { %v8283_v54 = vpop.eup %8282  ;;  %v1853_v14 = vxor.u32 2147483648, %v8281_v31  ;;  %v1940_v49 = vmul.f32 %v1939_v61, %v1937_v40  ;;  %v2021_v38 = vadd.s32 %v2020_v17, %v2016_v6  ;;  %v2085_v20 = vshll.u32 %v14757_v62, %v2079_v41 }
 0x21c   :  { %v1850_v0 = vxor.u32 2147483648, %v8283_v54  ;;  %v2083_v8 = vshrl.u32 %v14757_v62, %v2080_v13  ;;  %v2086_v24 = vshrl.u32 %v14758_v27, %v2080_v13  ;;  %v2089_v39 = vshrl.u32 %v14759_v37, %v2080_v13 }
 0x21d   :  { %v1854_v43 = vsel %vm1852_vm3, %v1853_v14, %v8283_v54  ;;  %v1941_v9 = vxor.u32 2147483648, %v1940_v49  ;;  %v2022_v21 = vadd.s32 536870912, %v2021_v38  ;;  %v10105_v28 = vshrl.u32 %v2077_v58, 5 }
 0x21e   :  { %v1851_v34 = vsel %vm1849_vm2, %v8281_v31, %v1850_v0  ;;  %v2084_v2 = vor.u32 %v2083_v8, %v2082_v16  ;;  %v2088_v46 = vshll.u32 %v14758_v27, %v2079_v41  ;;  %v2087_v15 = vor.u32 %v2086_v24, %v2085_v20 }
 0x21f   :  { %v1855_v26 = vsel %vm1848_vm1, %v1851_v34, %v1854_v43  ;;  %v1942_v30 = vsel %vm1859_vm9, %v1941_v9, %v1940_v49  ;;  %v2023_v63 = vshrl.u32 %v2022_v21, 30  ;;  %v2091_v5 = vshll.u32 %v14759_v37, %v2079_v41 }
 0x220   :  { %v1856_v36 = vsel %vm1845_vm0, nan, %v1855_v26  ;;  %v1945_v60 = vsel %vm10000_vm8, %v9826_v42, %v1942_v30  ;;  %v2092_v29 = vshrl.u32 %v14760_v45, %v2080_v13  ;;  %v2090_v32 = vor.u32 %v2089_v39, %v2088_v46 }
 0x221   :  { %v7585_v25 = vmul.f32 1000.0, %v1856_v36  ;;  %8284 = vcosq.f32 %v1945_v60  ;;  %v2024_v56 = vshll.u32 %v2023_v63, 30  ;;  %v2094_v58 = vshll.u32 %v14760_v45, %v2079_v41 }
 0x222   :  { %8286 = vsinq.f32 %v1945_v60  ;;  %v2093_v3 = vor.u32 %v2092_v29, %v2091_v5  ;;  %v2095_v35 = vshrl.u32 %v14761_v57, %v2080_v13  ;;  %vm1963_vm5 = vcmp.lt.s32.totalorder %v9905_v33, 0 }
 0x223   :  { %7649 = vst [vmem:[#allocation2 + $0x40] sm:$0xff] %v7585_v25  ;;  %v10122_v4 = vsub.s32 %v2021_v38, %v2024_v56  ;;  %v2073_v1 = vor.u32 8388608, %v10094_v19  ;;  %v738_v40 = vmul.f32 %v9135_v55, %v519_v53  ;;  %vm10128_vm6 = vcmp.le.f32.partialorder %v1961_v48, 0.7853982 }
 0x224   :  { %v2047_v6 = vsub.s32 4, %v2023_v63  ;;  %v2096_v31 = vor.u32 %v2095_v35, %v2094_v58  ;;  %vm2097_vm7 = vcmp.lt.s32.totalorder %v10105_v28, 1  ;;  %v10134_v41 = vadd.f32 %v9137_v52, %v801_v59 }
 0x225   :  { %v2027_v17 = vsub.s32 0, %v10122_v4  ;;  %vm2099_vm8 = vcmp.lt.s32.totalorder %v10105_v28, 3  ;;  %vm2100_vm9 = vcmp.lt.s32.totalorder %v10105_v28, 4  ;;  %v2105_v19 = vsel %vm2097_vm7, %v2084_v2, %v2087_v15 }
 0x226   :  { %vm1953_vm12 = vcmp.eq.s32.totalorder %v10089_v18, 0  ;;  %v2081_v48 = vshrl.u32 %v14756_v44, %v2080_v13  ;;  %v2102_v54 = vsel %vm2100_vm9, %v2090_v32, 2102212464  ;;  %v2106_v14 = vsel %vm2100_vm9, %v2093_v3, 920167782 }
 0x227   :  { %v2110_v49 = vsel %vm2100_vm9, %v2096_v31, 1326507024  ;;  %vm1952_vm10 = vcmp.lt.s32.totalorder %v10089_v18, 2  ;;  %v7762_v59 = vmin.u32 %v2027_v17, %v10122_v4  ;;  %vm2098_vm11 = vcmp.lt.s32.totalorder %v10105_v28, 2 }
 0x228   :  { %v2107_v38 = vsel %vm2099_vm8, %v2090_v32, %v2106_v14  ;;  %v2109_v16 = vsel %vm2097_vm7, %v2087_v15, %v2090_v32  ;;  %vm1949_vm13 = vweird.f32 %v9826_v42  ;;  %vm1956_vm14 = vcmp.eq.s32.totalorder %v10089_v18, 2 }
 0x229   :  { %v2108_v13 = vsel %vm2098_vm11, %v2105_v19, %v2107_v38  ;;  %v2111_v0 = vsel %vm2099_vm8, %v2093_v3, %v2110_v49  ;;  %v2113_v8 = vshll.u32 %v2073_v1, 8  ;;  %v2029_v20 = vclz %v7762_v59 }
 0x22a   :  { %v2048_v24 = vsel %vm1963_vm5, %v2047_v6, %v2023_v63  ;;  %v2101_v43 = vsel %vm2097_vm7, %v2081_v48, %v2084_v2  ;;  %v2103_v9 = vsel %vm2099_vm8, %v2087_v15, %v2102_v54  ;;  %v2112_v21 = vsel %vm2098_vm11, %v2109_v16, %v2111_v0 }
 0x22b   :  { %v10164_v39 = vmul.u32.u64.low %v2113_v8, %v2108_v13  ;;  %v10165_v34 = vmul.u32.u64.high %v2113_v8, %v2108_v13, %v10164_v39  ;;  %v2172_v46 = vand.u32 2139095040, %v10134_v41  ;;  %v8285_v26 = vpop.eup %8284  ;;  %v7763_v30 = vadd.s32 4294967294, %v2029_v20 }
 0x22c   :  { %v10168_v36 = vmul.u32.u64.low %v2113_v8, %v2112_v21  ;;  %v10169_v60 = vmul.u32.u64.high %v2113_v8, %v2112_v21, %v10168_v36  ;;  %v802_v63 = vadd.f32 %v738_v40, %v9839_v11  ;;  %v8287_v5 = vpop.eup %8286  ;;  %v1957_v2 = vxor.u32 2147483648, %v8285_v26 }
 0x22d   :  { %v2104_v15 = vsel %vm2098_vm11, %v2101_v43, %v2103_v9  ;;  %v2169_v29 = vand.u32 2147483647, %v10134_v41  ;;  %v2173_v53 = vshrl.u32 %v2172_v46, 23  ;;  %v1954_v25 = vxor.u32 2147483648, %v8287_v5 }
 0x22e   :  { %v2017_v56 = vadd.s32 %v10068_v47, %v10074_v51  ;;  %vm7764_vm15 = vcmp.lt.s32.totalorder %v7763_v30, 0  ;;  %v2050_v32 = vsel %vm10128_vm6, 0, %v2048_v24  ;;  %v1958_v3 = vsel %vm1956_vm14, %v1957_v2, %v8287_v5 }
 0x22f   :  { %v2032_v11 = vsel %vm7764_vm15, 0, %v7763_v30  ;;  %v2123_v58 = vadd.s32 1, %v10165_v34  ;;  %v7769_v35 = vadd.s32 4294967169, %v2173_v53  ;;  %v1955_v28 = vsel %vm1953_vm12, %v8285_v26, %v1954_v25 }
 0x230   :  { %v2033_v1 = vsub.s32 32, %v2032_v11  ;;  %v2037_v40 = vsub.s32 4294967266, %v2032_v11  ;;  %v2120_v6 = vmul.u32 %v2113_v8, %v2104_v15  ;;  %v1959_v47 = vsel %vm1952_vm10, %v1955_v28, %v1958_v3 }
 0x231   :  { %v2034_v51 = vshll.u32 %v10122_v4, %v2032_v11  ;;  %vm2122_vm0 = vc.u32 %v10169_v60, %v10164_v39  ;;  %v2179_v31 = vadd.s32 1, %v7769_v35  ;;  %v1960_v17 = vsel %vm1949_vm13, nan, %v1959_v47 }
 0x232   :  { %v2035_v19 = vshrl.u32 %v2017_v56, %v2033_v1  ;;  %v2038_v48 = vadd.s32 127, %v2037_v40  ;;  %v2124_v54 = vsel %vm2122_vm0, %v2123_v58, %v10165_v34  ;;  %v7586_v14 = vmul.f32 1000.0, %v1960_v17 }
 0x233   :  { %v2054_v49 = vadd.s32 3, %v2050_v32  ;;  %v2125_v59 = vadd.s32 %v2124_v54, %v2120_v6  ;;  %vm2180_vm1 = vcmp.gt.s32.totalorder %v2179_v31, 0  ;;  %v2176_v18 = vand.u32 8388607, %v2169_v29 }
 0x234   :  { %v2036_v38 = vor.u32 %v2035_v19, %v2034_v51  ;;  %v2039_v16 = vshll.u32 %v2038_v48, 23  ;;  %v2181_v4 = vsel %vm2180_vm1, %v2179_v31, 0  ;;  %7650 = vst [vmem:[#allocation2 + $0x48] sm:$0xff] %v7586_v14  ;;  %v10198_v34 = vadd.f32 %v9137_v52, %v802_v63 }
 0x235   :  { %v2126_v13 = vadd.s32 536870912, %v2125_v59  ;;  %v2183_v0 = vand.u32 31, %v2181_v4  ;;  %v10193_v42 = vand.u32 3, %v2054_v49  ;;  %v2177_v21 = vor.u32 8388608, %v2176_v18 }
 0x236   :  { %v2040_v8 = vor.u32 4788187, %v2039_v16  ;;  %v2043_v9 = vcvt.s32.f32 %v2036_v38  ;;  %v10201_v46 = vadd.s32 %v10164_v39, %v10169_v60  ;;  %v2182_v32 = vshrl.u32 %v2181_v4, 5 }
 0x237   :  { %v10195_v20 = vshrl.u32 %v2126_v13, 30  ;;  %v2184_v24 = vsub.s32 32, %v2183_v0  ;;  %v2186_v30 = vshll.u32 %v14756_v44, %v2183_v0  ;;  %v2189_v63 = vshll.u32 %v14757_v62, %v2183_v0 }
 0x238   :  { %v2041_v43 = vand.u32 2147483647, %v2040_v8  ;;  %v2192_v39 = vshll.u32 %v14758_v27, %v2183_v0  ;;  %v2195_v3 = vshll.u32 %v14759_v37, %v2183_v0  ;;  %v2198_v11 = vshll.u32 %v14760_v45, %v2183_v0 }
 0x239   :  { %v2128_v26 = vshll.u32 %v10195_v20, 30  ;;  %v2187_v36 = vshrl.u32 %v14757_v62, %v2184_v24  ;;  %v2190_v2 = vshrl.u32 %v14758_v27, %v2184_v24  ;;  %v2193_v15 = vshrl.u32 %v14759_v37, %v2184_v24 }
 0x23a   :  { %v2044_v5 = vmul.f32 %v2043_v9, %v2041_v43  ;;  %v2196_v53 = vshrl.u32 %v14760_v45, %v2184_v24  ;;  %v2199_v60 = vshrl.u32 %v14761_v57, %v2184_v24  ;;  %vm2067_vm2 = vcmp.lt.s32.totalorder %v9986_v23, 0 }
 0x23b   :  { %v10209_v25 = vsub.s32 %v2125_v59, %v2128_v26  ;;  %v2188_v35 = vor.u32 %v2187_v36, %v2186_v30  ;;  %v2191_v28 = vor.u32 %v2190_v2, %v2189_v63  ;;  %v2194_v1 = vor.u32 %v2193_v15, %v2192_v39 }
 0x23c   :  { %v2045_v56 = vxor.u32 2147483648, %v2044_v5  ;;  %v2197_v6 = vor.u32 %v2196_v53, %v2195_v3  ;;  %v2217_v47 = vshll.u32 %v2177_v21, 8  ;;  %v2276_v51 = vand.u32 2139095040, %v10198_v34 }
 0x23d   :  { %v2131_v58 = vsub.s32 0, %v10209_v25  ;;  %v2151_v19 = vsub.s32 4, %v10195_v20  ;;  %v2200_v48 = vor.u32 %v2199_v60, %v2198_v11  ;;  %v2185_v54 = vshrl.u32 %v14756_v44, %v2184_v24 }
 0x23e   :  { %v2046_v40 = vsel %vm1963_vm5, %v2045_v56, %v2044_v5  ;;  %vm2201_vm3 = vcmp.lt.s32.totalorder %v2182_v32, 1  ;;  %vm2204_vm4 = vcmp.lt.s32.totalorder %v2182_v32, 4  ;;  %vm10229_vm5 = vcmp.le.f32.partialorder %v2065_v22, 0.7853982 }
 0x23f   :  { %v2049_v31 = vsel %vm10128_vm6, %v9905_v33, %v2046_v40  ;;  %v7766_v17 = vmin.u32 %v2131_v58, %v10209_v25  ;;  %v2206_v61 = vsel %vm2204_vm4, %v2194_v1, 2102212464  ;;  %v2209_v59 = vsel %vm2201_vm3, %v2188_v35, %v2191_v28 }
 0x240   :  { %8288 = vcosq.f32 %v2049_v31  ;;  %vm2202_vm6 = vcmp.lt.s32.totalorder %v2182_v32, 2  ;;  %vm2203_vm7 = vcmp.lt.s32.totalorder %v2182_v32, 3  ;;  %v2210_v38 = vsel %vm2204_vm4, %v2197_v6, 920167782 }
 0x241   :  { %8290 = vsinq.f32 %v2049_v31  ;;  %v2133_v49 = vclz %v7766_v17  ;;  %v2213_v16 = vsel %vm2201_vm3, %v2191_v28, %v2194_v1  ;;  %v2205_v4 = vsel %vm2201_vm3, %v2185_v54, %v2188_v35 }
 0x242   :  { %v2211_v13 = vsel %vm2203_vm7, %v2194_v1, %v2210_v38  ;;  %v2214_v0 = vsel %vm2204_vm4, %v2200_v48, 1326507024  ;;  %v2207_v8 = vsel %vm2203_vm7, %v2191_v28, %v2206_v61  ;;  %v2277_v9 = vshrl.u32 %v2276_v51, 23  ;;  %v523_v1 = vpop.permute.xlu1 %522 }
 0x243   :  { %v7767_v18 = vadd.s32 4294967294, %v2133_v49  ;;  %v2212_v24 = vsel %vm2202_vm6, %v2209_v59, %v2211_v13  ;;  %v2215_v43 = vsel %vm2203_vm7, %v2197_v6, %v2214_v0  ;;  %v2152_v63 = vsel %vm2067_vm2, %v2151_v19, %v10195_v20 }
 0x244   :  { %v2216_v22 = vsel %vm2202_vm6, %v2213_v16, %v2215_v43  ;;  %v10235_v21 = vmul.u32.u64.low %v2217_v47, %v2212_v24  ;;  %v10236_v26 = vmul.u32.u64.high %v2217_v47, %v2212_v24, %v10235_v21  ;;  %v7773_v2 = vadd.s32 4294967169, %v2277_v9 }
 0x245   :  { %vm7768_vm8 = vcmp.lt.s32.totalorder %v7767_v18, 0  ;;  %v10239_v36 = vmul.u32.u64.low %v2217_v47, %v2216_v22  ;;  %v10240_v5 = vmul.u32.u64.high %v2217_v47, %v2216_v22, %v10239_v36  ;;  %v2208_v39 = vsel %vm2202_vm6, %v2205_v4, %v2207_v8 }
 0x246   :  { %v2136_v30 = vsel %vm7768_vm8, 0, %v7767_v18  ;;  %vm2056_vm9 = vcmp.lt.s32.totalorder %v10193_v42, 2  ;;  %vm2057_vm12 = vcmp.eq.s32.totalorder %v10193_v42, 0  ;;  %v2273_v60 = vand.u32 2147483647, %v10198_v34 }
 0x247   :  { %v2137_v15 = vsub.s32 32, %v2136_v30  ;;  %v2141_v53 = vsub.s32 4294967266, %v2136_v30  ;;  %v2283_v56 = vadd.s32 1, %v7773_v2  ;;  %v2138_v3 = vshll.u32 %v10209_v25, %v2136_v30 }
 0x248   :  { %v2227_v35 = vadd.s32 1, %v10236_v26  ;;  %v2154_v20 = vsel %vm10229_vm5, 0, %v2152_v63  ;;  %v2224_v32 = vmul.u32 %v2217_v47, %v2208_v39  ;;  %vm2226_vm10 = vc.u32 %v10240_v5, %v10235_v21 }
 0x249   :  { %v2139_v11 = vshrl.u32 %v10201_v46, %v2137_v15  ;;  %v2142_v58 = vadd.s32 127, %v2141_v53  ;;  %vm2284_vm11 = vcmp.gt.s32.totalorder %v2283_v56, 0  ;;  %vm2060_vm13 = vcmp.eq.s32.totalorder %v10193_v42, 2 }
 0x24a   :  { %v8289_v28 = vpop.eup %8288  ;;  %v2228_v25 = vsel %vm2226_vm10, %v2227_v35, %v10236_v26  ;;  %v2285_v19 = vsel %vm2284_vm11, %v2283_v56, 0  ;;  %v2158_v49 = vadd.s32 3, %v2154_v20  ;;  %v739_v47 = vmul.f32 %v9135_v55, %v523_v1 }
 0x24b   :  { %v8291_v40 = vpop.eup %8290  ;;  %v2061_v6 = vxor.u32 2147483648, %v8289_v28  ;;  %v2140_v51 = vor.u32 %v2139_v11, %v2138_v3  ;;  %v2143_v31 = vshll.u32 %v2142_v58, 23  ;;  %v2229_v17 = vadd.s32 %v2228_v25, %v2224_v32 }
 0x24c   :  { %v2058_v46 = vxor.u32 2147483648, %v8291_v40  ;;  %v2280_v38 = vand.u32 8388607, %v2273_v60  ;;  %v2287_v16 = vand.u32 31, %v2285_v19  ;;  %vm2053_vm14 = vweird.f32 %v9905_v33 }
 0x24d   :  { %v2062_v48 = vsel %vm2060_vm13, %v2061_v6, %v8291_v40  ;;  %v2144_v54 = vor.u32 4788187, %v2143_v31  ;;  %v2230_v59 = vadd.s32 536870912, %v2229_v17  ;;  %v2147_v13 = vcvt.s32.f32 %v2140_v51 }
 0x24e   :  { %v2059_v61 = vsel %vm2057_vm12, %v8289_v28, %v2058_v46  ;;  %v415_v0 = vmul.f32 %v9131_v50, %v8982_v10  ;;  %v2288_v43 = vsub.s32 32, %v2287_v16  ;;  %v10270_v9 = vmul.f32 %v9131_v50, %v8980_v7 }
 0x24f   :  { %v2063_v18 = vsel %vm2056_vm9, %v2059_v61, %v2062_v48  ;;  %v2145_v4 = vand.u32 2147483647, %v2144_v54  ;;  %v2231_v24 = vshrl.u32 %v2230_v59, 30  ;;  %v10272_v30 = vand.u32 3, %v2158_v49 }
 0x250   :  { %v2064_v8 = vsel %vm2053_vm14, nan, %v2063_v18  ;;  %v2281_v36 = vor.u32 8388608, %v2280_v38  ;;  %v2291_v42 = vshrl.u32 %v14757_v62, %v2288_v43  ;;  %v803_v2 = vadd.f32 %v739_v47, %v415_v0 }
 0x251   :  { %v7587_v22 = vmul.f32 1000.0, %v2064_v8  ;;  %v2148_v26 = vmul.f32 %v2147_v13, %v2145_v4  ;;  %v2232_v33 = vshll.u32 %v2231_v24, 30  ;;  %v2290_v10 = vshll.u32 %v14756_v44, %v2287_v16 }
 0x252   :  { %v2294_v53 = vshrl.u32 %v14758_v27, %v2288_v43  ;;  %v2297_v63 = vshrl.u32 %v14759_v37, %v2288_v43  ;;  %vm2171_vm15 = vcmp.lt.s32.totalorder %v10134_v41, 0  ;;  %v2293_v39 = vshll.u32 %v14757_v62, %v2287_v16 }
 0x253   :  { %7651 = vst [vmem:[#allocation2 + $0x50] sm:$0xff] %v7587_v22  ;;  %v2149_v15 = vxor.u32 2147483648, %v2148_v26  ;;  %v10279_v7 = vsub.s32 %v2229_v17, %v2232_v33  ;;  %v2296_v56 = vshll.u32 %v14758_v27, %v2287_v16  ;;  %v2300_v3 = vshrl.u32 %v14760_v45, %v2288_v43  ;;  %v527_v22 = vpop.permute.xlu0 %526 }
 0x254   :  { %v2286_v58 = vshrl.u32 %v2285_v19, 5  ;;  %v2292_v35 = vor.u32 %v2291_v42, %v2290_v10  ;;  %v2299_v28 = vshll.u32 %v14759_v37, %v2287_v16  ;;  %v2295_v1 = vor.u32 %v2294_v53, %v2293_v39 }
 0x255   :  { %v2150_v11 = vsel %vm2067_vm2, %v2149_v15, %v2148_v26  ;;  %v2235_v32 = vsub.s32 0, %v10279_v7  ;;  %v2298_v40 = vor.u32 %v2297_v63, %v2296_v56  ;;  %v2302_v51 = vshll.u32 %v14760_v45, %v2287_v16 }
 0x256   :  { %v2153_v20 = vsel %vm10229_vm5, %v9986_v23, %v2150_v11  ;;  %v2301_v6 = vor.u32 %v2300_v3, %v2299_v28  ;;  %v2303_v31 = vshrl.u32 %v14761_v57, %v2288_v43  ;;  %vm10295_vm0 = vcmp.le.f32.partialorder %v2169_v29, 0.7853982 }
 0x257   :  { %8292 = vcosq.f32 %v2153_v20  ;;  %v7770_v14 = vmin.u32 %v2235_v32, %v10279_v7  ;;  %v10300_v46 = vshll.u32 %v2281_v36, 8  ;;  %v10303_v17 = vadd.f32 %v9137_v52, %v803_v2 }
 0x258   :  { %8294 = vsinq.f32 %v2153_v20  ;;  %v2255_v19 = vsub.s32 4, %v2231_v24  ;;  %v2289_v48 = vshrl.u32 %v14756_v44, %v2288_v43  ;;  %v2304_v54 = vor.u32 %v2303_v31, %v2302_v51 }
 0x259   :  { %vm2305_vm1 = vcmp.lt.s32.totalorder %v2286_v58, 1  ;;  %v2237_v49 = vclz %v7770_v14  ;;  %vm2307_vm2 = vcmp.lt.s32.totalorder %v2286_v58, 3  ;;  %vm2308_vm3 = vcmp.lt.s32.totalorder %v2286_v58, 4 }
 0x25a   :  { %v2313_v29 = vsel %vm2305_vm1, %v2292_v35, %v2295_v1  ;;  %vm2164_vm4 = vcmp.eq.s32.totalorder %v10272_v30, 2  ;;  %v2310_v47 = vsel %vm2308_vm3, %v2298_v40, 2102212464  ;;  %v2314_v61 = vsel %vm2308_vm3, %v2301_v6, 920167782 }
 0x25b   :  { %v2317_v59 = vsel %vm2305_vm1, %v2295_v1, %v2298_v40  ;;  %v2318_v38 = vsel %vm2308_vm3, %v2304_v54, 1326507024  ;;  %vm2161_vm5 = vcmp.eq.s32.totalorder %v10272_v30, 0  ;;  %v7771_v16 = vadd.s32 4294967294, %v2237_v49 }
 0x25c   :  { %vm2306_vm6 = vcmp.lt.s32.totalorder %v2286_v58, 2  ;;  %v2315_v18 = vsel %vm2307_vm2, %v2298_v40, %v2314_v61  ;;  %v2319_v4 = vsel %vm2307_vm2, %v2301_v6, %v2318_v38  ;;  %vm2160_vm7 = vcmp.lt.s32.totalorder %v10272_v30, 2 }
 0x25d   :  { %v2256_v13 = vsel %vm2171_vm15, %v2255_v19, %v2231_v24  ;;  %v2309_v0 = vsel %vm2305_vm1, %v2289_v48, %v2292_v35  ;;  %v2316_v8 = vsel %vm2306_vm6, %v2313_v29, %v2315_v18  ;;  %v2320_v43 = vsel %vm2306_vm6, %v2317_v59, %v2319_v4 }
 0x25e   :  { %vm2157_vm8 = vweird.f32 %v9986_v23  ;;  %vm7772_vm9 = vcmp.lt.s32.totalorder %v7771_v16, 0  ;;  %v2311_v26 = vsel %vm2307_vm2, %v2295_v1, %v2310_v47  ;;  %v2380_v15 = vand.u32 2139095040, %v10303_v17 }
 0x25f   :  { %v10321_v33 = vmul.u32.u64.low %v10300_v46, %v2320_v43  ;;  %v10322_v36 = vmul.u32.u64.high %v10300_v46, %v2320_v43, %v10321_v33  ;;  %v2240_v42 = vsel %vm7772_vm9, 0, %v7771_v16  ;;  %v2225_v10 = vadd.s32 %v10235_v21, %v10240_v5 }
 0x260   :  { %v10325_v2 = vmul.u32.u64.low %v10300_v46, %v2316_v8  ;;  %v10326_v24 = vmul.u32.u64.high %v10300_v46, %v2316_v8, %v10325_v2  ;;  %v2241_v53 = vsub.s32 32, %v2240_v42  ;;  %v2245_v63 = vsub.s32 4294967266, %v2240_v42 }
 0x261   :  { %v740_v39 = vmul.f32 %v9135_v55, %v527_v22  ;;  %v8293_v56 = vpop.eup %8292  ;;  %v2258_v3 = vsel %vm10295_vm0, 0, %v2256_v13  ;;  %v2312_v11 = vsel %vm2306_vm6, %v2309_v0, %v2311_v26  ;;  %v2377_v35 = vand.u32 2147483647, %v10303_v17 }
 0x262   :  { %v2381_v28 = vshrl.u32 %v2380_v15, 23  ;;  %v8295_v20 = vpop.eup %8294  ;;  %v2165_v32 = vxor.u32 2147483648, %v8293_v56  ;;  %v2242_v1 = vshll.u32 %v10279_v7, %v2240_v42  ;;  %v2243_v40 = vshrl.u32 %v2225_v10, %v2241_v53 }
 0x263   :  { %v2246_v6 = vadd.s32 127, %v2245_v63  ;;  %v2162_v21 = vxor.u32 2147483648, %v8295_v20  ;;  %vm2330_vm12 = vc.u32 %v10322_v36, %v10325_v2  ;;  %v2331_v5 = vadd.s32 1, %v10326_v24 }
 0x264   :  { %v7777_v51 = vadd.s32 4294967169, %v2381_v28  ;;  %v2166_v58 = vsel %vm2164_vm4, %v2165_v32, %v8295_v20  ;;  %v2244_v31 = vor.u32 %v2243_v40, %v2242_v1  ;;  %v2328_v19 = vmul.u32 %v10300_v46, %v2312_v11 }
 0x265   :  { %v2247_v14 = vshll.u32 %v2246_v6, 23  ;;  %v2163_v48 = vsel %vm2161_vm5, %v8293_v56, %v2162_v21  ;;  %v2262_v7 = vadd.s32 3, %v2258_v3  ;;  %v2332_v54 = vsel %vm2330_vm12, %v2331_v5, %v10326_v24 }
 0x266   :  { %v2387_v49 = vadd.s32 1, %v7777_v51  ;;  %v2167_v29 = vsel %vm2160_vm7, %v2163_v48, %v2166_v58  ;;  %v2333_v61 = vadd.s32 %v2332_v54, %v2328_v19  ;;  %v2384_v59 = vand.u32 8388607, %v2377_v35 }
 0x267   :  { %v2248_v47 = vor.u32 4788187, %v2247_v14  ;;  %v2168_v38 = vsel %vm2157_vm8, nan, %v2167_v29  ;;  %v2251_v16 = vcvt.s32.f32 %v2244_v31  ;;  %v804_v46 = vadd.f32 %v740_v39, %v10270_v9 }
 0x268   :  { %vm2388_vm10 = vcmp.gt.s32.totalorder %v2387_v49, 0  ;;  %v7588_v18 = vmul.f32 1000.0, %v2168_v38  ;;  %v2334_v13 = vadd.s32 536870912, %v2333_v61  ;;  %v10356_v22 = vand.u32 3, %v2262_v7 }
 0x269   :  { %v2249_v4 = vand.u32 2147483647, %v2248_v47  ;;  %v2389_v0 = vsel %vm2388_vm10, %v2387_v49, 0  ;;  %v2385_v26 = vor.u32 8388608, %v2384_v59  ;;  %v10361_v9 = vadd.f32 %v9137_v52, %v804_v46 }
 0x26a   :  { %v2391_v8 = vand.u32 31, %v2389_v0  ;;  %7652 = vst [vmem:[#allocation2 + $0x58] sm:$0xff] %v7588_v18  ;;  %v10354_v43 = vshrl.u32 %v2334_v13, 30  ;;  %v2390_v20 = vshrl.u32 %v2389_v0, 5  ;;  %vm2275_vm11 = vcmp.lt.s32.totalorder %v10198_v34, 0 }
 0x26b   :  { %v2252_v30 = vmul.f32 %v2251_v16, %v2249_v4  ;;  %v2425_v31 = vshll.u32 %v2385_v26, 8  ;;  %v2484_v14 = vand.u32 2139095040, %v10361_v9  ;;  %vm2268_vm14 = vcmp.eq.s32.totalorder %v10356_v22, 2 }
 0x26c   :  { %v2392_v33 = vsub.s32 32, %v2391_v8  ;;  %v2336_v23 = vshll.u32 %v10354_v43, 30  ;;  %v2394_v24 = vshll.u32 %v14756_v44, %v2391_v8  ;;  %v2397_v10 = vshll.u32 %v14757_v62, %v2391_v8 }
 0x26d   :  { %v2253_v42 = vxor.u32 2147483648, %v2252_v30  ;;  %v2400_v3 = vshll.u32 %v14758_v27, %v2391_v8  ;;  %v2403_v1 = vshll.u32 %v14759_v37, %v2391_v8  ;;  %v2406_v51 = vshll.u32 %v14760_v45, %v2391_v8 }
 0x26e   :  { %v2395_v15 = vshrl.u32 %v14757_v62, %v2392_v33  ;;  %v2398_v53 = vshrl.u32 %v14758_v27, %v2392_v33  ;;  %v2401_v63 = vshrl.u32 %v14759_v37, %v2392_v33  ;;  %v10369_v56 = vsub.s32 %v2333_v61, %v2336_v23 }
 0x26f   :  { %v2254_v39 = vsel %vm2171_vm15, %v2253_v42, %v2252_v30  ;;  %v2404_v11 = vshrl.u32 %v14760_v45, %v2392_v33  ;;  %v2407_v58 = vshrl.u32 %v14761_v57, %v2392_v33  ;;  %v2359_v19 = vsub.s32 4, %v10354_v43 }
 0x270   :  { %v2257_v28 = vsel %vm10295_vm0, %v10134_v41, %v2254_v39  ;;  %v2396_v32 = vor.u32 %v2395_v15, %v2394_v24  ;;  %v2339_v40 = vsub.s32 0, %v10369_v56  ;;  %v2399_v6 = vor.u32 %v2398_v53, %v2397_v10 }
 0x271   :  { %8296 = vcosq.f32 %v2257_v28  ;;  %v2402_v21 = vor.u32 %v2401_v63, %v2400_v3  ;;  %v2405_v5 = vor.u32 %v2404_v11, %v2403_v1  ;;  %v2393_v48 = vshrl.u32 %v14756_v44, %v2392_v33 }
 0x272   :  { %8298 = vsinq.f32 %v2257_v28  ;;  %v7774_v25 = vmin.u32 %v2339_v40, %v10369_v56  ;;  %v2408_v7 = vor.u32 %v2407_v58, %v2406_v51  ;;  %vm2409_vm13 = vcmp.lt.s32.totalorder %v2390_v20, 1 }
 0x273   :  { %vm2410_vm15 = vcmp.lt.s32.totalorder %v2390_v20, 2  ;;  %vm2411_vm0 = vcmp.lt.s32.totalorder %v2390_v20, 3  ;;  %vm2412_vm1 = vcmp.lt.s32.totalorder %v2390_v20, 4  ;;  %vm2265_vm2 = vcmp.eq.s32.totalorder %v10356_v22, 0 }
 0x274   :  { %v2341_v54 = vclz %v7774_v25  ;;  %v2414_v49 = vsel %vm2412_vm1, %v2402_v21, 2102212464  ;;  %v2417_v29 = vsel %vm2409_vm13, %v2396_v32, %v2399_v6  ;;  %v2418_v47 = vsel %vm2412_vm1, %v2405_v5, 920167782 }
 0x275   :  { %v2421_v61 = vsel %vm2409_vm13, %v2399_v6, %v2402_v21  ;;  %vm2264_vm3 = vcmp.lt.s32.totalorder %v10356_v22, 2  ;;  %v2413_v38 = vsel %vm2409_vm13, %v2393_v48, %v2396_v32  ;;  %v2419_v16 = vsel %vm2411_vm0, %v2402_v21, %v2418_v47  ;;  %v531_v21 = vpop.permute.xlu1 %530 }
 0x276   :  { %v7775_v59 = vadd.s32 4294967294, %v2341_v54  ;;  %v2422_v46 = vsel %vm2412_vm1, %v2408_v7, 1326507024  ;;  %vm2261_vm4 = vweird.f32 %v10134_v41  ;;  %v2415_v18 = vsel %vm2411_vm0, %v2399_v6, %v2414_v49 }
 0x277   :  { %v2420_v4 = vsel %vm2410_vm15, %v2417_v29, %v2419_v16  ;;  %v2423_v13 = vsel %vm2411_vm0, %v2405_v5, %v2422_v46  ;;  %v2485_v0 = vshrl.u32 %v2484_v14, 23  ;;  %vm10392_vm5 = vcmp.le.f32.partialorder %v2273_v60, 0.7853982  ;;  %v14796_v46 = vld [vmem:[#allocation12_spill] sm:$0xff] }
 0x278   :  { %vm7776_vm6 = vcmp.lt.s32.totalorder %v7775_v59, 0  ;;  %v2424_v30 = vsel %vm2410_vm15, %v2421_v61, %v2423_v13  ;;  %v10397_v26 = vmul.u32.u64.low %v2425_v31, %v2420_v4  ;;  %v10398_v33 = vmul.u32.u64.high %v2425_v31, %v2420_v4, %v10397_v26 }
 0x279   :  { %v2329_v42 = vadd.s32 %v10325_v2, %v10322_v36  ;;  %v2344_v23 = vsel %vm7776_vm6, 0, %v7775_v59  ;;  %v10403_v24 = vmul.u32.u64.low %v2425_v31, %v2424_v30  ;;  %v10404_v15 = vmul.u32.u64.high %v2425_v31, %v2424_v30, %v10403_v24 }
 0x27a   :  { %v2345_v53 = vsub.s32 32, %v2344_v23  ;;  %v2349_v60 = vsub.s32 4294967266, %v2344_v23  ;;  %v2416_v63 = vsel %vm2410_vm15, %v2413_v38, %v2415_v18  ;;  %v7781_v39 = vadd.s32 4294967169, %v2485_v0 }
 0x27b   :  { %v8297_v10 = vpop.eup %8296  ;;  %v2346_v28 = vshll.u32 %v10369_v56, %v2344_v23  ;;  %v2360_v32 = vsel %vm2275_vm11, %v2359_v19, %v10354_v43  ;;  %v2481_v36 = vand.u32 2147483647, %v10361_v9  ;;  %v2435_v6 = vadd.s32 1, %v10398_v33 }
 0x27c   :  { %v8299_v3 = vpop.eup %8298  ;;  %v2269_v11 = vxor.u32 2147483648, %v8297_v10  ;;  %v2347_v1 = vshrl.u32 %v2329_v42, %v2345_v53  ;;  %v2350_v40 = vadd.s32 127, %v2349_v60  ;;  %v2432_v5 = vmul.u32 %v2425_v31, %v2416_v63 }
 0x27d   :  { %v2266_v2 = vxor.u32 2147483648, %v8299_v3  ;;  %vm2434_vm7 = vc.u32 %v10404_v15, %v10397_v26  ;;  %v2491_v56 = vadd.s32 1, %v7781_v39  ;;  %v741_v48 = vmul.f32 %v9135_v55, %v531_v21 }
 0x27e   :  { %v2270_v20 = vsel %vm2268_vm14, %v2269_v11, %v8299_v3  ;;  %v2348_v43 = vor.u32 %v2347_v1, %v2346_v28  ;;  %v2351_v58 = vshll.u32 %v2350_v40, 23  ;;  %v2436_v25 = vsel %vm2434_vm7, %v2435_v6, %v10398_v33 }
 0x27f   :  { %v2267_v51 = vsel %vm2265_vm2, %v8297_v10, %v2266_v2  ;;  %v2437_v19 = vadd.s32 %v2436_v25, %v2432_v5  ;;  %vm2492_vm8 = vcmp.gt.s32.totalorder %v2491_v56, 0  ;;  %v2488_v54 = vand.u32 8388607, %v2481_v36 }
 0x280   :  { %v2271_v14 = vsel %vm2264_vm3, %v2267_v51, %v2270_v20  ;;  %v2352_v7 = vor.u32 4788187, %v2351_v58  ;;  %v2493_v49 = vsel %vm2492_vm8, %v2491_v56, 0  ;;  %v2362_v47 = vsel %vm10392_vm5, 0, %v2360_v32 }
 0x281   :  { %v2272_v31 = vsel %vm2261_vm4, nan, %v2271_v14  ;;  %v2438_v61 = vadd.s32 536870912, %v2437_v19  ;;  %v2495_v59 = vand.u32 31, %v2493_v49  ;;  %v417_v22 = vmul.f32 %v9131_v50, %v8988_v12 }
 0x282   :  { %v7589_v29 = vmul.f32 1000.0, %v2272_v31  ;;  %v2353_v38 = vand.u32 2147483647, %v2352_v7  ;;  %v2355_v16 = vcvt.s32.f32 %v2348_v43  ;;  %v10433_v41 = vmul.f32 %v9131_v50, %v14796_v46 }
 0x283   :  { %v2439_v18 = vshrl.u32 %v2438_v61, 30  ;;  %v2496_v4 = vsub.s32 32, %v2495_v59  ;;  %v2366_v0 = vadd.s32 3, %v2362_v47  ;;  %v2489_v30 = vor.u32 8388608, %v2488_v54 }
 0x284   :  { %7653 = vst [vmem:[#allocation2 + $0x60] sm:$0xff] %v7589_v29  ;;  %v2356_v13 = vmul.f32 %v2355_v16, %v2353_v38  ;;  %v805_v33 = vadd.f32 %v741_v48, %v417_v22  ;;  %v10435_v23 = vshrl.u32 %v2493_v49, 5  ;;  %v2498_v24 = vshll.u32 %v14756_v44, %v2495_v59 }
 0x285   :  { %v2440_v42 = vshll.u32 %v2439_v18, 30  ;;  %v2499_v12 = vshrl.u32 %v14757_v62, %v2496_v4  ;;  %v2502_v53 = vshrl.u32 %v14758_v27, %v2496_v4  ;;  %v2505_v60 = vshrl.u32 %v14759_v37, %v2496_v4 }
 0x286   :  { %v2357_v10 = vxor.u32 2147483648, %v2356_v13  ;;  %v2508_v63 = vshrl.u32 %v14760_v45, %v2496_v4  ;;  %v2501_v3 = vshll.u32 %v14757_v62, %v2495_v59  ;;  %v2504_v11 = vshll.u32 %v14758_v27, %v2495_v59 }
 0x287   :  { %v10442_v39 = vsub.s32 %v2437_v19, %v2440_v42  ;;  %v2511_v28 = vshrl.u32 %v14761_v57, %v2496_v4  ;;  %v2500_v2 = vor.u32 %v2499_v12, %v2498_v24  ;;  %v2507_v1 = vshll.u32 %v14759_v37, %v2495_v59 }
 0x288   :  { %v2358_v32 = vsel %vm2275_vm11, %v2357_v10, %v2356_v13  ;;  %v2510_v40 = vshll.u32 %v14760_v45, %v2495_v59  ;;  %v2503_v20 = vor.u32 %v2502_v53, %v2501_v3  ;;  %v2506_v5 = vor.u32 %v2505_v60, %v2504_v11 }
 0x289   :  { %v2361_v6 = vsel %vm10392_vm5, %v10198_v34, %v2358_v32  ;;  %v2443_v21 = vsub.s32 0, %v10442_v39  ;;  %vm2379_vm9 = vcmp.lt.s32.totalorder %v10303_v17, 0  ;;  %v2509_v56 = vor.u32 %v2508_v63, %v2507_v1 }
 0x28a   :  { %8300 = vcosq.f32 %v2361_v6  ;;  %v2512_v51 = vor.u32 %v2511_v28, %v2510_v40  ;;  %v10456_v43 = vand.u32 3, %v2366_v0  ;;  %vm10460_vm12 = vcmp.le.f32.partialorder %v2377_v35, 0.7853982 }
 0x28b   :  { %8302 = vsinq.f32 %v2361_v6  ;;  %v7778_v8 = vmin.u32 %v2443_v21, %v10442_v39  ;;  %v10465_v25 = vshll.u32 %v2489_v30, 8  ;;  %v2463_v14 = vsub.s32 4, %v2439_v18 }
 0x28c   :  { %vm2513_vm10 = vcmp.lt.s32.totalorder %v10435_v23, 1  ;;  %vm2515_vm11 = vcmp.lt.s32.totalorder %v10435_v23, 3  ;;  %v10470_v19 = vadd.f32 %v9137_v52, %v805_v33  ;;  %vm2516_vm13 = vcmp.lt.s32.totalorder %v10435_v23, 4 }
 0x28d   :  { %v2445_v48 = vclz %v7778_v8  ;;  %v2521_v35 = vsel %vm2513_vm10, %v2500_v2, %v2503_v20  ;;  %v2525_v31 = vsel %vm2513_vm10, %v2503_v20, %v2506_v5  ;;  %v2497_v7 = vshrl.u32 %v14756_v44, %v2496_v4  ;;  %v535_v4 = vpop.permute.xlu0 %534 }
 0x28e   :  { %v2518_v54 = vsel %vm2516_vm13, %v2506_v5, 2102212464  ;;  %v2522_v49 = vsel %vm2516_vm13, %v2509_v56, 920167782  ;;  %v2526_v29 = vsel %vm2516_vm13, %v2512_v51, 1326507024  ;;  %v2464_v22 = vsel %vm2379_vm9, %v2463_v14, %v2439_v18  ;;  %v539_v51 = vpop.permute.xlu1 %538 }
 0x28f   :  { %vm2369_vm14 = vcmp.eq.s32.totalorder %v10456_v43, 0  ;;  %v7779_v47 = vadd.s32 4294967294, %v2445_v48  ;;  %vm2514_vm15 = vcmp.lt.s32.totalorder %v10435_v23, 2  ;;  %v2523_v61 = vsel %vm2515_vm11, %v2506_v5, %v2522_v49 }
 0x290   :  { %v2527_v59 = vsel %vm2515_vm11, %v2509_v56, %v2526_v29  ;;  %vm2368_vm0 = vcmp.lt.s32.totalorder %v10456_v43, 2  ;;  %v2517_v38 = vsel %vm2513_vm10, %v2497_v7, %v2500_v2  ;;  %v2524_v16 = vsel %vm2514_vm15, %v2521_v35, %v2523_v61 }
 0x291   :  { %v2528_v46 = vsel %vm2514_vm15, %v2525_v31, %v2527_v59  ;;  %vm7780_vm1 = vcmp.lt.s32.totalorder %v7779_v47, 0  ;;  %v2519_v13 = vsel %vm2515_vm11, %v2503_v20, %v2518_v54  ;;  %vm2372_vm2 = vcmp.eq.s32.totalorder %v10456_v43, 2 }
 0x292   :  { %v10496_v0 = vmul.u32.u64.low %v10465_v25, %v2528_v46  ;;  %v10497_v30 = vmul.u32.u64.high %v10465_v25, %v2528_v46, %v10496_v0  ;;  %v2448_v18 = vsel %vm7780_vm1, 0, %v7779_v47  ;;  %v2433_v24 = vadd.s32 %v10397_v26, %v10404_v15 }
 0x293   :  { %v10501_v33 = vmul.u32.u64.low %v10465_v25, %v2524_v16  ;;  %v10502_v42 = vmul.u32.u64.high %v10465_v25, %v2524_v16, %v10501_v33  ;;  %v2449_v12 = vsub.s32 32, %v2448_v18  ;;  %v2453_v10 = vsub.s32 4294967266, %v2448_v18 }
 0x294   :  { %v742_v53 = vmul.f32 %v9135_v55, %v535_v4  ;;  %v8301_v60 = vpop.eup %8300  ;;  %v2466_v63 = vsel %vm10460_vm12, 0, %v2464_v22  ;;  %v2520_v3 = vsel %vm2514_vm15, %v2517_v38, %v2519_v13  ;;  %v2585_v11 = vand.u32 2147483647, %v10470_v19 }
 0x295   :  { %v2588_v28 = vand.u32 2139095040, %v10470_v19  ;;  %v8303_v32 = vpop.eup %8302  ;;  %v2373_v2 = vxor.u32 2147483648, %v8301_v60  ;;  %v2450_v1 = vshll.u32 %v10442_v39, %v2448_v18  ;;  %v2451_v26 = vshrl.u32 %v2433_v24, %v2449_v12 }
 0x296   :  { %v2454_v15 = vadd.s32 127, %v2453_v10  ;;  %v2370_v40 = vxor.u32 2147483648, %v8303_v32  ;;  %vm2538_vm3 = vc.u32 %v10497_v30, %v10501_v33  ;;  %v2539_v6 = vadd.s32 1, %v10502_v42 }
 0x297   :  { %v2589_v21 = vshrl.u32 %v2588_v28, 23  ;;  %v2374_v23 = vsel %vm2372_vm2, %v2373_v2, %v8303_v32  ;;  %v2452_v20 = vor.u32 %v2451_v26, %v2450_v1  ;;  %v2536_v56 = vmul.u32 %v10465_v25, %v2520_v3 }
 0x298   :  { %v2455_v5 = vshll.u32 %v2454_v15, 23  ;;  %v2371_v8 = vsel %vm2369_vm14, %v8301_v60, %v2370_v40  ;;  %v2540_v39 = vsel %vm2538_vm3, %v2539_v6, %v10502_v42  ;;  %v806_v48 = vadd.f32 %v742_v53, %v10433_v41  ;;  %v14799_v41 = vld [vmem:[#allocation14_spill] sm:$0xff] }
 0x299   :  { %v7785_v14 = vadd.s32 4294967169, %v2589_v21  ;;  %vm2365_vm4 = vweird.f32 %v10198_v34  ;;  %v2375_v35 = vsel %vm2368_vm0, %v2371_v8, %v2374_v23  ;;  %v2541_v7 = vadd.s32 %v2540_v39, %v2536_v56 }
 0x29a   :  { %v2456_v31 = vor.u32 4788187, %v2455_v5  ;;  %v2376_v54 = vsel %vm2365_vm4, nan, %v2375_v35  ;;  %v2470_v49 = vadd.s32 3, %v2466_v63  ;;  %v743_v25 = vmul.f32 %v9135_v55, %v539_v51 }
 0x29b   :  { %v2595_v29 = vadd.s32 1, %v7785_v14  ;;  %v7590_v47 = vmul.f32 1000.0, %v2376_v54  ;;  %v2459_v59 = vcvt.s32.f32 %v2452_v20  ;;  %v2542_v22 = vadd.s32 536870912, %v2541_v7 }
 0x29c   :  { %v2457_v61 = vand.u32 2147483647, %v2456_v31  ;;  %v2592_v38 = vand.u32 8388607, %v2585_v11  ;;  %v10530_v34 = vadd.f32 %v9137_v52, %v806_v48  ;;  %v419_v43 = vmul.f32 %v9131_v50, %v14799_v41 }
 0x29d   :  { %vm2596_vm5 = vcmp.gt.s32.totalorder %v2595_v29, 0  ;;  %7654 = vst [vmem:[#allocation2 + $0x68] sm:$0xff] %v7590_v47  ;;  %v2543_v46 = vshrl.u32 %v2542_v22, 30  ;;  %v10534_v13 = vand.u32 3, %v2470_v49  ;;  %vm2483_vm6 = vcmp.lt.s32.totalorder %v10361_v9, 0 }
 0x29e   :  { %v2460_v16 = vmul.f32 %v2459_v59, %v2457_v61  ;;  %v2597_v4 = vsel %vm2596_vm5, %v2595_v29, 0  ;;  %vm10539_vm7 = vcmp.le.f32.partialorder %v2481_v36, 0.7853982  ;;  %v10544_v24 = vadd.s32 %v10501_v33, %v10497_v30 }
 0x29f   :  { %v2599_v0 = vand.u32 31, %v2597_v4  ;;  %v2544_v12 = vshll.u32 %v2543_v46, 30  ;;  %v10546_v10 = vadd.f32 %v743_v25, %v419_v43  ;;  %v2593_v53 = vor.u32 8388608, %v2592_v38 }
 0x2a0   :  { %v2461_v18 = vxor.u32 2147483648, %v2460_v16  ;;  %v2689_v63 = vand.u32 2147483647, %v10530_v34  ;;  %v2692_v3 = vand.u32 2139095040, %v10530_v34  ;;  %v2567_v36 = vsub.s32 4, %v2543_v46 }
 0x2a1   :  { %v2600_v60 = vsub.s32 32, %v2599_v0  ;;  %v10552_v32 = vsub.s32 %v2541_v7, %v2544_v12  ;;  %v10554_v2 = vshrl.u32 %v2597_v4, 5  ;;  %v2602_v33 = vshll.u32 %v14756_v44, %v2599_v0 }
 0x2a2   :  { %v2462_v28 = vsel %vm2379_vm9, %v2461_v18, %v2460_v16  ;;  %v2605_v26 = vshll.u32 %v14757_v62, %v2599_v0  ;;  %v2608_v6 = vshll.u32 %v14758_v27, %v2599_v0  ;;  %v2611_v23 = vshll.u32 %v14759_v37, %v2599_v0 }
 0x2a3   :  { %v2465_v30 = vsel %vm10460_vm12, %v10303_v17, %v2462_v28  ;;  %v2603_v1 = vshrl.u32 %v14757_v62, %v2600_v60  ;;  %v2547_v15 = vsub.s32 0, %v10552_v32  ;;  %v2606_v40 = vshrl.u32 %v14758_v27, %v2600_v60 }
 0x2a4   :  { %8304 = vcosq.f32 %v2465_v30  ;;  %v2609_v21 = vshrl.u32 %v14759_v37, %v2600_v60  ;;  %v2612_v58 = vshrl.u32 %v14760_v45, %v2600_v60  ;;  %v2568_v5 = vsel %vm2483_vm6, %v2567_v36, %v2543_v46 }
 0x2a5   :  { %8306 = vsinq.f32 %v2465_v30  ;;  %v7782_v20 = vmin.u32 %v2547_v15, %v10552_v32  ;;  %v2604_v56 = vor.u32 %v2603_v1, %v2602_v33  ;;  %v2607_v51 = vor.u32 %v2606_v40, %v2605_v26 }
 0x2a6   :  { %v2610_v8 = vor.u32 %v2609_v21, %v2608_v6  ;;  %v2613_v39 = vor.u32 %v2612_v58, %v2611_v23  ;;  %v2614_v14 = vshll.u32 %v14760_v45, %v2599_v0  ;;  %v2615_v48 = vshrl.u32 %v14761_v57, %v2600_v60 }
 0x2a7   :  { %vm2476_vm8 = vcmp.eq.s32.totalorder %v10534_v13, 2  ;;  %v2549_v35 = vclz %v7782_v20  ;;  %v10574_v31 = vshll.u32 %v2593_v53, 8  ;;  %v2693_v7 = vshrl.u32 %v2692_v3, 23 }
 0x2a8   :  { %v10578_v54 = vand.u32 8388607, %v2689_v63  ;;  %vm2473_vm9 = vcmp.eq.s32.totalorder %v10534_v13, 0  ;;  %v2570_v49 = vsel %vm10539_vm7, 0, %v2568_v5  ;;  %v2601_v29 = vshrl.u32 %v14756_v44, %v2600_v60 }
 0x2a9   :  { %v2616_v25 = vor.u32 %v2615_v48, %v2614_v14  ;;  %vm2620_vm12 = vcmp.lt.s32.totalorder %v10554_v2, 4  ;;  %vm2472_vm10 = vcmp.lt.s32.totalorder %v10534_v13, 2  ;;  %v7783_v47 = vadd.s32 4294967294, %v2549_v35 }
 0x2aa   :  { %vm2617_vm11 = vcmp.lt.s32.totalorder %v10554_v2, 1  ;;  %vm2619_vm13 = vcmp.lt.s32.totalorder %v10554_v2, 3  ;;  %v2622_v61 = vsel %vm2620_vm12, %v2610_v8, 2102212464  ;;  %v2626_v22 = vsel %vm2620_vm12, %v2613_v39, 920167782 }
 0x2ab   :  { %v2625_v59 = vsel %vm2617_vm11, %v2604_v56, %v2607_v51  ;;  %v2629_v38 = vsel %vm2617_vm11, %v2607_v51, %v2610_v8  ;;  %v2630_v41 = vsel %vm2620_vm12, %v2616_v25, 1326507024  ;;  %vm7784_vm14 = vcmp.lt.s32.totalorder %v7783_v47, 0 }
 0x2ac   :  { %vm2618_vm15 = vcmp.lt.s32.totalorder %v10554_v2, 2  ;;  %v2627_v43 = vsel %vm2619_vm13, %v2610_v8, %v2626_v22  ;;  %v2631_v16 = vsel %vm2619_vm13, %v2613_v39, %v2630_v41  ;;  %v2552_v46 = vsel %vm7784_vm14, 0, %v7783_v47 }
 0x2ad   :  { %v2621_v4 = vsel %vm2617_vm11, %v2601_v29, %v2604_v56  ;;  %v2623_v0 = vsel %vm2619_vm13, %v2607_v51, %v2622_v61  ;;  %v2632_v18 = vsel %vm2618_vm15, %v2629_v38, %v2631_v16  ;;  %v2553_v53 = vsub.s32 32, %v2552_v46 }
 0x2ae   :  { %v8305_v12 = vpop.eup %8304  ;;  %v2557_v60 = vsub.s32 4294967266, %v2552_v46  ;;  %v2628_v3 = vsel %vm2618_vm15, %v2625_v59, %v2627_v43  ;;  %v7789_v28 = vadd.s32 4294967169, %v2693_v7  ;;  %v2554_v33 = vshll.u32 %v10552_v32, %v2552_v46 }
 0x2af   :  { %v8307_v36 = vpop.eup %8306  ;;  %v2477_v30 = vxor.u32 2147483648, %v8305_v12  ;;  %v10595_v1 = vmul.u32.u64.low %v10574_v31, %v2632_v18  ;;  %v10596_v26 = vmul.u32.u64.high %v10574_v31, %v2632_v18, %v10595_v1  ;;  %v2555_v40 = vshrl.u32 %v10544_v24, %v2553_v53 }
 0x2b0   :  { %v2474_v15 = vxor.u32 2147483648, %v8307_v36  ;;  %v2558_v6 = vadd.s32 127, %v2557_v60  ;;  %v2699_v21 = vadd.s32 1, %v7789_v28  ;;  %v2574_v58 = vadd.s32 3, %v2570_v49 }
 0x2b1   :  { %v2478_v23 = vsel %vm2476_vm8, %v2477_v30, %v8307_v36  ;;  %v10602_v20 = vmul.u32.u64.low %v10574_v31, %v2628_v3  ;;  %v10603_v5 = vmul.u32.u64.high %v10574_v31, %v2628_v3, %v10602_v20  ;;  %v2556_v56 = vor.u32 %v2555_v40, %v2554_v33 }
 0x2b2   :  { %v2475_v32 = vsel %vm2473_vm9, %v8305_v12, %v2474_v15  ;;  %v2559_v51 = vshll.u32 %v2558_v6, 23  ;;  %vm2700_vm0 = vcmp.gt.s32.totalorder %v2699_v21, 0  ;;  %vm2469_vm1 = vweird.f32 %v10303_v17 }
 0x2b3   :  { %v2479_v24 = vsel %vm2472_vm10, %v2475_v32, %v2478_v23  ;;  %v2624_v8 = vsel %vm2618_vm15, %v2621_v4, %v2623_v0  ;;  %v2701_v39 = vsel %vm2700_vm0, %v2699_v21, 0  ;;  %vm2642_vm2 = vc.u32 %v10596_v26, %v10602_v20 }
 0x2b4   :  { %v2480_v14 = vsel %vm2469_vm1, nan, %v2479_v24  ;;  %v2560_v48 = vor.u32 4788187, %v2559_v51  ;;  %v2697_v35 = vor.u32 8388608, %v10578_v54  ;;  %v2643_v49 = vadd.s32 1, %v10603_v5 }
 0x2b5   :  { %v7591_v7 = vmul.f32 1000.0, %v2480_v14  ;;  %v2703_v29 = vand.u32 31, %v2701_v39  ;;  %v10619_v17 = vadd.f32 %v9137_v52, %v10546_v10  ;;  %v2563_v25 = vcvt.s32.f32 %v2556_v56 }
 0x2b6   :  { %v2561_v13 = vand.u32 2147483647, %v2560_v48  ;;  %v10621_v2 = vand.u32 3, %v2574_v58  ;;  %v2640_v47 = vmul.u32 %v10574_v31, %v2624_v8  ;;  %v2644_v61 = vsel %vm2642_vm2, %v2643_v49, %v10603_v5 }
 0x2b7   :  { %7655 = vst [vmem:[#allocation2 + $0x70] sm:$0xff] %v7591_v7  ;;  %v2702_v59 = vshrl.u32 %v2701_v39, 5  ;;  %v2704_v22 = vsub.s32 32, %v2703_v29  ;;  %v2706_v54 = vshll.u32 %v14756_v44, %v2703_v29  ;;  %v2709_v43 = vshll.u32 %v14757_v62, %v2703_v29 }
 0x2b8   :  { %v2564_v38 = vmul.f32 %v2563_v25, %v2561_v13  ;;  %v2645_v41 = vadd.s32 %v2644_v61, %v2640_v47  ;;  %v2712_v10 = vshll.u32 %v14758_v27, %v2703_v29  ;;  %v2715_v31 = vshll.u32 %v14759_v37, %v2703_v29 }
 0x2b9   :  { %v2707_v16 = vshrl.u32 %v14757_v62, %v2704_v22  ;;  %v2710_v46 = vshrl.u32 %v14758_v27, %v2704_v22  ;;  %v2713_v4 = vshrl.u32 %v14759_v37, %v2704_v22  ;;  %v2716_v12 = vshrl.u32 %v14760_v45, %v2704_v22 }
 0x2ba   :  { %v2565_v0 = vxor.u32 2147483648, %v2564_v38  ;;  %v2646_v18 = vadd.s32 536870912, %v2645_v41  ;;  %v2718_v53 = vshll.u32 %v14760_v45, %v2703_v29  ;;  %vm2587_vm3 = vcmp.lt.s32.totalorder %v10470_v19, 0 }
 0x2bb   :  { %v2708_v60 = vor.u32 %v2707_v16, %v2706_v54  ;;  %v2711_v3 = vor.u32 %v2710_v46, %v2709_v43  ;;  %v2714_v28 = vor.u32 %v2713_v4, %v2712_v10  ;;  %v2719_v36 = vshrl.u32 %v14761_v57, %v2704_v22 }
 0x2bc   :  { %v2566_v30 = vsel %vm2483_vm6, %v2565_v0, %v2564_v38  ;;  %v2647_v33 = vshrl.u32 %v2646_v18, 30  ;;  %v2717_v1 = vor.u32 %v2716_v12, %v2715_v31  ;;  %vm2721_vm4 = vcmp.lt.s32.totalorder %v2702_v59, 1  ;;  %v543_v31 = vpop.permute.xlu0 %542 }
 0x2bd   :  { %v2569_v15 = vsel %vm10539_vm7, %v10361_v9, %v2566_v30  ;;  %v2720_v40 = vor.u32 %v2719_v36, %v2718_v53  ;;  %vm2722_vm5 = vcmp.lt.s32.totalorder %v2702_v59, 2  ;;  %vm2723_vm8 = vcmp.lt.s32.totalorder %v2702_v59, 3 }
 0x2be   :  { %8308 = vcosq.f32 %v2569_v15  ;;  %v2648_v6 = vshll.u32 %v2647_v33, 30  ;;  %v2705_v21 = vshrl.u32 %v14756_v44, %v2704_v22  ;;  %vm2724_vm9 = vcmp.lt.s32.totalorder %v2702_v59, 4 }
 0x2bf   :  { %8310 = vsinq.f32 %v2569_v15  ;;  %v2726_v23 = vsel %vm2724_vm9, %v2714_v28, 2102212464  ;;  %v2729_v58 = vsel %vm2721_vm4, %v2708_v60, %v2711_v3  ;;  %v2730_v5 = vsel %vm2724_vm9, %v2717_v1, 920167782 }
 0x2c0   :  { %v10643_v32 = vsub.s32 %v2645_v41, %v2648_v6  ;;  %v2671_v56 = vsub.s32 4, %v2647_v33  ;;  %v2731_v51 = vsel %vm2723_vm8, %v2714_v28, %v2730_v5  ;;  %v2733_v42 = vsel %vm2721_vm4, %v2711_v3, %v2714_v28  ;;  %v14802_v41 = vld [vmem:[#allocation13_spill] sm:$0xff] }
 0x2c1   :  { %v2732_v24 = vsel %vm2722_vm5, %v2729_v58, %v2731_v51  ;;  %v2734_v8 = vsel %vm2724_vm9, %v2720_v40, 1326507024  ;;  %v2737_v39 = vshll.u32 %v2697_v35, 8  ;;  %v2793_v14 = vand.u32 2147483647, %v10619_v17 }
 0x2c2   :  { %v2651_v48 = vsub.s32 0, %v10643_v32  ;;  %v2725_v7 = vsel %vm2721_vm4, %v2705_v21, %v2708_v60  ;;  %v2727_v49 = vsel %vm2723_vm8, %v2711_v3, %v2726_v23  ;;  %v2735_v29 = vsel %vm2723_vm8, %v2717_v1, %v2734_v8 }
 0x2c3   :  { %v2736_v13 = vsel %vm2722_vm5, %v2733_v42, %v2735_v29  ;;  %v10654_v25 = vmul.u32.u64.low %v2737_v39, %v2732_v24  ;;  %v10655_v47 = vmul.u32.u64.high %v2737_v39, %v2732_v24, %v10654_v25  ;;  %v2796_v61 = vand.u32 2139095040, %v10619_v17  ;;  %v547_v42 = vpop.permute.xlu1 %546 }
 0x2c4   :  { %v7786_v35 = vmin.u32 %v2651_v48, %v10643_v32  ;;  %v2672_v22 = vsel %vm2587_vm3, %v2671_v56, %v2647_v33  ;;  %v10662_v54 = vmul.u32.u64.low %v2737_v39, %v2736_v13  ;;  %v10663_v38 = vmul.u32.u64.high %v2737_v39, %v2736_v13, %v10662_v54 }
 0x2c5   :  { %v420_v43 = vmul.f32 %v9131_v50, %v14802_v41  ;;  %vm2573_vm6 = vweird.f32 %v10361_v9  ;;  %v2728_v10 = vsel %vm2722_vm5, %v2725_v7, %v2727_v49  ;;  %v2797_v16 = vshrl.u32 %v2796_v61, 23 }
 0x2c6   :  { %vm2576_vm7 = vcmp.lt.s32.totalorder %v10621_v2, 2  ;;  %vm2577_vm12 = vcmp.eq.s32.totalorder %v10621_v2, 0  ;;  %vm10673_vm10 = vcmp.le.f32.partialorder %v2585_v11, 0.7853982  ;;  %v2653_v4 = vclz %v7786_v35 }
 0x2c7   :  { %vm2580_vm11 = vcmp.eq.s32.totalorder %v10621_v2, 2  ;;  %v2674_v0 = vsel %vm10673_vm10, 0, %v2672_v22  ;;  %v2747_v59 = vadd.s32 1, %v10655_v47  ;;  %v7793_v18 = vadd.s32 4294967169, %v2797_v16  ;;  %v14805_v2 = vld [vmem:[#allocation16_spill] sm:$0xff] }
 0x2c8   :  { %v8309_v12 = vpop.eup %8308  ;;  %v7787_v53 = vadd.s32 4294967294, %v2653_v4  ;;  %v2744_v60 = vmul.u32 %v2737_v39, %v2728_v10  ;;  %vm2746_vm13 = vc.u32 %v10663_v38, %v10654_v25  ;;  %v2800_v11 = vand.u32 8388607, %v2793_v14 }
 0x2c9   :  { %v8311_v3 = vpop.eup %8310  ;;  %v2581_v28 = vxor.u32 2147483648, %v8309_v12  ;;  %v2748_v36 = vsel %vm2746_vm13, %v2747_v59, %v10655_v47  ;;  %v2803_v30 = vadd.s32 1, %v7793_v18  ;;  %v744_v33 = vmul.f32 %v9135_v55, %v543_v31 }
 0x2ca   :  { %v2578_v1 = vxor.u32 2147483648, %v8311_v3  ;;  %v2641_v15 = vadd.s32 %v10602_v20, %v10596_v26  ;;  %vm7788_vm14 = vcmp.lt.s32.totalorder %v7787_v53, 0  ;;  %v2749_v40 = vadd.s32 %v2748_v36, %v2744_v60 }
 0x2cb   :  { %v2582_v6 = vsel %vm2580_vm11, %v2581_v28, %v8311_v3  ;;  %v2656_v21 = vsel %vm7788_vm14, 0, %v7787_v53  ;;  %v2678_v23 = vadd.s32 3, %v2674_v0  ;;  %vm2804_vm15 = vcmp.gt.s32.totalorder %v2803_v30, 0 }
 0x2cc   :  { %v2579_v58 = vsel %vm2577_vm12, %v8309_v12, %v2578_v1  ;;  %v2657_v5 = vsub.s32 32, %v2656_v21  ;;  %v2661_v56 = vsub.s32 4294967266, %v2656_v21  ;;  %v2801_v51 = vor.u32 8388608, %v2800_v11 }
 0x2cd   :  { %v2583_v24 = vsel %vm2576_vm7, %v2579_v58, %v2582_v6  ;;  %v2750_v8 = vadd.s32 536870912, %v2749_v40  ;;  %v2805_v26 = vsel %vm2804_vm15, %v2803_v30, 0  ;;  %v808_v20 = vadd.f32 %v744_v33, %v420_v43 }
 0x2ce   :  { %v2584_v39 = vsel %vm2573_vm6, nan, %v2583_v24  ;;  %v2658_v48 = vshll.u32 %v10643_v32, %v2656_v21  ;;  %v2659_v7 = vshrl.u32 %v2641_v15, %v2657_v5  ;;  %v2662_v49 = vadd.s32 127, %v2661_v56 }
 0x2cf   :  { %v7592_v29 = vmul.f32 1000.0, %v2584_v39  ;;  %v10698_v13 = vshrl.u32 %v2750_v8, 30  ;;  %v2807_v47 = vand.u32 31, %v2805_v26  ;;  %v745_v61 = vmul.f32 %v9135_v55, %v547_v42 }
 0x2d0   :  { %v2660_v35 = vor.u32 %v2659_v7, %v2658_v48  ;;  %v2663_v22 = vshll.u32 %v2662_v49, 23  ;;  %v421_v54 = vmul.f32 %v9131_v50, %v14805_v2  ;;  %v10704_v10 = vand.u32 3, %v2678_v23 }
 0x2d1   :  { %7656 = vst [vmem:[#allocation2 + $0x78] sm:$0xff] %v7592_v29  ;;  %v2752_v41 = vshll.u32 %v10698_v13, 30  ;;  %v2808_v9 = vsub.s32 32, %v2807_v47  ;;  %v2745_v32 = vadd.s32 %v10654_v25, %v10663_v38  ;;  %v10708_v16 = vshll.u32 %v2801_v51, 8 }
 0x2d2   :  { %v2664_v43 = vor.u32 4788187, %v2663_v22  ;;  %v10714_v0 = vadd.f32 %v9137_v52, %v808_v20  ;;  %v809_v59 = vadd.f32 %v745_v61, %v421_v54  ;;  %v2667_v12 = vcvt.s32.f32 %v2660_v35 }
 0x2d3   :  { %v10710_v4 = vsub.s32 %v2749_v40, %v2752_v41  ;;  %v2811_v31 = vshrl.u32 %v14757_v62, %v2808_v9  ;;  %v2814_v53 = vshrl.u32 %v14758_v27, %v2808_v9  ;;  %v2817_v60 = vshrl.u32 %v14759_v37, %v2808_v9 }
 0x2d4   :  { %v2665_v18 = vand.u32 2147483647, %v2664_v43  ;;  %v2806_v3 = vshrl.u32 %v2805_v26, 5  ;;  %v2810_v25 = vshll.u32 %v14756_v44, %v2807_v47  ;;  %v2813_v38 = vshll.u32 %v14757_v62, %v2807_v47 }
 0x2d5   :  { %v2755_v11 = vsub.s32 0, %v10710_v4  ;;  %v2816_v36 = vshll.u32 %v14758_v27, %v2807_v47  ;;  %v2819_v30 = vshll.u32 %v14759_v37, %v2807_v47  ;;  %v2820_v33 = vshrl.u32 %v14760_v45, %v2808_v9 }
 0x2d6   :  { %v2668_v28 = vmul.f32 %v2667_v12, %v2665_v18  ;;  %v2812_v15 = vor.u32 %v2811_v31, %v2810_v25  ;;  %v2815_v40 = vor.u32 %v2814_v53, %v2813_v38  ;;  %v2823_v6 = vshrl.u32 %v14761_v57, %v2808_v9 }
 0x2d7   :  { %v7790_v1 = vmin.u32 %v2755_v11, %v10710_v4  ;;  %v2818_v23 = vor.u32 %v2817_v60, %v2816_v36  ;;  %v2821_v58 = vor.u32 %v2820_v33, %v2819_v30  ;;  %v2822_v5 = vshll.u32 %v14760_v45, %v2807_v47 }
 0x2d8   :  { %v2669_v21 = vxor.u32 2147483648, %v2668_v28  ;;  %vm2691_vm0 = vcmp.lt.s32.totalorder %v10530_v34, 0  ;;  %v2775_v51 = vsub.s32 4, %v10698_v13  ;;  %vm2825_vm1 = vcmp.lt.s32.totalorder %v2806_v3, 1 }
 0x2d9   :  { %v2757_v56 = vclz %v7790_v1  ;;  %vm2826_vm2 = vcmp.lt.s32.totalorder %v2806_v3, 2  ;;  %v2809_v24 = vshrl.u32 %v14756_v44, %v2808_v9  ;;  %v2824_v8 = vor.u32 %v2823_v6, %v2822_v5 }
 0x2da   :  { %v2670_v42 = vsel %vm2587_vm3, %v2669_v21, %v2668_v28  ;;  %vm2827_vm4 = vcmp.lt.s32.totalorder %v2806_v3, 3  ;;  %vm2828_vm5 = vcmp.lt.s32.totalorder %v2806_v3, 4  ;;  %v2833_v39 = vsel %vm2825_vm1, %v2812_v15, %v2815_v40 }
 0x2db   :  { %v2673_v26 = vsel %vm10673_vm10, %v10470_v19, %v2670_v42  ;;  %v7791_v20 = vadd.s32 4294967294, %v2757_v56  ;;  %v2830_v48 = vsel %vm2828_vm5, %v2818_v23, 2102212464  ;;  %v2834_v7 = vsel %vm2828_vm5, %v2821_v58, 920167782 }
 0x2dc   :  { %8312 = vcosq.f32 %v2673_v26  ;;  %v2837_v49 = vsel %vm2825_vm1, %v2815_v40, %v2818_v23  ;;  %v2835_v29 = vsel %vm2827_vm4, %v2818_v23, %v2834_v7  ;;  %v2838_v47 = vsel %vm2828_vm5, %v2824_v8, 1326507024 }
 0x2dd   :  { %8314 = vsinq.f32 %v2673_v26  ;;  %vm7792_vm8 = vcmp.lt.s32.totalorder %v7791_v20, 0  ;;  %v2829_v35 = vsel %vm2825_vm1, %v2809_v24, %v2812_v15  ;;  %v2836_v46 = vsel %vm2826_vm2, %v2833_v39, %v2835_v29 }
 0x2de   :  { %v2760_v61 = vsel %vm7792_vm8, 0, %v7791_v20  ;;  %v2839_v22 = vsel %vm2827_vm4, %v2821_v58, %v2838_v47  ;;  %v2831_v41 = vsel %vm2827_vm4, %v2815_v40, %v2830_v48  ;;  %v2900_v25 = vand.u32 2139095040, %v10714_v0 }
 0x2df   :  { %v2761_v2 = vsub.s32 32, %v2760_v61  ;;  %v2765_v54 = vsub.s32 4294967266, %v2760_v61  ;;  %v2840_v9 = vsel %vm2826_vm2, %v2837_v49, %v2839_v22  ;;  %v2762_v53 = vshll.u32 %v10710_v4, %v2760_v61  ;;  %v14808_v22 = vld [vmem:[#allocation15_spill] sm:$0xff] }
 0x2e0   :  { %v10744_v43 = vmul.u32.u64.low %v10708_v16, %v2840_v9  ;;  %v10745_v31 = vmul.u32.u64.high %v10708_v16, %v2840_v9, %v10744_v43  ;;  %v10748_v18 = vmul.u32.u64.low %v10708_v16, %v2836_v46  ;;  %v10749_v12 = vmul.u32.u64.high %v10708_v16, %v2836_v46, %v10748_v18 }
 0x2e1   :  { %v2763_v60 = vshrl.u32 %v2745_v32, %v2761_v2  ;;  %v2766_v11 = vadd.s32 127, %v2765_v54  ;;  %v2776_v38 = vsel %vm2691_vm0, %v2775_v51, %v10698_v13  ;;  %v2832_v28 = vsel %vm2826_vm2, %v2829_v35, %v2831_v41 }
 0x2e2   :  { %v2897_v36 = vand.u32 2147483647, %v10714_v0  ;;  %v10759_v30 = vadd.f32 %v9137_v52, %v809_v59  ;;  %vm2677_vm3 = vweird.f32 %v10470_v19  ;;  %v2901_v4 = vshrl.u32 %v2900_v25, 23 }
 0x2e3   :  { %v2764_v33 = vor.u32 %v2763_v60, %v2762_v53  ;;  %v2767_v1 = vshll.u32 %v2766_v11, 23  ;;  %vm2680_vm9 = vcmp.lt.s32.totalorder %v10704_v10, 2  ;;  %vm10765_vm6 = vcmp.le.f32.partialorder %v2689_v63, 0.7853982 }
 0x2e4   :  { %vm2850_vm7 = vc.u32 %v10745_v31, %v10748_v18  ;;  %v2851_v13 = vadd.s32 1, %v10749_v12  ;;  %v2778_v59 = vsel %vm10765_vm6, 0, %v2776_v38  ;;  %v2848_v15 = vmul.u32 %v10708_v16, %v2832_v28 }
 0x2e5   :  { %v2768_v3 = vor.u32 4788187, %v2767_v1  ;;  %v7797_v40 = vadd.s32 4294967169, %v2901_v4  ;;  %v2771_v21 = vcvt.s32.f32 %v2764_v33  ;;  %v2904_v63 = vand.u32 8388607, %v2897_v36 }
 0x2e6   :  { %v8313_v6 = vpop.eup %8312  ;;  %v2852_v23 = vsel %vm2850_vm7, %v2851_v13, %v10749_v12  ;;  %v3004_v58 = vand.u32 2139095040, %v10759_v30  ;;  %vm2681_vm12 = vcmp.eq.s32.totalorder %v10704_v10, 0  ;;  %vm2684_vm10 = vcmp.eq.s32.totalorder %v10704_v10, 2 }
 0x2e7   :  { %v8315_v5 = vpop.eup %8314  ;;  %v2685_v56 = vxor.u32 2147483648, %v8313_v6  ;;  %v2769_v51 = vand.u32 2147483647, %v2768_v3  ;;  %v2853_v42 = vadd.s32 %v2852_v23, %v2848_v15  ;;  %v2907_v24 = vadd.s32 1, %v7797_v40 }
 0x2e8   :  { %v2682_v8 = vxor.u32 2147483648, %v8315_v5  ;;  %v2782_v16 = vadd.s32 3, %v2778_v59  ;;  %v2905_v7 = vor.u32 8388608, %v2904_v63  ;;  %v3001_v29 = vand.u32 2147483647, %v10759_v30 }
 0x2e9   :  { %v2686_v26 = vsel %vm2684_vm10, %v2685_v56, %v8315_v5  ;;  %v2772_v20 = vmul.f32 %v2771_v21, %v2769_v51  ;;  %v2854_v39 = vadd.s32 536870912, %v2853_v42  ;;  %vm2908_vm11 = vcmp.gt.s32.totalorder %v2907_v24, 0 }
 0x2ea   :  { %v2683_v48 = vsel %vm2681_vm12, %v8313_v6, %v2682_v8  ;;  %v2909_v49 = vsel %vm2908_vm11, %v2907_v24, 0  ;;  %v3005_v46 = vshrl.u32 %v3004_v58, 23  ;;  %v10787_v2 = vmul.f32 %v9131_v50, %v14808_v22 }
 0x2eb   :  { %v2687_v47 = vsel %vm2680_vm9, %v2683_v48, %v2686_v26  ;;  %v2773_v61 = vxor.u32 2147483648, %v2772_v20  ;;  %v10783_v35 = vshrl.u32 %v2854_v39, 30  ;;  %v10791_v41 = vand.u32 3, %v2782_v16 }
 0x2ec   :  { %v2688_v54 = vsel %vm2677_vm3, nan, %v2687_v47  ;;  %v2911_v9 = vand.u32 31, %v2909_v49  ;;  %v10796_v10 = vadd.s32 %v10748_v18, %v10745_v31  ;;  %v10802_v25 = vshll.u32 %v2905_v7, 8 }
 0x2ed   :  { %v7593_v43 = vmul.f32 1000.0, %v2688_v54  ;;  %v2774_v12 = vsel %vm2691_vm0, %v2773_v61, %v2772_v20  ;;  %v2856_v53 = vshll.u32 %v10783_v35, 30  ;;  %v10806_v19 = vand.u32 8388607, %v3001_v29 }
 0x2ee   :  { %v2777_v60 = vsel %vm10765_vm6, %v10530_v34, %v2774_v12  ;;  %v2912_v11 = vsub.s32 32, %v2911_v9  ;;  %v2910_v28 = vshrl.u32 %v2909_v49, 5  ;;  %v7801_v31 = vadd.s32 4294967169, %v3005_v46 }
 0x2ef   :  { %7657 = vst [vmem:[#allocation2 + $0x80] sm:$0xff] %v7593_v43  ;;  %8316 = vcosq.f32 %v2777_v60  ;;  %v10808_v38 = vsub.s32 %v2853_v42, %v2856_v53  ;;  %vm2795_vm13 = vcmp.lt.s32.totalorder %v10619_v17, 0  ;;  %v2914_v18 = vshll.u32 %v14756_v44, %v2911_v9 }
 0x2f0   :  { %8318 = vsinq.f32 %v2777_v60  ;;  %v2915_v33 = vshrl.u32 %v14757_v62, %v2912_v11  ;;  %v2917_v1 = vshll.u32 %v14757_v62, %v2911_v9  ;;  %v2918_v32 = vshrl.u32 %v14758_v27, %v2912_v11 }
 0x2f1   :  { %v2859_v4 = vsub.s32 0, %v10808_v38  ;;  %v2920_v13 = vshll.u32 %v14758_v27, %v2911_v9  ;;  %v2921_v3 = vshrl.u32 %v14759_v37, %v2912_v11  ;;  %v2923_v15 = vshll.u32 %v14759_v37, %v2911_v9 }
 0x2f2   :  { %v2916_v59 = vor.u32 %v2915_v33, %v2914_v18  ;;  %v2924_v40 = vshrl.u32 %v14760_v45, %v2912_v11  ;;  %v3009_v6 = vor.u32 8388608, %v10806_v19  ;;  %vm2788_vm14 = vcmp.eq.s32.totalorder %v10791_v41, 2 }
 0x2f3   :  { %v7794_v21 = vmin.u32 %v2859_v4, %v10808_v38  ;;  %v2919_v23 = vor.u32 %v2918_v32, %v2917_v1  ;;  %v2922_v63 = vor.u32 %v2921_v3, %v2920_v13  ;;  %v3011_v58 = vadd.s32 1, %v7801_v31  ;;  %v551_v32 = vpop.permute.xlu0 %550 }
 0x2f4   :  { %vm2785_vm15 = vcmp.eq.s32.totalorder %v10791_v41, 0  ;;  %v2913_v5 = vshrl.u32 %v14756_v44, %v2912_v11  ;;  %v2925_v56 = vor.u32 %v2924_v40, %v2923_v15  ;;  %v2926_v51 = vshll.u32 %v14760_v45, %v2911_v9 }
 0x2f5   :  { %v2927_v42 = vshrl.u32 %v14761_v57, %v2912_v11  ;;  %vm2784_vm0 = vcmp.lt.s32.totalorder %v10791_v41, 2  ;;  %v2861_v24 = vclz %v7794_v21  ;;  %v2879_v8 = vsub.s32 4, %v10783_v35 }
 0x2f6   :  { %vm2929_vm1 = vcmp.lt.s32.totalorder %v2910_v28, 1  ;;  %vm2930_vm2 = vcmp.lt.s32.totalorder %v2910_v28, 2  ;;  %vm2781_vm4 = vweird.f32 %v10530_v34  ;;  %vm2931_vm5 = vcmp.lt.s32.totalorder %v2910_v28, 3 }
 0x2f7   :  { %v2928_v16 = vor.u32 %v2927_v42, %v2926_v51  ;;  %vm2932_vm8 = vcmp.lt.s32.totalorder %v2910_v28, 4  ;;  %v2933_v26 = vsel %vm2929_vm1, %v2913_v5, %v2916_v59  ;;  %vm10832_vm3 = vcmp.le.f32.partialorder %v2793_v14, 0.7853982 }
 0x2f8   :  { %v7795_v39 = vadd.s32 4294967294, %v2861_v24  ;;  %v2934_v48 = vsel %vm2932_vm8, %v2922_v63, 2102212464  ;;  %v2937_v7 = vsel %vm2929_vm1, %v2916_v59, %v2919_v23  ;;  %v2938_v49 = vsel %vm2932_vm8, %v2925_v56, 920167782 }
 0x2f9   :  { %v2935_v47 = vsel %vm2931_vm5, %v2919_v23, %v2934_v48  ;;  %v2939_v61 = vsel %vm2931_vm5, %v2922_v63, %v2938_v49  ;;  %v2941_v46 = vsel %vm2929_vm1, %v2919_v23, %v2922_v63  ;;  %v2942_v22 = vsel %vm2932_vm8, %v2928_v16, 1326507024  ;;  %v8317_v54 = vpop.eup %8316 }
 0x2fa   :  { %vm7796_vm9 = vcmp.lt.s32.totalorder %v7795_v39, 0  ;;  %v2880_v9 = vsel %vm2795_vm13, %v2879_v8, %v10783_v35  ;;  %v2936_v14 = vsel %vm2930_vm2, %v2933_v26, %v2935_v47  ;;  %v2943_v43 = vsel %vm2931_vm5, %v2925_v56, %v2942_v22  ;;  %v8319_v12 = vpop.eup %8318 }
 0x2fb   :  { %v2789_v53 = vxor.u32 2147483648, %v8317_v54  ;;  %v2864_v60 = vsel %vm7796_vm9, 0, %v7795_v39  ;;  %v2940_v11 = vsel %vm2930_vm2, %v2937_v7, %v2939_v61  ;;  %v2944_v31 = vsel %vm2930_vm2, %v2941_v46, %v2943_v43 }
 0x2fc   :  { %v2786_v18 = vxor.u32 2147483648, %v8319_v12  ;;  %v2865_v33 = vsub.s32 32, %v2864_v60  ;;  %v2866_v1 = vshll.u32 %v10808_v38, %v2864_v60  ;;  %v2869_v4 = vsub.s32 4294967266, %v2864_v60 }
 0x2fd   :  { %v2790_v35 = vsel %vm2788_vm14, %v2789_v53, %v8319_v12  ;;  %v10849_v13 = vmul.u32.u64.low %v10802_v25, %v2944_v31  ;;  %v10850_v3 = vmul.u32.u64.high %v10802_v25, %v2944_v31, %v10849_v13  ;;  %vm3012_vm6 = vcmp.gt.s32.totalorder %v3011_v58, 0 }
 0x2fe   :  { %v2787_v59 = vsel %vm2785_vm15, %v8317_v54, %v2786_v18  ;;  %v2867_v28 = vshrl.u32 %v10796_v10, %v2865_v33  ;;  %v2870_v15 = vadd.s32 127, %v2869_v4  ;;  %v3013_v40 = vsel %vm3012_vm6, %v3011_v58, 0 }
 0x2ff   :  { %v2791_v38 = vsel %vm2784_vm0, %v2787_v59, %v2790_v35  ;;  %v10858_v21 = vmul.u32.u64.low %v10802_v25, %v2940_v11  ;;  %v10859_v23 = vmul.u32.u64.high %v10802_v25, %v2940_v11, %v10858_v21  ;;  %v10863_v63 = vmul.f32 %v9135_v55, %v551_v32 }
 0x300   :  { %v2792_v5 = vsel %vm2781_vm4, nan, %v2791_v38  ;;  %v2868_v56 = vor.u32 %v2867_v28, %v2866_v1  ;;  %v2871_v51 = vshll.u32 %v2870_v15, 23  ;;  %v3015_v42 = vand.u32 31, %v3013_v40 }
 0x301   :  { %v7594_v10 = vmul.f32 1000.0, %v2792_v5  ;;  %v2882_v58 = vsel %vm10832_vm3, 0, %v2880_v9  ;;  %v2952_v41 = vmul.u32 %v10802_v25, %v2936_v14  ;;  %v10872_v24 = vshll.u32 %v3009_v6, 8 }
 0x302   :  { %v2872_v8 = vor.u32 4788187, %v2871_v51  ;;  %vm2954_vm7 = vc.u32 %v10850_v3, %v10858_v21  ;;  %v3014_v16 = vshrl.u32 %v3013_v40, 5  ;;  %v3016_v34 = vsub.s32 32, %v3015_v42 }
 0x303   :  { %7658 = vst [vmem:[#allocation2 + $0x88] sm:$0xff] %v7594_v10  ;;  %v2875_v26 = vcvt.s32.f32 %v2868_v56  ;;  %v2955_v39 = vadd.s32 1, %v10859_v23  ;;  %v3018_v48 = vshll.u32 %v14756_v44, %v3015_v42  ;;  %v3021_v7 = vshll.u32 %v14757_v62, %v3015_v42 }
 0x304   :  { %v2873_v49 = vand.u32 2147483647, %v2872_v8  ;;  %v3019_v25 = vshrl.u32 %v14757_v62, %v3016_v34  ;;  %v3022_v19 = vshrl.u32 %v14758_v27, %v3016_v34  ;;  %v3024_v6 = vshll.u32 %v14758_v27, %v3015_v42 }
 0x305   :  { %v2956_v47 = vsel %vm2954_vm7, %v2955_v39, %v10859_v23  ;;  %v3025_v61 = vshrl.u32 %v14759_v37, %v3016_v34  ;;  %v3027_v46 = vshll.u32 %v14759_v37, %v3015_v42  ;;  %v3028_v22 = vshrl.u32 %v14760_v45, %v3016_v34 }
 0x306   :  { %v2876_v54 = vmul.f32 %v2875_v26, %v2873_v49  ;;  %v2957_v9 = vadd.s32 %v2956_v47, %v2952_v41  ;;  %v3020_v14 = vor.u32 %v3019_v25, %v3018_v48  ;;  %v3023_v43 = vor.u32 %v3022_v19, %v3021_v7  ;;  %v555_v19 = vpop.permute.xlu1 %554 }
 0x307   :  { %v3026_v12 = vor.u32 %v3025_v61, %v3024_v6  ;;  %v3029_v53 = vor.u32 %v3028_v22, %v3027_v46  ;;  %v3030_v60 = vshll.u32 %v14760_v45, %v3015_v42  ;;  %v3031_v11 = vshrl.u32 %v14761_v57, %v3016_v34  ;;  %v14811_v46 = vld [vmem:[#allocation18_spill] sm:$0xff] }
 0x308   :  { %v2877_v31 = vxor.u32 2147483648, %v2876_v54  ;;  %v2886_v18 = vadd.s32 3, %v2882_v58  ;;  %v2958_v33 = vadd.s32 536870912, %v2957_v9  ;;  %vm3033_vm12 = vcmp.lt.s32.totalorder %v3014_v16, 1 }
 0x309   :  { %v3017_v1 = vshrl.u32 %v14756_v44, %v3016_v34  ;;  %v3032_v4 = vor.u32 %v3031_v11, %v3030_v60  ;;  %vm3036_vm10 = vcmp.lt.s32.totalorder %v3014_v16, 4  ;;  %v3041_v32 = vsel %vm3033_vm12, %v3020_v14, %v3023_v43 }
 0x30a   :  { %v2878_v35 = vsel %vm2795_vm13, %v2877_v31, %v2876_v54  ;;  %v2959_v13 = vshrl.u32 %v2958_v33, 30  ;;  %vm3035_vm11 = vcmp.lt.s32.totalorder %v3014_v16, 3  ;;  %v3042_v59 = vsel %vm3036_vm10, %v3029_v53, 920167782 }
 0x30b   :  { %v2881_v28 = vsel %vm10832_vm3, %v10619_v17, %v2878_v35  ;;  %vm3034_vm14 = vcmp.lt.s32.totalorder %v3014_v16, 2  ;;  %v3038_v15 = vsel %vm3036_vm10, %v3026_v12, 2102212464  ;;  %v3043_v40 = vsel %vm3035_vm11, %v3026_v12, %v3042_v59 }
 0x30c   :  { %8320 = vcosq.f32 %v2881_v28  ;;  %v2960_v38 = vshll.u32 %v2959_v13, 30  ;;  %v3044_v23 = vsel %vm3034_vm14, %v3041_v32, %v3043_v40  ;;  %v3045_v5 = vsel %vm3033_vm12, %v3023_v43, %v3026_v12 }
 0x30d   :  { %8322 = vsinq.f32 %v2881_v28  ;;  %v3046_v56 = vsel %vm3036_vm10, %v3032_v4, 1326507024  ;;  %v10899_v51 = vmul.u32.u64.low %v10872_v24, %v3044_v23  ;;  %v10900_v42 = vmul.u32.u64.high %v10872_v24, %v3044_v23, %v10899_v51 }
 0x30e   :  { %v10903_v10 = vsub.s32 %v2957_v9, %v2960_v38  ;;  %v3047_v20 = vsel %vm3035_vm11, %v3029_v53, %v3046_v56  ;;  %v3037_v58 = vsel %vm3033_vm12, %v3017_v1, %v3020_v14  ;;  %v3039_v41 = vsel %vm3035_vm11, %v3023_v43, %v3038_v15 }
 0x30f   :  { %v3048_v8 = vsel %vm3034_vm14, %v3045_v5, %v3047_v20  ;;  %v810_v34 = vadd.f32 %v10863_v63, %v10787_v2  ;;  %v2887_v26 = vand.u32 3, %v2886_v18  ;;  %v2983_v49 = vsub.s32 4, %v2959_v13 }
 0x310   :  { %v2963_v39 = vsub.s32 0, %v10903_v10  ;;  %v10913_v48 = vmul.u32.u64.low %v10872_v24, %v3048_v8  ;;  %v10914_v7 = vmul.u32.u64.high %v10872_v24, %v3048_v8, %v10913_v48  ;;  %v3040_v47 = vsel %vm3034_vm14, %v3037_v58, %v3039_v41 }
 0x311   :  { %v10917_v25 = vadd.f32 %v9137_v52, %v810_v34  ;;  %v3059_v61 = vadd.s32 1, %v10900_v42  ;;  %v423_v2 = vmul.f32 %v9131_v50, %v14811_v46  ;;  %vm2885_vm13 = vweird.f32 %v10619_v17 }
 0x312   :  { %v7798_v6 = vmin.u32 %v2963_v39, %v10903_v10  ;;  %vm10927_vm15 = vcmp.le.f32.partialorder %v2897_v36, 0.7853982  ;;  %vm2888_vm0 = vcmp.lt.s32.totalorder %v2887_v26, 2  ;;  %vm2899_vm1 = vcmp.lt.s32.totalorder %v10714_v0, 0 }
 0x313   :  { %v3108_v22 = vand.u32 2139095040, %v10917_v25  ;;  %v747_v54 = vmul.f32 %v9135_v55, %v555_v19  ;;  %v2984_v9 = vsel %vm2899_vm1, %v2983_v49, %v2959_v13  ;;  %v3056_v14 = vmul.u32 %v10872_v24, %v3040_v47 }
 0x314   :  { %v2965_v16 = vclz %v7798_v6  ;;  %vm3058_vm2 = vc.u32 %v10914_v7, %v10899_v51  ;;  %vm2889_vm4 = vcmp.eq.s32.totalorder %v2887_v26, 0  ;;  %v3105_v60 = vand.u32 2147483647, %v10917_v25 }
 0x315   :  { %v3109_v36 = vshrl.u32 %v3108_v22, 23  ;;  %v3060_v53 = vsel %vm3058_vm2, %v3059_v61, %v10900_v42  ;;  %vm2892_vm5 = vcmp.eq.s32.totalorder %v2887_v26, 2  ;;  %v2953_v24 = vadd.s32 %v10858_v21, %v10850_v3  ;;  %v14814_v26 = vld [vmem:[#allocation17_spill] sm:$0xff] }
 0x316   :  { %v8321_v43 = vpop.eup %8320  ;;  %v7799_v12 = vadd.s32 4294967294, %v2965_v16  ;;  %v3061_v18 = vadd.s32 %v3060_v53, %v3056_v14  ;;  %v2986_v4 = vsel %vm10927_vm15, 0, %v2984_v9  ;;  %v3112_v38 = vand.u32 8388607, %v3105_v60 }
 0x317   :  { %v8323_v11 = vpop.eup %8322  ;;  %v2893_v31 = vxor.u32 2147483648, %v8321_v43  ;;  %v7805_v33 = vadd.s32 4294967169, %v3109_v36  ;;  %v2990_v41 = vadd.s32 3, %v2986_v4  ;;  %v811_v34 = vadd.f32 %v747_v54, %v423_v2 }
 0x318   :  { %v2890_v1 = vxor.u32 2147483648, %v8323_v11  ;;  %vm7800_vm8 = vcmp.lt.s32.totalorder %v7799_v12, 0  ;;  %v3062_v13 = vadd.s32 536870912, %v3061_v18  ;;  %v3113_v49 = vor.u32 8388608, %v3112_v38 }
 0x319   :  { %v2894_v32 = vsel %vm2892_vm5, %v2893_v31, %v8323_v11  ;;  %v2968_v35 = vsel %vm7800_vm8, 0, %v7799_v12  ;;  %v3115_v59 = vadd.s32 1, %v7805_v33  ;;  %v10954_v6 = vmul.f32 %v9131_v50, %v14814_v26 }
 0x31a   :  { %v2891_v28 = vsel %vm2889_vm4, %v8321_v43, %v2890_v1  ;;  %v2969_v15 = vsub.s32 32, %v2968_v35  ;;  %v2973_v40 = vsub.s32 4294967266, %v2968_v35  ;;  %v2970_v5 = vshll.u32 %v10903_v10, %v2968_v35  ;;  %v14815_v10 = vld [vmem:[#allocation20_spill] sm:$0xff] }
 0x31b   :  { %v2895_v23 = vsel %vm2888_vm0, %v2891_v28, %v2894_v32  ;;  %v3063_v3 = vshrl.u32 %v3062_v13, 30  ;;  %vm3116_vm3 = vcmp.gt.s32.totalorder %v3115_v59, 0  ;;  %v10958_v47 = vmul.f32 %v9131_v50, %v14815_v10 }
 0x31c   :  { %v2896_v21 = vsel %vm2885_vm13, nan, %v2895_v23  ;;  %v2971_v56 = vshrl.u32 %v2953_v24, %v2969_v15  ;;  %v2974_v42 = vadd.s32 127, %v2973_v40  ;;  %v3117_v20 = vsel %vm3116_vm3, %v3115_v59, 0 }
 0x31d   :  { %v7595_v58 = vmul.f32 1000.0, %v2896_v21  ;;  %v3064_v8 = vshll.u32 %v3063_v3, 30  ;;  %v3119_v19 = vand.u32 31, %v3117_v20  ;;  %vm3003_vm9 = vcmp.lt.s32.totalorder %v10759_v30, 0 }
 0x31e   :  { %v2972_v39 = vor.u32 %v2971_v56, %v2970_v5  ;;  %v2975_v48 = vshll.u32 %v2974_v42, 23  ;;  %v3087_v46 = vsub.s32 4, %v3063_v3  ;;  %v10963_v2 = vshrl.u32 %v3117_v20, 5 }
 0x31f   :  { %7659 = vst [vmem:[#allocation2 + $0x90] sm:$0xff] %v7595_v58  ;;  %v10961_v17 = vsub.s32 %v3061_v18, %v3064_v8  ;;  %v3120_v22 = vsub.s32 32, %v3119_v19  ;;  %v10965_v16 = vand.u32 3, %v2990_v41  ;;  %v3057_v54 = vadd.s32 %v10899_v51, %v10914_v7 }
 0x320   :  { %v2976_v61 = vor.u32 4788187, %v2975_v48  ;;  %v10971_v14 = vadd.f32 %v9137_v52, %v811_v34  ;;  %v2979_v43 = vcvt.s32.f32 %v2972_v39  ;;  %v10974_v53 = vshll.u32 %v3113_v49, 8 }
 0x321   :  { %v3067_v9 = vsub.s32 0, %v10961_v17  ;;  %v3123_v12 = vshrl.u32 %v14757_v62, %v3120_v22  ;;  %v3122_v31 = vshll.u32 %v14756_v44, %v3119_v19  ;;  %v3126_v18 = vshrl.u32 %v14758_v27, %v3120_v22 }
 0x322   :  { %v2977_v36 = vand.u32 2147483647, %v2976_v61  ;;  %v3129_v33 = vshrl.u32 %v14759_v37, %v3120_v22  ;;  %v10982_v7 = vsel %vm3003_vm9, %v3087_v46, %v3063_v3  ;;  %v3128_v1 = vshll.u32 %v14758_v27, %v3119_v19 }
 0x323   :  { %v7802_v11 = vmin.u32 %v3067_v9, %v10961_v17  ;;  %vm3137_vm6 = vcmp.lt.s32.totalorder %v10963_v2, 1  ;;  %v3124_v4 = vor.u32 %v3123_v12, %v3122_v31  ;;  %v3125_v32 = vshll.u32 %v14757_v62, %v3119_v19 }
 0x324   :  { %v2980_v51 = vmul.f32 %v2979_v43, %v2977_v36  ;;  %vm3138_vm7 = vcmp.lt.s32.totalorder %v10963_v2, 2  ;;  %v3130_v13 = vor.u32 %v3129_v33, %v3128_v1  ;;  %v3131_v59 = vshll.u32 %v14759_v37, %v3119_v19 }
 0x325   :  { %v3069_v24 = vclz %v7802_v11  ;;  %v3132_v28 = vshrl.u32 %v14760_v45, %v3120_v22  ;;  %v3127_v40 = vor.u32 %v3126_v18, %v3125_v32  ;;  %v3134_v38 = vshll.u32 %v14760_v45, %v3119_v19 }
 0x326   :  { %v2981_v35 = vxor.u32 2147483648, %v2980_v51  ;;  %v3135_v23 = vshrl.u32 %v14761_v57, %v3120_v22  ;;  %v3121_v3 = vshrl.u32 %v14756_v44, %v3120_v22  ;;  %vm3139_vm12 = vcmp.lt.s32.totalorder %v10963_v2, 3  ;;  %v559_v22 = vpop.permute.xlu0 %558 }
 0x327   :  { %v7803_v15 = vadd.s32 4294967294, %v3069_v24  ;;  %v3133_v21 = vor.u32 %v3132_v28, %v3131_v59  ;;  %vm3140_vm11 = vcmp.lt.s32.totalorder %v10963_v2, 4  ;;  %v3145_v39 = vsel %vm3137_vm6, %v3124_v4, %v3127_v40 }
 0x328   :  { %v2982_v5 = vsel %vm2899_vm1, %v2981_v35, %v2980_v51  ;;  %v3136_v42 = vor.u32 %v3135_v23, %v3134_v38  ;;  %v3141_v58 = vsel %vm3137_vm6, %v3121_v3, %v3124_v4  ;;  %v3142_v41 = vsel %vm3140_vm11, %v3130_v13, 2102212464 }
 0x329   :  { %v2985_v56 = vsel %vm10927_vm15, %v10714_v0, %v2982_v5  ;;  %vm7804_vm10 = vcmp.lt.s32.totalorder %v7803_v15, 0  ;;  %v3146_v63 = vsel %vm3140_vm11, %v3133_v21, 920167782  ;;  %v3149_v49 = vsel %vm3137_vm6, %v3127_v40, %v3130_v13 }
 0x32a   :  { %8324 = vcosq.f32 %v2985_v56  ;;  %v3072_v20 = vsel %vm7804_vm10, 0, %v7803_v15  ;;  %v3150_v19 = vsel %vm3140_vm11, %v3136_v42, 1326507024  ;;  %v3147_v61 = vsel %vm3139_vm12, %v3130_v13, %v3146_v63 }
 0x32b   :  { %8326 = vsinq.f32 %v2985_v56  ;;  %v3073_v8 = vsub.s32 32, %v3072_v20  ;;  %v3077_v34 = vsub.s32 4294967266, %v3072_v20  ;;  %v3074_v48 = vshll.u32 %v10961_v17, %v3072_v20 }
 0x32c   :  { %v3151_v46 = vsel %vm3139_vm12, %v3133_v21, %v3150_v19  ;;  %v3143_v9 = vsel %vm3139_vm12, %v3127_v40, %v3142_v41  ;;  %v3148_v17 = vsel %vm3138_vm7, %v3145_v39, %v3147_v61  ;;  %v3212_v43 = vand.u32 2139095040, %v10971_v14 }
 0x32d   :  { %v3075_v26 = vshrl.u32 %v3057_v54, %v3073_v8  ;;  %v3078_v10 = vadd.s32 127, %v3077_v34  ;;  %v3152_v36 = vsel %vm3138_vm7, %v3149_v49, %v3151_v46  ;;  %v563_v54 = vpop.permute.xlu1 %562  ;;  %v748_v24 = vmul.f32 %v9135_v55, %v559_v22 }
 0x32e   :  { %v11019_v31 = vmul.u32.u64.low %v10974_v53, %v3152_v36  ;;  %v11020_v18 = vmul.u32.u64.high %v10974_v53, %v3152_v36, %v11019_v31  ;;  %v11023_v33 = vmul.u32.u64.low %v10974_v53, %v3148_v17  ;;  %v11024_v51 = vmul.u32.u64.high %v10974_v53, %v3148_v17, %v11023_v33 }
 0x32f   :  { %v3076_v12 = vor.u32 %v3075_v26, %v3074_v48  ;;  %v3079_v11 = vshll.u32 %v3078_v10, 23  ;;  %v3213_v1 = vshrl.u32 %v3212_v43, 23  ;;  %vm2989_vm14 = vweird.f32 %v10714_v0 }
 0x330   :  { %vm11030_vm13 = vcmp.le.f32.partialorder %v3001_v29, 0.7853982  ;;  %v11035_v35 = vmul.f32 %v9135_v55, %v563_v54  ;;  %v3144_v59 = vsel %vm3138_vm7, %v3141_v58, %v3143_v9  ;;  %v3209_v28 = vand.u32 2147483647, %v10971_v14 }
 0x331   :  { %v3080_v32 = vor.u32 4788187, %v3079_v11  ;;  %v3090_v13 = vsel %vm11030_vm13, 0, %v10982_v7  ;;  %v7809_v15 = vadd.s32 4294967169, %v3213_v1  ;;  %vm2993_vm15 = vcmp.eq.s32.totalorder %v10965_v16, 0 }
 0x332   :  { %v3083_v40 = vcvt.s32.f32 %v3076_v12  ;;  %vm3162_vm0 = vc.u32 %v11020_v18, %v11023_v33  ;;  %vm2996_vm1 = vcmp.eq.s32.totalorder %v10965_v16, 2  ;;  %v3163_v23 = vadd.s32 1, %v11024_v51 }
 0x333   :  { %v3081_v29 = vand.u32 2147483647, %v3080_v32  ;;  %v3219_v5 = vadd.s32 1, %v7809_v15  ;;  %v812_v7 = vadd.f32 %v748_v24, %v10954_v6  ;;  %v3094_v56 = vadd.s32 3, %v3090_v13 }
 0x334   :  { %v8325_v38 = vpop.eup %8324  ;;  %v3160_v42 = vmul.u32 %v10974_v53, %v3144_v59  ;;  %v3164_v58 = vsel %vm3162_vm0, %v3163_v23, %v11024_v51  ;;  %v3216_v41 = vand.u32 8388607, %v3209_v28  ;;  %vm2992_vm4 = vcmp.lt.s32.totalorder %v10965_v16, 2 }
 0x335   :  { %v8327_v3 = vpop.eup %8326  ;;  %v2997_v2 = vxor.u32 2147483648, %v8325_v38  ;;  %v3084_v21 = vmul.f32 %v3083_v40, %v3081_v29  ;;  %vm3220_vm2 = vcmp.gt.s32.totalorder %v3219_v5, 0  ;;  %v11056_v49 = vadd.f32 %v9137_v52, %v812_v7 }
 0x336   :  { %v2994_v20 = vxor.u32 2147483648, %v8327_v3  ;;  %v3165_v39 = vadd.s32 %v3164_v58, %v3160_v42  ;;  %v3221_v48 = vsel %vm3220_vm2, %v3219_v5, 0  ;;  %v11060_v26 = vand.u32 3, %v3094_v56 }
 0x337   :  { %v2998_v8 = vsel %vm2996_vm1, %v2997_v2, %v8327_v3  ;;  %v3085_v34 = vxor.u32 2147483648, %v3084_v21  ;;  %v3223_v63 = vand.u32 31, %v3221_v48  ;;  %v3217_v16 = vor.u32 8388608, %v3216_v41 }
 0x338   :  { %v2995_v6 = vsel %vm2993_vm15, %v8325_v38, %v2994_v20  ;;  %v3166_v10 = vadd.s32 536870912, %v3165_v39  ;;  %v11068_v17 = vadd.s32 %v11023_v33, %v11020_v18  ;;  %vm3107_vm5 = vcmp.lt.s32.totalorder %v10917_v25, 0 }
 0x339   :  { %v2999_v53 = vsel %vm2992_vm4, %v2995_v6, %v2998_v8  ;;  %v3086_v19 = vsel %vm3003_vm9, %v3085_v34, %v3084_v21  ;;  %v3224_v22 = vsub.s32 32, %v3223_v63  ;;  %v3316_v54 = vand.u32 2139095040, %v11056_v49 }
 0x33a   :  { %v3000_v61 = vsel %vm2989_vm14, nan, %v2999_v53  ;;  %v3089_v46 = vsel %vm11030_vm13, %v10759_v30, %v3086_v19  ;;  %v3167_v36 = vshrl.u32 %v3166_v10, 30  ;;  %v3226_v11 = vshll.u32 %v14756_v44, %v3223_v63 }
 0x33b   :  { %v7596_v9 = vmul.f32 1000.0, %v3000_v61  ;;  %8328 = vcosq.f32 %v3089_v46  ;;  %v3227_v43 = vshrl.u32 %v14757_v62, %v3224_v22  ;;  %v3230_v0 = vshrl.u32 %v14758_v27, %v3224_v22 }
 0x33c   :  { %8330 = vsinq.f32 %v3089_v46  ;;  %v3168_v12 = vshll.u32 %v3167_v36, 30  ;;  %v3229_v31 = vshll.u32 %v14757_v62, %v3223_v63  ;;  %v3233_v51 = vshrl.u32 %v14759_v37, %v3224_v22 }
 0x33d   :  { %7660 = vst [vmem:[#allocation2 + $0x98] sm:$0xff] %v7596_v9  ;;  %v11077_v18 = vshrl.u32 %v3221_v48, 5  ;;  %v3232_v33 = vshll.u32 %v14758_v27, %v3223_v63  ;;  %v3235_v1 = vshll.u32 %v14759_v37, %v3223_v63  ;;  %v3236_v24 = vshrl.u32 %v14760_v45, %v3224_v22 }
 0x33e   :  { %vm3100_vm8 = vcmp.eq.s32.totalorder %v11060_v26, 2  ;;  %v11083_v4 = vsub.s32 %v3165_v39, %v3168_v12  ;;  %v3228_v32 = vor.u32 %v3227_v43, %v3226_v11  ;;  %v3231_v13 = vor.u32 %v3230_v0, %v3229_v31 }
 0x33f   :  { %v3313_v59 = vand.u32 2147483647, %v11056_v49  ;;  %vm3097_vm3 = vcmp.eq.s32.totalorder %v11060_v26, 0  ;;  %v3234_v15 = vor.u32 %v3233_v51, %v3232_v33  ;;  %v3237_v29 = vor.u32 %v3236_v24, %v3235_v1 }
 0x340   :  { %v3238_v40 = vshll.u32 %v14760_v45, %v3223_v63  ;;  %v3239_v38 = vshrl.u32 %v14761_v57, %v3224_v22  ;;  %vm3096_vm9 = vcmp.lt.s32.totalorder %v11060_v26, 2  ;;  %vm11092_vm6 = vcmp.le.f32.partialorder %v3105_v60, 0.7853982 }
 0x341   :  { %v3171_v5 = vsub.s32 0, %v11083_v4  ;;  %v3191_v7 = vsub.s32 4, %v3167_v36  ;;  %v3257_v3 = vshll.u32 %v3217_v16, 8  ;;  %v3317_v2 = vshrl.u32 %v3316_v54, 23 }
 0x342   :  { %vm3093_vm7 = vweird.f32 %v10759_v30  ;;  %v3225_v21 = vshrl.u32 %v14756_v44, %v3224_v22  ;;  %v3240_v56 = vor.u32 %v3239_v38, %v3238_v40  ;;  %vm3241_vm12 = vcmp.lt.s32.totalorder %v11077_v18, 1 }
 0x343   :  { %vm3244_vm10 = vcmp.lt.s32.totalorder %v11077_v18, 4  ;;  %v7806_v42 = vmin.u32 %v3171_v5, %v11083_v4  ;;  %vm3243_vm11 = vcmp.lt.s32.totalorder %v11077_v18, 3  ;;  %v3249_v60 = vsel %vm3241_vm12, %v3228_v32, %v3231_v13 }
 0x344   :  { %v3250_v20 = vsel %vm3244_vm10, %v3237_v29, 920167782  ;;  %v3246_v58 = vsel %vm3244_vm10, %v3234_v15, 2102212464  ;;  %v3253_v8 = vsel %vm3241_vm12, %v3231_v13, %v3234_v15  ;;  %v3254_v34 = vsel %vm3244_vm10, %v3240_v56, 1326507024 }
 0x345   :  { %v3251_v41 = vsel %vm3243_vm11, %v3234_v15, %v3250_v20  ;;  %v8329_v39 = vpop.eup %8328  ;;  %v3173_v48 = vclz %v7806_v42  ;;  %v3192_v6 = vsel %vm3107_vm5, %v3191_v7, %v3167_v36  ;;  %vm3242_vm14 = vcmp.lt.s32.totalorder %v11077_v18, 2 }
 0x346   :  { %v11114_v63 = vand.u32 8388607, %v3313_v59  ;;  %v8331_v53 = vpop.eup %8330  ;;  %v3101_v19 = vxor.u32 2147483648, %v8329_v39  ;;  %v3245_v10 = vsel %vm3241_vm12, %v3225_v21, %v3228_v32  ;;  %v3252_v61 = vsel %vm3242_vm14, %v3249_v60, %v3251_v41 }
 0x347   :  { %v3255_v46 = vsel %vm3243_vm11, %v3237_v29, %v3254_v34  ;;  %v3098_v16 = vxor.u32 2147483648, %v8331_v53  ;;  %v7807_v22 = vadd.s32 4294967294, %v3173_v48  ;;  %v3247_v9 = vsel %vm3243_vm11, %v3231_v13, %v3246_v58 }
 0x348   :  { %v3256_v36 = vsel %vm3242_vm14, %v3253_v8, %v3255_v46  ;;  %v3102_v43 = vsel %vm3100_vm8, %v3101_v19, %v8331_v53  ;;  %v7813_v12 = vadd.s32 4294967169, %v3317_v2  ;;  %v3194_v24 = vsel %vm11092_vm6, 0, %v3192_v6 }
 0x349   :  { %v11128_v0 = vmul.u32.u64.low %v3257_v3, %v3256_v36  ;;  %v11129_v54 = vmul.u32.u64.high %v3257_v3, %v3256_v36, %v11128_v0  ;;  %v3099_v11 = vsel %vm3097_vm3, %v8329_v39, %v3098_v16  ;;  %vm7808_vm13 = vcmp.lt.s32.totalorder %v7807_v22, 0 }
 0x34a   :  { %v11133_v31 = vmul.u32.u64.low %v3257_v3, %v3252_v61  ;;  %v11134_v51 = vmul.u32.u64.high %v3257_v3, %v3252_v61, %v11133_v31  ;;  %v3103_v33 = vsel %vm3096_vm9, %v3099_v11, %v3102_v43  ;;  %v3176_v1 = vsel %vm7808_vm13, 0, %v7807_v22  ;;  %v567_v61 = vpop.permute.xlu0 %566 }
 0x34b   :  { %v3323_v32 = vadd.s32 1, %v7813_v12  ;;  %v3104_v13 = vsel %vm3093_vm7, nan, %v3103_v33  ;;  %v3177_v15 = vsub.s32 32, %v3176_v1  ;;  %v3181_v29 = vsub.s32 4294967266, %v3176_v1 }
 0x34c   :  { %v3248_v40 = vsel %vm3242_vm14, %v3245_v10, %v3247_v9  ;;  %v7597_v38 = vmul.f32 1000.0, %v3104_v13  ;;  %v3178_v5 = vshll.u32 %v11083_v4, %v3176_v1  ;;  %vm3266_vm15 = vc.u32 %v11129_v54, %v11133_v31 }
 0x34d   :  { %vm3324_vm0 = vcmp.gt.s32.totalorder %v3323_v32, 0  ;;  %v3179_v26 = vshrl.u32 %v11068_v17, %v3177_v15  ;;  %v3182_v7 = vadd.s32 127, %v3181_v29  ;;  %v3267_v2 = vadd.s32 1, %v11134_v51 }
 0x34e   :  { %v3325_v21 = vsel %vm3324_vm0, %v3323_v32, 0  ;;  %7661 = vst [vmem:[#allocation2 + $0xa0] sm:$0xff] %v7597_v38  ;;  %v3264_v30 = vmul.u32 %v3257_v3, %v3248_v40  ;;  %v813_v4 = vadd.f32 %v11035_v35, %v10958_v47  ;;  %v3198_v20 = vadd.s32 3, %v3194_v24 }
 0x34f   :  { %v3327_v56 = vand.u32 31, %v3325_v21  ;;  %v3180_v42 = vor.u32 %v3179_v26, %v3178_v5  ;;  %v3183_v60 = vshll.u32 %v3182_v7, 23  ;;  %v3268_v18 = vsel %vm3266_vm15, %v3267_v2, %v11134_v51 }
 0x350   :  { %v3269_v58 = vadd.s32 %v3268_v18, %v3264_v30  ;;  %v3321_v41 = vor.u32 8388608, %v11114_v63  ;;  %v11154_v34 = vshrl.u32 %v3325_v21, 5  ;;  %v11166_v11 = vand.u32 3, %v3198_v20 }
 0x351   :  { %v3328_v8 = vsub.s32 32, %v3327_v56  ;;  %v3184_v17 = vor.u32 4788187, %v3183_v60  ;;  %v3330_v39 = vshll.u32 %v14756_v44, %v3327_v56  ;;  %v3333_v3 = vshll.u32 %v14757_v62, %v3327_v56 }
 0x352   :  { %v3187_v48 = vcvt.s32.f32 %v3180_v42  ;;  %v3270_v6 = vadd.s32 536870912, %v3269_v58  ;;  %v3339_v35 = vshll.u32 %v14759_v37, %v3327_v56  ;;  %v3336_v16 = vshll.u32 %v14758_v27, %v3327_v56 }
 0x353   :  { %v3331_v53 = vshrl.u32 %v14757_v62, %v3328_v8  ;;  %v3334_v19 = vshrl.u32 %v14758_v27, %v3328_v8  ;;  %v3185_v10 = vand.u32 2147483647, %v3184_v17  ;;  %v3337_v47 = vshrl.u32 %v14759_v37, %v3328_v8 }
 0x354   :  { %v3340_v63 = vshrl.u32 %v14760_v45, %v3328_v8  ;;  %v3271_v46 = vshrl.u32 %v3270_v6, 30  ;;  %v3342_v22 = vshll.u32 %v14760_v45, %v3327_v56  ;;  %v3343_v9 = vshrl.u32 %v14761_v57, %v3328_v8 }
 0x355   :  { %v3188_v36 = vmul.f32 %v3187_v48, %v3185_v10  ;;  %v3332_v43 = vor.u32 %v3331_v53, %v3330_v39  ;;  %v3335_v0 = vor.u32 %v3334_v19, %v3333_v3  ;;  %vm3211_vm1 = vcmp.lt.s32.totalorder %v10971_v14, 0 }
 0x356   :  { %v3341_v12 = vor.u32 %v3340_v63, %v3339_v35  ;;  %v3272_v51 = vshll.u32 %v3271_v46, 30  ;;  %v750_v33 = vmul.f32 %v9135_v55, %v567_v61  ;;  %v3338_v24 = vor.u32 %v3337_v47, %v3336_v16 }
 0x357   :  { %v3189_v1 = vxor.u32 2147483648, %v3188_v36  ;;  %v3344_v32 = vor.u32 %v3343_v9, %v3342_v22  ;;  %v11170_v13 = vshll.u32 %v3321_v41, 8  ;;  %vm3345_vm2 = vcmp.lt.s32.totalorder %v11154_v34, 1  ;;  %v14820_v41 = vld [vmem:[#allocation19_spill] sm:$0xff] }
 0x358   :  { %v11172_v15 = vsub.s32 %v3269_v58, %v3272_v51  ;;  %vm3348_vm4 = vcmp.lt.s32.totalorder %v11154_v34, 4  ;;  %v11177_v29 = vadd.f32 %v9137_v52, %v813_v4  ;;  %v3295_v38 = vsub.s32 4, %v3271_v46 }
 0x359   :  { %v3190_v40 = vsel %vm3107_vm5, %v3189_v1, %v3188_v36  ;;  %v3353_v5 = vsel %vm3345_vm2, %v3332_v43, %v3335_v0  ;;  %v3354_v26 = vsel %vm3348_vm4, %v3341_v12, 920167782  ;;  %vm3346_vm8 = vcmp.lt.s32.totalorder %v11154_v34, 2 }
 0x35a   :  { %v3193_v7 = vsel %vm11092_vm6, %v10917_v25, %v3190_v40  ;;  %v3275_v2 = vsub.s32 0, %v11172_v15  ;;  %vm3347_vm3 = vcmp.lt.s32.totalorder %v11154_v34, 3  ;;  %v3350_v21 = vsel %vm3348_vm4, %v3338_v24, 2102212464 }
 0x35b   :  { %8332 = vcosq.f32 %v3193_v7  ;;  %v3355_v30 = vsel %vm3347_vm3, %v3338_v24, %v3354_v26  ;;  %v3358_v56 = vsel %vm3348_vm4, %v3344_v32, 1326507024  ;;  %v3357_v23 = vsel %vm3345_vm2, %v3335_v0, %v3338_v24 }
 0x35c   :  { %8334 = vsinq.f32 %v3193_v7  ;;  %v7810_v42 = vmin.u32 %v3275_v2, %v11172_v15  ;;  %v3356_v60 = vsel %vm3346_vm8, %v3353_v5, %v3355_v30  ;;  %v3329_v18 = vshrl.u32 %v14756_v44, %v3328_v8 }
 0x35d   :  { %v3359_v4 = vsel %vm3347_vm3, %v3341_v12, %v3358_v56  ;;  %v11200_v20 = vmul.u32.u64.low %v11170_v13, %v3356_v60  ;;  %v11201_v58 = vmul.u32.u64.high %v11170_v13, %v3356_v60, %v11200_v20  ;;  %v426_v17 = vmul.f32 %v9131_v50, %v14820_v41 }
 0x35e   :  { %vm11208_vm5 = vcmp.le.f32.partialorder %v3209_v28, 0.7853982  ;;  %v3277_v3 = vclz %v7810_v42  ;;  %v3296_v8 = vsel %vm3211_vm1, %v3295_v38, %v3271_v46  ;;  %v3349_v48 = vsel %vm3345_vm2, %v3329_v18, %v3332_v43  ;;  %v14823_v18 = vld [vmem:[#allocation22_spill] sm:$0xff] }
 0x35f   :  { %v3351_v6 = vsel %vm3347_vm3, %v3335_v0, %v3350_v21  ;;  %v3360_v53 = vsel %vm3346_vm8, %v3357_v23, %v3359_v4  ;;  %v3420_v19 = vand.u32 2139095040, %v11177_v29  ;;  %v814_v35 = vadd.f32 %v750_v33, %v426_v17 }
 0x360   :  { %v7811_v10 = vadd.s32 4294967294, %v3277_v3  ;;  %v11222_v28 = vmul.u32.u64.low %v11170_v13, %v3360_v53  ;;  %v11223_v47 = vmul.u32.u64.high %v11170_v13, %v3360_v53, %v11222_v28  ;;  %vm3200_vm9 = vcmp.lt.s32.totalorder %v11166_v11, 2 }
 0x361   :  { %vm3201_vm6 = vcmp.eq.s32.totalorder %v11166_v11, 0  ;;  %v3298_v63 = vsel %vm11208_vm5, 0, %v3296_v8  ;;  %v3421_v61 = vshrl.u32 %v3420_v19, 23  ;;  %vm3204_vm7 = vcmp.eq.s32.totalorder %v11166_v11, 2 }
 0x362   :  { %vm7812_vm12 = vcmp.lt.s32.totalorder %v7811_v10, 0  ;;  %v3352_v46 = vsel %vm3346_vm8, %v3349_v48, %v3351_v6  ;;  %v3371_v16 = vadd.s32 1, %v11201_v58  ;;  %v3265_v22 = vadd.s32 %v11133_v31, %v11129_v54 }
 0x363   :  { %v3280_v9 = vsel %vm7812_vm12, 0, %v7811_v10  ;;  %v3417_v36 = vand.u32 2147483647, %v11177_v29  ;;  %v7817_v43 = vadd.s32 4294967169, %v3421_v61  ;;  %v3302_v51 = vadd.s32 3, %v3298_v63 }
 0x364   :  { %v3281_v0 = vsub.s32 32, %v3280_v9  ;;  %v3285_v12 = vsub.s32 4294967266, %v3280_v9  ;;  %v11237_v33 = vadd.f32 %v9137_v52, %v814_v35  ;;  %v3282_v24 = vshll.u32 %v11172_v15, %v3280_v9 }
 0x365   :  { %v8333_v1 = vpop.eup %8332  ;;  %v3368_v34 = vmul.u32 %v11170_v13, %v3352_v46  ;;  %vm3370_vm10 = vc.u32 %v11223_v47, %v11200_v20  ;;  %v3427_v32 = vadd.s32 1, %v7817_v43  ;;  %v3424_v2 = vand.u32 8388607, %v3417_v36 }
 0x366   :  { %v8335_v54 = vpop.eup %8334  ;;  %v3205_v31 = vxor.u32 2147483648, %v8333_v1  ;;  %v3283_v40 = vshrl.u32 %v3265_v22, %v3281_v0  ;;  %v3286_v38 = vadd.s32 127, %v3285_v12  ;;  %v3372_v5 = vsel %vm3370_vm10, %v3371_v16, %v11201_v58 }
 0x367   :  { %v3202_v26 = vxor.u32 2147483648, %v8335_v54  ;;  %v3373_v7 = vadd.s32 %v3372_v5, %v3368_v34  ;;  %vm3428_vm11 = vcmp.gt.s32.totalorder %v3427_v32, 0  ;;  %v3524_v23 = vand.u32 2139095040, %v11237_v33 }
 0x368   :  { %v3206_v15 = vsel %vm3204_vm7, %v3205_v31, %v8335_v54  ;;  %v3284_v13 = vor.u32 %v3283_v40, %v3282_v24  ;;  %v3287_v21 = vshll.u32 %v3286_v38, 23  ;;  %v3429_v30 = vsel %vm3428_vm11, %v3427_v32, 0 }
 0x369   :  { %v3203_v56 = vsel %vm3201_vm6, %v8333_v1, %v3202_v26  ;;  %v3374_v42 = vadd.s32 536870912, %v3373_v7  ;;  %v3431_v60 = vand.u32 31, %v3429_v30  ;;  %v11253_v4 = vmul.f32 %v9131_v50, %v14823_v18 }
 0x36a   :  { %vm3197_vm14 = vweird.f32 %v10917_v25  ;;  %v3207_v58 = vsel %vm3200_vm9, %v3203_v56, %v3206_v15  ;;  %v3288_v41 = vor.u32 4788187, %v3287_v21  ;;  %v11258_v3 = vand.u32 3, %v3302_v51 }
 0x36b   :  { %v3208_v17 = vsel %vm3197_vm14, nan, %v3207_v58  ;;  %vm3315_vm13 = vcmp.lt.s32.totalorder %v11056_v49, 0  ;;  %v3375_v8 = vshrl.u32 %v3374_v42, 30  ;;  %v3432_v48 = vsub.s32 32, %v3431_v60 }
 0x36c   :  { %v7598_v6 = vmul.f32 1000.0, %v3208_v17  ;;  %v3289_v53 = vand.u32 2147483647, %v3288_v41  ;;  %v3291_v19 = vcvt.s32.f32 %v3284_v13  ;;  %v3521_v10 = vand.u32 2147483647, %v11237_v33 }
 0x36d   :  { %v3376_v28 = vshll.u32 %v3375_v8, 30  ;;  %v3425_v35 = vor.u32 8388608, %v3424_v2  ;;  %v3435_v25 = vshrl.u32 %v14757_v62, %v3432_v48  ;;  %v3525_v63 = vshrl.u32 %v3524_v23, 23 }
 0x36e   :  { %7662 = vst [vmem:[#allocation2 + $0xa8] sm:$0xff] %v7598_v6  ;;  %v3292_v11 = vmul.f32 %v3291_v19, %v3289_v53  ;;  %v3434_v61 = vshll.u32 %v14756_v44, %v3431_v60  ;;  %v3438_v46 = vshrl.u32 %v14758_v27, %v3432_v48  ;;  %v3441_v16 = vshrl.u32 %v14759_v37, %v3432_v48 }
 0x36f   :  { %v11266_v22 = vsub.s32 %v3373_v7, %v3376_v28  ;;  %v3437_v9 = vshll.u32 %v14757_v62, %v3431_v60  ;;  %v3440_v43 = vshll.u32 %v14758_v27, %v3431_v60  ;;  %v3444_v0 = vshrl.u32 %v14760_v45, %v3432_v48 }
 0x370   :  { %v3293_v12 = vxor.u32 2147483648, %v3292_v11  ;;  %v3399_v51 = vsub.s32 4, %v3375_v8  ;;  %v3430_v1 = vshrl.u32 %v3429_v30, 5  ;;  %v3443_v24 = vshll.u32 %v14759_v37, %v3431_v60 }
 0x371   :  { %vm11274_vm15 = vcmp.le.f32.partialorder %v3313_v59, 0.7853982  ;;  %v3379_v32 = vsub.s32 0, %v11266_v22  ;;  %v3436_v54 = vor.u32 %v3435_v25, %v3434_v61  ;;  %v3439_v31 = vor.u32 %v3438_v46, %v3437_v9 }
 0x372   :  { %v3442_v40 = vor.u32 %v3441_v16, %v3440_v43  ;;  %v3294_v38 = vsel %vm3211_vm1, %v3293_v12, %v3292_v11  ;;  %v3445_v5 = vor.u32 %v3444_v0, %v3443_v24  ;;  %v3446_v26 = vshll.u32 %v14760_v45, %v3431_v60 }
 0x373   :  { %v3447_v7 = vshrl.u32 %v14761_v57, %v3432_v48  ;;  %v3297_v59 = vsel %vm11208_vm5, %v10971_v14, %v3294_v38  ;;  %v7814_v2 = vmin.u32 %v3379_v32, %v11266_v22  ;;  %v11287_v15 = vshll.u32 %v3425_v35, 8 }
 0x374   :  { %v7821_v13 = vadd.s32 4294967169, %v3525_v63  ;;  %8336 = vcosq.f32 %v3297_v59  ;;  %v3400_v21 = vsel %vm3315_vm13, %v3399_v51, %v3375_v8  ;;  %v3433_v30 = vshrl.u32 %v14756_v44, %v3432_v48 }
 0x375   :  { %v3448_v56 = vor.u32 %v3447_v7, %v3446_v26  ;;  %8338 = vsinq.f32 %v3297_v59  ;;  %v3381_v42 = vclz %v7814_v2  ;;  %vm3449_vm0 = vcmp.lt.s32.totalorder %v3430_v1, 1 }
 0x376   :  { %vm3452_vm1 = vcmp.lt.s32.totalorder %v3430_v1, 4  ;;  %vm3451_vm2 = vcmp.lt.s32.totalorder %v3430_v1, 3  ;;  %v3457_v39 = vsel %vm3449_vm0, %v3436_v54, %v3439_v31  ;;  %vm3450_vm4 = vcmp.lt.s32.totalorder %v3430_v1, 2 }
 0x377   :  { %v3454_v60 = vsel %vm3452_vm1, %v3442_v40, 2102212464  ;;  %v3458_v23 = vsel %vm3452_vm1, %v3445_v5, 920167782  ;;  %v7815_v18 = vadd.s32 4294967294, %v3381_v42  ;;  %v3461_v41 = vsel %vm3449_vm0, %v3439_v31, %v3442_v40 }
 0x378   :  { %v3459_v58 = vsel %vm3451_vm2, %v3442_v40, %v3458_v23  ;;  %v3453_v17 = vsel %vm3449_vm0, %v3433_v30, %v3436_v54  ;;  %v3455_v6 = vsel %vm3451_vm2, %v3439_v31, %v3454_v60  ;;  %v3462_v8 = vsel %vm3452_vm1, %v3448_v56, 1326507024  ;;  %v571_v30 = vpop.permute.xlu1 %570 }
 0x379   :  { %v3460_v53 = vsel %vm3450_vm4, %v3457_v39, %v3459_v58  ;;  %vm7816_vm8 = vcmp.lt.s32.totalorder %v7815_v18, 0  ;;  %v3463_v48 = vsel %vm3451_vm2, %v3445_v5, %v3462_v8  ;;  %v3369_v35 = vadd.s32 %v11200_v20, %v11223_v47 }
 0x37a   :  { %v11294_v19 = vmul.u32.u64.low %v11287_v15, %v3460_v53  ;;  %v11295_v28 = vmul.u32.u64.high %v11287_v15, %v3460_v53, %v11294_v19  ;;  %v3384_v25 = vsel %vm7816_vm8, 0, %v7815_v18  ;;  %v3402_v63 = vsel %vm11274_vm15, 0, %v3400_v21 }
 0x37b   :  { %v3464_v11 = vsel %vm3450_vm4, %v3461_v41, %v3463_v48  ;;  %vm3301_vm3 = vweird.f32 %v10971_v14  ;;  %v3385_v61 = vsub.s32 32, %v3384_v25  ;;  %v3389_v46 = vsub.s32 4294967266, %v3384_v25 }
 0x37c   :  { %v3528_v16 = vand.u32 8388607, %v3521_v10  ;;  %v3531_v9 = vadd.s32 1, %v7821_v13  ;;  %v3386_v43 = vshll.u32 %v11266_v22, %v3384_v25  ;;  %v3456_v0 = vsel %vm3450_vm4, %v3453_v17, %v3455_v6 }
 0x37d   :  { %v11309_v20 = vmul.u32.u64.low %v11287_v15, %v3464_v11  ;;  %v11310_v47 = vmul.u32.u64.high %v11287_v15, %v3464_v11, %v11309_v20  ;;  %v3387_v12 = vshrl.u32 %v3369_v35, %v3385_v61  ;;  %v3390_v51 = vadd.s32 127, %v3389_v46 }
 0x37e   :  { %v3475_v24 = vadd.s32 1, %v11295_v28  ;;  %vm3532_vm5 = vcmp.gt.s32.totalorder %v3531_v9, 0  ;;  %v8337_v32 = vpop.eup %8336  ;;  %vm3304_vm9 = vcmp.lt.s32.totalorder %v11258_v3, 2  ;;  %vm3308_vm6 = vcmp.eq.s32.totalorder %v11258_v3, 2 }
 0x37f   :  { %v3406_v54 = vadd.s32 3, %v3402_v63  ;;  %v3533_v31 = vsel %vm3532_vm5, %v3531_v9, 0  ;;  %v8339_v40 = vpop.eup %8338  ;;  %v3309_v22 = vxor.u32 2147483648, %v8337_v32  ;;  %v3388_v1 = vor.u32 %v3387_v12, %v3386_v43 }
 0x380   :  { %v3391_v38 = vshll.u32 %v3390_v51, 23  ;;  %v3529_v5 = vor.u32 8388608, %v3528_v16  ;;  %v3306_v26 = vxor.u32 2147483648, %v8339_v40  ;;  %v3472_v7 = vmul.u32 %v11287_v15, %v3456_v0 }
 0x381   :  { %vm3474_vm7 = vc.u32 %v11310_v47, %v11294_v19  ;;  %v3535_v59 = vand.u32 31, %v3533_v31  ;;  %vm3305_vm12 = vcmp.eq.s32.totalorder %v11258_v3, 0  ;;  %v3310_v2 = vsel %vm3308_vm6, %v3309_v22, %v8339_v40 }
 0x382   :  { %v3392_v13 = vor.u32 4788187, %v3391_v38  ;;  %v3476_v21 = vsel %vm3474_vm7, %v3475_v24, %v11295_v28  ;;  %v3307_v56 = vsel %vm3305_vm12, %v8337_v32, %v3306_v26  ;;  %v11320_v42 = vand.u32 3, %v3406_v54 }
 0x383   :  { %v3477_v60 = vadd.s32 %v3476_v21, %v3472_v7  ;;  %v3536_v39 = vsub.s32 32, %v3535_v59  ;;  %v3311_v23 = vsel %vm3304_vm9, %v3307_v56, %v3310_v2  ;;  %v3395_v18 = vcvt.s32.f32 %v3388_v1 }
 0x384   :  { %v3393_v15 = vand.u32 2147483647, %v3392_v13  ;;  %v11324_v58 = vshll.u32 %v3529_v5, 8  ;;  %v3312_v41 = vsel %vm3301_vm3, nan, %v3311_v23  ;;  %v751_v53 = vmul.f32 %v9135_v55, %v571_v30 }
 0x385   :  { %v3478_v17 = vadd.s32 536870912, %v3477_v60  ;;  %v3539_v6 = vshrl.u32 %v14757_v62, %v3536_v39  ;;  %v7599_v8 = vmul.f32 1000.0, %v3312_v41  ;;  %v3542_v28 = vshrl.u32 %v14758_v27, %v3536_v39 }
 0x386   :  { %v3396_v48 = vmul.f32 %v3395_v18, %v3393_v15  ;;  %v3545_v35 = vshrl.u32 %v14759_v37, %v3536_v39  ;;  %v3538_v25 = vshll.u32 %v14756_v44, %v3535_v59  ;;  %v3544_v63 = vshll.u32 %v14758_v27, %v3535_v59 }
 0x387   :  { %v3479_v3 = vshrl.u32 %v3478_v17, 30  ;;  %v3548_v11 = vshrl.u32 %v14760_v45, %v3536_v39  ;;  %7663 = vst [vmem:[#allocation2 + $0xb0] sm:$0xff] %v7599_v8  ;;  %v3534_v61 = vshrl.u32 %v3533_v31, 5  ;;  %v3541_v46 = vshll.u32 %v14757_v62, %v3535_v59 }
 0x388   :  { %v3397_v14 = vxor.u32 2147483648, %v3396_v48  ;;  %v3547_v16 = vshll.u32 %v14759_v37, %v3535_v59  ;;  %v3540_v43 = vor.u32 %v3539_v6, %v3538_v25  ;;  %v3546_v0 = vor.u32 %v3545_v35, %v3544_v63 }
 0x389   :  { %v3480_v9 = vshll.u32 %v3479_v3, 30  ;;  %v3551_v20 = vshrl.u32 %v14761_v57, %v3536_v39  ;;  %v3543_v51 = vor.u32 %v3542_v28, %v3541_v46  ;;  %v3550_v32 = vshll.u32 %v14760_v45, %v3535_v59 }
 0x38a   :  { %v3398_v12 = vsel %vm3315_vm13, %v3397_v14, %v3396_v48  ;;  %v3549_v24 = vor.u32 %v3548_v11, %v3547_v16  ;;  %v3537_v40 = vshrl.u32 %v14756_v44, %v3536_v39  ;;  %v815_v22 = vadd.f32 %v751_v53, %v11253_v4  ;;  %v14826_v39 = vld [vmem:[#allocation21_spill] sm:$0xff] }
 0x38b   :  { %v3401_v54 = vsel %vm11274_vm15, %v11056_v49, %v3398_v12  ;;  %v11344_v31 = vsub.s32 %v3477_v60, %v3480_v9  ;;  %v3503_v1 = vsub.s32 4, %v3479_v3  ;;  %v3552_v38 = vor.u32 %v3551_v20, %v3550_v32  ;;  %v579_v32 = vpop.permute.xlu1 %578 }
 0x38c   :  { %8340 = vcosq.f32 %v3401_v54  ;;  %vm3556_vm10 = vcmp.lt.s32.totalorder %v3534_v61, 4  ;;  %vm3553_vm11 = vcmp.lt.s32.totalorder %v3534_v61, 1  ;;  %vm3554_vm14 = vcmp.lt.s32.totalorder %v3534_v61, 2 }
 0x38d   :  { %8342 = vsinq.f32 %v3401_v54  ;;  %v3483_v5 = vsub.s32 0, %v11344_v31  ;;  %v3558_v26 = vsel %vm3556_vm10, %v3546_v0, 2102212464  ;;  %vm3555_vm13 = vcmp.lt.s32.totalorder %v3534_v61, 3 }
 0x38e   :  { %v3561_v7 = vsel %vm3553_vm11, %v3540_v43, %v3543_v51  ;;  %v3562_v34 = vsel %vm3556_vm10, %v3549_v24, 920167782  ;;  %v3557_v2 = vsel %vm3553_vm11, %v3537_v40, %v3540_v43  ;;  %v3559_v13 = vsel %vm3555_vm13, %v3543_v51, %v3558_v26 }
 0x38f   :  { %v7818_v59 = vmin.u32 %v3483_v5, %v11344_v31  ;;  %v3563_v4 = vsel %vm3555_vm13, %v3546_v0, %v3562_v34  ;;  %v3565_v30 = vsel %vm3553_vm11, %v3543_v51, %v3546_v0  ;;  %v3566_v56 = vsel %vm3556_vm10, %v3552_v38, 1326507024  ;;  %v575_v51 = vpop.permute.xlu0 %574 }
 0x390   :  { %v3564_v21 = vsel %vm3554_vm14, %v3561_v7, %v3563_v4  ;;  %v11354_v60 = vadd.f32 %v9137_v52, %v815_v22  ;;  %v428_v23 = vmul.f32 %v9131_v50, %v14826_v39  ;;  %vm11360_vm15 = vcmp.le.f32.partialorder %v3417_v36, 0.7853982 }
 0x391   :  { %vm3419_vm0 = vcmp.lt.s32.totalorder %v11177_v29, 0  ;;  %v3485_v18 = vclz %v7818_v59  ;;  %v3567_v17 = vsel %vm3555_vm13, %v3549_v24, %v3566_v56  ;;  %vm3405_vm1 = vweird.f32 %v11056_v49 }
 0x392   :  { %v3504_v41 = vsel %vm3419_vm0, %v3503_v1, %v3479_v3  ;;  %v11369_v6 = vmul.u32.u64.low %v11324_v58, %v3564_v21  ;;  %v11370_v53 = vmul.u32.u64.high %v11324_v58, %v3564_v21, %v11369_v6  ;;  %v3560_v36 = vsel %vm3554_vm14, %v3557_v2, %v3559_v13 }
 0x393   :  { %v7819_v8 = vadd.s32 4294967294, %v3485_v18  ;;  %v3568_v48 = vsel %vm3554_vm14, %v3565_v30, %v3567_v17  ;;  %v3628_v28 = vand.u32 2139095040, %v11354_v60  ;;  %vm3408_vm2 = vcmp.lt.s32.totalorder %v11320_v42, 2  ;;  %v14829_v17 = vld [vmem:[#allocation24_spill] sm:$0xff] }
 0x394   :  { %vm3409_vm4 = vcmp.eq.s32.totalorder %v11320_v42, 0  ;;  %v11380_v35 = vmul.u32.u64.low %v11324_v58, %v3568_v48  ;;  %v11381_v3 = vmul.u32.u64.high %v11324_v58, %v3568_v48, %v11380_v35  ;;  %vm3412_vm8 = vcmp.eq.s32.totalorder %v11320_v42, 2 }
 0x395   :  { %v3473_v25 = vadd.s32 %v11294_v19, %v11310_v47  ;;  %vm7820_vm3 = vcmp.lt.s32.totalorder %v7819_v8, 0  ;;  %v3629_v63 = vshrl.u32 %v3628_v28, 23  ;;  %v3506_v61 = vsel %vm11360_vm15, 0, %v3504_v41 }
 0x396   :  { %v8341_v11 = vpop.eup %8340  ;;  %v3488_v14 = vsel %vm7820_vm3, 0, %v7819_v8  ;;  %v3576_v46 = vmul.u32 %v11324_v58, %v3560_v36  ;;  %v3579_v16 = vadd.s32 1, %v11370_v53  ;;  %v3625_v12 = vand.u32 2147483647, %v11354_v60 }
 0x397   :  { %v8343_v9 = vpop.eup %8342  ;;  %v3413_v43 = vxor.u32 2147483648, %v8341_v11  ;;  %v3489_v0 = vsub.s32 32, %v3488_v14  ;;  %v3493_v20 = vsub.s32 4294967266, %v3488_v14  ;;  %v3490_v19 = vshll.u32 %v11344_v31, %v3488_v14 }
 0x398   :  { %v3410_v24 = vxor.u32 2147483648, %v8343_v9  ;;  %vm3578_vm5 = vc.u32 %v11381_v3, %v11369_v6  ;;  %v7825_v47 = vadd.s32 4294967169, %v3629_v63  ;;  %v752_v26 = vmul.f32 %v9135_v55, %v575_v51 }
 0x399   :  { %v3414_v58 = vsel %vm3412_vm8, %v3413_v43, %v8343_v9  ;;  %v3491_v54 = vshrl.u32 %v3473_v25, %v3489_v0  ;;  %v3494_v40 = vadd.s32 127, %v3493_v20  ;;  %v3580_v22 = vsel %vm3578_vm5, %v3579_v16, %v11370_v53 }
 0x39a   :  { %v3411_v1 = vsel %vm3409_vm4, %v8341_v11, %v3410_v24  ;;  %v3581_v38 = vadd.s32 %v3580_v22, %v3576_v46  ;;  %v3635_v5 = vadd.s32 1, %v7825_v47  ;;  %v753_v59 = vmul.f32 %v9135_v55, %v579_v32 }
 0x39b   :  { %v3415_v31 = vsel %vm3408_vm2, %v3411_v1, %v3414_v58  ;;  %v3492_v7 = vor.u32 %v3491_v54, %v3490_v19  ;;  %v3495_v34 = vshll.u32 %v3494_v40, 23  ;;  %v3510_v13 = vadd.s32 3, %v3506_v61 }
 0x39c   :  { %v3416_v2 = vsel %vm3405_vm1, nan, %v3415_v31  ;;  %v3582_v4 = vadd.s32 536870912, %v3581_v38  ;;  %vm3636_vm9 = vcmp.gt.s32.totalorder %v3635_v5, 0  ;;  %v3632_v56 = vand.u32 8388607, %v3625_v12 }
 0x39d   :  { %v7600_v21 = vmul.f32 1000.0, %v3416_v2  ;;  %v3496_v30 = vor.u32 4788187, %v3495_v34  ;;  %v3637_v39 = vsel %vm3636_vm9, %v3635_v5, 0  ;;  %v816_v42 = vadd.f32 %v752_v26, %v428_v23 }
 0x39e   :  { %v3583_v18 = vshrl.u32 %v3582_v4, 30  ;;  %v3639_v41 = vand.u32 31, %v3637_v39  ;;  %v429_v53 = vmul.f32 %v9131_v50, %v14829_v17  ;;  %v3499_v36 = vcvt.s32.f32 %v3492_v7 }
 0x39f   :  { %7664 = vst [vmem:[#allocation2 + $0xb8] sm:$0xff] %v7600_v21  ;;  %v3497_v8 = vand.u32 2147483647, %v3496_v30  ;;  %v11409_v35 = vand.u32 3, %v3510_v13  ;;  %v3633_v25 = vor.u32 8388608, %v3632_v56  ;;  %v3577_v11 = vadd.s32 %v11369_v6, %v11381_v3 }
 0x3a0   :  { %v3584_v49 = vshll.u32 %v3583_v18, 30  ;;  %v3640_v48 = vsub.s32 32, %v3639_v41  ;;  %v11411_v63 = vadd.f32 %v753_v59, %v429_v53  ;;  %v11419_v61 = vadd.f32 %v9137_v52, %v816_v42 }
 0x3a1   :  { %v3500_v28 = vmul.f32 %v3499_v36, %v3497_v8  ;;  %v3642_v16 = vshll.u32 %v14756_v44, %v3639_v41  ;;  %vm3523_vm6 = vcmp.lt.s32.totalorder %v11237_v33, 0  ;;  %v3645_v6 = vshll.u32 %v14757_v62, %v3639_v41 }
 0x3a2   :  { %v11415_v14 = vsub.s32 %v3581_v38, %v3584_v49  ;;  %v3643_v23 = vshrl.u32 %v14757_v62, %v3640_v48  ;;  %v3646_v9 = vshrl.u32 %v14758_v27, %v3640_v48  ;;  %v3649_v43 = vshrl.u32 %v14759_v37, %v3640_v48 }
 0x3a3   :  { %v3501_v46 = vxor.u32 2147483648, %v3500_v28  ;;  %v3648_v3 = vshll.u32 %v14758_v27, %v3639_v41  ;;  %v3652_v20 = vshrl.u32 %v14760_v45, %v3640_v48  ;;  %v3638_v24 = vshrl.u32 %v3637_v39, 5 }
 0x3a4   :  { %v3587_v0 = vsub.s32 0, %v11415_v14  ;;  %v3644_v19 = vor.u32 %v3643_v23, %v3642_v16  ;;  %v3651_v47 = vshll.u32 %v14759_v37, %v3639_v41  ;;  %v3647_v54 = vor.u32 %v3646_v9, %v3645_v6 }
 0x3a5   :  { %v3502_v51 = vsel %vm3419_vm0, %v3501_v46, %v3500_v28  ;;  %v3650_v40 = vor.u32 %v3649_v43, %v3648_v3  ;;  %v3654_v1 = vshll.u32 %v14760_v45, %v3639_v41  ;;  %v3655_v38 = vshrl.u32 %v14761_v57, %v3640_v48 }
 0x3a6   :  { %v3505_v32 = vsel %vm11360_vm15, %v11177_v29, %v3502_v51  ;;  %v7822_v58 = vmin.u32 %v3587_v0, %v11415_v14  ;;  %v3653_v22 = vor.u32 %v3652_v20, %v3651_v47  ;;  %vm11440_vm7 = vcmp.le.f32.partialorder %v3521_v10, 0.7853982 }
 0x3a7   :  { %8344 = vcosq.f32 %v3505_v32  ;;  %v3673_v15 = vshll.u32 %v3633_v25, 8  ;;  %v3732_v31 = vand.u32 2139095040, %v11419_v61  ;;  %v3607_v7 = vsub.s32 4, %v3583_v18 }
 0x3a8   :  { %8346 = vsinq.f32 %v3505_v32  ;;  %v3589_v26 = vclz %v7822_v58  ;;  %v3641_v34 = vshrl.u32 %v14756_v44, %v3640_v48  ;;  %v3656_v59 = vor.u32 %v3655_v38, %v3654_v1 }
 0x3a9   :  { %vm3657_vm12 = vcmp.lt.s32.totalorder %v3638_v24, 1  ;;  %vm3659_vm10 = vcmp.lt.s32.totalorder %v3638_v24, 3  ;;  %vm3660_vm11 = vcmp.lt.s32.totalorder %v3638_v24, 4  ;;  %vm3658_vm13 = vcmp.lt.s32.totalorder %v3638_v24, 2 }
 0x3aa   :  { %v7823_v2 = vadd.s32 4294967294, %v3589_v26  ;;  %v3665_v13 = vsel %vm3657_vm12, %v3644_v19, %v3647_v54  ;;  %v3662_v4 = vsel %vm3660_vm11, %v3650_v40, 2102212464  ;;  %v3666_v21 = vsel %vm3660_vm11, %v3653_v22, 920167782 }
 0x3ab   :  { %v3669_v10 = vsel %vm3657_vm12, %v3647_v54, %v3650_v40  ;;  %v3670_v30 = vsel %vm3660_vm11, %v3656_v59, 1326507024  ;;  %v3667_v56 = vsel %vm3659_vm10, %v3650_v40, %v3666_v21  ;;  %vm3512_vm15 = vcmp.lt.s32.totalorder %v11409_v35, 2 }
 0x3ac   :  { %vm7824_vm14 = vcmp.lt.s32.totalorder %v7823_v2, 0  ;;  %v3671_v39 = vsel %vm3659_vm10, %v3653_v22, %v3670_v30  ;;  %v3608_v42 = vsel %vm3523_vm6, %v3607_v7, %v3583_v18  ;;  %v3668_v17 = vsel %vm3658_vm13, %v3665_v13, %v3667_v56 }
 0x3ad   :  { %v3592_v41 = vsel %vm7824_vm14, 0, %v7823_v2  ;;  %v3672_v53 = vsel %vm3658_vm13, %v3669_v10, %v3671_v39  ;;  %vm3509_vm0 = vweird.f32 %v11177_v29  ;;  %v3661_v49 = vsel %vm3657_vm12, %v3641_v34, %v3644_v19 }
 0x3ae   :  { %v3593_v8 = vsub.s32 32, %v3592_v41  ;;  %v3597_v36 = vsub.s32 4294967266, %v3592_v41  ;;  %v3663_v48 = vsel %vm3659_vm10, %v3647_v54, %v3662_v4  ;;  %v3594_v18 = vshll.u32 %v11415_v14, %v3592_v41 }
 0x3af   :  { %v11458_v28 = vmul.u32.u64.low %v3673_v15, %v3672_v53  ;;  %v11459_v25 = vmul.u32.u64.high %v3673_v15, %v3672_v53, %v11458_v28  ;;  %v11461_v23 = vmul.u32.u64.low %v3673_v15, %v3668_v17  ;;  %v11462_v46 = vmul.u32.u64.high %v3673_v15, %v3668_v17, %v11461_v23 }
 0x3b0   :  { %v3595_v16 = vshrl.u32 %v3577_v11, %v3593_v8  ;;  %v3598_v9 = vadd.s32 127, %v3597_v36  ;;  %v3733_v43 = vshrl.u32 %v3732_v31, 23  ;;  %vm3516_vm1 = vcmp.eq.s32.totalorder %v11409_v35, 2 }
 0x3b1   :  { %v8345_v0 = vpop.eup %8344  ;;  %v3610_v6 = vsel %vm11440_vm7, 0, %v3608_v42  ;;  %v3664_v3 = vsel %vm3658_vm13, %v3661_v49, %v3663_v48  ;;  %v11472_v20 = vadd.f32 %v9137_v52, %v11411_v63  ;;  %vm3682_vm2 = vc.u32 %v11459_v25, %v11461_v23 }
 0x3b2   :  { %v8347_v51 = vpop.eup %8346  ;;  %v3517_v19 = vxor.u32 2147483648, %v8345_v0  ;;  %v3596_v47 = vor.u32 %v3595_v16, %v3594_v18  ;;  %v3599_v32 = vshll.u32 %v3598_v9, 23  ;;  %v7829_v14 = vadd.s32 4294967169, %v3733_v43 }
 0x3b3   :  { %v3514_v11 = vxor.u32 2147483648, %v8347_v51  ;;  %v3683_v58 = vadd.s32 1, %v11462_v46  ;;  %v3729_v54 = vand.u32 2147483647, %v11419_v61  ;;  %vm3513_vm4 = vcmp.eq.s32.totalorder %v11409_v35, 0 }
 0x3b4   :  { %v3518_v24 = vsel %vm3516_vm1, %v3517_v19, %v8347_v51  ;;  %v3600_v63 = vor.u32 4788187, %v3599_v32  ;;  %v3680_v40 = vmul.u32 %v3673_v15, %v3664_v3  ;;  %v3614_v1 = vadd.s32 3, %v3610_v6 }
 0x3b5   :  { %v3515_v22 = vsel %vm3513_vm4, %v8345_v0, %v3514_v11  ;;  %v3684_v38 = vsel %vm3682_vm2, %v3683_v58, %v11462_v46  ;;  %v3739_v26 = vadd.s32 1, %v7829_v14  ;;  %v3603_v34 = vcvt.s32.f32 %v3596_v47 }
 0x3b6   :  { %v3519_v31 = vsel %vm3512_vm15, %v3515_v22, %v3518_v24  ;;  %v3601_v7 = vand.u32 2147483647, %v3600_v63  ;;  %v3685_v59 = vadd.s32 %v3684_v38, %v3680_v40  ;;  %v3736_v13 = vand.u32 8388607, %v3729_v54 }
 0x3b7   :  { %v3520_v2 = vsel %vm3509_vm0, nan, %v3519_v31  ;;  %vm3740_vm8 = vcmp.gt.s32.totalorder %v3739_v26, 0  ;;  %v3836_v15 = vand.u32 2139095040, %v11472_v20  ;;  %vm3627_vm3 = vcmp.lt.s32.totalorder %v11354_v60, 0 }
 0x3b8   :  { %v7601_v4 = vmul.f32 1000.0, %v3520_v2  ;;  %v3604_v21 = vmul.f32 %v3603_v34, %v3601_v7  ;;  %v3686_v10 = vadd.s32 536870912, %v3685_v59  ;;  %v3741_v30 = vsel %vm3740_vm8, %v3739_v26, 0 }
 0x3b9   :  { %v3743_v56 = vand.u32 31, %v3741_v30  ;;  %v11490_v41 = vand.u32 3, %v3614_v1  ;;  %v3737_v29 = vor.u32 8388608, %v3736_v13  ;;  %v3833_v17 = vand.u32 2147483647, %v11472_v20 }
 0x3ba   :  { %7665 = vst [vmem:[#allocation2 + $0xc0] sm:$0xff] %v7601_v4  ;;  %v3605_v35 = vxor.u32 2147483648, %v3604_v21  ;;  %v3687_v39 = vshrl.u32 %v3686_v10, 30  ;;  %v11495_v36 = vshrl.u32 %v3741_v30, 5  ;;  %v3837_v49 = vshrl.u32 %v3836_v15, 23 }
 0x3bb   :  { %v3744_v42 = vsub.s32 32, %v3743_v56  ;;  %v3746_v28 = vshll.u32 %v14756_v44, %v3743_v56  ;;  %v3749_v9 = vshll.u32 %v14757_v62, %v3743_v56  ;;  %v3752_v6 = vshll.u32 %v14758_v27, %v3743_v56 }
 0x3bc   :  { %v3606_v53 = vsel %vm3523_vm6, %v3605_v35, %v3604_v21  ;;  %v3688_v8 = vshll.u32 %v3687_v39, 30  ;;  %v3711_v0 = vsub.s32 4, %v3687_v39  ;;  %v3755_v5 = vshll.u32 %v14759_v37, %v3743_v56 }
 0x3bd   :  { %v3609_v48 = vsel %vm11440_vm7, %v11237_v33, %v3606_v53  ;;  %v3747_v46 = vshrl.u32 %v14757_v62, %v3744_v42  ;;  %v3750_v18 = vshrl.u32 %v14758_v27, %v3744_v42  ;;  %v3753_v43 = vshrl.u32 %v14759_v37, %v3744_v42 }
 0x3be   :  { %8348 = vcosq.f32 %v3609_v48  ;;  %v11503_v16 = vsub.s32 %v3685_v59, %v3688_v8  ;;  %v3756_v47 = vshrl.u32 %v14760_v45, %v3744_v42  ;;  %v3681_v32 = vadd.s32 %v11461_v23, %v11459_v25 }
 0x3bf   :  { %8350 = vsinq.f32 %v3609_v48  ;;  %v3748_v51 = vor.u32 %v3747_v46, %v3746_v28  ;;  %v3751_v19 = vor.u32 %v3750_v18, %v3749_v9  ;;  %v3754_v14 = vor.u32 %v3753_v43, %v3752_v6 }
 0x3c0   :  { %v3691_v3 = vsub.s32 0, %v11503_v16  ;;  %v3758_v11 = vshll.u32 %v14760_v45, %v3743_v56  ;;  %v3759_v58 = vshrl.u32 %v14761_v57, %v3744_v42  ;;  %vm3620_vm5 = vcmp.eq.s32.totalorder %v11490_v41, 2  ;;  %v583_v56 = vpop.permute.xlu0 %582 }
 0x3c1   :  { %vm11518_vm9 = vcmp.le.f32.partialorder %v3625_v12, 0.7853982  ;;  %v3757_v40 = vor.u32 %v3756_v47, %v3755_v5  ;;  %v11523_v22 = vshll.u32 %v3737_v29, 8  ;;  %v7833_v1 = vadd.s32 4294967169, %v3837_v49 }
 0x3c2   :  { %v7826_v63 = vmin.u32 %v3691_v3, %v11503_v16  ;;  %vm3617_vm6 = vcmp.eq.s32.totalorder %v11490_v41, 0  ;;  %v3712_v25 = vsel %vm3627_vm3, %v3711_v0, %v3687_v39  ;;  %v3745_v23 = vshrl.u32 %v14756_v44, %v3744_v42 }
 0x3c3   :  { %v3760_v38 = vor.u32 %v3759_v58, %v3758_v11  ;;  %vm3761_vm7 = vcmp.lt.s32.totalorder %v11495_v36, 1  ;;  %vm3616_vm12 = vcmp.lt.s32.totalorder %v11490_v41, 2  ;;  %vm3763_vm10 = vcmp.lt.s32.totalorder %v11495_v36, 3 }
 0x3c4   :  { %v3693_v12 = vclz %v7826_v63  ;;  %vm3764_vm11 = vcmp.lt.s32.totalorder %v11495_v36, 4  ;;  %v3769_v26 = vsel %vm3761_vm7, %v3748_v51, %v3751_v19  ;;  %vm3613_vm14 = vweird.f32 %v11237_v33 }
 0x3c5   :  { %v3766_v31 = vsel %vm3764_vm11, %v3754_v14, 2102212464  ;;  %v3770_v7 = vsel %vm3764_vm11, %v3757_v40, 920167782  ;;  %v3773_v34 = vsel %vm3761_vm7, %v3751_v19, %v3754_v14  ;;  %v3774_v59 = vsel %vm3764_vm11, %v3760_v38, 1326507024 }
 0x3c6   :  { %v7827_v2 = vadd.s32 4294967294, %v3693_v12  ;;  %vm3762_vm13 = vcmp.lt.s32.totalorder %v11495_v36, 2  ;;  %v3771_v13 = vsel %vm3763_vm10, %v3754_v14, %v3770_v7  ;;  %v3775_v15 = vsel %vm3763_vm10, %v3757_v40, %v3774_v59 }
 0x3c7   :  { %v3765_v4 = vsel %vm3761_vm7, %v3745_v23, %v3748_v51  ;;  %v3772_v21 = vsel %vm3762_vm13, %v3769_v26, %v3771_v13  ;;  %v3776_v10 = vsel %vm3762_vm13, %v3773_v34, %v3775_v15  ;;  %v3843_v30 = vadd.s32 1, %v7833_v1 }
 0x3c8   :  { %v8349_v35 = vpop.eup %8348  ;;  %vm7828_vm15 = vcmp.lt.s32.totalorder %v7827_v2, 0  ;;  %v3767_v39 = vsel %vm3763_vm10, %v3751_v19, %v3766_v31  ;;  %v11546_v29 = vmul.u32.u64.low %v11523_v22, %v3776_v10  ;;  %v11547_v42 = vmul.u32.u64.high %v11523_v22, %v3776_v10, %v11546_v29 }
 0x3c9   :  { %v8351_v53 = vpop.eup %8350  ;;  %v3621_v8 = vxor.u32 2147483648, %v8349_v35  ;;  %v3696_v49 = vsel %vm7828_vm15, 0, %v7827_v2  ;;  %v11550_v48 = vmul.u32.u64.low %v11523_v22, %v3772_v21  ;;  %v11551_v28 = vmul.u32.u64.high %v11523_v22, %v3772_v21, %v11550_v48 }
 0x3ca   :  { %v3618_v46 = vxor.u32 2147483648, %v8351_v53  ;;  %v3697_v18 = vsub.s32 32, %v3696_v49  ;;  %v3701_v9 = vsub.s32 4294967266, %v3696_v49  ;;  %v754_v43 = vmul.f32 %v9135_v55, %v583_v56 }
 0x3cb   :  { %v3622_v0 = vsel %vm3620_vm5, %v3621_v8, %v8351_v53  ;;  %v3714_v6 = vsel %vm11518_vm9, 0, %v3712_v25  ;;  %v3768_v5 = vsel %vm3762_vm13, %v3765_v4, %v3767_v39  ;;  %vm3844_vm0 = vcmp.gt.s32.totalorder %v3843_v30, 0  ;;  %v14834_v25 = vld [vmem:[#allocation23_spill] sm:$0xff]  ;;  %v14835_v53 = vld [vmem:[#allocation26_spill] sm:$0xff] }
 0x3cc   :  { %v3619_v3 = vsel %vm3617_vm6, %v8349_v35, %v3618_v46  ;;  %v3698_v51 = vshll.u32 %v11503_v16, %v3696_v49  ;;  %v3699_v19 = vshrl.u32 %v3681_v32, %v3697_v18  ;;  %v3702_v47 = vadd.s32 127, %v3701_v9 }
 0x3cd   :  { %v3623_v14 = vsel %vm3616_vm12, %v3619_v3, %v3622_v0  ;;  %vm3786_vm1 = vc.u32 %v11547_v42, %v11550_v48  ;;  %v3787_v11 = vadd.s32 1, %v11551_v28  ;;  %v3845_v58 = vsel %vm3844_vm0, %v3843_v30, 0 }
 0x3ce   :  { %v3624_v36 = vsel %vm3613_vm14, nan, %v3623_v14  ;;  %v3700_v63 = vor.u32 %v3699_v19, %v3698_v51  ;;  %v3703_v40 = vshll.u32 %v3702_v47, 23  ;;  %v3784_v1 = vmul.u32 %v11523_v22, %v3768_v5 }
 0x3cf   :  { %v430_v16 = vmul.f32 %v9131_v50, %v14834_v25  ;;  %v7602_v32 = vmul.f32 1000.0, %v3624_v36  ;;  %v3788_v41 = vsel %vm3786_vm1, %v3787_v11, %v11551_v28  ;;  %v3847_v23 = vand.u32 31, %v3845_v58 }
 0x3d0   :  { %v3704_v38 = vor.u32 4788187, %v3703_v40  ;;  %v3718_v12 = vadd.s32 3, %v3714_v6  ;;  %v3789_v26 = vadd.s32 %v3788_v41, %v3784_v1  ;;  %v3840_v31 = vand.u32 8388607, %v3833_v17  ;;  %v587_v1 = vpop.permute.xlu1 %586 }
 0x3d1   :  { %7666 = vst [vmem:[#allocation2 + $0xc8] sm:$0xff] %v7602_v32  ;;  %v3707_v33 = vcvt.s32.f32 %v3700_v63  ;;  %v11577_v7 = vshrl.u32 %v3845_v58, 5  ;;  %v3848_v34 = vsub.s32 32, %v3847_v23  ;;  %v818_v59 = vadd.f32 %v754_v43, %v430_v16 }
 0x3d2   :  { %v3705_v22 = vand.u32 2147483647, %v3704_v38  ;;  %v3790_v2 = vadd.s32 536870912, %v3789_v26  ;;  %v3850_v13 = vshll.u32 %v14756_v44, %v3847_v23  ;;  %v3853_v15 = vshll.u32 %v14757_v62, %v3847_v23 }
 0x3d3   :  { %v3851_v4 = vshrl.u32 %v14757_v62, %v3848_v34  ;;  %v3854_v21 = vshrl.u32 %v14758_v27, %v3848_v34  ;;  %v3856_v10 = vshll.u32 %v14758_v27, %v3847_v23  ;;  %v3857_v30 = vshrl.u32 %v14759_v37, %v3848_v34 }
 0x3d4   :  { %v3708_v56 = vmul.f32 %v3707_v33, %v3705_v22  ;;  %v3791_v35 = vshrl.u32 %v3790_v2, 30  ;;  %v3860_v39 = vshrl.u32 %v14760_v45, %v3848_v34  ;;  %v3863_v29 = vshrl.u32 %v14761_v57, %v3848_v34 }
 0x3d5   :  { %v431_v8 = vmul.f32 %v9131_v50, %v14835_v53  ;;  %v3852_v49 = vor.u32 %v3851_v4, %v3850_v13  ;;  %v3859_v28 = vshll.u32 %v14759_v37, %v3847_v23  ;;  %v3862_v46 = vshll.u32 %v14760_v45, %v3847_v23 }
 0x3d6   :  { %v3709_v18 = vxor.u32 2147483648, %v3708_v56  ;;  %v3792_v9 = vshll.u32 %v3791_v35, 30  ;;  %v3855_v43 = vor.u32 %v3854_v21, %v3853_v15  ;;  %v3858_v0 = vor.u32 %v3857_v30, %v3856_v10 }
 0x3d7   :  { %v11591_v6 = vand.u32 3, %v3718_v12  ;;  %v3841_v5 = vor.u32 8388608, %v3840_v31  ;;  %v3861_v3 = vor.u32 %v3860_v39, %v3859_v28  ;;  %v3864_v51 = vor.u32 %v3863_v29, %v3862_v46 }
 0x3d8   :  { %v3710_v19 = vsel %vm3627_vm3, %v3709_v18, %v3708_v56  ;;  %v11595_v47 = vsub.s32 %v3789_v26, %v3792_v9  ;;  %vm3865_vm2 = vcmp.lt.s32.totalorder %v11577_v7, 1  ;;  %v11599_v14 = vadd.f32 %v9137_v52, %v818_v59 }
 0x3d9   :  { %v3713_v11 = vsel %vm11518_vm9, %v11354_v60, %v3710_v19  ;;  %vm3731_vm4 = vcmp.lt.s32.totalorder %v11419_v61, 0  ;;  %v3849_v58 = vshrl.u32 %v14756_v44, %v3848_v34  ;;  %vm3867_vm8 = vcmp.lt.s32.totalorder %v11577_v7, 3 }
 0x3da   :  { %vm3868_vm5 = vcmp.lt.s32.totalorder %v11577_v7, 4  ;;  %8352 = vcosq.f32 %v3713_v11  ;;  %v3795_v36 = vsub.s32 0, %v11595_v47  ;;  %v3873_v40 = vsel %vm3865_vm2, %v3852_v49, %v3855_v43 }
 0x3db   :  { %v3870_v63 = vsel %vm3868_vm5, %v3858_v0, 2102212464  ;;  %8354 = vsinq.f32 %v3713_v11  ;;  %v3874_v25 = vsel %vm3868_vm5, %v3861_v3, 920167782  ;;  %v3877_v24 = vsel %vm3865_vm2, %v3855_v43, %v3858_v0 }
 0x3dc   :  { %v3878_v16 = vsel %vm3868_vm5, %v3864_v51, 1326507024  ;;  %v7830_v32 = vmin.u32 %v3795_v36, %v11595_v47  ;;  %vm3866_vm3 = vcmp.lt.s32.totalorder %v11577_v7, 2  ;;  %v3875_v41 = vsel %vm3867_vm8, %v3858_v0, %v3874_v25 }
 0x3dd   :  { %v3879_v23 = vsel %vm3867_vm8, %v3861_v3, %v3878_v16  ;;  %v3876_v38 = vsel %vm3866_vm3, %v3873_v40, %v3875_v41  ;;  %v3881_v26 = vshll.u32 %v3841_v5, 8  ;;  %v755_v31 = vmul.f32 %v9135_v55, %v587_v1 }
 0x3de   :  { %v3880_v12 = vsel %vm3866_vm3, %v3877_v24, %v3879_v23  ;;  %v3797_v33 = vclz %v7830_v32  ;;  %v3815_v34 = vsub.s32 4, %v3791_v35  ;;  %v3869_v59 = vsel %vm3865_vm2, %v3849_v58, %v3852_v49 }
 0x3df   :  { %v3871_v22 = vsel %vm3867_vm8, %v3855_v43, %v3870_v63  ;;  %v11628_v2 = vmul.u32.u64.low %v3881_v26, %v3880_v12  ;;  %v11629_v13 = vmul.u32.u64.high %v3881_v26, %v3880_v12, %v11628_v2  ;;  %vm3720_vm9 = vcmp.lt.s32.totalorder %v11591_v6, 2 }
 0x3e0   :  { %v11631_v15 = vmul.u32.u64.low %v3881_v26, %v3876_v38  ;;  %v11632_v4 = vmul.u32.u64.high %v3881_v26, %v3876_v38, %v11631_v15  ;;  %vm11638_vm6 = vcmp.le.f32.partialorder %v3729_v54, 0.7853982  ;;  %v7831_v10 = vadd.s32 4294967294, %v3797_v33 }
 0x3e1   :  { %v3940_v30 = vand.u32 2139095040, %v11599_v14  ;;  %vm3721_vm7 = vcmp.eq.s32.totalorder %v11591_v6, 0  ;;  %vm3724_vm12 = vcmp.eq.s32.totalorder %v11591_v6, 2  ;;  %v3785_v56 = vadd.s32 %v11550_v48, %v11547_v42  ;;  %v14839_v6 = vld [vmem:[#allocation28_spill] sm:$0xff] }
 0x3e2   :  { %v3872_v39 = vsel %vm3866_vm3, %v3869_v59, %v3871_v22  ;;  %vm7832_vm10 = vcmp.lt.s32.totalorder %v7831_v10, 0  ;;  %v3816_v54 = vsel %vm3731_vm4, %v3815_v34, %v3791_v35  ;;  %v3937_v29 = vand.u32 2147483647, %v11599_v14 }
 0x3e3   :  { %v3941_v53 = vshrl.u32 %v3940_v30, 23  ;;  %v3800_v49 = vsel %vm7832_vm10, 0, %v7831_v10  ;;  %vm3890_vm11 = vc.u32 %v11629_v13, %v11631_v15  ;;  %v3891_v28 = vadd.s32 1, %v11632_v4 }
 0x3e4   :  { %v819_v46 = vadd.f32 %v755_v31, %v431_v8  ;;  %v8353_v18 = vpop.eup %8352  ;;  %v3801_v9 = vsub.s32 32, %v3800_v49  ;;  %v3805_v42 = vsub.s32 4294967266, %v3800_v49  ;;  %v3888_v48 = vmul.u32 %v3881_v26, %v3872_v39 }
 0x3e5   :  { %v7837_v7 = vadd.s32 4294967169, %v3941_v53  ;;  %v8355_v43 = vpop.eup %8354  ;;  %v3725_v0 = vxor.u32 2147483648, %v8353_v18  ;;  %v3802_v5 = vshll.u32 %v11595_v47, %v3800_v49  ;;  %v3818_v35 = vsel %vm11638_vm6, 0, %v3816_v54 }
 0x3e6   :  { %v3892_v3 = vsel %vm3890_vm11, %v3891_v28, %v11632_v4  ;;  %v3722_v51 = vxor.u32 2147483648, %v8355_v43  ;;  %v3803_v19 = vshrl.u32 %v3785_v56, %v3801_v9  ;;  %v3806_v11 = vadd.s32 127, %v3805_v42  ;;  %v14838_v4 = vld [vmem:[#allocation25_spill] sm:$0xff] }
 0x3e7   :  { %v3893_v58 = vadd.s32 %v3892_v3, %v3888_v48  ;;  %v3726_v8 = vsel %vm3724_vm12, %v3725_v0, %v8355_v43  ;;  %v3944_v36 = vand.u32 8388607, %v3937_v29  ;;  %v3947_v63 = vadd.s32 1, %v7837_v7 }
 0x3e8   :  { %v11664_v40 = vadd.f32 %v9137_v52, %v819_v46  ;;  %v3723_v47 = vsel %vm3721_vm7, %v8353_v18, %v3722_v51  ;;  %v3804_v1 = vor.u32 %v3803_v19, %v3802_v5  ;;  %v3807_v25 = vshll.u32 %v3806_v11, 23 }
 0x3e9   :  { %v3894_v24 = vadd.s32 536870912, %v3893_v58  ;;  %vm3717_vm14 = vweird.f32 %v11354_v60  ;;  %v3727_v16 = vsel %vm3720_vm9, %v3723_v47, %v3726_v8  ;;  %vm3948_vm13 = vcmp.gt.s32.totalorder %v3947_v63, 0 }
 0x3ea   :  { %v3728_v32 = vsel %vm3717_vm14, nan, %v3727_v16  ;;  %v3808_v41 = vor.u32 4788187, %v3807_v25  ;;  %v3822_v23 = vadd.s32 3, %v3818_v35  ;;  %v3945_v26 = vor.u32 8388608, %v3944_v36 }
 0x3eb   :  { %v3895_v38 = vshrl.u32 %v3894_v24, 30  ;;  %v7603_v12 = vmul.f32 1000.0, %v3728_v32  ;;  %v3949_v31 = vsel %vm3948_vm13, %v3947_v63, 0  ;;  %v4041_v33 = vand.u32 2147483647, %v11664_v40 }
 0x3ec   :  { %v3809_v34 = vand.u32 2147483647, %v3808_v41  ;;  %v3811_v59 = vcvt.s32.f32 %v3804_v1  ;;  %v4044_v2 = vand.u32 2139095040, %v11664_v40  ;;  %v11675_v60 = vmul.f32 %v9131_v50, %v14838_v4 }
 0x3ed   :  { %v3896_v22 = vshll.u32 %v3895_v38, 30  ;;  %v11679_v10 = vmul.f32 %v9131_v50, %v14839_v6  ;;  %7667 = vst [vmem:[#allocation2 + $0xd0] sm:$0xff] %v7603_v12  ;;  %vm3835_vm15 = vcmp.lt.s32.totalorder %v11472_v20, 0  ;;  %v3951_v30 = vand.u32 31, %v3949_v31 }
 0x3ee   :  { %v3812_v56 = vmul.f32 %v3811_v59, %v3809_v34  ;;  %v11682_v39 = vand.u32 3, %v3822_v23  ;;  %v3889_v54 = vadd.s32 %v11631_v15, %v11629_v13  ;;  %v3919_v49 = vsub.s32 4, %v3895_v38 }
 0x3ef   :  { %v11686_v53 = vsub.s32 %v3893_v58, %v3896_v22  ;;  %v3950_v28 = vshrl.u32 %v3949_v31, 5  ;;  %v3952_v46 = vsub.s32 32, %v3951_v30  ;;  %v11688_v18 = vshll.u32 %v3945_v26, 8 }
 0x3f0   :  { %v3813_v9 = vxor.u32 2147483648, %v3812_v56  ;;  %v4045_v48 = vshrl.u32 %v4044_v2, 23  ;;  %v11693_v7 = vand.u32 8388607, %v4041_v33  ;;  %v3954_v43 = vshll.u32 %v14756_v44, %v3951_v30 }
 0x3f1   :  { %v3899_v42 = vsub.s32 0, %v11686_v53  ;;  %v3955_v0 = vshrl.u32 %v14757_v62, %v3952_v46  ;;  %v3958_v13 = vshrl.u32 %v14758_v27, %v3952_v46  ;;  %v3961_v15 = vshrl.u32 %v14759_v37, %v3952_v46 }
 0x3f2   :  { %v3814_v5 = vsel %vm3731_vm4, %v3813_v9, %v3812_v56  ;;  %v3957_v3 = vshll.u32 %v14757_v62, %v3951_v30  ;;  %v3960_v51 = vshll.u32 %v14758_v27, %v3951_v30  ;;  %v11709_v11 = vsel %vm3835_vm15, %v3919_v49, %v3895_v38 }
 0x3f3   :  { %v7834_v35 = vmin.u32 %v3899_v42, %v11686_v53  ;;  %v3817_v19 = vsel %vm11638_vm6, %v11419_v61, %v3814_v5  ;;  %v3956_v58 = vor.u32 %v3955_v0, %v3954_v43  ;;  %vm3969_vm0 = vcmp.lt.s32.totalorder %v3950_v28, 1  ;;  %v591_v0 = vpop.permute.xlu0 %590 }
 0x3f4   :  { %8356 = vcosq.f32 %v3817_v19  ;;  %v3959_v36 = vor.u32 %v3958_v13, %v3957_v3  ;;  %v3962_v63 = vor.u32 %v3961_v15, %v3960_v51  ;;  %v3953_v47 = vshrl.u32 %v14756_v44, %v3952_v46 }
 0x3f5   :  { %v3901_v8 = vclz %v7834_v35  ;;  %8358 = vsinq.f32 %v3817_v19  ;;  %v3963_v1 = vshll.u32 %v14759_v37, %v3951_v30  ;;  %v3964_v25 = vshrl.u32 %v14760_v45, %v3952_v46 }
 0x3f6   :  { %v3966_v21 = vshll.u32 %v14760_v45, %v3951_v30  ;;  %v3967_v16 = vshrl.u32 %v14761_v57, %v3952_v46  ;;  %vm3970_vm1 = vcmp.lt.s32.totalorder %v3950_v28, 2  ;;  %vm11718_vm2 = vcmp.le.f32.partialorder %v3833_v17, 0.7853982 }
 0x3f7   :  { %v7835_v24 = vadd.s32 4294967294, %v3901_v8  ;;  %v3965_v41 = vor.u32 %v3964_v25, %v3963_v1  ;;  %vm3971_vm4 = vcmp.lt.s32.totalorder %v3950_v28, 3  ;;  %vm3972_vm8 = vcmp.lt.s32.totalorder %v3950_v28, 4 }
 0x3f8   :  { %v3973_v23 = vsel %vm3969_vm0, %v3953_v47, %v3956_v58  ;;  %v3968_v38 = vor.u32 %v3967_v16, %v3966_v21  ;;  %v3974_v12 = vsel %vm3972_vm8, %v3962_v63, 2102212464  ;;  %v3977_v26 = vsel %vm3969_vm0, %v3956_v58, %v3959_v36 }
 0x3f9   :  { %vm7836_vm5 = vcmp.lt.s32.totalorder %v7835_v24, 0  ;;  %vm3825_vm3 = vcmp.eq.s32.totalorder %v11682_v39, 0  ;;  %v3975_v34 = vsel %vm3971_vm4, %v3959_v36, %v3974_v12  ;;  %v3978_v17 = vsel %vm3972_vm8, %v3965_v41, 920167782 }
 0x3fa   :  { %v3904_v31 = vsel %vm7836_vm5, 0, %v7835_v24  ;;  %v7841_v59 = vadd.s32 4294967169, %v4045_v48  ;;  %vm3824_vm9 = vcmp.lt.s32.totalorder %v11682_v39, 2  ;;  %v3981_v6 = vsel %vm3969_vm0, %v3959_v36, %v3962_v63 }
 0x3fb   :  { %v3905_v22 = vsub.s32 32, %v3904_v31  ;;  %v3906_v2 = vshll.u32 %v11686_v53, %v3904_v31  ;;  %v3909_v4 = vsub.s32 4294967266, %v3904_v31  ;;  %vm3821_vm6 = vweird.f32 %v11419_v61 }
 0x3fc   :  { %v3976_v30 = vsel %vm3970_vm1, %v3973_v23, %v3975_v34  ;;  %v3979_v56 = vsel %vm3971_vm4, %v3962_v63, %v3978_v17  ;;  %v3982_v49 = vsel %vm3972_vm8, %v3968_v38, 1326507024  ;;  %v4051_v46 = vadd.s32 1, %v7841_v59 }
 0x3fd   :  { %v3907_v9 = vshrl.u32 %v3889_v54, %v3905_v22  ;;  %v3910_v42 = vadd.s32 127, %v3909_v4  ;;  %v3980_v48 = vsel %vm3970_vm1, %v3977_v26, %v3979_v56  ;;  %v3983_v43 = vsel %vm3971_vm4, %v3965_v41, %v3982_v49 }
 0x3fe   :  { %v3984_v53 = vsel %vm3970_vm1, %v3981_v6, %v3983_v43  ;;  %v11739_v13 = vmul.u32.u64.low %v11688_v18, %v3980_v48  ;;  %v11740_v15 = vmul.u32.u64.high %v11688_v18, %v3980_v48, %v11739_v13  ;;  %vm4052_vm7 = vcmp.gt.s32.totalorder %v4051_v46, 0  ;;  %v8357_v5 = vpop.eup %8356 }
 0x3ff   :  { %v3908_v35 = vor.u32 %v3907_v9, %v3906_v2  ;;  %v3911_v3 = vshll.u32 %v3910_v42, 23  ;;  %v11744_v51 = vmul.u32.u64.low %v11688_v18, %v3984_v53  ;;  %v11745_v54 = vmul.u32.u64.high %v11688_v18, %v3984_v53, %v11744_v51  ;;  %v8359_v19 = vpop.eup %8358 }
 0x400   :  { %vm3828_vm12 = vcmp.eq.s32.totalorder %v11682_v39, 2  ;;  %v3829_v58 = vxor.u32 2147483648, %v8357_v5  ;;  %v4053_v8 = vsel %vm4052_vm7, %v4051_v46, 0  ;;  %v756_v28 = vmul.f32 %v9135_v55, %v591_v0 }
 0x401   :  { %v3826_v36 = vxor.u32 2147483648, %v8359_v19  ;;  %v3912_v63 = vor.u32 4788187, %v3911_v3  ;;  %v3922_v47 = vsel %vm11718_vm2, 0, %v11709_v11  ;;  %v4049_v1 = vor.u32 8388608, %v11693_v7 }
 0x402   :  { %v3830_v25 = vsel %vm3828_vm12, %v3829_v58, %v8359_v19  ;;  %v3992_v24 = vmul.u32 %v11688_v18, %v3976_v30  ;;  %v3995_v21 = vadd.s32 1, %v11740_v15  ;;  %v4055_v16 = vand.u32 31, %v4053_v8 }
 0x403   :  { %v3827_v41 = vsel %vm3825_vm3, %v8357_v5, %v3826_v36  ;;  %v3913_v23 = vand.u32 2147483647, %v3912_v63  ;;  %v3915_v38 = vcvt.s32.f32 %v3908_v35  ;;  %vm3994_vm10 = vc.u32 %v11745_v54, %v11739_v13 }
 0x404   :  { %v3831_v12 = vsel %vm3824_vm9, %v3827_v41, %v3830_v25  ;;  %v3996_v11 = vsel %vm3994_vm10, %v3995_v21, %v11740_v15  ;;  %v4056_v7 = vsub.s32 32, %v4055_v16  ;;  %v820_v26 = vadd.f32 %v756_v28, %v11675_v60 }
 0x405   :  { %v3832_v18 = vsel %vm3821_vm6, nan, %v3831_v12  ;;  %v3916_v31 = vmul.f32 %v3915_v38, %v3913_v23  ;;  %v3997_v34 = vadd.s32 %v3996_v11, %v3992_v24  ;;  %v4058_v17 = vshll.u32 %v14756_v44, %v4055_v16  ;;  %v595_v38 = vpop.permute.xlu1 %594 }
 0x406   :  { %v7604_v59 = vmul.f32 1000.0, %v3832_v18  ;;  %v4059_v22 = vshrl.u32 %v14757_v62, %v4056_v7  ;;  %v4061_v2 = vshll.u32 %v14757_v62, %v4055_v16  ;;  %v4062_v39 = vshrl.u32 %v14758_v27, %v4056_v7 }
 0x407   :  { %v3917_v4 = vxor.u32 2147483648, %v3916_v31  ;;  %v3998_v6 = vadd.s32 536870912, %v3997_v34  ;;  %v4064_v30 = vshll.u32 %v14758_v27, %v4055_v16  ;;  %v4065_v60 = vshrl.u32 %v14759_v37, %v4056_v7 }
 0x408   :  { %7668 = vst [vmem:[#allocation2 + $0xd8] sm:$0xff] %v7604_v59  ;;  %v4054_v61 = vshrl.u32 %v4053_v8, 5  ;;  %v4060_v56 = vor.u32 %v4059_v22, %v4058_v17  ;;  %v4067_v49 = vshll.u32 %v14759_v37, %v4055_v16  ;;  %v4068_v46 = vshrl.u32 %v14760_v45, %v4056_v7 }
 0x409   :  { %v3918_v9 = vsel %vm3835_vm15, %v3917_v4, %v3916_v31  ;;  %v3999_v42 = vshrl.u32 %v3998_v6, 30  ;;  %v4063_v48 = vor.u32 %v4062_v39, %v4061_v2  ;;  %v4066_v43 = vor.u32 %v4065_v60, %v4064_v30 }
 0x40a   :  { %v3921_v0 = vsel %vm11718_vm2, %v11472_v20, %v3918_v9  ;;  %v4069_v53 = vor.u32 %v4068_v46, %v4067_v49  ;;  %v4070_v15 = vshll.u32 %v14760_v45, %v4055_v16  ;;  %v4071_v5 = vshrl.u32 %v14761_v57, %v4056_v7 }
 0x40b   :  { %8360 = vcosq.f32 %v3921_v0  ;;  %v3926_v35 = vadd.s32 3, %v3922_v47  ;;  %v4000_v3 = vshll.u32 %v3999_v42, 30  ;;  %v11780_v51 = vshll.u32 %v4049_v1, 8 }
 0x40c   :  { %8362 = vsinq.f32 %v3921_v0  ;;  %v4072_v19 = vor.u32 %v4071_v5, %v4070_v15  ;;  %vm4076_vm11 = vcmp.lt.s32.totalorder %v4054_v61, 4  ;;  %v11783_v58 = vadd.f32 %v9137_v52, %v820_v26 }
 0x40d   :  { %v11785_v8 = vsub.s32 %v3997_v34, %v4000_v3  ;;  %v4057_v32 = vshrl.u32 %v14756_v44, %v4056_v7  ;;  %vm4073_vm14 = vcmp.lt.s32.totalorder %v4054_v61, 1  ;;  %v4078_v28 = vsel %vm4076_vm11, %v4066_v43, 2102212464 }
 0x40e   :  { %v4023_v36 = vsub.s32 4, %v3999_v42  ;;  %vm4075_vm13 = vcmp.lt.s32.totalorder %v4054_v61, 3  ;;  %v4081_v63 = vsel %vm4073_vm14, %v4060_v56, %v4063_v48  ;;  %v4082_v47 = vsel %vm4076_vm11, %v4069_v53, 920167782 }
 0x40f   :  { %v4003_v1 = vsub.s32 0, %v11785_v8  ;;  %vm4074_vm15 = vcmp.lt.s32.totalorder %v4054_v61, 2  ;;  %v4077_v25 = vsel %vm4073_vm14, %v4057_v32, %v4060_v56  ;;  %v4083_v24 = vsel %vm4075_vm13, %v4066_v43, %v4082_v47 }
 0x410   :  { %v4079_v21 = vsel %vm4075_vm13, %v4063_v48, %v4078_v28  ;;  %v4084_v16 = vsel %vm4074_vm15, %v4081_v63, %v4083_v24  ;;  %v4085_v41 = vsel %vm4073_vm14, %v4063_v48, %v4066_v43  ;;  %v4086_v23 = vsel %vm4076_vm11, %v4072_v19, 1326507024 }
 0x411   :  { %v3927_v12 = vand.u32 3, %v3926_v35  ;;  %vm11795_vm0 = vcmp.le.f32.partialorder %v3937_v29, 0.7853982  ;;  %v7838_v7 = vmin.u32 %v4003_v1, %v11785_v8  ;;  %v4087_v26 = vsel %vm4075_vm13, %v4069_v53, %v4086_v23  ;;  %v599_v1 = vpop.permute.xlu0 %598 }
 0x412   :  { %vm3925_vm1 = vweird.f32 %v11472_v20  ;;  %vm3939_vm2 = vcmp.lt.s32.totalorder %v11599_v14, 0  ;;  %v4088_v18 = vsel %vm4074_vm15, %v4085_v41, %v4087_v26  ;;  %v4080_v59 = vsel %vm4074_vm15, %v4077_v25, %v4079_v21  ;;  %v14844_v26 = vld [vmem:[#allocation27_spill] sm:$0xff] }
 0x413   :  { %v11804_v31 = vmul.u32.u64.low %v11780_v51, %v4084_v16  ;;  %v11805_v34 = vmul.u32.u64.high %v11780_v51, %v4084_v16, %v11804_v31  ;;  %v4005_v17 = vclz %v7838_v7  ;;  %v4024_v29 = vsel %vm3939_vm2, %v4023_v36, %v3999_v42 }
 0x414   :  { %v757_v22 = vmul.f32 %v9135_v55, %v595_v38  ;;  %v11812_v2 = vmul.u32.u64.low %v11780_v51, %v4088_v18  ;;  %v11813_v39 = vmul.u32.u64.high %v11780_v51, %v4088_v18, %v11812_v2  ;;  %v4145_v4 = vand.u32 2147483647, %v11783_v58 }
 0x415   :  { %v4148_v6 = vand.u32 2139095040, %v11783_v58  ;;  %v8361_v30 = vpop.eup %8360  ;;  %vm3928_vm4 = vcmp.lt.s32.totalorder %v3927_v12, 2  ;;  %vm3929_vm8 = vcmp.eq.s32.totalorder %v3927_v12, 0  ;;  %vm3932_vm5 = vcmp.eq.s32.totalorder %v3927_v12, 2 }
 0x416   :  { %v7839_v60 = vadd.s32 4294967294, %v4005_v17  ;;  %v8363_v56 = vpop.eup %8362  ;;  %v3933_v49 = vxor.u32 2147483648, %v8361_v30  ;;  %v3993_v61 = vadd.s32 %v11739_v13, %v11745_v54  ;;  %v4099_v46 = vadd.s32 1, %v11805_v34 }
 0x417   :  { %v4149_v9 = vshrl.u32 %v4148_v6, 23  ;;  %v3930_v42 = vxor.u32 2147483648, %v8363_v56  ;;  %v4026_v48 = vsel %vm11795_vm0, 0, %v4024_v29  ;;  %v4096_v43 = vmul.u32 %v11780_v51, %v4080_v59 }
 0x418   :  { %vm7840_vm3 = vcmp.lt.s32.totalorder %v7839_v60, 0  ;;  %v3934_v0 = vsel %vm3932_vm5, %v3933_v49, %v8363_v56  ;;  %vm4098_vm9 = vc.u32 %v11813_v39, %v11804_v31  ;;  %v4152_v15 = vand.u32 8388607, %v4145_v4 }
 0x419   :  { %v4008_v53 = vsel %vm7840_vm3, 0, %v7839_v60  ;;  %v3931_v5 = vsel %vm3929_vm8, %v8361_v30, %v3930_v42  ;;  %v821_v35 = vadd.f32 %v757_v22, %v11679_v10  ;;  %v4100_v32 = vsel %vm4098_vm9, %v4099_v46, %v11805_v34 }
 0x41a   :  { %v4009_v13 = vsub.s32 32, %v4008_v53  ;;  %v4013_v54 = vsub.s32 4294967266, %v4008_v53  ;;  %v3935_v3 = vsel %vm3928_vm4, %v3931_v5, %v3934_v0  ;;  %v4010_v19 = vshll.u32 %v11785_v8, %v4008_v53 }
 0x41b   :  { %v7845_v51 = vadd.s32 4294967169, %v4149_v9  ;;  %v3936_v28 = vsel %vm3925_vm1, nan, %v3935_v3  ;;  %v4101_v47 = vadd.s32 %v4100_v32, %v4096_v43  ;;  %v4030_v10 = vadd.s32 3, %v4026_v48 }
 0x41c   :  { %v4011_v36 = vshrl.u32 %v3993_v61, %v4009_v13  ;;  %v4014_v63 = vadd.s32 127, %v4013_v54  ;;  %v7605_v25 = vmul.f32 1000.0, %v3936_v28  ;;  %v4153_v23 = vor.u32 8388608, %v4152_v15 }
 0x41d   :  { %v4155_v24 = vadd.s32 1, %v7845_v51  ;;  %v4102_v41 = vadd.s32 536870912, %v4101_v47  ;;  %v758_v8 = vmul.f32 %v9135_v55, %v599_v1  ;;  %v11837_v7 = vadd.f32 %v9137_v52, %v821_v35 }
 0x41e   :  { %v4012_v21 = vor.u32 %v4011_v36, %v4010_v19  ;;  %v4015_v16 = vshll.u32 %v4014_v63, 23  ;;  %7669 = vst [vmem:[#allocation2 + $0xe0] sm:$0xff] %v7605_v25  ;;  %v434_v18 = vmul.f32 %v9131_v50, %v14844_v26  ;;  %v11842_v22 = vand.u32 3, %v4030_v10 }
 0x41f   :  { %vm4156_vm6 = vcmp.gt.s32.totalorder %v4155_v24, 0  ;;  %v11834_v12 = vshrl.u32 %v4102_v41, 30  ;;  %v4097_v2 = vadd.s32 %v11804_v31, %v11813_v39  ;;  %v11849_v49 = vshll.u32 %v4153_v23, 8 }
 0x420   :  { %v4016_v38 = vor.u32 4788187, %v4015_v16  ;;  %v4157_v20 = vsel %vm4156_vm6, %v4155_v24, 0  ;;  %v4019_v29 = vcvt.s32.f32 %v4012_v21  ;;  %v11845_v30 = vadd.f32 %v758_v8, %v434_v18 }
 0x421   :  { %v4159_v34 = vand.u32 31, %v4157_v20  ;;  %v4104_v59 = vshll.u32 %v11834_v12, 30  ;;  %v4252_v61 = vand.u32 2139095040, %v11837_v7  ;;  %v4158_v46 = vshrl.u32 %v4157_v20, 5 }
 0x422   :  { %v4017_v17 = vand.u32 2147483647, %v4016_v38  ;;  %vm4043_vm7 = vcmp.lt.s32.totalorder %v11664_v40, 0  ;;  %v4127_v25 = vsub.s32 4, %v11834_v12  ;;  %vm11875_vm14 = vcmp.le.f32.partialorder %v4041_v33, 0.7853982 }
 0x423   :  { %v4160_v6 = vsub.s32 32, %v4159_v34  ;;  %v11847_v56 = vsub.s32 %v4101_v47, %v4104_v59  ;;  %v4162_v9 = vshll.u32 %v14756_v44, %v4159_v34  ;;  %v4165_v39 = vshll.u32 %v14757_v62, %v4159_v34 }
 0x424   :  { %v4020_v60 = vmul.f32 %v4019_v29, %v4017_v17  ;;  %v4168_v15 = vshll.u32 %v14758_v27, %v4159_v34  ;;  %v4171_v5 = vshll.u32 %v14759_v37, %v4159_v34  ;;  %v4174_v19 = vshll.u32 %v14760_v45, %v4159_v34 }
 0x425   :  { %v4163_v42 = vshrl.u32 %v14757_v62, %v4160_v6  ;;  %v4166_v48 = vshrl.u32 %v14758_v27, %v4160_v6  ;;  %v4107_v31 = vsub.s32 0, %v11847_v56  ;;  %v4169_v0 = vshrl.u32 %v14759_v37, %v4160_v6 }
 0x426   :  { %v4021_v43 = vxor.u32 2147483648, %v4020_v60  ;;  %v4172_v13 = vshrl.u32 %v14760_v45, %v4160_v6  ;;  %v4175_v36 = vshrl.u32 %v14761_v57, %v4160_v6  ;;  %v4249_v47 = vand.u32 2147483647, %v11837_v7 }
 0x427   :  { %v4164_v53 = vor.u32 %v4163_v42, %v4162_v9  ;;  %v7842_v35 = vmin.u32 %v4107_v31, %v11847_v56  ;;  %v4167_v3 = vor.u32 %v4166_v48, %v4165_v39  ;;  %v4170_v51 = vor.u32 %v4169_v0, %v4168_v15 }
 0x428   :  { %v4022_v54 = vsel %vm3939_vm2, %v4021_v43, %v4020_v60  ;;  %v4173_v28 = vor.u32 %v4172_v13, %v4171_v5  ;;  %v4253_v1 = vshrl.u32 %v4252_v61, 23  ;;  %v4161_v24 = vshrl.u32 %v14756_v44, %v4160_v6 }
 0x429   :  { %v4025_v32 = vsel %vm11795_vm0, %v11599_v14, %v4022_v54  ;;  %v4109_v63 = vclz %v7842_v35  ;;  %v4176_v21 = vor.u32 %v4175_v36, %v4174_v19  ;;  %vm4177_vm12 = vcmp.lt.s32.totalorder %v4158_v46, 1 }
 0x42a   :  { %8364 = vcosq.f32 %v4025_v32  ;;  %vm4179_vm10 = vcmp.lt.s32.totalorder %v4158_v46, 3  ;;  %vm4180_vm11 = vcmp.lt.s32.totalorder %v4158_v46, 4  ;;  %v4185_v41 = vsel %vm4177_vm12, %v4164_v53, %v4167_v3 }
 0x42b   :  { %8366 = vsinq.f32 %v4025_v32  ;;  %v7843_v16 = vadd.s32 4294967294, %v4109_v63  ;;  %v4182_v11 = vsel %vm4180_vm11, %v4170_v51, 2102212464  ;;  %v4186_v10 = vsel %vm4180_vm11, %v4173_v28, 920167782 }
 0x42c   :  { %v4189_v23 = vsel %vm4177_vm12, %v4167_v3, %v4170_v51  ;;  %vm4178_vm15 = vcmp.lt.s32.totalorder %v4158_v46, 2  ;;  %v4187_v38 = vsel %vm4179_vm10, %v4170_v51, %v4186_v10  ;;  %v4190_v20 = vsel %vm4180_vm11, %v4176_v21, 1326507024 }
 0x42d   :  { %vm7844_vm13 = vcmp.lt.s32.totalorder %v7843_v16, 0  ;;  %v4181_v18 = vsel %vm4177_vm12, %v4161_v24, %v4164_v53  ;;  %v4188_v34 = vsel %vm4178_vm15, %v4185_v41, %v4187_v38  ;;  %v4191_v17 = vsel %vm4179_vm10, %v4173_v28, %v4190_v20 }
 0x42e   :  { %v4112_v26 = vsel %vm7844_vm13, 0, %v7843_v16  ;;  %vm4032_vm0 = vcmp.lt.s32.totalorder %v11842_v22, 2  ;;  %v4183_v33 = vsel %vm4179_vm10, %v4167_v3, %v4182_v11  ;;  %v4192_v6 = vsel %vm4178_vm15, %v4189_v23, %v4191_v17 }
 0x42f   :  { %v4113_v29 = vsub.s32 32, %v4112_v26  ;;  %v4117_v59 = vsub.s32 4294967266, %v4112_v26  ;;  %v11886_v60 = vmul.u32.u64.low %v11849_v49, %v4192_v6  ;;  %v11887_v61 = vmul.u32.u64.high %v11849_v49, %v4192_v6, %v11886_v60 }
 0x430   :  { %v11890_v9 = vmul.u32.u64.low %v11849_v49, %v4188_v34  ;;  %v11891_v42 = vmul.u32.u64.high %v11849_v49, %v4188_v34, %v11890_v9  ;;  %v4114_v48 = vshll.u32 %v11847_v56, %v4112_v26  ;;  %v7849_v39 = vadd.s32 4294967169, %v4253_v1 }
 0x431   :  { %v4115_v43 = vshrl.u32 %v4097_v2, %v4113_v29  ;;  %v4118_v31 = vadd.s32 127, %v4117_v59  ;;  %vm4033_vm1 = vcmp.eq.s32.totalorder %v11842_v22, 0  ;;  %vm4036_vm2 = vcmp.eq.s32.totalorder %v11842_v22, 2 }
 0x432   :  { %v4184_v0 = vsel %vm4178_vm15, %v4181_v18, %v4183_v33  ;;  %v4256_v53 = vand.u32 8388607, %v4249_v47  ;;  %v4128_v54 = vsel %vm4043_vm7, %v4127_v25, %v11834_v12  ;;  %v4259_v56 = vadd.s32 1, %v7849_v39 }
 0x433   :  { %v4116_v5 = vor.u32 %v4115_v43, %v4114_v48  ;;  %v4119_v13 = vshll.u32 %v4118_v31, 23  ;;  %vm4202_vm4 = vc.u32 %v11887_v61, %v11890_v9  ;;  %v4203_v3 = vadd.s32 1, %v11891_v42 }
 0x434   :  { %v8365_v15 = vpop.eup %8364  ;;  %v11908_v46 = vadd.f32 %v9137_v52, %v11845_v30  ;;  %v4200_v51 = vmul.u32 %v11849_v49, %v4184_v0  ;;  %vm4260_vm8 = vcmp.gt.s32.totalorder %v4259_v56, 0  ;;  %v4130_v28 = vsel %vm11875_vm14, 0, %v4128_v54 }
 0x435   :  { %v8367_v2 = vpop.eup %8366  ;;  %v4037_v35 = vxor.u32 2147483648, %v8365_v15  ;;  %v4120_v32 = vor.u32 4788187, %v4119_v13  ;;  %v4204_v36 = vsel %vm4202_vm4, %v4203_v3, %v11891_v42  ;;  %v4261_v63 = vsel %vm4260_vm8, %v4259_v56, 0 }
 0x436   :  { %v4034_v19 = vxor.u32 2147483648, %v8367_v2  ;;  %v4123_v30 = vcvt.s32.f32 %v4116_v5  ;;  %v4205_v24 = vadd.s32 %v4204_v36, %v4200_v51  ;;  %vm4029_vm5 = vweird.f32 %v11599_v14 }
 0x437   :  { %v4038_v12 = vsel %vm4036_vm2, %v4037_v35, %v8367_v2  ;;  %v4121_v25 = vand.u32 2147483647, %v4120_v32  ;;  %v4257_v21 = vor.u32 8388608, %v4256_v53  ;;  %v4263_v16 = vand.u32 31, %v4261_v63 }
 0x438   :  { %v4035_v1 = vsel %vm4033_vm1, %v8365_v15, %v4034_v19  ;;  %v4134_v10 = vadd.s32 3, %v4130_v28  ;;  %v4206_v23 = vadd.s32 536870912, %v4205_v24  ;;  %v4262_v20 = vshrl.u32 %v4261_v63, 5 }
 0x439   :  { %v4039_v49 = vsel %vm4032_vm0, %v4035_v1, %v4038_v12  ;;  %v4124_v41 = vmul.f32 %v4123_v30, %v4121_v25  ;;  %v4264_v26 = vsub.s32 32, %v4263_v16  ;;  %v4356_v18 = vand.u32 2139095040, %v11908_v46 }
 0x43a   :  { %v4040_v11 = vsel %vm4029_vm5, nan, %v4039_v49  ;;  %v4207_v17 = vshrl.u32 %v4206_v23, 30  ;;  %v4266_v29 = vshll.u32 %v14756_v44, %v4263_v16  ;;  %v4269_v14 = vshll.u32 %v14757_v62, %v4263_v16 }
 0x43b   :  { %v7606_v38 = vmul.f32 1000.0, %v4040_v11  ;;  %v4125_v34 = vxor.u32 2147483648, %v4124_v41  ;;  %v4267_v22 = vshrl.u32 %v14757_v62, %v4264_v26  ;;  %v4270_v59 = vshrl.u32 %v14758_v27, %v4264_v26 }
 0x43c   :  { %v4272_v33 = vshll.u32 %v14758_v27, %v4263_v16  ;;  %v4273_v6 = vshrl.u32 %v14759_v37, %v4264_v26  ;;  %vm4147_vm3 = vcmp.lt.s32.totalorder %v11783_v58, 0  ;;  %v4208_v42 = vshll.u32 %v4207_v17, 30 }
 0x43d   :  { %7670 = vst [vmem:[#allocation2 + $0xe8] sm:$0xff] %v7606_v38  ;;  %v4126_v60 = vsel %vm4043_vm7, %v4125_v34, %v4124_v41  ;;  %v4275_v48 = vshll.u32 %v14759_v37, %v4263_v16  ;;  %v4276_v43 = vshrl.u32 %v14760_v45, %v4264_v26  ;;  %v11936_v39 = vand.u32 3, %v4134_v10 }
 0x43e   :  { %v4129_v31 = vsel %vm11875_vm14, %v11664_v40, %v4126_v60  ;;  %v4268_v0 = vor.u32 %v4267_v22, %v4266_v29  ;;  %v4271_v53 = vor.u32 %v4270_v59, %v4269_v14  ;;  %v11938_v15 = vsub.s32 %v4205_v24, %v4208_v42 }
 0x43f   :  { %8368 = vcosq.f32 %v4129_v31  ;;  %v4274_v5 = vor.u32 %v4273_v6, %v4272_v33  ;;  %v4277_v13 = vor.u32 %v4276_v43, %v4275_v48  ;;  %v4278_v54 = vshll.u32 %v14760_v45, %v4263_v16 }
 0x440   :  { %8370 = vsinq.f32 %v4129_v31  ;;  %v4279_v56 = vshrl.u32 %v14761_v57, %v4264_v26  ;;  %v11942_v2 = vshll.u32 %v4257_v21, 8  ;;  %vm11946_vm9 = vcmp.le.f32.partialorder %v4145_v4, 0.7853982 }
 0x441   :  { %v4211_v35 = vsub.s32 0, %v11938_v15  ;;  %v4265_v3 = vshrl.u32 %v14756_v44, %v4264_v26  ;;  %vm4281_vm6 = vcmp.lt.s32.totalorder %v4262_v20, 1  ;;  %v4357_v19 = vshrl.u32 %v4356_v18, 23 }
 0x442   :  { %v4231_v32 = vsub.s32 4, %v4207_v17  ;;  %v4280_v51 = vor.u32 %v4279_v56, %v4278_v54  ;;  %vm4283_vm7 = vcmp.lt.s32.totalorder %v4262_v20, 3  ;;  %vm4284_vm12 = vcmp.lt.s32.totalorder %v4262_v20, 4 }
 0x443   :  { %v7846_v12 = vmin.u32 %v4211_v35, %v11938_v15  ;;  %v4286_v28 = vsel %vm4284_vm12, %v4274_v5, 2102212464  ;;  %v4289_v36 = vsel %vm4281_vm6, %v4268_v0, %v4271_v53  ;;  %v4290_v63 = vsel %vm4284_vm12, %v4277_v13, 920167782 }
 0x444   :  { %v4291_v4 = vsel %vm4283_vm7, %v4274_v5, %v4290_v63  ;;  %v4293_v1 = vsel %vm4281_vm6, %v4271_v53, %v4274_v5  ;;  %v4294_v25 = vsel %vm4284_vm12, %v4280_v51, 1326507024  ;;  %v4353_v30 = vand.u32 2147483647, %v11908_v46  ;;  %v14849_v63 = vld [vmem:[#allocation30_spill] sm:$0xff] }
 0x445   :  { %vm4136_vm10 = vcmp.lt.s32.totalorder %v11936_v39, 2  ;;  %v4213_v24 = vclz %v7846_v12  ;;  %vm4282_vm11 = vcmp.lt.s32.totalorder %v4262_v20, 2  ;;  %v4285_v49 = vsel %vm4281_vm6, %v4265_v3, %v4268_v0 }
 0x446   :  { %v4287_v21 = vsel %vm4283_vm7, %v4271_v53, %v4286_v28  ;;  %vm4133_vm14 = vweird.f32 %v11664_v40  ;;  %v4232_v16 = vsel %vm4147_vm3, %v4231_v32, %v4207_v17  ;;  %v4292_v11 = vsel %vm4282_vm11, %v4289_v36, %v4291_v4  ;;  %v603_v53 = vpop.permute.xlu1 %602 }
 0x447   :  { %v4295_v41 = vsel %vm4283_vm7, %v4277_v13, %v4294_v25  ;;  %v7853_v10 = vadd.s32 4294967169, %v4357_v19  ;;  %v7847_v23 = vadd.s32 4294967294, %v4213_v24  ;;  %vm4137_vm13 = vcmp.eq.s32.totalorder %v11936_v39, 0 }
 0x448   :  { %v4296_v38 = vsel %vm4282_vm11, %v4293_v1, %v4295_v41  ;;  %v11965_v26 = vmul.u32.u64.low %v11942_v2, %v4292_v11  ;;  %v11966_v18 = vmul.u32.u64.high %v11942_v2, %v4292_v11, %v11965_v26  ;;  %v4288_v34 = vsel %vm4282_vm11, %v4285_v49, %v4287_v21 }
 0x449   :  { %v11971_v29 = vmul.u32.u64.low %v11942_v2, %v4296_v38  ;;  %v11972_v14 = vmul.u32.u64.high %v11942_v2, %v4296_v38, %v11971_v29  ;;  %v8369_v22 = vpop.eup %8368  ;;  %vm4140_vm15 = vcmp.eq.s32.totalorder %v11936_v39, 2  ;;  %v4201_v20 = vadd.s32 %v11890_v9, %v11887_v61  ;;  %v14850_v39 = vld [vmem:[#allocation29_spill] sm:$0xff] }
 0x44a   :  { %vm7848_vm0 = vcmp.lt.s32.totalorder %v7847_v23, 0  ;;  %v4363_v17 = vadd.s32 1, %v7853_v10  ;;  %v8371_v59 = vpop.eup %8370  ;;  %v4141_v33 = vxor.u32 2147483648, %v8369_v22  ;;  %v4234_v60 = vsel %vm11946_vm9, 0, %v4232_v16 }
 0x44b   :  { %v4216_v6 = vsel %vm7848_vm0, 0, %v7847_v23  ;;  %v4360_v42 = vand.u32 8388607, %v4353_v30  ;;  %v4138_v48 = vxor.u32 2147483648, %v8371_v59  ;;  %v4304_v0 = vmul.u32 %v11942_v2, %v4288_v34 }
 0x44c   :  { %v4217_v43 = vsub.s32 32, %v4216_v6  ;;  %v4221_v31 = vsub.s32 4294967266, %v4216_v6  ;;  %v4142_v61 = vsel %vm4140_vm15, %v4141_v33, %v8371_v59  ;;  %v4218_v9 = vshll.u32 %v11938_v15, %v4216_v6 }
 0x44d   :  { %vm4306_vm1 = vc.u32 %v11972_v14, %v11965_v26  ;;  %v4307_v5 = vadd.s32 1, %v11966_v18  ;;  %v4139_v13 = vsel %vm4137_vm13, %v8369_v22, %v4138_v48  ;;  %vm4364_vm2 = vcmp.gt.s32.totalorder %v4363_v17, 0 }
 0x44e   :  { %v4219_v54 = vshrl.u32 %v4201_v20, %v4217_v43  ;;  %v4222_v56 = vadd.s32 127, %v4221_v31  ;;  %v4143_v2 = vsel %vm4136_vm10, %v4139_v13, %v4142_v61  ;;  %v4365_v3 = vsel %vm4364_vm2, %v4363_v17, 0 }
 0x44f   :  { %v4308_v35 = vsel %vm4306_vm1, %v4307_v5, %v11966_v18  ;;  %v759_v19 = vmul.f32 %v9135_v55, %v603_v53  ;;  %v4144_v15 = vsel %vm4133_vm14, nan, %v4143_v2  ;;  %v4367_v36 = vand.u32 31, %v4365_v3 }
 0x450   :  { %v4220_v32 = vor.u32 %v4219_v54, %v4218_v9  ;;  %v4223_v51 = vshll.u32 %v4222_v56, 23  ;;  %v4309_v12 = vadd.s32 %v4308_v35, %v4304_v0  ;;  %v7607_v28 = vmul.f32 1000.0, %v4144_v15 }
 0x451   :  { %v435_v4 = vmul.f32 %v9131_v50, %v14849_v63  ;;  %v12000_v24 = vmul.f32 %v9131_v50, %v14850_v39  ;;  %v4238_v49 = vadd.s32 3, %v4234_v60  ;;  %v4361_v21 = vor.u32 8388608, %v4360_v42 }
 0x452   :  { %v4224_v1 = vor.u32 4788187, %v4223_v51  ;;  %v4310_v25 = vadd.s32 536870912, %v4309_v12  ;;  %7671 = vst [vmem:[#allocation2 + $0xf0] sm:$0xff] %v7607_v28  ;;  %v4368_v16 = vsub.s32 32, %v4367_v36  ;;  %v4227_v11 = vcvt.s32.f32 %v4220_v32 }
 0x453   :  { %v823_v10 = vadd.f32 %v759_v19, %v435_v4  ;;  %v4366_v23 = vshrl.u32 %v4365_v3, 5  ;;  %v4376_v20 = vshll.u32 %v14758_v27, %v4367_v36  ;;  %v4370_v59 = vshll.u32 %v14756_v44, %v4367_v36 }
 0x454   :  { %v4225_v40 = vand.u32 2147483647, %v4224_v1  ;;  %v4311_v41 = vshrl.u32 %v4310_v25, 30  ;;  %v4371_v38 = vshrl.u32 %v14757_v62, %v4368_v16  ;;  %v4374_v18 = vshrl.u32 %v14758_v27, %v4368_v16 }
 0x455   :  { %v4377_v34 = vshrl.u32 %v14759_v37, %v4368_v16  ;;  %v4380_v17 = vshrl.u32 %v14760_v45, %v4368_v16  ;;  %v4373_v33 = vshll.u32 %v14757_v62, %v4367_v36  ;;  %v4379_v6 = vshll.u32 %v14759_v37, %v4367_v36 }
 0x456   :  { %v4228_v29 = vmul.f32 %v4227_v11, %v4225_v40  ;;  %v4312_v22 = vshll.u32 %v4311_v41, 30  ;;  %v4383_v60 = vshrl.u32 %v14761_v57, %v4368_v16  ;;  %v12011_v48 = vand.u32 3, %v4238_v49 }
 0x457   :  { %vm4251_vm4 = vcmp.lt.s32.totalorder %v11837_v7, 0  ;;  %v4378_v31 = vor.u32 %v4377_v34, %v4376_v20  ;;  %v4372_v0 = vor.u32 %v4371_v38, %v4370_v59  ;;  %v4375_v53 = vor.u32 %v4374_v18, %v4373_v33 }
 0x458   :  { %v4229_v42 = vxor.u32 2147483648, %v4228_v29  ;;  %v12014_v43 = vsub.s32 %v4309_v12, %v4312_v22  ;;  %v4381_v61 = vor.u32 %v4380_v17, %v4379_v6  ;;  %v4382_v9 = vshll.u32 %v14760_v45, %v4367_v36 }
 0x459   :  { %v12020_v54 = vshll.u32 %v4361_v21, 8  ;;  %v12023_v56 = vadd.f32 %v9137_v52, %v823_v10  ;;  %v4369_v35 = vshrl.u32 %v14756_v44, %v4368_v16  ;;  %vm4388_vm8 = vcmp.lt.s32.totalorder %v4366_v23, 4  ;;  %v607_v16 = vpop.permute.xlu0 %606 }
 0x45a   :  { %v4230_v5 = vsel %vm4147_vm3, %v4229_v42, %v4228_v29  ;;  %v4315_v13 = vsub.s32 0, %v12014_v43  ;;  %v4384_v3 = vor.u32 %v4383_v60, %v4382_v9  ;;  %vm4385_vm5 = vcmp.lt.s32.totalorder %v4366_v23, 1 }
 0x45b   :  { %v4233_v2 = vsel %vm11946_vm9, %v11783_v58, %v4230_v5  ;;  %v4390_v15 = vsel %vm4388_vm8, %v4378_v31, 2102212464  ;;  %v4335_v32 = vsub.s32 4, %v4311_v41  ;;  %v4393_v51 = vsel %vm4385_vm5, %v4372_v0, %v4375_v53 }
 0x45c   :  { %8372 = vcosq.f32 %v4233_v2  ;;  %v7850_v19 = vmin.u32 %v4315_v13, %v12014_v43  ;;  %v4394_v12 = vsel %vm4388_vm8, %v4381_v61, 920167782  ;;  %vm4386_vm3 = vcmp.lt.s32.totalorder %v4366_v23, 2 }
 0x45d   :  { %8374 = vsinq.f32 %v4233_v2  ;;  %vm4387_vm6 = vcmp.lt.s32.totalorder %v4366_v23, 3  ;;  %v4397_v8 = vsel %vm4385_vm5, %v4375_v53, %v4378_v31  ;;  %v4389_v36 = vsel %vm4385_vm5, %v4369_v35, %v4372_v0 }
 0x45e   :  { %v4317_v28 = vclz %v7850_v19  ;;  %v4391_v63 = vsel %vm4387_vm6, %v4375_v53, %v4390_v15  ;;  %v4395_v4 = vsel %vm4387_vm6, %v4378_v31, %v4394_v12  ;;  %v4398_v1 = vsel %vm4388_vm8, %v4384_v3, 1326507024 }
 0x45f   :  { %vm12035_vm9 = vcmp.le.f32.partialorder %v4249_v47, 0.7853982  ;;  %v4396_v49 = vsel %vm4386_vm3, %v4393_v51, %v4395_v4  ;;  %v4399_v21 = vsel %vm4387_vm6, %v4381_v61, %v4398_v1  ;;  %v4336_v40 = vsel %vm4251_vm4, %v4335_v32, %v4311_v41 }
 0x460   :  { %v7851_v39 = vadd.s32 4294967294, %v4317_v28  ;;  %v4400_v11 = vsel %vm4386_vm3, %v4397_v8, %v4399_v21  ;;  %v12044_v10 = vmul.u32.u64.low %v12020_v54, %v4396_v49  ;;  %v12045_v38 = vmul.u32.u64.high %v12020_v54, %v4396_v49, %v12044_v10  ;;  %v611_v49 = vpop.permute.xlu1 %610 }
 0x461   :  { %vm4240_vm7 = vcmp.lt.s32.totalorder %v12011_v48, 2  ;;  %v4392_v47 = vsel %vm4386_vm3, %v4389_v36, %v4391_v63  ;;  %v12051_v18 = vmul.u32.u64.low %v12020_v54, %v4400_v11  ;;  %v12052_v34 = vmul.u32.u64.high %v12020_v54, %v4400_v11, %v12051_v18 }
 0x462   :  { %vm7852_vm12 = vcmp.lt.s32.totalorder %v7851_v39, 0  ;;  %vm4237_vm10 = vweird.f32 %v11783_v58  ;;  %vm4244_vm11 = vcmp.eq.s32.totalorder %v12011_v48, 2  ;;  %v4460_v29 = vand.u32 2139095040, %v12023_v56 }
 0x463   :  { %v4320_v41 = vsel %vm7852_vm12, 0, %v7851_v39  ;;  %v760_v22 = vmul.f32 %v9135_v55, %v607_v16  ;;  %v4305_v20 = vadd.s32 %v11965_v26, %v11972_v14  ;;  %v4338_v23 = vsel %vm12035_vm9, 0, %v4336_v40  ;;  %v14853_v40 = vld [vmem:[#allocation32_spill] sm:$0xff] }
 0x464   :  { %v4321_v17 = vsub.s32 32, %v4320_v41  ;;  %v4325_v59 = vsub.s32 4294967266, %v4320_v41  ;;  %v4408_v33 = vmul.u32 %v12020_v54, %v4392_v47  ;;  %v4411_v6 = vadd.s32 1, %v12045_v38 }
 0x465   :  { %v4457_v60 = vand.u32 2147483647, %v12023_v56  ;;  %v4461_v42 = vshrl.u32 %v4460_v29, 23  ;;  %v4322_v0 = vshll.u32 %v12014_v43, %v4320_v41  ;;  %vm4410_vm14 = vc.u32 %v12052_v34, %v12044_v10 }
 0x466   :  { %v8373_v31 = vpop.eup %8372  ;;  %v4323_v53 = vshrl.u32 %v4305_v20, %v4321_v17  ;;  %v4326_v61 = vadd.s32 127, %v4325_v59  ;;  %v4412_v9 = vsel %vm4410_vm14, %v4411_v6, %v12045_v38  ;;  %v824_v13 = vadd.f32 %v760_v22, %v12000_v24 }
 0x467   :  { %v8375_v26 = vpop.eup %8374  ;;  %v4245_v14 = vxor.u32 2147483648, %v8373_v31  ;;  %v7857_v5 = vadd.s32 4294967169, %v4461_v42  ;;  %v4413_v3 = vadd.s32 %v4412_v9, %v4408_v33  ;;  %vm4241_vm13 = vcmp.eq.s32.totalorder %v12011_v48, 0 }
 0x468   :  { %v4242_v54 = vxor.u32 2147483648, %v8375_v26  ;;  %v4324_v2 = vor.u32 %v4323_v53, %v4322_v0  ;;  %v4327_v35 = vshll.u32 %v4326_v61, 23  ;;  %v4342_v19 = vadd.s32 3, %v4338_v23 }
 0x469   :  { %v4246_v43 = vsel %vm4244_vm11, %v4245_v14, %v8375_v26  ;;  %v4467_v15 = vadd.s32 1, %v7857_v5  ;;  %v4414_v12 = vadd.s32 536870912, %v4413_v3  ;;  %v4464_v28 = vand.u32 8388607, %v4457_v60 }
 0x46a   :  { %v4243_v32 = vsel %vm4241_vm13, %v8373_v31, %v4242_v54  ;;  %v4328_v51 = vor.u32 4788187, %v4327_v35  ;;  %v4331_v8 = vcvt.s32.f32 %v4324_v2  ;;  %v12078_v36 = vadd.f32 %v9137_v52, %v824_v13 }
 0x46b   :  { %v4247_v24 = vsel %vm4240_vm7, %v4243_v32, %v4246_v43  ;;  %vm4468_vm15 = vcmp.gt.s32.totalorder %v4467_v15, 0  ;;  %v12082_v1 = vshrl.u32 %v4414_v12, 30  ;;  %v12086_v11 = vmul.f32 %v9131_v50, %v14853_v40 }
 0x46c   :  { %v4248_v63 = vsel %vm4237_vm10, nan, %v4247_v24  ;;  %v4329_v4 = vand.u32 2147483647, %v4328_v51  ;;  %v4469_v39 = vsel %vm4468_vm15, %v4467_v15, 0  ;;  %v12089_v47 = vand.u32 3, %v4342_v19 }
 0x46d   :  { %v7608_v21 = vmul.f32 1000.0, %v4248_v63  ;;  %v4471_v16 = vand.u32 31, %v4469_v39  ;;  %v4416_v38 = vshll.u32 %v12082_v1, 30  ;;  %v4465_v18 = vor.u32 8388608, %v4464_v28 }
 0x46e   :  { %v4332_v48 = vmul.f32 %v4331_v8, %v4329_v4  ;;  %v12092_v41 = vmul.f32 %v9135_v55, %v611_v49  ;;  %v12096_v20 = vshrl.u32 %v4469_v39, 5  ;;  %v4564_v17 = vand.u32 2139095040, %v12078_v36 }
 0x46f   :  { %7672 = vst [vmem:[#allocation2 + $0xf8] sm:$0xff] %v7608_v21  ;;  %v4472_v58 = vsub.s32 32, %v4471_v16  ;;  %v12094_v22 = vsub.s32 %v4413_v3, %v4416_v38  ;;  %v4474_v59 = vshll.u32 %v14756_v44, %v4471_v16  ;;  %v4477_v33 = vshll.u32 %v14757_v62, %v4471_v16 }
 0x470   :  { %v4333_v29 = vxor.u32 2147483648, %v4332_v48  ;;  %vm4355_vm0 = vcmp.lt.s32.totalorder %v11908_v46, 0  ;;  %v4480_v0 = vshll.u32 %v14758_v27, %v4471_v16  ;;  %v4483_v14 = vshll.u32 %v14759_v37, %v4471_v16 }
 0x471   :  { %v4475_v23 = vshrl.u32 %v14757_v62, %v4472_v58  ;;  %v4478_v6 = vshrl.u32 %v14758_v27, %v4472_v58  ;;  %v4419_v31 = vsub.s32 0, %v12094_v22  ;;  %v4481_v53 = vshrl.u32 %v14759_v37, %v4472_v58 }
 0x472   :  { %v4334_v42 = vsel %vm4251_vm4, %v4333_v29, %v4332_v48  ;;  %v4484_v9 = vshrl.u32 %v14760_v45, %v4472_v58  ;;  %v4486_v35 = vshll.u32 %v14760_v45, %v4471_v16  ;;  %v4487_v3 = vshrl.u32 %v14761_v57, %v4472_v58 }
 0x473   :  { %v4337_v61 = vsel %vm12035_vm9, %v11837_v7, %v4334_v42  ;;  %v4476_v26 = vor.u32 %v4475_v23, %v4474_v59  ;;  %v7854_v5 = vmin.u32 %v4419_v31, %v12094_v22  ;;  %v4479_v13 = vor.u32 %v4478_v6, %v4477_v33 }
 0x474   :  { %8376 = vcosq.f32 %v4337_v61  ;;  %v4482_v54 = vor.u32 %v4481_v53, %v4480_v0  ;;  %v4485_v2 = vor.u32 %v4484_v9, %v4483_v14  ;;  %vm12119_vm1 = vcmp.le.f32.partialorder %v4353_v30, 0.7853982 }
 0x475   :  { %8378 = vsinq.f32 %v4337_v61  ;;  %v4409_v43 = vadd.s32 %v12044_v10, %v12052_v34  ;;  %v4421_v19 = vclz %v7854_v5  ;;  %v12125_v15 = vshll.u32 %v4465_v18, 8 }
 0x476   :  { %v4565_v32 = vshrl.u32 %v4564_v17, 23  ;;  %v4439_v51 = vsub.s32 4, %v12082_v1  ;;  %v4473_v12 = vshrl.u32 %v14756_v44, %v4472_v58  ;;  %v4488_v28 = vor.u32 %v4487_v3, %v4486_v35 }
 0x477   :  { %vm4489_vm2 = vcmp.lt.s32.totalorder %v12096_v20, 1  ;;  %v7855_v24 = vadd.s32 4294967294, %v4421_v19  ;;  %vm4491_vm4 = vcmp.lt.s32.totalorder %v12096_v20, 3  ;;  %vm4492_vm8 = vcmp.lt.s32.totalorder %v12096_v20, 4 }
 0x478   :  { %v4497_v30 = vsel %vm4489_vm2, %v4476_v26, %v4479_v13  ;;  %vm4345_vm5 = vcmp.eq.s32.totalorder %v12089_v47, 0  ;;  %v4494_v10 = vsel %vm4492_vm8, %v4482_v54, 2102212464  ;;  %v4498_v34 = vsel %vm4492_vm8, %v4485_v2, 920167782 }
 0x479   :  { %v4501_v8 = vsel %vm4489_vm2, %v4479_v13, %v4482_v54  ;;  %v4502_v63 = vsel %vm4492_vm8, %v4488_v28, 1326507024  ;;  %vm4344_vm3 = vcmp.lt.s32.totalorder %v12089_v47, 2  ;;  %vm7856_vm6 = vcmp.lt.s32.totalorder %v7855_v24, 0 }
 0x47a   :  { %vm4490_vm9 = vcmp.lt.s32.totalorder %v12096_v20, 2  ;;  %v4499_v4 = vsel %vm4491_vm4, %v4482_v54, %v4498_v34  ;;  %v4503_v39 = vsel %vm4491_vm4, %v4485_v2, %v4502_v63  ;;  %vm4341_vm7 = vweird.f32 %v11837_v7 }
 0x47b   :  { %v4424_v49 = vsel %vm7856_vm6, 0, %v7855_v24  ;;  %v4440_v21 = vsel %vm4355_vm0, %v4439_v51, %v12082_v1  ;;  %v4500_v16 = vsel %vm4490_vm9, %v4497_v30, %v4499_v4  ;;  %v4504_v40 = vsel %vm4490_vm9, %v4501_v8, %v4503_v39 }
 0x47c   :  { %v4425_v48 = vsub.s32 32, %v4424_v49  ;;  %v4429_v38 = vsub.s32 4294967266, %v4424_v49  ;;  %v4493_v18 = vsel %vm4489_vm2, %v4473_v12, %v4476_v26  ;;  %v4495_v58 = vsel %vm4491_vm4, %v4479_v13, %v4494_v10 }
 0x47d   :  { %v12156_v29 = vmul.u32.u64.low %v12125_v15, %v4504_v40  ;;  %v12157_v17 = vmul.u32.u64.high %v12125_v15, %v4504_v40, %v12156_v29  ;;  %v12160_v1 = vmul.u32.u64.low %v12125_v15, %v4500_v16  ;;  %v12161_v59 = vmul.u32.u64.high %v12125_v15, %v4500_v16, %v12160_v1 }
 0x47e   :  { %v8377_v23 = vpop.eup %8376  ;;  %v4426_v33 = vshll.u32 %v12094_v22, %v4424_v49  ;;  %v4427_v6 = vshrl.u32 %v4409_v43, %v4425_v48  ;;  %v4430_v42 = vadd.s32 127, %v4429_v38  ;;  %v7861_v31 = vadd.s32 4294967169, %v4565_v32 }
 0x47f   :  { %v8379_v0 = vpop.eup %8378  ;;  %vm4348_vm12 = vcmp.eq.s32.totalorder %v12089_v47, 2  ;;  %v4349_v53 = vxor.u32 2147483648, %v8377_v23  ;;  %v4442_v61 = vsel %vm12119_vm1, 0, %v4440_v21  ;;  %v4496_v26 = vsel %vm4490_vm9, %v4493_v18, %v4495_v58 }
 0x480   :  { %v4346_v14 = vxor.u32 2147483648, %v8379_v0  ;;  %v4428_v9 = vor.u32 %v4427_v6, %v4426_v33  ;;  %v4431_v5 = vshll.u32 %v4430_v42, 23  ;;  %v4571_v13 = vadd.s32 1, %v7861_v31 }
 0x481   :  { %v4350_v54 = vsel %vm4348_vm12, %v4349_v53, %v8379_v0  ;;  %vm4514_vm10 = vc.u32 %v12157_v17, %v12160_v1  ;;  %v4515_v22 = vadd.s32 1, %v12161_v59  ;;  %v4561_v2 = vand.u32 2147483647, %v12078_v36 }
 0x482   :  { %v4347_v35 = vsel %vm4345_vm5, %v8377_v23, %v4346_v14  ;;  %v4432_v3 = vor.u32 4788187, %v4431_v5  ;;  %v4512_v43 = vmul.u32 %v12125_v15, %v4496_v26  ;;  %vm4572_vm11 = vcmp.gt.s32.totalorder %v4571_v13, 0 }
 0x483   :  { %v4351_v20 = vsel %vm4344_vm3, %v4347_v35, %v4350_v54  ;;  %v4446_v19 = vadd.s32 3, %v4442_v61  ;;  %v4516_v32 = vsel %vm4514_vm10, %v4515_v22, %v12161_v59  ;;  %v4573_v51 = vsel %vm4572_vm11, %v4571_v13, 0 }
 0x484   :  { %v4352_v12 = vsel %vm4341_vm7, nan, %v4351_v20  ;;  %v4433_v28 = vand.u32 2147483647, %v4432_v3  ;;  %v4435_v24 = vcvt.s32.f32 %v4428_v9  ;;  %v4517_v30 = vadd.s32 %v4516_v32, %v4512_v43 }
 0x485   :  { %v7609_v10 = vmul.f32 1000.0, %v4352_v12  ;;  %v4575_v34 = vand.u32 31, %v4573_v51  ;;  %v825_v15 = vadd.f32 %v12092_v41, %v12086_v11  ;;  %v12184_v47 = vand.u32 3, %v4446_v19 }
 0x486   :  { %v4436_v8 = vmul.f32 %v4435_v24, %v4433_v28  ;;  %v4518_v63 = vadd.s32 536870912, %v4517_v30  ;;  %v4568_v4 = vand.u32 8388607, %v4561_v2  ;;  %v4574_v39 = vshrl.u32 %v4573_v51, 5 }
 0x487   :  { %7673 = vst [vmem:[#allocation2 + $0x100] sm:$0xff] %v7609_v10  ;;  %v4576_v49 = vsub.s32 32, %v4575_v34  ;;  %v4578_v16 = vshll.u32 %v14756_v44, %v4575_v34  ;;  %v4581_v40 = vshll.u32 %v14757_v62, %v4575_v34  ;;  %v4584_v11 = vshll.u32 %v14758_v27, %v4575_v34 }
 0x488   :  { %v4437_v7 = vxor.u32 2147483648, %v4436_v8  ;;  %v12188_v21 = vshrl.u32 %v4518_v63, 30  ;;  %v4587_v29 = vshll.u32 %v14759_v37, %v4575_v34  ;;  %v4569_v0 = vor.u32 8388608, %v4568_v4 }
 0x489   :  { %v4579_v48 = vshrl.u32 %v14757_v62, %v4576_v49  ;;  %v4582_v38 = vshrl.u32 %v14758_v27, %v4576_v49  ;;  %v4585_v41 = vshrl.u32 %v14759_v37, %v4576_v49  ;;  %v4588_v59 = vshrl.u32 %v14760_v45, %v4576_v49 }
 0x48a   :  { %v4438_v18 = vsel %vm4355_vm0, %v4437_v7, %v4436_v8  ;;  %v4520_v58 = vshll.u32 %v12188_v21, 30  ;;  %v4590_v61 = vshll.u32 %v14760_v45, %v4575_v34  ;;  %v4591_v26 = vshrl.u32 %v14761_v57, %v4576_v49 }
 0x48b   :  { %v4441_v23 = vsel %vm12119_vm1, %v11908_v46, %v4438_v18  ;;  %v4580_v33 = vor.u32 %v4579_v48, %v4578_v16  ;;  %v4583_v6 = vor.u32 %v4582_v38, %v4581_v40  ;;  %v4586_v42 = vor.u32 %v4585_v41, %v4584_v11 }
 0x48c   :  { %8380 = vcosq.f32 %v4441_v23  ;;  %v12204_v31 = vsub.s32 %v4517_v30, %v4520_v58  ;;  %v4589_v53 = vor.u32 %v4588_v59, %v4587_v29  ;;  %v12209_v14 = vadd.f32 %v9137_v52, %v825_v15  ;;  %v615_v30 = vpop.permute.xlu0 %614 }
 0x48d   :  { %8382 = vsinq.f32 %v4441_v23  ;;  %vm4459_vm14 = vcmp.lt.s32.totalorder %v12023_v56, 0  ;;  %vm4593_vm13 = vcmp.lt.s32.totalorder %v4574_v39, 1  ;;  %vm4595_vm15 = vcmp.lt.s32.totalorder %v4574_v39, 3 }
 0x48e   :  { %v4523_v25 = vsub.s32 0, %v12204_v31  ;;  %vm4596_vm0 = vcmp.lt.s32.totalorder %v4574_v39, 4  ;;  %v4592_v9 = vor.u32 %v4591_v26, %v4590_v61  ;;  %v4601_v13 = vsel %vm4593_vm13, %v4580_v33, %v4583_v6 }
 0x48f   :  { %v4598_v5 = vsel %vm4596_vm0, %v4586_v42, 2102212464  ;;  %v4602_v54 = vsel %vm4596_vm0, %v4589_v53, 920167782  ;;  %v4577_v35 = vshrl.u32 %v14756_v44, %v4576_v49  ;;  %vm4594_vm1 = vcmp.lt.s32.totalorder %v4574_v39, 2 }
 0x490   :  { %v7858_v22 = vmin.u32 %v4523_v25, %v12204_v31  ;;  %v4603_v3 = vsel %vm4595_vm15, %v4586_v42, %v4602_v54  ;;  %v4605_v20 = vsel %vm4593_vm13, %v4583_v6, %v4586_v42  ;;  %v4606_v19 = vsel %vm4596_vm0, %v4592_v9, 1326507024 }
 0x491   :  { %v4604_v43 = vsel %vm4594_vm1, %v4601_v13, %v4603_v3  ;;  %v4609_v32 = vshll.u32 %v4569_v0, 8  ;;  %vm4448_vm2 = vcmp.lt.s32.totalorder %v12184_v47, 2  ;;  %vm4449_vm4 = vcmp.eq.s32.totalorder %v12184_v47, 0 }
 0x492   :  { %vm12223_vm8 = vcmp.le.f32.partialorder %v4457_v60, 0.7853982  ;;  %v4525_v12 = vclz %v7858_v22  ;;  %v4597_v28 = vsel %vm4593_vm13, %v4577_v35, %v4580_v33  ;;  %v4599_v24 = vsel %vm4595_vm15, %v4583_v6, %v4598_v5  ;;  %v14858_v35 = vld [vmem:[#allocation31_spill] sm:$0xff] }
 0x493   :  { %vm4445_vm5 = vweird.f32 %v11908_v46  ;;  %v4543_v10 = vsub.s32 4, %v12188_v21  ;;  %v4607_v34 = vsel %vm4595_vm15, %v4589_v53, %v4606_v19  ;;  %vm4452_vm3 = vcmp.eq.s32.totalorder %v12184_v47, 2 }
 0x494   :  { %v12232_v8 = vmul.u32.u64.low %v4609_v32, %v4604_v43  ;;  %v12233_v63 = vmul.u32.u64.high %v4609_v32, %v4604_v43, %v12232_v8  ;;  %v7859_v60 = vadd.s32 4294967294, %v4525_v12  ;;  %v4608_v15 = vsel %vm4594_vm1, %v4605_v20, %v4607_v34  ;;  %v14859_v34 = vld [vmem:[#allocation34_spill] sm:$0xff] }
 0x495   :  { %v4668_v4 = vand.u32 2139095040, %v12209_v14  ;;  %v4600_v49 = vsel %vm4594_vm1, %v4597_v28, %v4599_v24  ;;  %v12239_v7 = vmul.u32.u64.low %v4609_v32, %v4608_v15  ;;  %v12240_v16 = vmul.u32.u64.high %v4609_v32, %v4608_v15, %v12239_v7 }
 0x496   :  { %v762_v40 = vmul.f32 %v9135_v55, %v615_v30  ;;  %v8381_v48 = vpop.eup %8380  ;;  %v4513_v38 = vadd.s32 %v12160_v1, %v12157_v17  ;;  %vm7860_vm6 = vcmp.lt.s32.totalorder %v7859_v60, 0  ;;  %v4665_v11 = vand.u32 2147483647, %v12209_v14 }
 0x497   :  { %v4669_v41 = vshrl.u32 %v4668_v4, 23  ;;  %v8383_v18 = vpop.eup %8382  ;;  %v4453_v58 = vxor.u32 2147483648, %v8381_v48  ;;  %v4528_v29 = vsel %vm7860_vm6, 0, %v7859_v60  ;;  %v4544_v39 = vsel %vm4459_vm14, %v4543_v10, %v12188_v21 }
 0x498   :  { %v4619_v59 = vadd.s32 1, %v12233_v63  ;;  %v4450_v23 = vxor.u32 2147483648, %v8383_v18  ;;  %v4529_v33 = vsub.s32 32, %v4528_v29  ;;  %v4533_v6 = vsub.s32 4294967266, %v4528_v29 }
 0x499   :  { %v4616_v42 = vmul.u32 %v4609_v32, %v4600_v49  ;;  %v4454_v17 = vsel %vm4452_vm3, %v4453_v58, %v8383_v18  ;;  %v4530_v1 = vshll.u32 %v12204_v31, %v4528_v29  ;;  %vm4618_vm9 = vc.u32 %v12240_v16, %v12232_v8 }
 0x49a   :  { %v7865_v0 = vadd.s32 4294967169, %v4669_v41  ;;  %v4451_v53 = vsel %vm4449_vm4, %v8381_v48, %v4450_v23  ;;  %v4531_v61 = vshrl.u32 %v4513_v38, %v4529_v33  ;;  %v4534_v26 = vadd.s32 127, %v4533_v6 }
 0x49b   :  { %v4620_v21 = vsel %vm4618_vm9, %v4619_v59, %v12233_v63  ;;  %v4455_v25 = vsel %vm4448_vm2, %v4451_v53, %v4454_v17  ;;  %v4546_v9 = vsel %vm12223_vm8, 0, %v4544_v39  ;;  %v438_v3 = vmul.f32 %v9131_v50, %v14858_v35 }
 0x49c   :  { %v4621_v5 = vadd.s32 %v4620_v21, %v4616_v42  ;;  %v4675_v13 = vadd.s32 1, %v7865_v0  ;;  %v4456_v31 = vsel %vm4445_vm5, nan, %v4455_v25  ;;  %v4532_v54 = vor.u32 %v4531_v61, %v4530_v1 }
 0x49d   :  { %v4535_v22 = vshll.u32 %v4534_v26, 23  ;;  %v7610_v43 = vmul.f32 1000.0, %v4456_v31  ;;  %v4550_v32 = vadd.s32 3, %v4546_v9  ;;  %v4672_v47 = vand.u32 8388607, %v4665_v11 }
 0x49e   :  { %v4622_v20 = vadd.s32 536870912, %v4621_v5  ;;  %vm4676_vm7 = vcmp.gt.s32.totalorder %v4675_v13, 0  ;;  %v826_v30 = vadd.f32 %v762_v40, %v438_v3  ;;  %v4539_v10 = vcvt.s32.f32 %v4532_v54 }
 0x49f   :  { %v4536_v19 = vor.u32 4788187, %v4535_v22  ;;  %v4677_v12 = vsel %vm4676_vm7, %v4675_v13, 0  ;;  %7674 = vst [vmem:[#allocation2 + $0x108] sm:$0xff] %v7610_v43  ;;  %v12269_v63 = vmul.f32 %v9131_v50, %v14859_v34  ;;  %vm4563_vm12 = vcmp.lt.s32.totalorder %v12078_v36, 0 }
 0x4a0   :  { %v4623_v28 = vshrl.u32 %v4622_v20, 30  ;;  %v4679_v24 = vand.u32 31, %v4677_v12  ;;  %v12272_v49 = vand.u32 3, %v4550_v32  ;;  %v4617_v7 = vadd.s32 %v12232_v8, %v12240_v16 }
 0x4a1   :  { %v4537_v46 = vand.u32 2147483647, %v4536_v19  ;;  %v4673_v48 = vor.u32 8388608, %v4672_v47  ;;  %v12277_v41 = vshrl.u32 %v4677_v12, 5  ;;  %v12281_v18 = vadd.f32 %v9137_v52, %v826_v30 }
 0x4a2   :  { %v4624_v60 = vshll.u32 %v4623_v28, 30  ;;  %v4680_v15 = vsub.s32 32, %v4679_v24  ;;  %v4682_v29 = vshll.u32 %v14756_v44, %v4679_v24  ;;  %v4685_v8 = vshll.u32 %v14757_v62, %v4679_v24 }
 0x4a3   :  { %v4540_v4 = vmul.f32 %v4539_v10, %v4537_v46  ;;  %v4688_v16 = vshll.u32 %v14758_v27, %v4679_v24  ;;  %v4647_v42 = vsub.s32 4, %v4623_v28  ;;  %v4691_v1 = vshll.u32 %v14759_v37, %v4679_v24 }
 0x4a4   :  { %v12275_v38 = vsub.s32 %v4621_v5, %v4624_v60  ;;  %v4683_v40 = vshrl.u32 %v14757_v62, %v4680_v15  ;;  %v4686_v39 = vshrl.u32 %v14758_v27, %v4680_v15  ;;  %v4689_v59 = vshrl.u32 %v14759_v37, %v4680_v15 }
 0x4a5   :  { %v4541_v58 = vxor.u32 2147483648, %v4540_v4  ;;  %v4692_v33 = vshrl.u32 %v14760_v45, %v4680_v15  ;;  %v4694_v25 = vshll.u32 %v14760_v45, %v4679_v24  ;;  %v4695_v9 = vshrl.u32 %v14761_v57, %v4680_v15 }
 0x4a6   :  { %v4627_v23 = vsub.s32 0, %v12275_v38  ;;  %v4684_v17 = vor.u32 %v4683_v40, %v4682_v29  ;;  %v4687_v61 = vor.u32 %v4686_v39, %v4685_v8  ;;  %v4690_v26 = vor.u32 %v4689_v59, %v4688_v16 }
 0x4a7   :  { %v4542_v6 = vsel %vm4459_vm14, %v4541_v58, %v4540_v4  ;;  %v4693_v21 = vor.u32 %v4692_v33, %v4691_v1  ;;  %v12299_v13 = vshll.u32 %v4673_v48, 8  ;;  %v4772_v31 = vand.u32 2139095040, %v12281_v18  ;;  %v619_v4 = vpop.permute.xlu1 %618 }
 0x4a8   :  { %v4545_v0 = vsel %vm12223_vm8, %v12023_v56, %v4542_v6  ;;  %v7862_v53 = vmin.u32 %v4627_v23, %v12275_v38  ;;  %vm12304_vm10 = vcmp.le.f32.partialorder %v4561_v2, 0.7853982  ;;  %v4648_v54 = vsel %vm4563_vm12, %v4647_v42, %v4623_v28 }
 0x4a9   :  { %8384 = vcosq.f32 %v4545_v0  ;;  %v4681_v22 = vshrl.u32 %v14756_v44, %v4680_v15  ;;  %v4696_v35 = vor.u32 %v4695_v9, %v4694_v25  ;;  %vm4697_vm11 = vcmp.lt.s32.totalorder %v12277_v41, 1 }
 0x4aa   :  { %8386 = vsinq.f32 %v4545_v0  ;;  %v4629_v5 = vclz %v7862_v53  ;;  %vm4699_vm14 = vcmp.lt.s32.totalorder %v12277_v41, 3  ;;  %vm4700_vm13 = vcmp.lt.s32.totalorder %v12277_v41, 4 }
 0x4ab   :  { %v4705_v43 = vsel %vm4697_vm11, %v4684_v17, %v4687_v61  ;;  %v4702_v20 = vsel %vm4700_vm13, %v4690_v26, 2102212464  ;;  %v4706_v19 = vsel %vm4700_vm13, %v4693_v21, 920167782  ;;  %v4709_v2 = vsel %vm4697_vm11, %v4687_v61, %v4690_v26 }
 0x4ac   :  { %v7863_v3 = vadd.s32 4294967294, %v4629_v5  ;;  %v4710_v32 = vsel %vm4700_vm13, %v4696_v35, 1326507024  ;;  %vm4698_vm0 = vcmp.lt.s32.totalorder %v12277_v41, 2  ;;  %v4707_v47 = vsel %vm4699_vm14, %v4690_v26, %v4706_v19 }
 0x4ad   :  { %v4711_v12 = vsel %vm4699_vm14, %v4693_v21, %v4710_v32  ;;  %vm4552_vm1 = vcmp.lt.s32.totalorder %v12272_v49, 2  ;;  %v4701_v24 = vsel %vm4697_vm11, %v4681_v22, %v4684_v17  ;;  %v4708_v30 = vsel %vm4698_vm0, %v4705_v43, %v4707_v47 }
 0x4ae   :  { %vm7864_vm15 = vcmp.lt.s32.totalorder %v7863_v3, 0  ;;  %v4712_v46 = vsel %vm4698_vm0, %v4709_v2, %v4711_v12  ;;  %vm4549_vm2 = vweird.f32 %v12023_v56  ;;  %v4703_v60 = vsel %vm4699_vm14, %v4687_v61, %v4702_v20 }
 0x4af   :  { %v4632_v28 = vsel %vm7864_vm15, 0, %v7863_v3  ;;  %v4773_v15 = vshrl.u32 %v4772_v31, 23  ;;  %v12328_v48 = vmul.u32.u64.low %v12299_v13, %v4712_v46  ;;  %v12329_v40 = vmul.u32.u64.high %v12299_v13, %v4712_v46, %v12328_v48 }
 0x4b0   :  { %v4633_v10 = vsub.s32 32, %v4632_v28  ;;  %v4637_v34 = vsub.s32 4294967266, %v4632_v28  ;;  %v12332_v58 = vmul.u32.u64.low %v12299_v13, %v4708_v30  ;;  %v12333_v29 = vmul.u32.u64.high %v12299_v13, %v4708_v30, %v12332_v58 }
 0x4b1   :  { %v4634_v39 = vshll.u32 %v12275_v38, %v4632_v28  ;;  %v7869_v8 = vadd.s32 4294967169, %v4773_v15  ;;  %vm4553_vm4 = vcmp.eq.s32.totalorder %v12272_v49, 0  ;;  %vm4556_vm8 = vcmp.eq.s32.totalorder %v12272_v49, 2 }
 0x4b2   :  { %v4635_v59 = vshrl.u32 %v4617_v7, %v4633_v10  ;;  %v4638_v23 = vadd.s32 127, %v4637_v34  ;;  %v4704_v33 = vsel %vm4698_vm0, %v4701_v24, %v4703_v60  ;;  %v763_v6 = vmul.f32 %v9135_v55, %v619_v4 }
 0x4b3   :  { %v8385_v16 = vpop.eup %8384  ;;  %v4650_v38 = vsel %vm12304_vm10, 0, %v4648_v54  ;;  %vm4722_vm5 = vc.u32 %v12329_v40, %v12332_v58  ;;  %v4723_v53 = vadd.s32 1, %v12333_v29  ;;  %v4769_v61 = vand.u32 2147483647, %v12281_v18 }
 0x4b4   :  { %v8387_v42 = vpop.eup %8386  ;;  %v4557_v17 = vxor.u32 2147483648, %v8385_v16  ;;  %v4636_v1 = vor.u32 %v4635_v59, %v4634_v39  ;;  %v4639_v0 = vshll.u32 %v4638_v23, 23  ;;  %v4720_v41 = vmul.u32 %v12299_v13, %v4704_v33 }
 0x4b5   :  { %v4554_v7 = vxor.u32 2147483648, %v8387_v42  ;;  %v4779_v25 = vadd.s32 1, %v7869_v8  ;;  %v4654_v31 = vadd.s32 3, %v4650_v38  ;;  %v4724_v22 = vsel %vm4722_vm5, %v4723_v53, %v12333_v29 }
 0x4b6   :  { %v4558_v26 = vsel %vm4556_vm8, %v4557_v17, %v8387_v42  ;;  %v4640_v21 = vor.u32 4788187, %v4639_v0  ;;  %v4643_v5 = vcvt.s32.f32 %v4636_v1  ;;  %v4725_v3 = vadd.s32 %v4724_v22, %v4720_v41 }
 0x4b7   :  { %v4555_v9 = vsel %vm4553_vm4, %v8385_v16, %v4554_v7  ;;  %vm4780_vm3 = vcmp.gt.s32.totalorder %v4779_v25, 0  ;;  %v4776_v13 = vand.u32 8388607, %v4769_v61  ;;  %v827_v19 = vadd.f32 %v763_v6, %v12269_v63 }
 0x4b8   :  { %v4559_v54 = vsel %vm4552_vm1, %v4555_v9, %v4558_v26  ;;  %v4641_v35 = vand.u32 2147483647, %v4640_v21  ;;  %v4781_v20 = vsel %vm4780_vm3, %v4779_v25, 0  ;;  %v4726_v47 = vadd.s32 536870912, %v4725_v3 }
 0x4b9   :  { %v4560_v43 = vsel %vm4549_vm2, nan, %v4559_v54  ;;  %v4783_v12 = vand.u32 31, %v4781_v20  ;;  %v12357_v49 = vand.u32 3, %v4654_v31  ;;  %v12360_v30 = vadd.s32 %v12332_v58, %v12329_v40 }
 0x4ba   :  { %v7611_v2 = vmul.f32 1000.0, %v4560_v43  ;;  %v4644_v32 = vmul.f32 %v4643_v5, %v4641_v35  ;;  %v4727_v24 = vshrl.u32 %v4726_v47, 30  ;;  %v4777_v56 = vor.u32 8388608, %v4776_v13 }
 0x4bb   :  { %v4784_v46 = vsub.s32 32, %v4783_v12  ;;  %v12363_v10 = vadd.f32 %v9137_v52, %v827_v19  ;;  %v4782_v60 = vshrl.u32 %v4781_v20, 5  ;;  %v4786_v15 = vshll.u32 %v14756_v44, %v4783_v12 }
 0x4bc   :  { %7675 = vst [vmem:[#allocation2 + $0x110] sm:$0xff] %v7611_v2  ;;  %v4645_v28 = vxor.u32 2147483648, %v4644_v32  ;;  %v4728_v34 = vshll.u32 %v4727_v24, 30  ;;  %v4789_v40 = vshll.u32 %v14757_v62, %v4783_v12  ;;  %vm4667_vm6 = vcmp.lt.s32.totalorder %v12209_v14, 0 }
 0x4bd   :  { %v4787_v48 = vshrl.u32 %v14757_v62, %v4784_v46  ;;  %v4790_v58 = vshrl.u32 %v14758_v27, %v4784_v46  ;;  %v4792_v39 = vshll.u32 %v14758_v27, %v4783_v12  ;;  %v4793_v59 = vshrl.u32 %v14759_v37, %v4784_v46 }
 0x4be   :  { %v4646_v63 = vsel %vm4563_vm12, %v4645_v28, %v4644_v32  ;;  %v12375_v29 = vsub.s32 %v4725_v3, %v4728_v34  ;;  %v4795_v51 = vshll.u32 %v14759_v37, %v4783_v12  ;;  %v12380_v8 = vshll.u32 %v4777_v56, 8 }
 0x4bf   :  { %v4649_v4 = vsel %vm12304_vm10, %v12078_v36, %v4646_v63  ;;  %v4788_v23 = vor.u32 %v4787_v48, %v4786_v15  ;;  %v4791_v33 = vor.u32 %v4790_v58, %v4789_v40  ;;  %v4794_v6 = vor.u32 %v4793_v59, %v4792_v39 }
 0x4c0   :  { %8388 = vcosq.f32 %v4649_v4  ;;  %v4731_v16 = vsub.s32 0, %v12375_v29  ;;  %v4796_v42 = vshrl.u32 %v14760_v45, %v4784_v46  ;;  %v4798_v17 = vshll.u32 %v14760_v45, %v4783_v12 }
 0x4c1   :  { %8390 = vsinq.f32 %v4649_v4  ;;  %v4799_v1 = vshrl.u32 %v14761_v57, %v4784_v46  ;;  %vm4801_vm9 = vcmp.lt.s32.totalorder %v4782_v60, 1  ;;  %v4876_v0 = vand.u32 2139095040, %v12363_v10 }
 0x4c2   :  { %vm4660_vm7 = vcmp.eq.s32.totalorder %v12357_v49, 2  ;;  %vm12390_vm12 = vcmp.le.f32.partialorder %v4665_v11, 0.7853982  ;;  %v7866_v7 = vmin.u32 %v4731_v16, %v12375_v29  ;;  %v4785_v53 = vshrl.u32 %v14756_v44, %v4784_v46 }
 0x4c3   :  { %v4797_v26 = vor.u32 %v4796_v42, %v4795_v51  ;;  %vm4804_vm10 = vcmp.lt.s32.totalorder %v4782_v60, 4  ;;  %vm4657_vm11 = vcmp.eq.s32.totalorder %v12357_v49, 0  ;;  %v4751_v21 = vsub.s32 4, %v4727_v24 }
 0x4c4   :  { %v4800_v41 = vor.u32 %v4799_v1, %v4798_v17  ;;  %vm4803_vm14 = vcmp.lt.s32.totalorder %v4782_v60, 3  ;;  %v4806_v25 = vsel %vm4804_vm10, %v4794_v6, 2102212464  ;;  %vm4656_vm13 = vcmp.lt.s32.totalorder %v12357_v49, 2 }
 0x4c5   :  { %v4733_v9 = vclz %v7866_v7  ;;  %v4805_v11 = vsel %vm4801_vm9, %v4785_v53, %v4788_v23  ;;  %v4809_v5 = vsel %vm4801_vm9, %v4788_v23, %v4791_v33  ;;  %v4813_v31 = vsel %vm4801_vm9, %v4791_v33, %v4794_v6 }
 0x4c6   :  { %vm4653_vm15 = vweird.f32 %v12078_v36  ;;  %v4807_v22 = vsel %vm4803_vm14, %v4791_v33, %v4806_v25  ;;  %v4810_v54 = vsel %vm4804_vm10, %v4797_v26, 920167782  ;;  %v4814_v35 = vsel %vm4804_vm10, %v4800_v41, 1326507024  ;;  %v14864_v41 = vld [vmem:[#allocation33_spill] sm:$0xff]  ;;  %v14865_v25 = vld [vmem:[#allocation36_spill] sm:$0xff] }
 0x4c7   :  { %v4877_v3 = vshrl.u32 %v4876_v0, 23  ;;  %v7867_v43 = vadd.s32 4294967294, %v4733_v9  ;;  %vm4802_vm0 = vcmp.lt.s32.totalorder %v4782_v60, 2  ;;  %v4811_v13 = vsel %vm4803_vm14, %v4794_v6, %v4810_v54 }
 0x4c8   :  { %v4815_v20 = vsel %vm4803_vm14, %v4797_v26, %v4814_v35  ;;  %v4752_v19 = vsel %vm4667_vm6, %v4751_v21, %v4727_v24  ;;  %v4812_v2 = vsel %vm4802_vm0, %v4809_v5, %v4811_v13  ;;  %v4808_v28 = vsel %vm4802_vm0, %v4805_v11, %v4807_v22  ;;  %v623_v26 = vpop.permute.xlu0 %622 }
 0x4c9   :  { %v4816_v32 = vsel %vm4802_vm0, %v4813_v31, %v4815_v20  ;;  %v7873_v47 = vadd.s32 4294967169, %v4877_v3  ;;  %vm7868_vm1 = vcmp.lt.s32.totalorder %v7867_v43, 0  ;;  %v4873_v58 = vand.u32 2147483647, %v12363_v10 }
 0x4ca   :  { %v8389_v12 = vpop.eup %8388  ;;  %v12405_v56 = vmul.u32.u64.low %v12380_v8, %v4816_v32  ;;  %v12406_v46 = vmul.u32.u64.high %v12380_v8, %v4816_v32, %v12405_v56  ;;  %v4736_v15 = vsel %vm7868_vm1, 0, %v7867_v43  ;;  %v4754_v59 = vsel %vm12390_vm12, 0, %v4752_v19 }
 0x4cb   :  { %v8391_v63 = vpop.eup %8390  ;;  %v4661_v34 = vxor.u32 2147483648, %v8389_v12  ;;  %v12409_v60 = vmul.u32.u64.low %v12380_v8, %v4812_v2  ;;  %v12410_v4 = vmul.u32.u64.high %v12380_v8, %v4812_v2, %v12409_v60  ;;  %v4737_v24 = vsub.s32 32, %v4736_v15 }
 0x4cc   :  { %v4658_v48 = vxor.u32 2147483648, %v8391_v63  ;;  %v4741_v40 = vsub.s32 4294967266, %v4736_v15  ;;  %v4824_v23 = vmul.u32 %v12380_v8, %v4808_v28  ;;  %v4883_v51 = vadd.s32 1, %v7873_v47 }
 0x4cd   :  { %v4662_v39 = vsel %vm4660_vm7, %v4661_v34, %v8391_v63  ;;  %v4738_v33 = vshll.u32 %v12375_v29, %v4736_v15  ;;  %v4739_v6 = vshrl.u32 %v12360_v30, %v4737_v24  ;;  %vm4826_vm2 = vc.u32 %v12406_v46, %v12409_v60 }
 0x4ce   :  { %v4659_v16 = vsel %vm4657_vm11, %v8389_v12, %v4658_v48  ;;  %v4742_v42 = vadd.s32 127, %v4741_v40  ;;  %v4827_v1 = vadd.s32 1, %v12410_v4  ;;  %vm4884_vm4 = vcmp.gt.s32.totalorder %v4883_v51, 0 }
 0x4cf   :  { %v4663_v17 = vsel %vm4656_vm13, %v4659_v16, %v4662_v39  ;;  %v4740_v0 = vor.u32 %v4739_v6, %v4738_v33  ;;  %v4885_v53 = vsel %vm4884_vm4, %v4883_v51, 0  ;;  %v440_v49 = vmul.f32 %v9131_v50, %v14864_v41 }
 0x4d0   :  { %v4664_v8 = vsel %vm4653_vm15, nan, %v4663_v17  ;;  %v4743_v7 = vshll.u32 %v4742_v42, 23  ;;  %v4828_v30 = vsel %vm4826_vm2, %v4827_v1, %v12410_v4  ;;  %v4887_v21 = vand.u32 31, %v4885_v53 }
 0x4d1   :  { %v7612_v29 = vmul.f32 1000.0, %v4664_v8  ;;  %v12435_v9 = vmul.f32 %v9131_v50, %v14865_v25  ;;  %v4829_v5 = vadd.s32 %v4828_v30, %v4824_v23  ;;  %v4758_v36 = vadd.s32 3, %v4754_v59 }
 0x4d2   :  { %v4744_v11 = vor.u32 4788187, %v4743_v7  ;;  %v4880_v31 = vand.u32 8388607, %v4873_v58  ;;  %v4888_v22 = vsub.s32 32, %v4887_v21  ;;  %v764_v54 = vmul.f32 %v9135_v55, %v623_v26 }
 0x4d3   :  { %7676 = vst [vmem:[#allocation2 + $0x118] sm:$0xff] %v7612_v29  ;;  %v4747_v3 = vcvt.s32.f32 %v4740_v0  ;;  %v4830_v43 = vadd.s32 536870912, %v4829_v5  ;;  %v4890_v13 = vshll.u32 %v14756_v44, %v4887_v21  ;;  %v4893_v19 = vshll.u32 %v14757_v62, %v4887_v21 }
 0x4d4   :  { %v4745_v35 = vand.u32 2147483647, %v4744_v11  ;;  %v4891_v20 = vshrl.u32 %v14757_v62, %v4888_v22  ;;  %v4894_v2 = vshrl.u32 %v14758_v27, %v4888_v22  ;;  %v4897_v32 = vshrl.u32 %v14759_v37, %v4888_v22 }
 0x4d5   :  { %v4831_v12 = vshrl.u32 %v4830_v43, 30  ;;  %v4900_v28 = vshrl.u32 %v14760_v45, %v4888_v22  ;;  %v4903_v56 = vshrl.u32 %v14761_v57, %v4888_v22  ;;  %v4886_v63 = vshrl.u32 %v4885_v53, 5 }
 0x4d6   :  { %v4748_v47 = vmul.f32 %v4747_v3, %v4745_v35  ;;  %v4896_v34 = vshll.u32 %v14758_v27, %v4887_v21  ;;  %v4899_v15 = vshll.u32 %v14759_v37, %v4887_v21  ;;  %v4902_v4 = vshll.u32 %v14760_v45, %v4887_v21  ;;  %v627_v35 = vpop.permute.xlu1 %626 }
 0x4d7   :  { %v4832_v24 = vshll.u32 %v4831_v12, 30  ;;  %v4892_v40 = vor.u32 %v4891_v20, %v4890_v13  ;;  %v4895_v39 = vor.u32 %v4894_v2, %v4893_v19  ;;  %v4881_v59 = vor.u32 8388608, %v4880_v31  ;;  %v631_v20 = vpop.permute.xlu0 %630 }
 0x4d8   :  { %v4749_v48 = vxor.u32 2147483648, %v4748_v47  ;;  %v4898_v23 = vor.u32 %v4897_v32, %v4896_v34  ;;  %v4901_v51 = vor.u32 %v4900_v28, %v4899_v15  ;;  %v828_v16 = vadd.f32 %v764_v54, %v440_v49 }
 0x4d9   :  { %v12452_v6 = vsub.s32 %v4829_v5, %v4832_v24  ;;  %v4889_v42 = vshrl.u32 %v14756_v44, %v4888_v22  ;;  %v4904_v17 = vor.u32 %v4903_v56, %v4902_v4  ;;  %v4855_v8 = vsub.s32 4, %v4831_v12 }
 0x4da   :  { %v4750_v33 = vsel %vm4667_vm6, %v4749_v48, %v4748_v47  ;;  %vm4905_vm8 = vcmp.lt.s32.totalorder %v4886_v63, 1  ;;  %vm4906_vm5 = vcmp.lt.s32.totalorder %v4886_v63, 2  ;;  %vm4908_vm3 = vcmp.lt.s32.totalorder %v4886_v63, 4 }
 0x4db   :  { %v4753_v1 = vsel %vm12390_vm12, %v12209_v14, %v4750_v33  ;;  %v4835_v0 = vsub.s32 0, %v12452_v6  ;;  %v4913_v7 = vsel %vm4905_vm8, %v4892_v40, %v4895_v39  ;;  %vm4907_vm6 = vcmp.lt.s32.totalorder %v4886_v63, 3 }
 0x4dc   :  { %8392 = vcosq.f32 %v4753_v1  ;;  %v4910_v53 = vsel %vm4908_vm3, %v4898_v23, 2102212464  ;;  %v4914_v26 = vsel %vm4908_vm3, %v4901_v51, 920167782  ;;  %v4917_v21 = vsel %vm4905_vm8, %v4895_v39, %v4898_v23 }
 0x4dd   :  { %8394 = vsinq.f32 %v4753_v1  ;;  %v7870_v29 = vmin.u32 %v4835_v0, %v12452_v6  ;;  %v4915_v30 = vsel %vm4907_vm6, %v4898_v23, %v4914_v26  ;;  %v4918_v38 = vsel %vm4908_vm3, %v4904_v17, 1326507024 }
 0x4de   :  { %v4916_v41 = vsel %vm4906_vm5, %v4913_v7, %v4915_v30  ;;  %v4919_v49 = vsel %vm4907_vm6, %v4901_v51, %v4918_v38  ;;  %v4921_v25 = vshll.u32 %v4881_v59, 8  ;;  %v12464_v11 = vadd.f32 %v9137_v52, %v828_v16 }
 0x4df   :  { %v4759_v5 = vand.u32 3, %v4758_v36  ;;  %v4837_v31 = vclz %v7870_v29  ;;  %v4909_v22 = vsel %vm4905_vm8, %v4889_v42, %v4892_v40  ;;  %v4911_v54 = vsel %vm4907_vm6, %v4895_v39, %v4910_v53 }
 0x4e0   :  { %vm4771_vm9 = vcmp.lt.s32.totalorder %v12281_v18, 0  ;;  %v4920_v3 = vsel %vm4906_vm5, %v4917_v21, %v4919_v49  ;;  %v12469_v43 = vmul.u32.u64.low %v4921_v25, %v4916_v41  ;;  %v12470_v13 = vmul.u32.u64.high %v4921_v25, %v4916_v41, %v12469_v43 }
 0x4e1   :  { %v7871_v19 = vadd.s32 4294967294, %v4837_v31  ;;  %v4856_v2 = vsel %vm4771_vm9, %v4855_v8, %v4831_v12  ;;  %v12475_v32 = vmul.u32.u64.low %v4921_v25, %v4920_v3  ;;  %v12476_v36 = vmul.u32.u64.high %v4921_v25, %v4920_v3, %v12475_v32 }
 0x4e2   :  { %vm4757_vm7 = vweird.f32 %v12209_v14  ;;  %vm12481_vm12 = vcmp.le.f32.partialorder %v4769_v61, 0.7853982  ;;  %v4912_v28 = vsel %vm4906_vm5, %v4909_v22, %v4911_v54  ;;  %v4980_v56 = vand.u32 2139095040, %v12464_v11 }
 0x4e3   :  { %v765_v34 = vmul.f32 %v9135_v55, %v627_v35  ;;  %vm4764_vm10 = vcmp.eq.s32.totalorder %v4759_v5, 2  ;;  %v4825_v12 = vadd.s32 %v12409_v60, %v12406_v46  ;;  %vm7872_vm11 = vcmp.lt.s32.totalorder %v7871_v19, 0  ;;  %v14868_v35 = vld [vmem:[#allocation35_spill] sm:$0xff] }
 0x4e4   :  { %v766_v15 = vmul.f32 %v9135_v55, %v631_v20  ;;  %v4840_v4 = vsel %vm7872_vm11, 0, %v7871_v19  ;;  %v4858_v61 = vsel %vm12481_vm12, 0, %v4856_v2  ;;  %v4931_v48 = vadd.s32 1, %v12470_v13 }
 0x4e5   :  { %v4981_v24 = vshrl.u32 %v4980_v56, 23  ;;  %v4841_v40 = vsub.s32 32, %v4840_v4  ;;  %v4845_v39 = vsub.s32 4294967266, %v4840_v4  ;;  %v4928_v59 = vmul.u32 %v4921_v25, %v4912_v28 }
 0x4e6   :  { %v8393_v63 = vpop.eup %8392  ;;  %v4977_v23 = vand.u32 2147483647, %v12464_v11  ;;  %v4842_v46 = vshll.u32 %v12452_v6, %v4840_v4  ;;  %vm4930_vm14 = vc.u32 %v12476_v36, %v12469_v43  ;;  %vm4761_vm13 = vcmp.eq.s32.totalorder %v4759_v5, 0 }
 0x4e7   :  { %v8395_v51 = vpop.eup %8394  ;;  %v4765_v16 = vxor.u32 2147483648, %v8393_v63  ;;  %v7877_v60 = vadd.s32 4294967169, %v4981_v24  ;;  %v4843_v42 = vshrl.u32 %v4825_v12, %v4841_v40  ;;  %v4846_v17 = vadd.s32 127, %v4845_v39 }
 0x4e8   :  { %v4762_v33 = vxor.u32 2147483648, %v8395_v51  ;;  %v4932_v1 = vsel %vm4930_vm14, %v4931_v48, %v12470_v13  ;;  %vm4760_vm15 = vcmp.lt.s32.totalorder %v4759_v5, 2  ;;  %v4862_v6 = vadd.s32 3, %v4858_v61 }
 0x4e9   :  { %v4766_v8 = vsel %vm4764_vm10, %v4765_v16, %v8395_v51  ;;  %v4933_v0 = vadd.s32 %v4932_v1, %v4928_v59  ;;  %v4987_v7 = vadd.s32 1, %v7877_v60  ;;  %v4844_v26 = vor.u32 %v4843_v42, %v4842_v46 }
 0x4ea   :  { %v4763_v53 = vsel %vm4761_vm13, %v8393_v63, %v4762_v33  ;;  %v4847_v29 = vshll.u32 %v4846_v17, 23  ;;  %v4984_v49 = vand.u32 8388607, %v4977_v23  ;;  %v829_v5 = vadd.f32 %v765_v34, %v12435_v9 }
 0x4eb   :  { %v4767_v30 = vsel %vm4760_vm15, %v4763_v53, %v4766_v8  ;;  %v4934_v21 = vadd.s32 536870912, %v4933_v0  ;;  %vm4988_vm0 = vcmp.gt.s32.totalorder %v4987_v7, 0  ;;  %v442_v3 = vmul.f32 %v9131_v50, %v14868_v35 }
 0x4ec   :  { %v4768_v38 = vsel %vm4757_vm7, nan, %v4767_v30  ;;  %v4848_v41 = vor.u32 4788187, %v4847_v29  ;;  %v4989_v25 = vsel %vm4988_vm0, %v4987_v7, 0  ;;  %v4851_v20 = vcvt.s32.f32 %v4844_v26 }
 0x4ed   :  { %v7613_v31 = vmul.f32 1000.0, %v4768_v38  ;;  %v4935_v22 = vshrl.u32 %v4934_v21, 30  ;;  %v4991_v54 = vand.u32 31, %v4989_v25  ;;  %v12507_v19 = vand.u32 3, %v4862_v6 }
 0x4ee   :  { %v4849_v13 = vand.u32 2147483647, %v4848_v41  ;;  %vm4875_vm1 = vcmp.lt.s32.totalorder %v12363_v10, 0  ;;  %v4929_v28 = vadd.s32 %v12469_v43, %v12476_v36  ;;  %v4985_v56 = vor.u32 8388608, %v4984_v49 }
 0x4ef   :  { %7677 = vst [vmem:[#allocation2 + $0x120] sm:$0xff] %v7613_v31  ;;  %v4936_v14 = vshll.u32 %v4935_v22, 30  ;;  %v4992_v2 = vsub.s32 32, %v4991_v54  ;;  %v12512_v12 = vadd.f32 %v766_v15, %v442_v3  ;;  %v12516_v34 = vshrl.u32 %v4989_v25, 5 }
 0x4f0   :  { %v4852_v32 = vmul.f32 %v4851_v20, %v4849_v13  ;;  %v12520_v61 = vadd.f32 %v9137_v52, %v829_v5  ;;  %v4994_v24 = vshll.u32 %v14756_v44, %v4991_v54  ;;  %v4997_v36 = vshll.u32 %v14757_v62, %v4991_v54 }
 0x4f1   :  { %v12514_v9 = vsub.s32 %v4933_v0, %v4936_v14  ;;  %v4995_v4 = vshrl.u32 %v14757_v62, %v4992_v2  ;;  %v4998_v63 = vshrl.u32 %v14758_v27, %v4992_v2  ;;  %v5001_v40 = vshrl.u32 %v14759_v37, %v4992_v2 }
 0x4f2   :  { %v4853_v48 = vxor.u32 2147483648, %v4852_v32  ;;  %v5000_v15 = vshll.u32 %v14758_v27, %v4991_v54  ;;  %v5004_v39 = vshrl.u32 %v14760_v45, %v4992_v2  ;;  %v4959_v51 = vsub.s32 4, %v4935_v22 }
 0x4f3   :  { %v4939_v43 = vsub.s32 0, %v12514_v9  ;;  %v4996_v16 = vor.u32 %v4995_v4, %v4994_v24  ;;  %v5003_v46 = vshll.u32 %v14759_v37, %v4991_v54  ;;  %v4999_v42 = vor.u32 %v4998_v63, %v4997_v36 }
 0x4f4   :  { %v4854_v59 = vsel %vm4771_vm9, %v4853_v48, %v4852_v32  ;;  %v5002_v17 = vor.u32 %v5001_v40, %v5000_v15  ;;  %v5006_v8 = vshll.u32 %v14760_v45, %v4991_v54  ;;  %v5007_v0 = vshrl.u32 %v14761_v57, %v4992_v2 }
 0x4f5   :  { %v4857_v60 = vsel %vm12481_vm12, %v12281_v18, %v4854_v59  ;;  %v7874_v33 = vmin.u32 %v4939_v43, %v12514_v9  ;;  %v5005_v1 = vor.u32 %v5004_v39, %v5003_v46  ;;  %v5025_v53 = vshll.u32 %v4985_v56, 8 }
 0x4f6   :  { %8396 = vcosq.f32 %v4857_v60  ;;  %v5084_v26 = vand.u32 2139095040, %v12520_v61  ;;  %vm12541_vm2 = vcmp.le.f32.partialorder %v4873_v58, 0.7853982  ;;  %v4960_v29 = vsel %vm4875_vm1, %v4959_v51, %v4935_v22 }
 0x4f7   :  { %8398 = vsinq.f32 %v4857_v60  ;;  %v4941_v7 = vclz %v7874_v33  ;;  %v4993_v30 = vshrl.u32 %v14756_v44, %v4992_v2  ;;  %v5008_v6 = vor.u32 %v5007_v0, %v5006_v8 }
 0x4f8   :  { %vm5009_vm4 = vcmp.lt.s32.totalorder %v12516_v34, 1  ;;  %vm5011_vm8 = vcmp.lt.s32.totalorder %v12516_v34, 3  ;;  %vm5012_vm5 = vcmp.lt.s32.totalorder %v12516_v34, 4  ;;  %vm5010_vm6 = vcmp.lt.s32.totalorder %v12516_v34, 2 }
 0x4f9   :  { %v7875_v21 = vadd.s32 4294967294, %v4941_v7  ;;  %v5017_v38 = vsel %vm5009_vm4, %v4996_v16, %v4999_v42  ;;  %v5014_v41 = vsel %vm5012_vm5, %v5002_v17, 2102212464  ;;  %v5018_v49 = vsel %vm5012_vm5, %v5005_v1, 920167782 }
 0x4fa   :  { %v5021_v58 = vsel %vm5009_vm4, %v4999_v42, %v5002_v17  ;;  %v5022_v25 = vsel %vm5012_vm5, %v5008_v6, 1326507024  ;;  %v5019_v31 = vsel %vm5011_vm8, %v5002_v17, %v5018_v49  ;;  %vm4864_vm9 = vcmp.lt.s32.totalorder %v12507_v19, 2  ;;  %v635_v6 = vpop.permute.xlu1 %634 }
 0x4fb   :  { %vm7876_vm3 = vcmp.lt.s32.totalorder %v7875_v21, 0  ;;  %v5023_v22 = vsel %vm5011_vm8, %v5005_v1, %v5022_v25  ;;  %v5013_v5 = vsel %vm5009_vm4, %v4993_v30, %v4996_v16  ;;  %v5020_v35 = vsel %vm5010_vm6, %v5017_v38, %v5019_v31  ;;  %v14871_v31 = vld [vmem:[#allocation37_spill] sm:$0xff] }
 0x4fc   :  { %v4944_v54 = vsel %vm7876_vm3, 0, %v7875_v21  ;;  %v5024_v3 = vsel %vm5010_vm6, %v5021_v58, %v5023_v22  ;;  %vm4861_vm7 = vweird.f32 %v12281_v18  ;;  %v5015_v14 = vsel %vm5011_vm8, %v4999_v42, %v5014_v41  ;;  %v14872_v22 = vld [vmem:[#allocation38_spill] sm:$0xff] }
 0x4fd   :  { %v4945_v13 = vsub.s32 32, %v4944_v54  ;;  %v4949_v20 = vsub.s32 4294967266, %v4944_v54  ;;  %v5085_v2 = vshrl.u32 %v5084_v26, 23  ;;  %v4946_v24 = vshll.u32 %v12514_v9, %v4944_v54 }
 0x4fe   :  { %v12564_v32 = vmul.u32.u64.low %v5025_v53, %v5024_v3  ;;  %v12565_v56 = vmul.u32.u64.high %v5025_v53, %v5024_v3, %v12564_v32  ;;  %v12567_v4 = vmul.u32.u64.low %v5025_v53, %v5020_v35  ;;  %v12568_v48 = vmul.u32.u64.high %v5025_v53, %v5020_v35, %v12567_v4 }
 0x4ff   :  { %v4947_v63 = vshrl.u32 %v4929_v28, %v4945_v13  ;;  %v4950_v40 = vadd.s32 127, %v4949_v20  ;;  %v7881_v43 = vadd.s32 4294967169, %v5085_v2  ;;  %vm4865_vm12 = vcmp.eq.s32.totalorder %v12507_v19, 0 }
 0x500   :  { %v8397_v36 = vpop.eup %8396  ;;  %vm4868_vm10 = vcmp.eq.s32.totalorder %v12507_v19, 2  ;;  %v5016_v15 = vsel %vm5010_vm6, %v5013_v5, %v5015_v14  ;;  %v12577_v39 = vadd.f32 %v9137_v52, %v12512_v12  ;;  %v4962_v28 = vsel %vm12541_vm2, 0, %v4960_v29 }
 0x501   :  { %v8399_v59 = vpop.eup %8398  ;;  %v4869_v51 = vxor.u32 2147483648, %v8397_v36  ;;  %v4948_v16 = vor.u32 %v4947_v63, %v4946_v24  ;;  %v4951_v46 = vshll.u32 %v4950_v40, 23  ;;  %vm5034_vm11 = vc.u32 %v12565_v56, %v12567_v4 }
 0x502   :  { %v4866_v9 = vxor.u32 2147483648, %v8399_v59  ;;  %v5035_v60 = vadd.s32 1, %v12568_v48  ;;  %v5081_v33 = vand.u32 2147483647, %v12520_v61  ;;  %v5032_v17 = vmul.u32 %v5025_v53, %v5016_v15 }
 0x503   :  { %v4870_v34 = vsel %vm4868_vm10, %v4869_v51, %v8399_v59  ;;  %v4952_v42 = vor.u32 4788187, %v4951_v46  ;;  %v5091_v1 = vadd.s32 1, %v7881_v43  ;;  %v4955_v8 = vcvt.s32.f32 %v4948_v16 }
 0x504   :  { %v4867_v12 = vsel %vm4865_vm12, %v8397_v36, %v4866_v9  ;;  %v4966_v0 = vadd.s32 3, %v4962_v28  ;;  %v5036_v7 = vsel %vm5034_vm11, %v5035_v60, %v12568_v48  ;;  %v5088_v53 = vand.u32 8388607, %v5081_v33 }
 0x505   :  { %v4871_v26 = vsel %vm4864_vm9, %v4867_v12, %v4870_v34  ;;  %v4953_v29 = vand.u32 2147483647, %v4952_v42  ;;  %v5037_v30 = vadd.s32 %v5036_v7, %v5032_v17  ;;  %vm5092_vm14 = vcmp.gt.s32.totalorder %v5091_v1, 0 }
 0x506   :  { %v4872_v21 = vsel %vm4861_vm7, nan, %v4871_v26  ;;  %v5093_v38 = vsel %vm5092_vm14, %v5091_v1, 0  ;;  %v5188_v41 = vand.u32 2139095040, %v12577_v39  ;;  %v12596_v19 = vmul.f32 %v9131_v50, %v14871_v31 }
 0x507   :  { %v7614_v49 = vmul.f32 1000.0, %v4872_v21  ;;  %v4956_v58 = vmul.f32 %v4955_v8, %v4953_v29  ;;  %v5038_v25 = vadd.s32 536870912, %v5037_v30  ;;  %v12600_v54 = vmul.f32 %v9131_v50, %v14872_v22 }
 0x508   :  { %v5095_v5 = vand.u32 31, %v5093_v38  ;;  %v12603_v18 = vmul.f32 %v9135_v55, %v635_v6  ;;  %v12605_v3 = vand.u32 3, %v4966_v0  ;;  %v5185_v20 = vand.u32 2147483647, %v12577_v39 }
 0x509   :  { %7678 = vst [vmem:[#allocation2 + $0x128] sm:$0xff] %v7614_v49  ;;  %v4957_v35 = vxor.u32 2147483648, %v4956_v58  ;;  %v12607_v13 = vshrl.u32 %v5038_v25, 30  ;;  %v12611_v14 = vadd.s32 %v12567_v4, %v12565_v56  ;;  %v5089_v2 = vor.u32 8388608, %v5088_v53 }
 0x50a   :  { %v5096_v32 = vsub.s32 32, %v5095_v5  ;;  %v5189_v48 = vshrl.u32 %v5188_v41, 23  ;;  %v12616_v40 = vshrl.u32 %v5093_v38, 5  ;;  %v5098_v43 = vshll.u32 %v14756_v44, %v5095_v5 }
 0x50b   :  { %v4958_v24 = vsel %vm4875_vm1, %v4957_v35, %v4956_v58  ;;  %v5040_v63 = vshll.u32 %v12607_v13, 30  ;;  %v5101_v56 = vshll.u32 %v14757_v62, %v5095_v5  ;;  %v5104_v51 = vshll.u32 %v14758_v27, %v5095_v5 }
 0x50c   :  { %v4961_v36 = vsel %vm12541_vm2, %v12363_v10, %v4958_v24  ;;  %v5099_v15 = vshrl.u32 %v14757_v62, %v5096_v32  ;;  %v5102_v4 = vshrl.u32 %v14758_v27, %v5096_v32  ;;  %v5105_v16 = vshrl.u32 %v14759_v37, %v5096_v32 }
 0x50d   :  { %8400 = vcosq.f32 %v4961_v36  ;;  %v12625_v59 = vsub.s32 %v5037_v30, %v5040_v63  ;;  %v5107_v28 = vshll.u32 %v14759_v37, %v5095_v5  ;;  %v12630_v9 = vshll.u32 %v5089_v2, 8 }
 0x50e   :  { %8402 = vsinq.f32 %v4961_v36  ;;  %v5100_v46 = vor.u32 %v5099_v15, %v5098_v43  ;;  %v5103_v60 = vor.u32 %v5102_v4, %v5101_v56  ;;  %v5106_v34 = vor.u32 %v5105_v16, %v5104_v51 }
 0x50f   :  { %v5043_v47 = vsub.s32 0, %v12625_v59  ;;  %v5108_v42 = vshrl.u32 %v14760_v45, %v5096_v32  ;;  %v5110_v17 = vshll.u32 %v14760_v45, %v5095_v5  ;;  %v5111_v1 = vshrl.u32 %v14761_v57, %v5096_v32 }
 0x510   :  { %v7885_v12 = vadd.s32 4294967169, %v5189_v48  ;;  %v12638_v8 = vand.u32 8388607, %v5185_v20  ;;  %vm4972_vm13 = vcmp.eq.s32.totalorder %v12605_v3, 2  ;;  %vm4979_vm15 = vcmp.lt.s32.totalorder %v12464_v11, 0 }
 0x511   :  { %v7878_v0 = vmin.u32 %v5043_v47, %v12625_v59  ;;  %v5109_v7 = vor.u32 %v5108_v42, %v5107_v28  ;;  %vm5113_vm0 = vcmp.lt.s32.totalorder %v12616_v40, 1  ;;  %vm5114_vm1 = vcmp.lt.s32.totalorder %v12616_v40, 2 }
 0x512   :  { %vm4969_vm2 = vcmp.eq.s32.totalorder %v12605_v3, 0  ;;  %v5063_v26 = vsub.s32 4, %v12607_v13  ;;  %v5097_v29 = vshrl.u32 %v14756_v44, %v5096_v32  ;;  %v5112_v30 = vor.u32 %v5111_v1, %v5110_v17 }
 0x513   :  { %vm5116_vm4 = vcmp.lt.s32.totalorder %v12616_v40, 4  ;;  %vm4968_vm8 = vcmp.lt.s32.totalorder %v12605_v3, 2  ;;  %v5045_v6 = vclz %v7878_v0  ;;  %v5121_v53 = vsel %vm5113_vm0, %v5100_v46, %v5103_v60 }
 0x514   :  { %v5118_v21 = vsel %vm5116_vm4, %v5106_v34, 2102212464  ;;  %v5125_v38 = vsel %vm5113_vm0, %v5103_v60, %v5106_v34  ;;  %vm4965_vm5 = vweird.f32 %v12363_v10  ;;  %vm5115_vm3 = vcmp.lt.s32.totalorder %v12616_v40, 3 }
 0x515   :  { %v5122_v41 = vsel %vm5116_vm4, %v5109_v7, 920167782  ;;  %v5126_v49 = vsel %vm5116_vm4, %v5112_v30, 1326507024  ;;  %v5195_v58 = vadd.s32 1, %v7885_v12  ;;  %v7879_v31 = vadd.s32 4294967294, %v5045_v6 }
 0x516   :  { %vm12658_vm6 = vcmp.le.f32.partialorder %v4977_v23, 0.7853982  ;;  %v5117_v22 = vsel %vm5113_vm0, %v5097_v29, %v5100_v46  ;;  %v5123_v5 = vsel %vm5115_vm3, %v5106_v34, %v5122_v41  ;;  %v5127_v35 = vsel %vm5115_vm3, %v5109_v7, %v5126_v49 }
 0x517   :  { %v5119_v2 = vsel %vm5115_vm3, %v5103_v60, %v5118_v21  ;;  %v5124_v32 = vsel %vm5114_vm1, %v5121_v53, %v5123_v5  ;;  %v5128_v48 = vsel %vm5114_vm1, %v5125_v38, %v5127_v35  ;;  %vm5196_vm9 = vcmp.gt.s32.totalorder %v5195_v58, 0  ;;  %v8401_v24 = vpop.eup %8400 }
 0x518   :  { %vm7880_vm7 = vcmp.lt.s32.totalorder %v7879_v31, 0  ;;  %v12669_v23 = vmul.u32.u64.low %v12630_v9, %v5128_v48  ;;  %v12670_v63 = vmul.u32.u64.high %v12630_v9, %v5128_v48, %v12669_v23  ;;  %v5197_v43 = vsel %vm5196_vm9, %v5195_v58, 0  ;;  %v8403_v36 = vpop.eup %8402 }
 0x519   :  { %v4973_v15 = vxor.u32 2147483648, %v8401_v24  ;;  %v5048_v56 = vsel %vm7880_vm7, 0, %v7879_v31  ;;  %v12673_v4 = vmul.u32.u64.low %v12630_v9, %v5124_v32  ;;  %v12674_v51 = vmul.u32.u64.high %v12630_v9, %v5124_v32, %v12673_v4 }
 0x51a   :  { %v4970_v16 = vxor.u32 2147483648, %v8403_v36  ;;  %v5049_v46 = vsub.s32 32, %v5048_v56  ;;  %v5053_v28 = vsub.s32 4294967266, %v5048_v56  ;;  %v5193_v47 = vor.u32 8388608, %v12638_v8 }
 0x51b   :  { %v4974_v60 = vsel %vm4972_vm13, %v4973_v15, %v8403_v36  ;;  %v5064_v34 = vsel %vm4979_vm15, %v5063_v26, %v12607_v13  ;;  %v5120_v42 = vsel %vm5114_vm1, %v5117_v22, %v5119_v2  ;;  %v5199_v17 = vand.u32 31, %v5197_v43  ;;  %v639_v22 = vpop.permute.xlu0 %638 }
 0x51c   :  { %v4971_v1 = vsel %vm4969_vm2, %v8401_v24, %v4970_v16  ;;  %v5050_v12 = vshll.u32 %v12625_v59, %v5048_v56  ;;  %v5051_v0 = vshrl.u32 %v12611_v14, %v5049_v46  ;;  %v5054_v7 = vadd.s32 127, %v5053_v28 }
 0x51d   :  { %v4975_v8 = vsel %vm4968_vm8, %v4971_v1, %v4974_v60  ;;  %vm5138_vm12 = vc.u32 %v12670_v63, %v12673_v4  ;;  %v5139_v13 = vadd.s32 1, %v12674_v51  ;;  %v5200_v26 = vsub.s32 32, %v5199_v17 }
 0x51e   :  { %v4976_v40 = vsel %vm4965_vm5, nan, %v4975_v8  ;;  %v5052_v29 = vor.u32 %v5051_v0, %v5050_v12  ;;  %v5055_v30 = vshll.u32 %v5054_v7, 23  ;;  %v5136_v6 = vmul.u32 %v12630_v9, %v5120_v42 }
 0x51f   :  { %v7615_v59 = vmul.f32 1000.0, %v4976_v40  ;;  %v5066_v14 = vsel %vm12658_vm6, 0, %v5064_v34  ;;  %v5140_v3 = vsel %vm5138_vm12, %v5139_v13, %v12674_v51  ;;  %v5203_v21 = vshrl.u32 %v14757_v62, %v5200_v26 }
 0x520   :  { %v5056_v53 = vor.u32 4788187, %v5055_v30  ;;  %v5141_v38 = vadd.s32 %v5140_v3, %v5136_v6  ;;  %v12701_v41 = vshrl.u32 %v5197_v43, 5  ;;  %v5202_v49 = vshll.u32 %v14756_v44, %v5199_v17 }
 0x521   :  { %7679 = vst [vmem:[#allocation2 + $0x130] sm:$0xff] %v7615_v59  ;;  %v5059_v10 = vcvt.s32.f32 %v5052_v29  ;;  %v5205_v58 = vshll.u32 %v14757_v62, %v5199_v17  ;;  %v5206_v9 = vshrl.u32 %v14758_v27, %v5200_v26  ;;  %v5209_v31 = vshrl.u32 %v14759_v37, %v5200_v26 }
 0x522   :  { %v5057_v5 = vand.u32 2147483647, %v5056_v53  ;;  %v5142_v35 = vadd.s32 536870912, %v5141_v38  ;;  %v5211_v2 = vshll.u32 %v14759_v37, %v5199_v17  ;;  %v5212_v32 = vshrl.u32 %v14760_v45, %v5200_v26 }
 0x523   :  { %v5204_v48 = vor.u32 %v5203_v21, %v5202_v49  ;;  %v5207_v24 = vor.u32 %v5206_v9, %v5205_v58  ;;  %v5208_v23 = vshll.u32 %v14758_v27, %v5199_v17  ;;  %v5215_v43 = vshrl.u32 %v14761_v57, %v5200_v26 }
 0x524   :  { %v5060_v36 = vmul.f32 %v5059_v10, %v5057_v5  ;;  %v5143_v15 = vshrl.u32 %v5142_v35, 30  ;;  %v5213_v56 = vor.u32 %v5212_v32, %v5211_v2  ;;  %v768_v51 = vmul.f32 %v9135_v55, %v639_v22 }
 0x525   :  { %v5070_v16 = vadd.s32 3, %v5066_v14  ;;  %v5210_v46 = vor.u32 %v5209_v31, %v5208_v23  ;;  %v5214_v28 = vshll.u32 %v14760_v45, %v5199_v17  ;;  %v12713_v60 = vshll.u32 %v5193_v47, 8  ;;  %v14875_v31 = vld [vmem:[#allocation40_spill] sm:$0xff] }
 0x526   :  { %v5061_v34 = vxor.u32 2147483648, %v5060_v36  ;;  %v5144_v42 = vshll.u32 %v5143_v15, 30  ;;  %vm5217_vm10 = vcmp.lt.s32.totalorder %v12701_v41, 1  ;;  %vm5220_vm11 = vcmp.lt.s32.totalorder %v12701_v41, 4 }
 0x527   :  { %v5201_v1 = vshrl.u32 %v14756_v44, %v5200_v26  ;;  %v5216_v12 = vor.u32 %v5215_v43, %v5214_v28  ;;  %v5225_v0 = vsel %vm5217_vm10, %v5204_v48, %v5207_v24  ;;  %v5226_v7 = vsel %vm5220_vm11, %v5213_v56, 920167782 }
 0x528   :  { %v5062_v17 = vsel %vm4979_vm15, %v5061_v34, %v5060_v36  ;;  %v12724_v47 = vsub.s32 %v5141_v38, %v5144_v42  ;;  %vm5218_vm14 = vcmp.lt.s32.totalorder %v12701_v41, 2  ;;  %vm5219_vm13 = vcmp.lt.s32.totalorder %v12701_v41, 3 }
 0x529   :  { %v5065_v8 = vsel %vm12658_vm6, %v12464_v11, %v5062_v17  ;;  %v5167_v13 = vsub.s32 4, %v5143_v15  ;;  %v5222_v26 = vsel %vm5220_vm11, %v5210_v46, 2102212464  ;;  %v5227_v40 = vsel %vm5219_vm13, %v5210_v46, %v5226_v7 }
 0x52a   :  { %8404 = vcosq.f32 %v5065_v8  ;;  %v5147_v29 = vsub.s32 0, %v12724_v47  ;;  %v5228_v30 = vsel %vm5218_vm14, %v5225_v0, %v5227_v40  ;;  %v5229_v6 = vsel %vm5217_vm10, %v5207_v24, %v5210_v46 }
 0x52b   :  { %8406 = vsinq.f32 %v5065_v8  ;;  %v5230_v25 = vsel %vm5220_vm11, %v5216_v12, 1326507024  ;;  %v12743_v59 = vmul.u32.u64.low %v12713_v60, %v5228_v30  ;;  %v12744_v14 = vmul.u32.u64.high %v12713_v60, %v5228_v30, %v12743_v59 }
 0x52c   :  { %v5071_v3 = vand.u32 3, %v5070_v16  ;;  %v7882_v21 = vmin.u32 %v5147_v29, %v12724_v47  ;;  %v5221_v53 = vsel %vm5217_vm10, %v5201_v1, %v5204_v48  ;;  %v5231_v38 = vsel %vm5219_vm13, %v5213_v56, %v5230_v25 }
 0x52d   :  { %v5223_v49 = vsel %vm5219_vm13, %v5207_v24, %v5222_v26  ;;  %v5232_v10 = vsel %vm5218_vm14, %v5229_v6, %v5231_v38  ;;  %v831_v58 = vadd.f32 %v12603_v18, %v12600_v54  ;;  %v832_v9 = vadd.f32 %v768_v51, %v12596_v19 }
 0x52e   :  { %v12761_v22 = vmul.f32 %v9131_v50, %v14875_v31  ;;  %vm5083_vm15 = vcmp.lt.s32.totalorder %v12520_v61, 0  ;;  %v5149_v5 = vclz %v7882_v21  ;;  %v5224_v19 = vsel %vm5218_vm14, %v5221_v53, %v5223_v49 }
 0x52f   :  { %v5168_v35 = vsel %vm5083_vm15, %v5167_v13, %v5143_v15  ;;  %v12767_v2 = vmul.u32.u64.low %v12713_v60, %v5232_v10  ;;  %v12768_v32 = vmul.u32.u64.high %v12713_v60, %v5232_v10, %v12767_v2  ;;  %v12771_v48 = vadd.f32 %v9137_v52, %v831_v58 }
 0x530   :  { %v7883_v54 = vadd.s32 4294967294, %v5149_v5  ;;  %v5243_v18 = vadd.s32 1, %v12744_v14  ;;  %v12777_v24 = vadd.f32 %v9137_v52, %v832_v9  ;;  %vm5069_vm0 = vweird.f32 %v12464_v11  ;;  %v643_v5 = vpop.permute.xlu1 %642 }
 0x531   :  { %vm5072_vm1 = vcmp.lt.s32.totalorder %v5071_v3, 2  ;;  %vm12782_vm2 = vcmp.le.f32.partialorder %v5081_v33, 0.7853982  ;;  %v5292_v43 = vand.u32 2139095040, %v12771_v48  ;;  %vm5076_vm4 = vcmp.eq.s32.totalorder %v5071_v3, 2 }
 0x532   :  { %v5137_v41 = vadd.s32 %v12673_v4, %v12670_v63  ;;  %vm7884_vm8 = vcmp.lt.s32.totalorder %v7883_v54, 0  ;;  %v5289_v36 = vand.u32 2147483647, %v12771_v48  ;;  %v5170_v56 = vsel %vm12782_vm2, 0, %v5168_v35 }
 0x533   :  { %v5152_v15 = vsel %vm7884_vm8, 0, %v7883_v54  ;;  %v5240_v51 = vmul.u32 %v12713_v60, %v5224_v19  ;;  %vm5242_vm5 = vc.u32 %v12768_v32, %v12743_v59  ;;  %vm5187_vm3 = vcmp.lt.s32.totalorder %v12577_v39, 0 }
 0x534   :  { %v8405_v33 = vpop.eup %8404  ;;  %v5153_v16 = vsub.s32 32, %v5152_v15  ;;  %v5157_v46 = vsub.s32 4294967266, %v5152_v15  ;;  %v5244_v28 = vsel %vm5242_vm5, %v5243_v18, %v12744_v14  ;;  %v5396_v63 = vand.u32 2139095040, %v12777_v24 }
 0x535   :  { %v8407_v4 = vpop.eup %8406  ;;  %v5077_v34 = vxor.u32 2147483648, %v8405_v33  ;;  %v5154_v42 = vshll.u32 %v12724_v47, %v5152_v15  ;;  %v5245_v1 = vadd.s32 %v5244_v28, %v5240_v51  ;;  %v5293_v12 = vshrl.u32 %v5292_v43, 23 }
 0x536   :  { %v5074_v0 = vxor.u32 2147483648, %v8407_v4  ;;  %v5155_v60 = vshrl.u32 %v5137_v41, %v5153_v16  ;;  %v5158_v7 = vadd.s32 127, %v5157_v46  ;;  %v5296_v17 = vand.u32 8388607, %v5289_v36 }
 0x537   :  { %vm5073_vm6 = vcmp.eq.s32.totalorder %v5071_v3, 0  ;;  %v5078_v8 = vsel %vm5076_vm4, %v5077_v34, %v8407_v4  ;;  %v5246_v13 = vadd.s32 536870912, %v5245_v1  ;;  %v7889_v26 = vadd.s32 4294967169, %v5293_v12 }
 0x538   :  { %v5075_v40 = vsel %vm5073_vm6, %v8405_v33, %v5074_v0  ;;  %v5156_v29 = vor.u32 %v5155_v60, %v5154_v42  ;;  %v5159_v30 = vshll.u32 %v5158_v7, 23  ;;  %v5397_v6 = vshrl.u32 %v5396_v63, 23 }
 0x539   :  { %v5079_v25 = vsel %vm5072_vm1, %v5075_v40, %v5078_v8  ;;  %v5174_v47 = vadd.s32 3, %v5170_v56  ;;  %v5247_v14 = vshrl.u32 %v5246_v13, 30  ;;  %v5299_v21 = vadd.s32 1, %v7889_v26 }
 0x53a   :  { %v5080_v53 = vsel %vm5069_vm0, nan, %v5079_v25  ;;  %v5160_v38 = vor.u32 4788187, %v5159_v30  ;;  %v5297_v49 = vor.u32 8388608, %v5296_v17  ;;  %v7893_v10 = vadd.s32 4294967169, %v5397_v6 }
 0x53b   :  { %v7616_v58 = vmul.f32 1000.0, %v5080_v53  ;;  %v5248_v9 = vshll.u32 %v5247_v14, 30  ;;  %v5271_v31 = vsub.s32 4, %v5247_v14  ;;  %vm5300_vm9 = vcmp.gt.s32.totalorder %v5299_v21, 0 }
 0x53c   :  { %v5161_v35 = vand.u32 2147483647, %v5160_v38  ;;  %v5163_v2 = vcvt.s32.f32 %v5156_v29  ;;  %v5301_v54 = vsel %vm5300_vm9, %v5299_v21, 0  ;;  %v5393_v3 = vand.u32 2147483647, %v12777_v24 }
 0x53d   :  { %7680 = vst [vmem:[#allocation2 + $0x138] sm:$0xff] %v7616_v58  ;;  %v12806_v19 = vsub.s32 %v5245_v1, %v5248_v9  ;;  %v12810_v11 = vsel %vm5187_vm3, %v5271_v31, %v5247_v14  ;;  %v5303_v18 = vand.u32 31, %v5301_v54  ;;  %v12812_v43 = vadd.s32 1, %v7893_v10 }
 0x53e   :  { %v5164_v41 = vmul.f32 %v5163_v2, %v5161_v35  ;;  %v12814_v15 = vand.u32 3, %v5174_v47  ;;  %vm12818_vm7 = vcmp.le.f32.partialorder %v5185_v20, 0.7853982  ;;  %v12823_v51 = vmul.f32 %v9135_v55, %v643_v5 }
 0x53f   :  { %v5241_v33 = vadd.s32 %v12743_v59, %v12768_v32  ;;  %v5251_v16 = vsub.s32 0, %v12806_v19  ;;  %v5304_v46 = vsub.s32 32, %v5303_v18  ;;  %v12828_v28 = vshll.u32 %v5297_v49, 8 }
 0x540   :  { %v5165_v63 = vxor.u32 2147483648, %v5164_v41  ;;  %v5274_v4 = vsel %vm12818_vm7, 0, %v12810_v11  ;;  %v5302_v20 = vshrl.u32 %v5301_v54, 5  ;;  %v12835_v34 = vand.u32 8388607, %v5393_v3 }
 0x541   :  { %v7886_v42 = vmin.u32 %v5251_v16, %v12806_v19  ;;  %v5306_v1 = vshll.u32 %v14756_v44, %v5303_v18  ;;  %v5307_v59 = vshrl.u32 %v14757_v62, %v5304_v46  ;;  %vm5404_vm12 = vcmp.gt.s32.totalorder %v12812_v43, 0 }
 0x542   :  { %v5166_v32 = vsel %vm5083_vm15, %v5165_v63, %v5164_v41  ;;  %v5310_v12 = vshrl.u32 %v14758_v27, %v5304_v46  ;;  %v5313_v0 = vshrl.u32 %v14759_v37, %v5304_v46  ;;  %v5316_v60 = vshrl.u32 %v14760_v45, %v5304_v46 }
 0x543   :  { %v5169_v7 = vsel %vm12782_vm2, %v12520_v61, %v5166_v32  ;;  %v5253_v17 = vclz %v7886_v42  ;;  %v5309_v8 = vshll.u32 %v14757_v62, %v5303_v18  ;;  %v5312_v13 = vshll.u32 %v14758_v27, %v5303_v18 }
 0x544   :  { %8408 = vcosq.f32 %v5169_v7  ;;  %v5305_v26 = vshrl.u32 %v14756_v44, %v5304_v46  ;;  %v5308_v40 = vor.u32 %v5307_v59, %v5306_v1  ;;  %v5315_v29 = vshll.u32 %v14759_v37, %v5303_v18 }
 0x545   :  { %8410 = vsinq.f32 %v5169_v7  ;;  %v7887_v30 = vadd.s32 4294967294, %v5253_v17  ;;  %v5311_v6 = vor.u32 %v5310_v12, %v5309_v8  ;;  %v5314_v25 = vor.u32 %v5313_v0, %v5312_v13 }
 0x546   :  { %v5317_v47 = vor.u32 %v5316_v60, %v5315_v29  ;;  %v5318_v14 = vshll.u32 %v14760_v45, %v5303_v18  ;;  %v5319_v23 = vshrl.u32 %v14761_v57, %v5304_v46  ;;  %vm5321_vm10 = vcmp.lt.s32.totalorder %v5302_v20, 1 }
 0x547   :  { %vm7888_vm11 = vcmp.lt.s32.totalorder %v7887_v30, 0  ;;  %vm5322_vm14 = vcmp.lt.s32.totalorder %v5302_v20, 2  ;;  %vm5323_vm13 = vcmp.lt.s32.totalorder %v5302_v20, 3  ;;  %vm5324_vm15 = vcmp.lt.s32.totalorder %v5302_v20, 4 }
 0x548   :  { %vm5180_vm0 = vcmp.eq.s32.totalorder %v12814_v15, 2  ;;  %v5256_v21 = vsel %vm7888_vm11, 0, %v7887_v30  ;;  %v5320_v53 = vor.u32 %v5319_v23, %v5318_v14  ;;  %v5325_v38 = vsel %vm5321_vm10, %v5305_v26, %v5308_v40 }
 0x549   :  { %v5326_v49 = vsel %vm5324_vm15, %v5314_v25, 2102212464  ;;  %vm5177_vm1 = vcmp.eq.s32.totalorder %v12814_v15, 0  ;;  %v5257_v10 = vsub.s32 32, %v5256_v21  ;;  %v5261_v58 = vsub.s32 4294967266, %v5256_v21 }
 0x54a   :  { %v5327_v9 = vsel %vm5323_vm13, %v5311_v6, %v5326_v49  ;;  %v5329_v31 = vsel %vm5321_vm10, %v5308_v40, %v5311_v6  ;;  %vm5176_vm2 = vcmp.lt.s32.totalorder %v12814_v15, 2  ;;  %v5258_v5 = vshll.u32 %v12806_v19, %v5256_v21 }
 0x54b   :  { %v5330_v35 = vsel %vm5324_vm15, %v5317_v47, 920167782  ;;  %v5333_v2 = vsel %vm5321_vm10, %v5311_v6, %v5314_v25  ;;  %v5334_v54 = vsel %vm5324_vm15, %v5320_v53, 1326507024  ;;  %vm5173_vm4 = vweird.f32 %v12520_v61 }
 0x54c   :  { %v5259_v18 = vshrl.u32 %v5241_v33, %v5257_v10  ;;  %v5262_v41 = vadd.s32 127, %v5261_v58  ;;  %v5331_v16 = vsel %vm5323_vm13, %v5314_v25, %v5330_v35  ;;  %v5335_v46 = vsel %vm5323_vm13, %v5317_v47, %v5334_v54 }
 0x54d   :  { %v5328_v63 = vsel %vm5322_vm14, %v5325_v38, %v5327_v9  ;;  %v5332_v42 = vsel %vm5322_vm14, %v5329_v31, %v5331_v16  ;;  %v5336_v1 = vsel %vm5322_vm14, %v5333_v2, %v5335_v46  ;;  %v5405_v19 = vsel %vm5404_vm12, %v12812_v43, 0 }
 0x54e   :  { %v5260_v59 = vor.u32 %v5259_v18, %v5258_v5  ;;  %v5263_v32 = vshll.u32 %v5262_v41, 23  ;;  %v12873_v12 = vmul.u32.u64.low %v12828_v28, %v5336_v1  ;;  %v12874_v33 = vmul.u32.u64.high %v12828_v28, %v5336_v1, %v12873_v12  ;;  %v8409_v0 = vpop.eup %8408 }
 0x54f   :  { %v12877_v60 = vmul.u32.u64.low %v12828_v28, %v5332_v42  ;;  %v12878_v7 = vmul.u32.u64.high %v12828_v28, %v5332_v42, %v12877_v60  ;;  %v5407_v17 = vand.u32 31, %v5405_v19  ;;  %v12883_v20 = vadd.f32 %v12823_v51, %v12761_v22  ;;  %v8411_v8 = vpop.eup %8410 }
 0x550   :  { %v5181_v13 = vxor.u32 2147483648, %v8409_v0  ;;  %v5264_v43 = vor.u32 4788187, %v5263_v32  ;;  %v5278_v26 = vadd.s32 3, %v5274_v4  ;;  %v5401_v40 = vor.u32 8388608, %v12835_v34 }
 0x551   :  { %v5178_v29 = vxor.u32 2147483648, %v8411_v8  ;;  %v5344_v30 = vmul.u32 %v12828_v28, %v5328_v63  ;;  %v12891_v6 = vshrl.u32 %v5405_v19, 5  ;;  %v5408_v25 = vsub.s32 32, %v5407_v17 }
 0x552   :  { %v5182_v22 = vsel %vm5180_vm0, %v5181_v13, %v8411_v8  ;;  %v5265_v51 = vand.u32 2147483647, %v5264_v43  ;;  %v5267_v47 = vcvt.s32.f32 %v5260_v59  ;;  %vm5346_vm8 = vc.u32 %v12874_v33, %v12877_v60 }
 0x553   :  { %v5179_v11 = vsel %vm5177_vm1, %v8409_v0, %v5178_v29  ;;  %v5347_v4 = vadd.s32 1, %v12878_v7  ;;  %v5410_v34 = vshll.u32 %v14756_v44, %v5407_v17  ;;  %v5411_v28 = vshrl.u32 %v14757_v62, %v5408_v25 }
 0x554   :  { %v5183_v14 = vsel %vm5176_vm2, %v5179_v11, %v5182_v22  ;;  %v5268_v23 = vmul.f32 %v5267_v47, %v5265_v51  ;;  %v5413_v21 = vshll.u32 %v14757_v62, %v5407_v17  ;;  %v5414_v53 = vshrl.u32 %v14758_v27, %v5408_v25  ;;  %v647_v11 = vpop.permute.xlu0 %646 }
 0x555   :  { %v5184_v38 = vsel %vm5173_vm4, nan, %v5183_v14  ;;  %v5348_v49 = vsel %vm5346_vm8, %v5347_v4, %v12878_v7  ;;  %v5416_v10 = vshll.u32 %v14758_v27, %v5407_v17  ;;  %v5417_v58 = vshrl.u32 %v14759_v37, %v5408_v25 }
 0x556   :  { %v7617_v9 = vmul.f32 1000.0, %v5184_v38  ;;  %v5269_v31 = vxor.u32 2147483648, %v5268_v23  ;;  %v5349_v5 = vadd.s32 %v5348_v49, %v5344_v30  ;;  %v5412_v35 = vor.u32 %v5411_v28, %v5410_v34 }
 0x557   :  { %v5415_v15 = vor.u32 %v5414_v53, %v5413_v21  ;;  %v5418_v2 = vor.u32 %v5417_v58, %v5416_v10  ;;  %v5419_v54 = vshll.u32 %v14759_v37, %v5407_v17  ;;  %v5420_v18 = vshrl.u32 %v14760_v45, %v5408_v25 }
 0x558   :  { %7681 = vst [vmem:[#allocation2 + $0x140] sm:$0xff] %v7617_v9  ;;  %v5270_v61 = vsel %vm5187_vm3, %v5269_v31, %v5268_v23  ;;  %v5350_v41 = vadd.s32 536870912, %v5349_v5  ;;  %v5422_v16 = vshll.u32 %v14760_v45, %v5407_v17  ;;  %v5423_v46 = vshrl.u32 %v14761_v57, %v5408_v25  ;;  %v14880_v23 = vld [vmem:[#allocation39_spill] sm:$0xff] }
 0x559   :  { %v5273_v63 = vsel %vm12818_vm7, %v12577_v39, %v5270_v61  ;;  %v12920_v42 = vand.u32 3, %v5278_v26  ;;  %v5421_v1 = vor.u32 %v5420_v18, %v5419_v54  ;;  %v5441_v19 = vshll.u32 %v5401_v40, 8 }
 0x55a   :  { %8412 = vcosq.f32 %v5273_v63  ;;  %v5351_v59 = vshrl.u32 %v5350_v41, 30  ;;  %v5424_v32 = vor.u32 %v5423_v46, %v5422_v16  ;;  %vm5425_vm5 = vcmp.lt.s32.totalorder %v12891_v6, 1 }
 0x55b   :  { %8414 = vsinq.f32 %v5273_v63  ;;  %v5409_v12 = vshrl.u32 %v14756_v44, %v5408_v25  ;;  %vm5428_vm3 = vcmp.lt.s32.totalorder %v12891_v6, 4  ;;  %v5433_v0 = vsel %vm5425_vm5, %v5412_v35, %v5415_v15 }
 0x55c   :  { %v5352_v7 = vshll.u32 %v5351_v59, 30  ;;  %vm5427_vm6 = vcmp.lt.s32.totalorder %v12891_v6, 3  ;;  %v5430_v56 = vsel %vm5428_vm3, %v5418_v2, 2102212464  ;;  %v5434_v17 = vsel %vm5428_vm3, %v5421_v1, 920167782 }
 0x55d   :  { %vm5426_vm9 = vcmp.lt.s32.totalorder %v12891_v6, 2  ;;  %v5435_v8 = vsel %vm5427_vm6, %v5418_v2, %v5434_v17  ;;  %v5437_v13 = vsel %vm5425_vm5, %v5415_v15, %v5418_v2  ;;  %v5438_v43 = vsel %vm5428_vm3, %v5424_v32, 1326507024 }
 0x55e   :  { %v12927_v26 = vsub.s32 %v5349_v5, %v5352_v7  ;;  %v5429_v40 = vsel %vm5425_vm5, %v5409_v12, %v5412_v35  ;;  %v5436_v29 = vsel %vm5426_vm9, %v5433_v0, %v5435_v8  ;;  %v5439_v30 = vsel %vm5427_vm6, %v5421_v1, %v5438_v43 }
 0x55f   :  { %v5431_v25 = vsel %vm5427_vm6, %v5415_v15, %v5430_v56  ;;  %v5440_v22 = vsel %vm5426_vm9, %v5437_v13, %v5439_v30  ;;  %v12933_v51 = vmul.u32.u64.low %v5441_v19, %v5436_v29  ;;  %v12934_v47 = vmul.u32.u64.high %v5441_v19, %v5436_v29, %v12933_v51 }
 0x560   :  { %v5355_v4 = vsub.s32 0, %v12927_v26  ;;  %v5375_v34 = vsub.s32 4, %v5351_v59  ;;  %v12938_v28 = vmul.u32.u64.low %v5441_v19, %v5440_v22  ;;  %v12939_v14 = vmul.u32.u64.high %v5441_v19, %v5440_v22, %v12938_v28 }
 0x561   :  { %v446_v21 = vmul.f32 %v9131_v50, %v14880_v23  ;;  %v12945_v53 = vadd.f32 %v9137_v52, %v12883_v20  ;;  %vm5277_vm7 = vweird.f32 %v12577_v39  ;;  %v5432_v49 = vsel %vm5426_vm9, %v5429_v40, %v5431_v25 }
 0x562   :  { %v7890_v38 = vmin.u32 %v5355_v4, %v12927_v26  ;;  %v770_v10 = vmul.f32 %v9135_v55, %v647_v11  ;;  %vm12954_vm12 = vcmp.le.f32.partialorder %v5289_v36, 0.7853982  ;;  %vm5291_vm10 = vcmp.lt.s32.totalorder %v12771_v48, 0 }
 0x563   :  { %v5451_v20 = vadd.s32 1, %v12934_v47  ;;  %v5500_v9 = vand.u32 2139095040, %v12945_v53  ;;  %vm5280_vm11 = vcmp.lt.s32.totalorder %v12920_v42, 2  ;;  %vm5284_vm14 = vcmp.eq.s32.totalorder %v12920_v42, 2 }
 0x564   :  { %v8413_v31 = vpop.eup %8412  ;;  %v5357_v6 = vclz %v7890_v38  ;;  %v5376_v5 = vsel %vm5291_vm10, %v5375_v34, %v5351_v59  ;;  %v5448_v15 = vmul.u32 %v5441_v19, %v5432_v49  ;;  %vm5450_vm13 = vc.u32 %v12939_v14, %v12933_v51 }
 0x565   :  { %v8415_v35 = vpop.eup %8414  ;;  %v5285_v36 = vxor.u32 2147483648, %v8413_v31  ;;  %v5497_v2 = vand.u32 2147483647, %v12945_v53  ;;  %v5452_v61 = vsel %vm5450_vm13, %v5451_v20, %v12934_v47  ;;  %v5501_v41 = vshrl.u32 %v5500_v9, 23 }
 0x566   :  { %v5282_v54 = vxor.u32 2147483648, %v8415_v35  ;;  %v7891_v18 = vadd.s32 4294967294, %v5357_v6  ;;  %vm5281_vm15 = vcmp.eq.s32.totalorder %v12920_v42, 0  ;;  %v5453_v46 = vadd.s32 %v5452_v61, %v5448_v15 }
 0x567   :  { %v5286_v16 = vsel %vm5284_vm14, %v5285_v36, %v8415_v35  ;;  %v834_v63 = vadd.f32 %v770_v10, %v446_v21  ;;  %v5378_v19 = vsel %vm12954_vm12, 0, %v5376_v5  ;;  %v7897_v59 = vadd.s32 4294967169, %v5501_v41 }
 0x568   :  { %v5283_v1 = vsel %vm5281_vm15, %v8413_v31, %v5282_v54  ;;  %vm7892_vm0 = vcmp.lt.s32.totalorder %v7891_v18, 0  ;;  %v5454_v0 = vadd.s32 536870912, %v5453_v46  ;;  %v5504_v7 = vand.u32 8388607, %v5497_v2 }
 0x569   :  { %v5287_v32 = vsel %vm5280_vm11, %v5283_v1, %v5286_v16  ;;  %v5360_v12 = vsel %vm7892_vm0, 0, %v7891_v18  ;;  %v5345_v17 = vadd.s32 %v12877_v60, %v12874_v33  ;;  %v5507_v29 = vadd.s32 1, %v7897_v59 }
 0x56a   :  { %v5288_v56 = vsel %vm5277_vm7, nan, %v5287_v32  ;;  %v5361_v8 = vsub.s32 32, %v5360_v12  ;;  %v5365_v13 = vsub.s32 4294967266, %v5360_v12  ;;  %v5455_v40 = vshrl.u32 %v5454_v0, 30 }
 0x56b   :  { %v7618_v43 = vmul.f32 1000.0, %v5288_v56  ;;  %v12981_v30 = vadd.f32 %v9137_v52, %v834_v63  ;;  %v5362_v42 = vshll.u32 %v12927_v26, %v5360_v12  ;;  %v5382_v47 = vadd.s32 3, %v5378_v19 }
 0x56c   :  { %v5363_v25 = vshrl.u32 %v5345_v17, %v5361_v8  ;;  %v5366_v22 = vadd.s32 127, %v5365_v13  ;;  %v5456_v11 = vshll.u32 %v5455_v40, 30  ;;  %v5479_v39 = vsub.s32 4, %v5455_v40 }
 0x56d   :  { %7682 = vst [vmem:[#allocation2 + $0x148] sm:$0xff] %v7618_v43  ;;  %v5505_v4 = vor.u32 8388608, %v5504_v7  ;;  %vm5508_vm1 = vcmp.gt.s32.totalorder %v5507_v29, 0  ;;  %vm5395_vm2 = vcmp.lt.s32.totalorder %v12777_v24, 0  ;;  %v5604_v26 = vand.u32 2139095040, %v12981_v30 }
 0x56e   :  { %v5364_v34 = vor.u32 %v5363_v25, %v5362_v42  ;;  %v5367_v33 = vshll.u32 %v5366_v22, 23  ;;  %v5509_v60 = vsel %vm5508_vm1, %v5507_v29, 0  ;;  %v12985_v28 = vsub.s32 %v5453_v46, %v5456_v11 }
 0x56f   :  { %v5480_v23 = vsel %vm5395_vm2, %v5479_v39, %v5455_v40  ;;  %v5511_v21 = vand.u32 31, %v5509_v60  ;;  %v12990_v49 = vand.u32 3, %v5382_v47  ;;  %vm12994_vm4 = vcmp.le.f32.partialorder %v5393_v3, 0.7853982 }
 0x570   :  { %v5368_v38 = vor.u32 4788187, %v5367_v33  ;;  %v5449_v20 = vadd.s32 %v12933_v51, %v12939_v14  ;;  %v5459_v9 = vsub.s32 0, %v12985_v28  ;;  %v13001_v6 = vshll.u32 %v5505_v4, 8 }
 0x571   :  { %v5512_v31 = vsub.s32 32, %v5511_v21  ;;  %v5371_v35 = vcvt.s32.f32 %v5364_v34  ;;  %v5482_v36 = vsel %vm12994_vm4, 0, %v5480_v23  ;;  %v5601_v15 = vand.u32 2147483647, %v12981_v30 }
 0x572   :  { %v5369_v5 = vand.u32 2147483647, %v5368_v38  ;;  %v7894_v3 = vmin.u32 %v5459_v9, %v12985_v28  ;;  %v5510_v54 = vshrl.u32 %v5509_v60, 5  ;;  %v5605_v61 = vshrl.u32 %v5604_v26, 23 }
 0x573   :  { %v5515_v18 = vshrl.u32 %v14757_v62, %v5512_v31  ;;  %v5518_v51 = vshrl.u32 %v14758_v27, %v5512_v31  ;;  %v5521_v14 = vshrl.u32 %v14759_v37, %v5512_v31  ;;  %v5524_v16 = vshrl.u32 %v14760_v45, %v5512_v31 }
 0x574   :  { %v5372_v41 = vmul.f32 %v5371_v35, %v5369_v5  ;;  %v5461_v46 = vclz %v7894_v3  ;;  %v5486_v63 = vadd.s32 3, %v5482_v36  ;;  %v5514_v1 = vshll.u32 %v14756_v44, %v5511_v21  ;;  %v651_v5 = vpop.permute.xlu1 %650 }
 0x575   :  { %v5517_v19 = vshll.u32 %v14757_v62, %v5511_v21  ;;  %v5513_v32 = vshrl.u32 %v14756_v44, %v5512_v31  ;;  %v5520_v12 = vshll.u32 %v14758_v27, %v5511_v21  ;;  %v5523_v0 = vshll.u32 %v14759_v37, %v5511_v21 }
 0x576   :  { %v5373_v59 = vxor.u32 2147483648, %v5372_v41  ;;  %v7895_v7 = vadd.s32 4294967294, %v5461_v46  ;;  %v5516_v56 = vor.u32 %v5515_v18, %v5514_v1  ;;  %v5527_v8 = vshrl.u32 %v14761_v57, %v5512_v31 }
 0x577   :  { %v5519_v17 = vor.u32 %v5518_v51, %v5517_v19  ;;  %v5522_v43 = vor.u32 %v5521_v14, %v5520_v12  ;;  %v5525_v40 = vor.u32 %v5524_v16, %v5523_v0  ;;  %v5526_v29 = vshll.u32 %v14760_v45, %v5511_v21 }
 0x578   :  { %v5374_v13 = vsel %vm5291_vm10, %v5373_v59, %v5372_v41  ;;  %vm7896_vm8 = vcmp.lt.s32.totalorder %v7895_v7, 0  ;;  %vm5529_vm5 = vcmp.lt.s32.totalorder %v5510_v54, 1  ;;  %vm5530_vm3 = vcmp.lt.s32.totalorder %v5510_v54, 2 }
 0x579   :  { %v5377_v42 = vsel %vm12954_vm12, %v12771_v48, %v5374_v13  ;;  %v5464_v25 = vsel %vm7896_vm8, 0, %v7895_v7  ;;  %v5528_v22 = vor.u32 %v5527_v8, %v5526_v29  ;;  %vm5531_vm6 = vcmp.lt.s32.totalorder %v5510_v54, 3 }
 0x57a   :  { %8416 = vcosq.f32 %v5377_v42  ;;  %v5465_v47 = vsub.s32 32, %v5464_v25  ;;  %v5469_v11 = vsub.s32 4294967266, %v5464_v25  ;;  %vm5532_vm9 = vcmp.lt.s32.totalorder %v5510_v54, 4 }
 0x57b   :  { %8418 = vsinq.f32 %v5377_v42  ;;  %v5466_v39 = vshll.u32 %v12985_v28, %v5464_v25  ;;  %v5534_v4 = vsel %vm5532_vm9, %v5522_v43, 2102212464  ;;  %v5537_v34 = vsel %vm5529_vm5, %v5516_v56, %v5519_v17 }
 0x57c   :  { %v5538_v33 = vsel %vm5532_vm9, %v5525_v40, 920167782  ;;  %v5467_v60 = vshrl.u32 %v5449_v20, %v5465_v47  ;;  %v5470_v58 = vadd.s32 127, %v5469_v11  ;;  %v5541_v21 = vsel %vm5529_vm5, %v5519_v17, %v5522_v43 }
 0x57d   :  { %v5539_v23 = vsel %vm5531_vm6, %v5522_v43, %v5538_v33  ;;  %v5533_v26 = vsel %vm5529_vm5, %v5513_v32, %v5516_v56  ;;  %v5542_v9 = vsel %vm5532_vm9, %v5528_v22, 1326507024  ;;  %v7901_v31 = vadd.s32 4294967169, %v5605_v61 }
 0x57e   :  { %v5540_v38 = vsel %vm5530_vm3, %v5537_v34, %v5539_v23  ;;  %v5468_v35 = vor.u32 %v5467_v60, %v5466_v39  ;;  %v5471_v36 = vshll.u32 %v5470_v58, 23  ;;  %v5535_v28 = vsel %vm5531_vm6, %v5519_v17, %v5534_v4 }
 0x57f   :  { %v5543_v3 = vsel %vm5531_vm6, %v5525_v40, %v5542_v9  ;;  %v13033_v18 = vmul.u32.u64.low %v13001_v6, %v5540_v38  ;;  %v13034_v41 = vmul.u32.u64.high %v13001_v6, %v5540_v38, %v13033_v18  ;;  %v5611_v51 = vadd.s32 1, %v7901_v31 }
 0x580   :  { %v5544_v20 = vsel %vm5530_vm3, %v5541_v21, %v5543_v3  ;;  %vm5381_vm7 = vweird.f32 %v12771_v48  ;;  %v5472_v14 = vor.u32 4788187, %v5471_v36  ;;  %v13043_v46 = vmul.f32 %v9135_v55, %v651_v5  ;;  %v14885_v3 = vld [vmem:[#allocation41_spill] sm:$0xff] }
 0x581   :  { %v13039_v61 = vmul.u32.u64.low %v13001_v6, %v5544_v20  ;;  %v13040_v16 = vmul.u32.u64.high %v13001_v6, %v5544_v20, %v13039_v61  ;;  %vm5384_vm12 = vcmp.lt.s32.totalorder %v12990_v49, 2  ;;  %v5536_v1 = vsel %vm5530_vm3, %v5533_v26, %v5535_v28 }
 0x582   :  { %v13049_v19 = vand.u32 8388607, %v5601_v15  ;;  %vm5612_vm10 = vcmp.gt.s32.totalorder %v5611_v51, 0  ;;  %vm5385_vm11 = vcmp.eq.s32.totalorder %v12990_v49, 0  ;;  %v5473_v59 = vand.u32 2147483647, %v5472_v14 }
 0x583   :  { %v5475_v32 = vcvt.s32.f32 %v5468_v35  ;;  %v5613_v12 = vsel %vm5612_vm10, %v5611_v51, 0  ;;  %vm5388_vm14 = vcmp.eq.s32.totalorder %v12990_v49, 2  ;;  %v13053_v7 = vand.u32 3, %v5486_v63  ;;  %v655_v35 = vpop.permute.xlu0 %654  ;;  %v14886_v14 = vld [vmem:[#allocation42_spill] sm:$0xff] }
 0x584   :  { %v8417_v0 = vpop.eup %8416  ;;  %v5555_v56 = vadd.s32 1, %v13034_v41  ;;  %v5615_v17 = vand.u32 31, %v5613_v12  ;;  %v5552_v43 = vmul.u32 %v13001_v6, %v5536_v1  ;;  %vm5554_vm13 = vc.u32 %v13040_v16, %v13033_v18 }
 0x585   :  { %v8419_v54 = vpop.eup %8418  ;;  %v5389_v8 = vxor.u32 2147483648, %v8417_v0  ;;  %v5476_v13 = vmul.f32 %v5475_v32, %v5473_v59  ;;  %v5609_v42 = vor.u32 8388608, %v13049_v19  ;;  %v13061_v11 = vshrl.u32 %v5613_v12, 5 }
 0x586   :  { %v5386_v40 = vxor.u32 2147483648, %v8419_v54  ;;  %v5556_v29 = vsel %vm5554_vm13, %v5555_v56, %v13034_v41  ;;  %v5616_v25 = vsub.s32 32, %v5615_v17  ;;  %v5618_v4 = vshll.u32 %v14756_v44, %v5615_v17 }
 0x587   :  { %v5390_v22 = vsel %vm5388_vm14, %v5389_v8, %v8419_v54  ;;  %v5477_v63 = vxor.u32 2147483648, %v5476_v13  ;;  %v5557_v47 = vadd.s32 %v5556_v29, %v5552_v43  ;;  %v5621_v23 = vshll.u32 %v14757_v62, %v5615_v17 }
 0x588   :  { %v5387_v39 = vsel %vm5385_vm11, %v8417_v0, %v5386_v40  ;;  %v5619_v6 = vshrl.u32 %v14757_v62, %v5616_v25  ;;  %v5622_v34 = vshrl.u32 %v14758_v27, %v5616_v25  ;;  %v5624_v9 = vshll.u32 %v14758_v27, %v5615_v17 }
 0x589   :  { %v5391_v33 = vsel %vm5384_vm12, %v5387_v39, %v5390_v22  ;;  %v5478_v60 = vsel %vm5395_vm2, %v5477_v63, %v5476_v13  ;;  %v5558_v58 = vadd.s32 536870912, %v5557_v47  ;;  %v5625_v5 = vshrl.u32 %v14759_v37, %v5616_v25 }
 0x58a   :  { %v5392_v21 = vsel %vm5381_vm7, nan, %v5391_v33  ;;  %v5481_v26 = vsel %vm12994_vm4, %v12777_v24, %v5478_v60  ;;  %v5620_v38 = vor.u32 %v5619_v6, %v5618_v4  ;;  %v5623_v36 = vor.u32 %v5622_v34, %v5621_v23 }
 0x58b   :  { %v7619_v31 = vmul.f32 1000.0, %v5392_v21  ;;  %8420 = vcosq.f32 %v5481_v26  ;;  %v5559_v49 = vshrl.u32 %v5558_v58, 30  ;;  %v5627_v28 = vshll.u32 %v14759_v37, %v5615_v17 }
 0x58c   :  { %8422 = vsinq.f32 %v5481_v26  ;;  %v5628_v48 = vshrl.u32 %v14760_v45, %v5616_v25  ;;  %v448_v20 = vmul.f32 %v9131_v50, %v14885_v3  ;;  %v5630_v41 = vshll.u32 %v14760_v45, %v5615_v17 }
 0x58d   :  { %7683 = vst [vmem:[#allocation2 + $0x150] sm:$0xff] %v7619_v31  ;;  %v5560_v10 = vshll.u32 %v5559_v49, 30  ;;  %v5631_v51 = vshrl.u32 %v14761_v57, %v5616_v25  ;;  %v447_v61 = vmul.f32 %v9131_v50, %v14886_v14  ;;  %v5626_v1 = vor.u32 %v5625_v5, %v5624_v9 }
 0x58e   :  { %v5629_v19 = vor.u32 %v5628_v48, %v5627_v28  ;;  %v772_v59 = vmul.f32 %v9135_v55, %v655_v35  ;;  %vm5499_vm15 = vcmp.lt.s32.totalorder %v12945_v53, 0  ;;  %vm5633_vm0 = vcmp.lt.s32.totalorder %v13061_v11, 1 }
 0x58f   :  { %v13090_v32 = vsub.s32 %v5557_v47, %v5560_v10  ;;  %v5632_v12 = vor.u32 %v5631_v51, %v5630_v41  ;;  %vm5489_vm1 = vcmp.eq.s32.totalorder %v13053_v7, 0  ;;  %vm5636_vm2 = vcmp.lt.s32.totalorder %v13061_v11, 4 }
 0x590   :  { %v5641_v0 = vsel %vm5633_vm0, %v5620_v38, %v5623_v36  ;;  %v5649_v56 = vshll.u32 %v5609_v42, 8  ;;  %v835_v17 = vadd.f32 %v13043_v46, %v447_v61  ;;  %vm5488_vm4 = vcmp.lt.s32.totalorder %v13053_v7, 2 }
 0x591   :  { %v5563_v54 = vsub.s32 0, %v13090_v32  ;;  %vm5634_vm8 = vcmp.lt.s32.totalorder %v13061_v11, 2  ;;  %vm5635_vm5 = vcmp.lt.s32.totalorder %v13061_v11, 3  ;;  %v5642_v8 = vsel %vm5636_vm2, %v5629_v19, 920167782 }
 0x592   :  { %vm5485_vm3 = vweird.f32 %v12777_v24  ;;  %v5638_v13 = vsel %vm5636_vm2, %v5626_v1, 2102212464  ;;  %v5643_v43 = vsel %vm5635_vm5, %v5626_v1, %v5642_v8  ;;  %v5645_v40 = vsel %vm5633_vm0, %v5623_v36, %v5626_v1 }
 0x593   :  { %v5646_v29 = vsel %vm5636_vm2, %v5632_v12, 1326507024  ;;  %v7898_v46 = vmin.u32 %v5563_v54, %v13090_v32  ;;  %v5617_v42 = vshrl.u32 %v14756_v44, %v5616_v25  ;;  %v5644_v22 = vsel %vm5634_vm8, %v5641_v0, %v5643_v43 }
 0x594   :  { %v5647_v63 = vsel %vm5635_vm5, %v5629_v19, %v5646_v29  ;;  %v5583_v47 = vsub.s32 4, %v5559_v49  ;;  %v13115_v4 = vmul.u32.u64.low %v5649_v56, %v5644_v22  ;;  %v13116_v6 = vmul.u32.u64.high %v5649_v56, %v5644_v22, %v13115_v4 }
 0x595   :  { %v5648_v39 = vsel %vm5634_vm8, %v5645_v40, %v5647_v63  ;;  %v8421_v34 = vpop.eup %8420  ;;  %v5565_v33 = vclz %v7898_v46  ;;  %v5637_v60 = vsel %vm5633_vm0, %v5617_v42, %v5620_v38  ;;  %v5639_v25 = vsel %vm5635_vm5, %v5623_v36, %v5638_v13  ;;  %v14889_v63 = vld [vmem:[#allocation43_spill] sm:$0xff] }
 0x596   :  { %v836_v58 = vadd.f32 %v772_v59, %v448_v20  ;;  %v8423_v23 = vpop.eup %8422  ;;  %v5493_v21 = vxor.u32 2147483648, %v8421_v34  ;;  %v13123_v26 = vmul.u32.u64.low %v5649_v56, %v5648_v39  ;;  %v13124_v9 = vmul.u32.u64.high %v5649_v56, %v5648_v39, %v13123_v26 }
 0x597   :  { %v13127_v31 = vadd.f32 %v9137_v52, %v835_v17  ;;  %v5490_v5 = vxor.u32 2147483648, %v8423_v23  ;;  %vm5492_vm6 = vcmp.eq.s32.totalorder %v13053_v7, 2  ;;  %v5553_v35 = vadd.s32 %v13033_v18, %v13040_v16 }
 0x598   :  { %v7899_v28 = vadd.s32 4294967294, %v5565_v33  ;;  %v5494_v38 = vsel %vm5492_vm6, %v5493_v21, %v8423_v23  ;;  %v5584_v36 = vsel %vm5499_vm15, %v5583_v47, %v5559_v49  ;;  %v5640_v48 = vsel %vm5634_vm8, %v5637_v60, %v5639_v25  ;;  %v14890_v23 = vld [vmem:[#allocation44_spill] sm:$0xff] }
 0x599   :  { %v5659_v3 = vadd.s32 1, %v13116_v6  ;;  %v5491_v20 = vsel %vm5489_vm1, %v8421_v34, %v5490_v5  ;;  %v5708_v10 = vand.u32 2139095040, %v13127_v31  ;;  %v13141_v41 = vadd.f32 %v9137_v52, %v836_v58  ;;  %v659_v34 = vpop.permute.xlu1 %658 }
 0x59a   :  { %vm7900_vm9 = vcmp.lt.s32.totalorder %v7899_v28, 0  ;;  %v5495_v18 = vsel %vm5488_vm4, %v5491_v20, %v5494_v38  ;;  %vm5658_vm7 = vc.u32 %v13124_v9, %v13115_v4  ;;  %v5705_v11 = vand.u32 2147483647, %v13127_v31 }
 0x59b   :  { %v5568_v16 = vsel %vm7900_vm9, 0, %v7899_v28  ;;  %v5496_v49 = vsel %vm5485_vm3, nan, %v5495_v18  ;;  %v5656_v61 = vmul.u32 %v5649_v56, %v5640_v48  ;;  %vm13152_vm12 = vcmp.le.f32.partialorder %v5497_v2, 0.7853982 }
 0x59c   :  { %v5569_v51 = vsub.s32 32, %v5568_v16  ;;  %v5573_v14 = vsub.s32 4294967266, %v5568_v16  ;;  %v7620_v1 = vmul.f32 1000.0, %v5496_v49  ;;  %v5660_v7 = vsel %vm5658_vm7, %v5659_v3, %v13116_v6 }
 0x59d   :  { %v5709_v59 = vshrl.u32 %v5708_v10, 23  ;;  %v5570_v12 = vshll.u32 %v13090_v32, %v5568_v16  ;;  %v5661_v54 = vadd.s32 %v5660_v7, %v5656_v61  ;;  %v5586_v24 = vsel %vm13152_vm12, 0, %v5584_v36 }
 0x59e   :  { %v5571_v0 = vshrl.u32 %v5553_v35, %v5569_v51  ;;  %v5574_v17 = vadd.s32 127, %v5573_v14  ;;  %7684 = vst [vmem:[#allocation2 + $0x158] sm:$0xff] %v7620_v1  ;;  %v5712_v8 = vand.u32 8388607, %v5705_v11  ;;  %v5812_v2 = vand.u32 2139095040, %v13141_v41 }
 0x59f   :  { %v7905_v56 = vadd.s32 4294967169, %v5709_v59  ;;  %v5662_v40 = vadd.s32 536870912, %v5661_v54  ;;  %v5590_v32 = vadd.s32 3, %v5586_v24  ;;  %v13165_v47 = vmul.f32 %v9131_v50, %v14889_v63 }
 0x5a0   :  { %v5572_v13 = vor.u32 %v5571_v0, %v5570_v12  ;;  %v5575_v43 = vshll.u32 %v5574_v17, 23  ;;  %v5813_v46 = vshrl.u32 %v5812_v2, 23  ;;  %v5713_v39 = vor.u32 8388608, %v5712_v8 }
 0x5a1   :  { %v5715_v29 = vadd.s32 1, %v7905_v56  ;;  %v5663_v22 = vshrl.u32 %v5662_v40, 30  ;;  %v5809_v6 = vand.u32 2147483647, %v13141_v41  ;;  %v13170_v21 = vmul.f32 %v9131_v50, %v14890_v23 }
 0x5a2   :  { %v5576_v42 = vor.u32 4788187, %v5575_v43  ;;  %v5579_v60 = vcvt.s32.f32 %v5572_v13  ;;  %vm5603_vm11 = vcmp.lt.s32.totalorder %v12981_v30, 0  ;;  %v7909_v5 = vadd.s32 4294967169, %v5813_v46 }
 0x5a3   :  { %vm5716_vm10 = vcmp.gt.s32.totalorder %v5715_v29, 0  ;;  %v5664_v25 = vshll.u32 %v5663_v22, 30  ;;  %v13173_v28 = vand.u32 3, %v5590_v32  ;;  %v13178_v36 = vmul.f32 %v9135_v55, %v659_v34 }
 0x5a4   :  { %v5577_v33 = vand.u32 2147483647, %v5576_v42  ;;  %v5717_v58 = vsel %vm5716_vm10, %v5715_v29, 0  ;;  %v5657_v48 = vadd.s32 %v13115_v4, %v13124_v9  ;;  %v5687_v3 = vsub.s32 4, %v5663_v22 }
 0x5a5   :  { %v5719_v26 = vand.u32 31, %v5717_v58  ;;  %v13175_v38 = vsub.s32 %v5661_v54, %v5664_v25  ;;  %v13184_v10 = vand.u32 8388607, %v5809_v6  ;;  %v5718_v49 = vshrl.u32 %v5717_v58, 5 }
 0x5a6   :  { %v5580_v35 = vmul.f32 %v5579_v60, %v5577_v33  ;;  %v13187_v51 = vshll.u32 %v5713_v39, 8  ;;  %v5819_v7 = vadd.s32 1, %v7909_v5  ;;  %v13202_v17 = vsel %vm5603_vm11, %v5687_v3, %v5663_v22 }
 0x5a7   :  { %v5720_v20 = vsub.s32 32, %v5719_v26  ;;  %v5667_v16 = vsub.s32 0, %v13175_v38  ;;  %v5722_v59 = vshll.u32 %v14756_v44, %v5719_v26  ;;  %v5728_v12 = vshll.u32 %v14758_v27, %v5719_v26 }
 0x5a8   :  { %v5581_v18 = vxor.u32 2147483648, %v5580_v35  ;;  %v5725_v24 = vshll.u32 %v14757_v62, %v5719_v26  ;;  %v5731_v43 = vshll.u32 %v14759_v37, %v5719_v26  ;;  %v5734_v29 = vshll.u32 %v14760_v45, %v5719_v26 }
 0x5a9   :  { %v5723_v14 = vshrl.u32 %v14757_v62, %v5720_v20  ;;  %v5726_v61 = vshrl.u32 %v14758_v27, %v5720_v20  ;;  %v5729_v1 = vshrl.u32 %v14759_v37, %v5720_v20  ;;  %v7902_v9 = vmin.u32 %v5667_v16, %v13175_v38 }
 0x5aa   :  { %v5582_v4 = vsel %vm5499_vm15, %v5581_v18, %v5580_v35  ;;  %v5721_v54 = vshrl.u32 %v14756_v44, %v5720_v20  ;;  %v5732_v40 = vshrl.u32 %v14760_v45, %v5720_v20  ;;  %v5735_v46 = vshrl.u32 %v14761_v57, %v5720_v20 }
 0x5ab   :  { %v5585_v0 = vsel %vm13152_vm12, %v12945_v53, %v5582_v4  ;;  %v5669_v56 = vclz %v7902_v9  ;;  %v5724_v8 = vor.u32 %v5723_v14, %v5722_v59  ;;  %v5730_v2 = vor.u32 %v5729_v1, %v5728_v12 }
 0x5ac   :  { %8424 = vcosq.f32 %v5585_v0  ;;  %v5727_v13 = vor.u32 %v5726_v61, %v5725_v24  ;;  %vm5737_vm14 = vcmp.lt.s32.totalorder %v5718_v49, 1  ;;  %vm13212_vm13 = vcmp.le.f32.partialorder %v5601_v15, 0.7853982 }
 0x5ad   :  { %8426 = vsinq.f32 %v5585_v0  ;;  %v7903_v19 = vadd.s32 4294967294, %v5669_v56  ;;  %v5733_v32 = vor.u32 %v5732_v40, %v5731_v43  ;;  %vm5738_vm15 = vcmp.lt.s32.totalorder %v5718_v49, 2 }
 0x5ae   :  { %vm5739_vm0 = vcmp.lt.s32.totalorder %v5718_v49, 3  ;;  %vm5740_vm1 = vcmp.lt.s32.totalorder %v5718_v49, 4  ;;  %v5736_v22 = vor.u32 %v5735_v46, %v5734_v29  ;;  %v5741_v63 = vsel %vm5737_vm14, %v5721_v54, %v5724_v8 }
 0x5af   :  { %vm7904_vm2 = vcmp.lt.s32.totalorder %v7903_v19, 0  ;;  %v5742_v39 = vsel %vm5740_vm1, %v5730_v2, 2102212464  ;;  %v5745_v60 = vsel %vm5737_vm14, %v5724_v8, %v5727_v13  ;;  %v5746_v15 = vsel %vm5740_vm1, %v5733_v32, 920167782 }
 0x5b0   :  { %v5672_v34 = vsel %vm7904_vm2, 0, %v7903_v19  ;;  %v5743_v33 = vsel %vm5739_vm0, %v5727_v13, %v5742_v39  ;;  %vm5592_vm4 = vcmp.lt.s32.totalorder %v13173_v28, 2  ;;  %v5749_v26 = vsel %vm5737_vm14, %v5727_v13, %v5730_v2 }
 0x5b1   :  { %v5673_v25 = vsub.s32 32, %v5672_v34  ;;  %v5674_v58 = vshll.u32 %v13175_v38, %v5672_v34  ;;  %v5677_v23 = vsub.s32 4294967266, %v5672_v34  ;;  %vm5589_vm8 = vweird.f32 %v12945_v53 }
 0x5b2   :  { %v5744_v5 = vsel %vm5738_vm15, %v5741_v63, %v5743_v33  ;;  %v5747_v35 = vsel %vm5739_vm0, %v5730_v2, %v5746_v15  ;;  %v5750_v3 = vsel %vm5740_vm1, %v5736_v22, 1326507024  ;;  %vm5820_vm5 = vcmp.gt.s32.totalorder %v5819_v7, 0 }
 0x5b3   :  { %v5675_v20 = vshrl.u32 %v5657_v48, %v5673_v25  ;;  %v5678_v18 = vadd.s32 127, %v5677_v23  ;;  %v5748_v16 = vsel %vm5738_vm15, %v5745_v60, %v5747_v35  ;;  %v5751_v14 = vsel %vm5739_vm0, %v5733_v32, %v5750_v3 }
 0x5b4   :  { %v5752_v38 = vsel %vm5738_vm15, %v5749_v26, %v5751_v14  ;;  %v13232_v61 = vmul.u32.u64.low %v13187_v51, %v5748_v16  ;;  %v13233_v1 = vmul.u32.u64.high %v13187_v51, %v5748_v16, %v13232_v61  ;;  %v5821_v4 = vsel %vm5820_vm5, %v5819_v7, 0 }
 0x5b5   :  { %v5676_v59 = vor.u32 %v5675_v20, %v5674_v58  ;;  %v5679_v12 = vshll.u32 %v5678_v18, 23  ;;  %v13237_v0 = vmul.u32.u64.low %v13187_v51, %v5752_v38  ;;  %v13238_v54 = vmul.u32.u64.high %v13187_v51, %v5752_v38, %v13237_v0 }
 0x5b6   :  { %v8425_v9 = vpop.eup %8424  ;;  %vm5593_vm3 = vcmp.eq.s32.totalorder %v13173_v28, 0  ;;  %vm5596_vm6 = vcmp.eq.s32.totalorder %v13173_v28, 2  ;;  %v5823_v24 = vand.u32 31, %v5821_v4  ;;  %v5690_v7 = vsel %vm13212_vm13, 0, %v13202_v17 }
 0x5b7   :  { %v8427_v48 = vpop.eup %8426  ;;  %v5597_v49 = vxor.u32 2147483648, %v8425_v9  ;;  %v5680_v8 = vor.u32 4788187, %v5679_v12  ;;  %v5817_v2 = vor.u32 8388608, %v13184_v10  ;;  %v5760_v43 = vmul.u32 %v13187_v51, %v5744_v5 }
 0x5b8   :  { %v5594_v56 = vxor.u32 2147483648, %v8427_v48  ;;  %v5763_v40 = vadd.s32 1, %v13233_v1  ;;  %v5824_v19 = vsub.s32 32, %v5823_v24  ;;  %v5683_v32 = vcvt.s32.f32 %v5676_v59 }
 0x5b9   :  { %v5598_v13 = vsel %vm5596_vm6, %v5597_v49, %v8427_v48  ;;  %v5681_v46 = vand.u32 2147483647, %v5680_v8  ;;  %vm5762_vm9 = vc.u32 %v13238_v54, %v13232_v61  ;;  %v5826_v17 = vshll.u32 %v14756_v44, %v5823_v24 }
 0x5ba   :  { %v5595_v29 = vsel %vm5593_vm3, %v8425_v9, %v5594_v56  ;;  %v5764_v63 = vsel %vm5762_vm9, %v5763_v40, %v13233_v1  ;;  %v5827_v10 = vshrl.u32 %v14757_v62, %v5824_v19  ;;  %v5822_v33 = vshrl.u32 %v5821_v4, 5 }
 0x5bb   :  { %v5599_v22 = vsel %vm5592_vm4, %v5595_v29, %v5598_v13  ;;  %v5684_v39 = vmul.f32 %v5683_v32, %v5681_v46  ;;  %v5765_v34 = vadd.s32 %v5764_v63, %v5760_v43  ;;  %v5829_v25 = vshll.u32 %v14757_v62, %v5823_v24 }
 0x5bc   :  { %v5600_v51 = vsel %vm5589_vm8, nan, %v5599_v22  ;;  %v5828_v15 = vor.u32 %v5827_v10, %v5826_v17  ;;  %v5830_v58 = vshrl.u32 %v14758_v27, %v5824_v19  ;;  %v5832_v26 = vshll.u32 %v14758_v27, %v5823_v24 }
 0x5bd   :  { %v7621_v60 = vmul.f32 1000.0, %v5600_v51  ;;  %v5685_v28 = vxor.u32 2147483648, %v5684_v39  ;;  %v5766_v23 = vadd.s32 536870912, %v5765_v34  ;;  %v5833_v5 = vshrl.u32 %v14759_v37, %v5824_v19 }
 0x5be   :  { %v5831_v35 = vor.u32 %v5830_v58, %v5829_v25  ;;  %v5835_v53 = vshll.u32 %v14759_v37, %v5823_v24  ;;  %v5836_v3 = vshrl.u32 %v14760_v45, %v5824_v19  ;;  %v5839_v20 = vshrl.u32 %v14761_v57, %v5824_v19 }
 0x5bf   :  { %7685 = vst [vmem:[#allocation2 + $0x160] sm:$0xff] %v7621_v60  ;;  %v5686_v18 = vsel %vm5603_vm11, %v5685_v28, %v5684_v39  ;;  %v5767_v16 = vshrl.u32 %v5766_v23, 30  ;;  %v13266_v14 = vshll.u32 %v5817_v2, 8  ;;  %v837_v38 = vadd.f32 %v13178_v36, %v13170_v21 }
 0x5c0   :  { %v5689_v1 = vsel %vm13212_vm13, %v12981_v30, %v5686_v18  ;;  %v5834_v4 = vor.u32 %v5833_v5, %v5832_v26  ;;  %v5837_v9 = vor.u32 %v5836_v3, %v5835_v53  ;;  %v5838_v59 = vshll.u32 %v14760_v45, %v5823_v24 }
 0x5c1   :  { %8428 = vcosq.f32 %v5689_v1  ;;  %v5694_v12 = vadd.s32 3, %v5690_v7  ;;  %v5768_v0 = vshll.u32 %v5767_v16, 30  ;;  %vm5841_vm7 = vcmp.lt.s32.totalorder %v5822_v33, 1 }
 0x5c2   :  { %8430 = vsinq.f32 %v5689_v1  ;;  %v5840_v48 = vor.u32 %v5839_v20, %v5838_v59  ;;  %vm5844_vm12 = vcmp.lt.s32.totalorder %v5822_v33, 4  ;;  %v5849_v49 = vsel %vm5841_vm7, %v5828_v15, %v5831_v35 }
 0x5c3   :  { %v13275_v56 = vsub.s32 %v5765_v34, %v5768_v0  ;;  %vm5843_vm10 = vcmp.lt.s32.totalorder %v5822_v33, 3  ;;  %v5850_v21 = vsel %vm5844_vm12, %v5837_v9, 920167782  ;;  %v13278_v36 = vadd.f32 %v9137_v52, %v837_v38 }
 0x5c4   :  { %v5825_v42 = vshrl.u32 %v14756_v44, %v5824_v19  ;;  %vm5842_vm11 = vcmp.lt.s32.totalorder %v5822_v33, 2  ;;  %v5846_v24 = vsel %vm5844_vm12, %v5834_v4, 2102212464  ;;  %v5851_v8 = vsel %vm5843_vm10, %v5834_v4, %v5850_v21  ;;  %v663_v33 = vpop.permute.xlu0 %662 }
 0x5c5   :  { %v5771_v7 = vsub.s32 0, %v13275_v56  ;;  %v5791_v2 = vsub.s32 4, %v5767_v16  ;;  %v5852_v13 = vsel %vm5842_vm11, %v5849_v49, %v5851_v8  ;;  %v5853_v43 = vsel %vm5841_vm7, %v5831_v35, %v5834_v4 }
 0x5c6   :  { %v5695_v40 = vand.u32 3, %v5694_v12  ;;  %v5854_v29 = vsel %vm5844_vm12, %v5840_v48, 1326507024  ;;  %v13286_v46 = vmul.u32.u64.low %v13266_v14, %v5852_v13  ;;  %v13287_v32 = vmul.u32.u64.high %v13266_v14, %v5852_v13, %v13286_v46 }
 0x5c7   :  { %v7906_v19 = vmin.u32 %v5771_v7, %v13275_v56  ;;  %v5845_v22 = vsel %vm5841_vm7, %v5825_v42, %v5828_v15  ;;  %v5847_v63 = vsel %vm5843_vm10, %v5831_v35, %v5846_v24  ;;  %v5855_v17 = vsel %vm5843_vm10, %v5837_v9, %v5854_v29 }
 0x5c8   :  { %vm5693_vm14 = vweird.f32 %v12981_v30  ;;  %vm5707_vm13 = vcmp.lt.s32.totalorder %v13127_v31, 0  ;;  %v5856_v10 = vsel %vm5842_vm11, %v5853_v43, %v5855_v17  ;;  %v5916_v51 = vand.u32 2139095040, %v13278_v36  ;;  %v14895_v30 = vld [vmem:[#allocation45_spill] sm:$0xff] }
 0x5c9   :  { %vm13300_vm15 = vcmp.le.f32.partialorder %v5705_v11, 0.7853982  ;;  %v5773_v34 = vclz %v7906_v19  ;;  %v5792_v60 = vsel %vm5707_vm13, %v5791_v2, %v5767_v16  ;;  %v5913_v15 = vand.u32 2147483647, %v13278_v36 }
 0x5ca   :  { %v5848_v25 = vsel %vm5842_vm11, %v5845_v22, %v5847_v63  ;;  %v13309_v58 = vmul.u32.u64.low %v13266_v14, %v5856_v10  ;;  %v13310_v28 = vmul.u32.u64.high %v13266_v14, %v5856_v10, %v13309_v58  ;;  %v5917_v23 = vshrl.u32 %v5916_v51, 23  ;;  %v14896_v10 = vld [vmem:[#allocation46_spill] sm:$0xff] }
 0x5cb   :  { %v8429_v26 = vpop.eup %8428  ;;  %vm5696_vm0 = vcmp.lt.s32.totalorder %v5695_v40, 2  ;;  %vm5697_vm1 = vcmp.eq.s32.totalorder %v5695_v40, 0  ;;  %vm5700_vm2 = vcmp.eq.s32.totalorder %v5695_v40, 2  ;;  %v7907_v11 = vadd.s32 4294967294, %v5773_v34 }
 0x5cc   :  { %v8431_v5 = vpop.eup %8430  ;;  %v5701_v35 = vxor.u32 2147483648, %v8429_v26  ;;  %v5761_v53 = vadd.s32 %v13232_v61, %v13238_v54  ;;  %v5867_v3 = vadd.s32 1, %v13287_v32  ;;  %v7913_v20 = vadd.s32 4294967169, %v5917_v23 }
 0x5cd   :  { %v5698_v18 = vxor.u32 2147483648, %v8431_v5  ;;  %vm7908_vm4 = vcmp.lt.s32.totalorder %v7907_v11, 0  ;;  %v5794_v16 = vsel %vm13300_vm15, 0, %v5792_v60  ;;  %v5864_v38 = vmul.u32 %v13266_v14, %v5848_v25 }
 0x5ce   :  { %v5702_v1 = vsel %vm5700_vm2, %v5701_v35, %v8431_v5  ;;  %v5776_v4 = vsel %vm7908_vm4, 0, %v7907_v11  ;;  %vm5866_vm8 = vc.u32 %v13310_v28, %v13286_v46  ;;  %v5920_v9 = vand.u32 8388607, %v5913_v15 }
 0x5cf   :  { %v5699_v61 = vsel %vm5697_vm1, %v8429_v26, %v5698_v18  ;;  %v5777_v54 = vsub.s32 32, %v5776_v4  ;;  %v5781_v59 = vsub.s32 4294967266, %v5776_v4  ;;  %v774_v12 = vmul.f32 %v9135_v55, %v663_v33 }
 0x5d0   :  { %v5703_v0 = vsel %vm5696_vm0, %v5699_v61, %v5702_v1  ;;  %v5778_v48 = vshll.u32 %v13275_v56, %v5776_v4  ;;  %v5868_v14 = vsel %vm5866_vm8, %v5867_v3, %v13287_v32  ;;  %v5923_v49 = vadd.s32 1, %v7913_v20 }
 0x5d1   :  { %v5704_v21 = vsel %vm5693_vm14, nan, %v5703_v0  ;;  %v5779_v42 = vshrl.u32 %v5761_v53, %v5777_v54  ;;  %v5782_v24 = vadd.s32 127, %v5781_v59  ;;  %v5869_v8 = vadd.s32 %v5868_v14, %v5864_v38 }
 0x5d2   :  { %v7622_v7 = vmul.f32 1000.0, %v5704_v21  ;;  %v5798_v2 = vadd.s32 3, %v5794_v16  ;;  %v5921_v13 = vor.u32 8388608, %v5920_v9  ;;  %vm5924_vm5 = vcmp.gt.s32.totalorder %v5923_v49, 0 }
 0x5d3   :  { %v5780_v43 = vor.u32 %v5779_v42, %v5778_v48  ;;  %v5783_v29 = vshll.u32 %v5782_v24, 23  ;;  %v5870_v19 = vadd.s32 536870912, %v5869_v8  ;;  %v5925_v40 = vsel %vm5924_vm5, %v5923_v49, 0 }
 0x5d4   :  { %7686 = vst [vmem:[#allocation2 + $0x168] sm:$0xff] %v7622_v7  ;;  %v5927_v22 = vand.u32 31, %v5925_v40  ;;  %v838_v56 = vadd.f32 %v774_v12, %v13165_v47  ;;  %v13334_v17 = vmul.f32 %v9131_v50, %v14895_v30  ;;  %v13338_v51 = vmul.f32 %v9131_v50, %v14896_v10 }
 0x5d5   :  { %v5784_v32 = vor.u32 4788187, %v5783_v29  ;;  %v13330_v63 = vshrl.u32 %v5870_v19, 30  ;;  %v13340_v34 = vand.u32 3, %v5798_v2  ;;  %v5787_v58 = vcvt.s32.f32 %v5780_v43 }
 0x5d6   :  { %v5928_v60 = vsub.s32 32, %v5927_v22  ;;  %v13343_v26 = vshll.u32 %v5921_v13, 8  ;;  %v13349_v35 = vadd.f32 %v9137_v52, %v838_v56  ;;  %v5930_v20 = vshll.u32 %v14756_v44, %v5927_v22 }
 0x5d7   :  { %v5785_v25 = vand.u32 2147483647, %v5784_v32  ;;  %v5872_v23 = vshll.u32 %v13330_v63, 30  ;;  %v5865_v18 = vadd.s32 %v13286_v46, %v13310_v28  ;;  %v5926_v16 = vshrl.u32 %v5925_v40, 5 }
 0x5d8   :  { %v5931_v47 = vshrl.u32 %v14757_v62, %v5928_v60  ;;  %v5934_v11 = vshrl.u32 %v14758_v27, %v5928_v60  ;;  %v5937_v5 = vshrl.u32 %v14759_v37, %v5928_v60  ;;  %v5940_v33 = vshrl.u32 %v14760_v45, %v5928_v60 }
 0x5d9   :  { %v5788_v53 = vmul.f32 %v5787_v58, %v5785_v25  ;;  %v13351_v3 = vsub.s32 %v5869_v8, %v5872_v23  ;;  %v5933_v38 = vshll.u32 %v14757_v62, %v5927_v22  ;;  %v5936_v1 = vshll.u32 %v14758_v27, %v5927_v22 }
 0x5da   :  { %v5932_v61 = vor.u32 %v5931_v47, %v5930_v20  ;;  %v5939_v54 = vshll.u32 %v14759_v37, %v5927_v22  ;;  %vm5811_vm3 = vcmp.lt.s32.totalorder %v13141_v41, 0  ;;  %v5942_v0 = vshll.u32 %v14760_v45, %v5927_v22 }
 0x5db   :  { %v5789_v4 = vxor.u32 2147483648, %v5788_v53  ;;  %v5875_v9 = vsub.s32 0, %v13351_v3  ;;  %v5935_v59 = vor.u32 %v5934_v11, %v5933_v38  ;;  %v5938_v12 = vor.u32 %v5937_v5, %v5936_v1  ;;  %v667_v1 = vpop.permute.xlu1 %666 }
 0x5dc   :  { %v5943_v48 = vshrl.u32 %v14761_v57, %v5928_v60  ;;  %v5941_v14 = vor.u32 %v5940_v33, %v5939_v54  ;;  %v6020_v49 = vand.u32 2139095040, %v13349_v35  ;;  %v5895_v42 = vsub.s32 4, %v13330_v63 }
 0x5dd   :  { %v5790_v46 = vsel %vm5707_vm13, %v5789_v4, %v5788_v53  ;;  %v7910_v28 = vmin.u32 %v5875_v9, %v13351_v3  ;;  %v5929_v24 = vshrl.u32 %v14756_v44, %v5928_v60  ;;  %vm13375_vm6 = vcmp.le.f32.partialorder %v5809_v6, 0.7853982 }
 0x5de   :  { %v5793_v21 = vsel %vm13300_vm15, %v13127_v31, %v5790_v46  ;;  %v5944_v8 = vor.u32 %v5943_v48, %v5942_v0  ;;  %vm5945_vm9 = vcmp.lt.s32.totalorder %v5926_v16, 1  ;;  %vm5948_vm7 = vcmp.lt.s32.totalorder %v5926_v16, 4 }
 0x5df   :  { %8432 = vcosq.f32 %v5793_v21  ;;  %v5877_v2 = vclz %v7910_v28  ;;  %vm5946_vm12 = vcmp.lt.s32.totalorder %v5926_v16, 2  ;;  %v5950_v13 = vsel %vm5948_vm7, %v5938_v12, 2102212464 }
 0x5e0   :  { %8434 = vsinq.f32 %v5793_v21  ;;  %v5953_v39 = vsel %vm5945_vm9, %v5932_v61, %v5935_v59  ;;  %vm5947_vm10 = vcmp.lt.s32.totalorder %v5926_v16, 3  ;;  %v5954_v29 = vsel %vm5948_vm7, %v5941_v14, 920167782 }
 0x5e1   :  { %v7911_v43 = vadd.s32 4294967294, %v5877_v2  ;;  %v5957_v19 = vsel %vm5945_vm9, %v5935_v59, %v5938_v12  ;;  %v5949_v40 = vsel %vm5945_vm9, %v5929_v24, %v5932_v61  ;;  %v5955_v22 = vsel %vm5947_vm10, %v5938_v12, %v5954_v29  ;;  %v671_v24 = vpop.permute.xlu0 %670 }
 0x5e2   :  { %v5958_v56 = vsel %vm5948_vm7, %v5944_v8, 1326507024  ;;  %v6021_v32 = vshrl.u32 %v6020_v49, 23  ;;  %v5951_v6 = vsel %vm5947_vm10, %v5935_v59, %v5950_v13  ;;  %v5956_v30 = vsel %vm5946_vm12, %v5953_v39, %v5955_v22 }
 0x5e3   :  { %vm7912_vm11 = vcmp.lt.s32.totalorder %v7911_v43, 0  ;;  %v5959_v10 = vsel %vm5947_vm10, %v5941_v14, %v5958_v56  ;;  %v13382_v58 = vmul.u32.u64.low %v13343_v26, %v5956_v30  ;;  %v13383_v23 = vmul.u32.u64.high %v13343_v26, %v5956_v30, %v13382_v58 }
 0x5e4   :  { %v5880_v60 = vsel %vm7912_vm11, 0, %v7911_v43  ;;  %v5960_v25 = vsel %vm5946_vm12, %v5957_v19, %v5959_v10  ;;  %v5896_v5 = vsel %vm5811_vm3, %v5895_v42, %v13330_v63  ;;  %v7917_v53 = vadd.s32 4294967169, %v6021_v32  ;;  %v675_v43 = vpop.permute.xlu1 %674 }
 0x5e5   :  { %v5881_v47 = vsub.s32 32, %v5880_v60  ;;  %v5885_v11 = vsub.s32 4294967266, %v5880_v60  ;;  %vm5797_vm14 = vweird.f32 %v13127_v31  ;;  %vm5800_vm13 = vcmp.lt.s32.totalorder %v13340_v34, 2 }
 0x5e6   :  { %v5952_v20 = vsel %vm5946_vm12, %v5949_v40, %v5951_v6  ;;  %v13393_v33 = vmul.u32.u64.low %v13343_v26, %v5960_v25  ;;  %v13394_v38 = vmul.u32.u64.high %v13343_v26, %v5960_v25, %v13393_v33  ;;  %v5882_v4 = vshll.u32 %v13351_v3, %v5880_v60 }
 0x5e7   :  { %v5883_v9 = vshrl.u32 %v5865_v18, %v5881_v47  ;;  %v5886_v61 = vadd.s32 127, %v5885_v11  ;;  %v6027_v54 = vadd.s32 1, %v7917_v53  ;;  %vm5801_vm15 = vcmp.eq.s32.totalorder %v13340_v34, 0 }
 0x5e8   :  { %v5898_v63 = vsel %vm13375_vm6, 0, %v5896_v5  ;;  %v5971_v59 = vadd.s32 1, %v13383_v23  ;;  %v6017_v16 = vand.u32 2147483647, %v13349_v35  ;;  %vm5804_vm0 = vcmp.eq.s32.totalorder %v13340_v34, 2 }
 0x5e9   :  { %v8433_v12 = vpop.eup %8432  ;;  %v5884_v0 = vor.u32 %v5883_v9, %v5882_v4  ;;  %v5887_v48 = vshll.u32 %v5886_v61, 23  ;;  %vm6028_vm1 = vcmp.gt.s32.totalorder %v6027_v54, 0  ;;  %v5968_v18 = vmul.u32 %v13343_v26, %v5952_v20 }
 0x5ea   :  { %v8435_v46 = vpop.eup %8434  ;;  %v5805_v3 = vxor.u32 2147483648, %v8433_v12  ;;  %vm5970_vm2 = vc.u32 %v13394_v38, %v13382_v58  ;;  %v6029_v28 = vsel %vm6028_vm1, %v6027_v54, 0  ;;  %v5902_v21 = vadd.s32 3, %v5898_v63 }
 0x5eb   :  { %v5802_v14 = vxor.u32 2147483648, %v8435_v46  ;;  %v5888_v49 = vor.u32 4788187, %v5887_v48  ;;  %v5972_v42 = vsel %vm5970_vm2, %v5971_v59, %v13383_v23  ;;  %v6024_v13 = vand.u32 8388607, %v6017_v16 }
 0x5ec   :  { %v5806_v8 = vsel %vm5804_vm0, %v5805_v3, %v8435_v46  ;;  %v5973_v2 = vadd.s32 %v5972_v42, %v5968_v18  ;;  %v6031_v39 = vand.u32 31, %v6029_v28  ;;  %v5891_v19 = vcvt.s32.f32 %v5884_v0 }
 0x5ed   :  { %v5803_v26 = vsel %vm5801_vm15, %v8433_v12, %v5802_v14  ;;  %v5889_v29 = vand.u32 2147483647, %v5888_v49  ;;  %v775_v40 = vmul.f32 %v9135_v55, %v667_v1  ;;  %v13415_v6 = vmul.f32 %v9135_v55, %v671_v24 }
 0x5ee   :  { %v5807_v22 = vsel %vm5800_vm13, %v5803_v26, %v5806_v8  ;;  %v5974_v56 = vadd.s32 536870912, %v5973_v2  ;;  %v6032_v32 = vsub.s32 32, %v6031_v39  ;;  %v13419_v60 = vand.u32 3, %v5902_v21 }
 0x5ef   :  { %v5808_v30 = vsel %vm5797_vm14, nan, %v5807_v22  ;;  %v5892_v10 = vmul.f32 %v5891_v19, %v5889_v29  ;;  %v13422_v25 = vmul.f32 %v9135_v55, %v675_v43  ;;  %v6025_v11 = vor.u32 8388608, %v6024_v13 }
 0x5f0   :  { %v7623_v23 = vmul.f32 1000.0, %v5808_v30  ;;  %v13424_v47 = vshrl.u32 %v5974_v56, 30  ;;  %v6035_v34 = vshrl.u32 %v14757_v62, %v6032_v32  ;;  %v6034_v53 = vshll.u32 %v14756_v44, %v6031_v39 }
 0x5f1   :  { %v5893_v5 = vxor.u32 2147483648, %v5892_v10  ;;  %v6038_v20 = vshrl.u32 %v14758_v27, %v6032_v32  ;;  %v6041_v31 = vshrl.u32 %v14759_v37, %v6032_v32  ;;  %v6037_v1 = vshll.u32 %v14757_v62, %v6031_v39 }
 0x5f2   :  { %7687 = vst [vmem:[#allocation2 + $0x170] sm:$0xff] %v7623_v23  ;;  %v5976_v33 = vshll.u32 %v13424_v47, 30  ;;  %v6040_v4 = vshll.u32 %v14758_v27, %v6031_v39  ;;  %v6044_v9 = vshrl.u32 %v14760_v45, %v6032_v32  ;;  %v6030_v54 = vshrl.u32 %v6029_v28, 5 }
 0x5f3   :  { %v5894_v61 = vsel %vm5811_vm3, %v5893_v5, %v5892_v10  ;;  %v6036_v63 = vor.u32 %v6035_v34, %v6034_v53  ;;  %v6043_v59 = vshll.u32 %v14759_v37, %v6031_v39  ;;  %v6039_v48 = vor.u32 %v6038_v20, %v6037_v1 }
 0x5f4   :  { %v5897_v12 = vsel %vm13375_vm6, %v13141_v41, %v5894_v61  ;;  %v13440_v0 = vsub.s32 %v5973_v2, %v5976_v33  ;;  %v6042_v46 = vor.u32 %v6041_v31, %v6040_v4  ;;  %v6046_v18 = vshll.u32 %v14760_v45, %v6031_v39 }
 0x5f5   :  { %8436 = vcosq.f32 %v5897_v12  ;;  %v6045_v3 = vor.u32 %v6044_v9, %v6043_v59  ;;  %v6047_v14 = vshrl.u32 %v14761_v57, %v6032_v32  ;;  %vm5915_vm4 = vcmp.lt.s32.totalorder %v13278_v36, 0 }
 0x5f6   :  { %8438 = vsinq.f32 %v5897_v12  ;;  %v5979_v28 = vsub.s32 0, %v13440_v0  ;;  %v6033_v49 = vshrl.u32 %v14756_v44, %v6032_v32  ;;  %v839_v7 = vadd.f32 %v775_v40, %v13338_v51 }
 0x5f7   :  { %v6048_v21 = vor.u32 %v6047_v14, %v6046_v18  ;;  %vm6049_vm8 = vcmp.lt.s32.totalorder %v6030_v54, 1  ;;  %vm6051_vm5 = vcmp.lt.s32.totalorder %v6030_v54, 3  ;;  %vm6052_vm3 = vcmp.lt.s32.totalorder %v6030_v54, 4 }
 0x5f8   :  { %v7914_v42 = vmin.u32 %v5979_v28, %v13440_v0  ;;  %v6053_v24 = vsel %vm6049_vm8, %v6033_v49, %v6036_v63  ;;  %v6054_v8 = vsel %vm6052_vm3, %v6042_v46, 2102212464  ;;  %v6057_v2 = vsel %vm6049_vm8, %v6036_v63, %v6039_v48 }
 0x5f9   :  { %v6055_v13 = vsel %vm6051_vm5, %v6039_v48, %v6054_v8  ;;  %v6058_v39 = vsel %vm6052_vm3, %v6045_v3, 920167782  ;;  %v6061_v43 = vsel %vm6049_vm8, %v6039_v48, %v6042_v46  ;;  %v6062_v26 = vsel %vm6052_vm3, %v6048_v21, 1326507024 }
 0x5fa   :  { %vm5905_vm6 = vcmp.eq.s32.totalorder %v13419_v60, 0  ;;  %vm13453_vm9 = vcmp.le.f32.partialorder %v5913_v15, 0.7853982  ;;  %v5981_v29 = vclz %v7914_v42  ;;  %v6065_v19 = vshll.u32 %v6025_v11, 8 }
 0x5fb   :  { %v13458_v40 = vadd.f32 %v9137_v52, %v839_v7  ;;  %v5999_v22 = vsub.s32 4, %v13424_v47  ;;  %vm6050_vm7 = vcmp.lt.s32.totalorder %v6030_v54, 2  ;;  %v6059_v56 = vsel %vm6051_vm5, %v6042_v46, %v6058_v39 }
 0x5fc   :  { %v6063_v32 = vsel %vm6051_vm5, %v6045_v3, %v6062_v26  ;;  %vm5901_vm12 = vweird.f32 %v13141_v41  ;;  %v7915_v30 = vadd.s32 4294967294, %v5981_v29  ;;  %v6056_v10 = vsel %vm6050_vm7, %v6053_v24, %v6055_v13 }
 0x5fd   :  { %v6060_v15 = vsel %vm6050_vm7, %v6057_v2, %v6059_v56  ;;  %v6064_v23 = vsel %vm6050_vm7, %v6061_v43, %v6063_v32  ;;  %vm5908_vm10 = vcmp.eq.s32.totalorder %v13419_v60, 2  ;;  %v6124_v20 = vand.u32 2139095040, %v13458_v40 }
 0x5fe   :  { %v13464_v34 = vmul.u32.u64.low %v6065_v19, %v6064_v23  ;;  %v13465_v5 = vmul.u32.u64.high %v6065_v19, %v6064_v23, %v13464_v34  ;;  %v13467_v11 = vmul.u32.u64.low %v6065_v19, %v6060_v15  ;;  %v13468_v53 = vmul.u32.u64.high %v6065_v19, %v6060_v15, %v13467_v11  ;;  %v14902_v15 = vld [vmem:[#allocation47_spill] sm:$0xff] }
 0x5ff   :  { %vm7916_vm11 = vcmp.lt.s32.totalorder %v7915_v30, 0  ;;  %v840_v31 = vadd.f32 %v13415_v6, %v13334_v17  ;;  %v8437_v33 = vpop.eup %8436  ;;  %v5969_v1 = vadd.s32 %v13382_v58, %v13394_v38  ;;  %v6000_v9 = vsel %vm5915_vm4, %v5999_v22, %v13424_v47 }
 0x600   :  { %v5984_v4 = vsel %vm7916_vm11, 0, %v7915_v30  ;;  %v6121_v61 = vand.u32 2147483647, %v13458_v40  ;;  %v8439_v54 = vpop.eup %8438  ;;  %v5909_v63 = vxor.u32 2147483648, %v8437_v33  ;;  %v6072_v48 = vmul.u32 %v6065_v19, %v6056_v10 }
 0x601   :  { %v5985_v59 = vsub.s32 32, %v5984_v4  ;;  %v5989_v12 = vsub.s32 4294967266, %v5984_v4  ;;  %v5906_v46 = vxor.u32 2147483648, %v8439_v54  ;;  %v5986_v3 = vshll.u32 %v13440_v0, %v5984_v4 }
 0x602   :  { %vm6074_vm14 = vc.u32 %v13465_v5, %v13467_v11  ;;  %v6075_v17 = vadd.s32 1, %v13468_v53  ;;  %v5910_v58 = vsel %vm5908_vm10, %v5909_v63, %v8439_v54  ;;  %v6125_v47 = vshrl.u32 %v6124_v20, 23 }
 0x603   :  { %v5987_v38 = vshrl.u32 %v5969_v1, %v5985_v59  ;;  %v5990_v6 = vadd.s32 127, %v5989_v12  ;;  %vm5904_vm13 = vcmp.lt.s32.totalorder %v13419_v60, 2  ;;  %v5907_v18 = vsel %vm5905_vm6, %v8437_v33, %v5906_v46  ;;  %v14901_v60 = vld [vmem:[#allocation48_spill] sm:$0xff] }
 0x604   :  { %v6002_v14 = vsel %vm13453_vm9, 0, %v6000_v9  ;;  %v6076_v0 = vsel %vm6074_vm14, %v6075_v17, %v13468_v53  ;;  %v5911_v28 = vsel %vm5904_vm13, %v5907_v18, %v5910_v58  ;;  %v7921_v24 = vadd.s32 4294967169, %v6125_v47 }
 0x605   :  { %v5988_v49 = vor.u32 %v5987_v38, %v5986_v3  ;;  %v5991_v7 = vshll.u32 %v5990_v6, 23  ;;  %v6077_v21 = vadd.s32 %v6076_v0, %v6072_v48  ;;  %v5912_v42 = vsel %vm5901_vm12, nan, %v5911_v28 }
 0x606   :  { %v6128_v8 = vand.u32 8388607, %v6121_v61  ;;  %v13496_v2 = vadd.f32 %v9137_v52, %v840_v31  ;;  %v453_v13 = vmul.f32 %v9131_v50, %v14901_v60  ;;  %v7624_v39 = vmul.f32 1000.0, %v5912_v42  ;;  %v14903_v31 = vld [vmem:[#allocation50_spill] sm:$0xff] }
 0x607   :  { %v5992_v43 = vor.u32 4788187, %v5991_v7  ;;  %v6078_v26 = vadd.s32 536870912, %v6077_v21  ;;  %v6006_v29 = vadd.s32 3, %v6002_v14  ;;  %v6131_v19 = vadd.s32 1, %v7921_v24 }
 0x608   :  { %7688 = vst [vmem:[#allocation2 + $0x178] sm:$0xff] %v7624_v39  ;;  %v5995_v56 = vcvt.s32.f32 %v5988_v49  ;;  %v841_v32 = vadd.f32 %v13422_v25, %v453_v13  ;;  %v6129_v30 = vor.u32 8388608, %v6128_v8  ;;  %v6228_v10 = vand.u32 2139095040, %v13496_v2 }
 0x609   :  { %v5993_v22 = vand.u32 2147483647, %v5992_v43  ;;  %v6079_v41 = vshrl.u32 %v6078_v26, 30  ;;  %vm6132_vm15 = vcmp.gt.s32.totalorder %v6131_v19, 0  ;;  %v13504_v23 = vmul.f32 %v9131_v50, %v14902_v15 }
 0x60a   :  { %v6133_v20 = vsel %vm6132_vm15, %v6131_v19, 0  ;;  %v13508_v33 = vmul.f32 %v9131_v50, %v14903_v31  ;;  %v13510_v1 = vand.u32 3, %v6006_v29  ;;  %vm6019_vm0 = vcmp.lt.s32.totalorder %v13349_v35, 0 }
 0x60b   :  { %v5996_v34 = vmul.f32 %v5995_v56, %v5993_v22  ;;  %v6080_v53 = vshll.u32 %v6079_v41, 30  ;;  %v6135_v25 = vand.u32 31, %v6133_v20  ;;  %v6073_v9 = vadd.s32 %v13467_v11, %v13465_v5 }
 0x60c   :  { %v13517_v63 = vadd.f32 %v9137_v52, %v841_v32  ;;  %v13519_v12 = vshll.u32 %v6129_v30, 8  ;;  %v6225_v48 = vand.u32 2147483647, %v13496_v2  ;;  %v6229_v46 = vshrl.u32 %v6228_v10, 23 }
 0x60d   :  { %v5997_v4 = vxor.u32 2147483648, %v5996_v34  ;;  %v13514_v54 = vsub.s32 %v6077_v21, %v6080_v53  ;;  %v6136_v59 = vsub.s32 32, %v6135_v25  ;;  %v6103_v58 = vsub.s32 4, %v6079_v41 }
 0x60e   :  { %v6134_v38 = vshrl.u32 %v6133_v20, 5  ;;  %v6138_v11 = vshll.u32 %v14756_v44, %v6135_v25  ;;  %v6141_v14 = vshll.u32 %v14757_v62, %v6135_v25  ;;  %v6144_v49 = vshll.u32 %v14758_v27, %v6135_v25 }
 0x60f   :  { %v5998_v3 = vsel %vm5915_vm4, %v5997_v4, %v5996_v34  ;;  %v6083_v17 = vsub.s32 0, %v13514_v54  ;;  %v6139_v6 = vshrl.u32 %v14757_v62, %v6136_v59  ;;  %v6142_v47 = vshrl.u32 %v14758_v27, %v6136_v59 }
 0x610   :  { %v6001_v5 = vsel %vm13453_vm9, %v13278_v36, %v5998_v3  ;;  %v6145_v0 = vshrl.u32 %v14759_v37, %v6136_v59  ;;  %v7925_v7 = vadd.s32 4294967169, %v6229_v46  ;;  %v6137_v21 = vshrl.u32 %v14756_v44, %v6136_v59 }
 0x611   :  { %8440 = vcosq.f32 %v6001_v5  ;;  %v7918_v18 = vmin.u32 %v6083_v17, %v13514_v54  ;;  %v6140_v28 = vor.u32 %v6139_v6, %v6138_v11  ;;  %v6143_v42 = vor.u32 %v6142_v47, %v6141_v14 }
 0x612   :  { %8442 = vsinq.f32 %v6001_v5  ;;  %v6147_v24 = vshll.u32 %v14759_v37, %v6135_v25  ;;  %v6146_v8 = vor.u32 %v6145_v0, %v6144_v49  ;;  %v6148_v60 = vshrl.u32 %v14760_v45, %v6136_v59 }
 0x613   :  { %v6085_v51 = vclz %v7918_v18  ;;  %v6150_v13 = vshll.u32 %v14760_v45, %v6135_v25  ;;  %v6151_v39 = vshrl.u32 %v14761_v57, %v6136_v59  ;;  %vm6012_vm1 = vcmp.eq.s32.totalorder %v13510_v1, 2 }
 0x614   :  { %v13543_v26 = vsel %vm6019_vm0, %v6103_v58, %v6079_v41  ;;  %vm6153_vm2 = vcmp.lt.s32.totalorder %v6134_v38, 1  ;;  %vm6155_vm4 = vcmp.lt.s32.totalorder %v6134_v38, 3  ;;  %vm6009_vm8 = vcmp.eq.s32.totalorder %v13510_v1, 0 }
 0x615   :  { %v7919_v43 = vadd.s32 4294967294, %v6085_v51  ;;  %vm13548_vm5 = vcmp.le.f32.partialorder %v6017_v16, 0.7853982  ;;  %v6149_v19 = vor.u32 %v6148_v60, %v6147_v24  ;;  %v6152_v22 = vor.u32 %v6151_v39, %v6150_v13 }
 0x616   :  { %vm6156_vm3 = vcmp.lt.s32.totalorder %v6134_v38, 4  ;;  %v6157_v56 = vsel %vm6153_vm2, %v6137_v21, %v6140_v28  ;;  %vm6008_vm6 = vcmp.lt.s32.totalorder %v13510_v1, 2  ;;  %v6161_v41 = vsel %vm6153_vm2, %v6140_v28, %v6143_v42 }
 0x617   :  { %vm7920_vm9 = vcmp.lt.s32.totalorder %v7919_v43, 0  ;;  %v6158_v32 = vsel %vm6156_vm3, %v6146_v8, 2102212464  ;;  %v6165_v30 = vsel %vm6153_vm2, %v6143_v42, %v6146_v8  ;;  %vm6005_vm7 = vweird.f32 %v13278_v36 }
 0x618   :  { %v6088_v10 = vsel %vm7920_vm9, 0, %v7919_v43  ;;  %v6159_v15 = vsel %vm6155_vm4, %v6143_v42, %v6158_v32  ;;  %v6162_v34 = vsel %vm6156_vm3, %v6149_v19, 920167782  ;;  %v6166_v16 = vsel %vm6156_vm3, %v6152_v22, 1326507024 }
 0x619   :  { %v6089_v53 = vsub.s32 32, %v6088_v10  ;;  %v6090_v20 = vshll.u32 %v13514_v54, %v6088_v10  ;;  %v6093_v31 = vsub.s32 4294967266, %v6088_v10  ;;  %vm6154_vm12 = vcmp.lt.s32.totalorder %v6134_v38, 2 }
 0x61a   :  { %v6160_v25 = vsel %vm6154_vm12, %v6157_v56, %v6159_v15  ;;  %v6163_v4 = vsel %vm6155_vm4, %v6146_v8, %v6162_v34  ;;  %v6167_v59 = vsel %vm6155_vm4, %v6149_v19, %v6166_v16  ;;  %v6235_v46 = vadd.s32 1, %v7925_v7 }
 0x61b   :  { %v8441_v3 = vpop.eup %8440  ;;  %v6091_v17 = vshrl.u32 %v6073_v9, %v6089_v53  ;;  %v6094_v58 = vadd.s32 127, %v6093_v31  ;;  %v6164_v5 = vsel %vm6154_vm12, %v6161_v41, %v6163_v4  ;;  %v6168_v11 = vsel %vm6154_vm12, %v6165_v30, %v6167_v59 }
 0x61c   :  { %v8443_v6 = vpop.eup %8442  ;;  %v6013_v47 = vxor.u32 2147483648, %v8441_v3  ;;  %v13559_v18 = vmul.u32.u64.low %v13519_v12, %v6168_v11  ;;  %v13560_v14 = vmul.u32.u64.high %v13519_v12, %v6168_v11, %v13559_v18  ;;  %vm6236_vm10 = vcmp.gt.s32.totalorder %v6235_v46, 0 }
 0x61d   :  { %v6010_v54 = vxor.u32 2147483648, %v8443_v6  ;;  %v6092_v0 = vor.u32 %v6091_v17, %v6090_v20  ;;  %v6095_v28 = vshll.u32 %v6094_v58, 23  ;;  %v6237_v49 = vsel %vm6236_vm10, %v6235_v46, 0 }
 0x61e   :  { %v6014_v38 = vsel %vm6012_vm1, %v6013_v47, %v8443_v6  ;;  %v13565_v7 = vmul.u32.u64.low %v13519_v12, %v6164_v5  ;;  %v13566_v9 = vmul.u32.u64.high %v13519_v12, %v6164_v5, %v13565_v7  ;;  %v6232_v51 = vand.u32 8388607, %v6225_v48 }
 0x61f   :  { %v6011_v21 = vsel %vm6009_vm8, %v8441_v3, %v6010_v54  ;;  %v6096_v42 = vor.u32 4788187, %v6095_v28  ;;  %v6106_v24 = vsel %vm13548_vm5, 0, %v13543_v26  ;;  %v6239_v8 = vand.u32 31, %v6237_v49 }
 0x620   :  { %v6015_v60 = vsel %vm6008_vm6, %v6011_v21, %v6014_v38  ;;  %v6099_v13 = vcvt.s32.f32 %v6092_v0  ;;  %v6176_v39 = vmul.u32 %v13519_v12, %v6160_v25  ;;  %v13579_v43 = vshrl.u32 %v6237_v49, 5 }
 0x621   :  { %v6016_v19 = vsel %vm6005_vm7, nan, %v6015_v60  ;;  %v6097_v22 = vand.u32 2147483647, %v6096_v42  ;;  %vm6178_vm11 = vc.u32 %v13560_v14, %v13565_v7  ;;  %v6240_v56 = vsub.s32 32, %v6239_v8 }
 0x622   :  { %v7625_v32 = vmul.f32 1000.0, %v6016_v19  ;;  %v6179_v26 = vadd.s32 1, %v13566_v9  ;;  %v6242_v41 = vshll.u32 %v14756_v44, %v6239_v8  ;;  %v6245_v1 = vshll.u32 %v14757_v62, %v6239_v8 }
 0x623   :  { %v6100_v30 = vmul.f32 %v6099_v13, %v6097_v22  ;;  %v6243_v12 = vshrl.u32 %v14757_v62, %v6240_v56  ;;  %v6246_v10 = vshrl.u32 %v14758_v27, %v6240_v56  ;;  %v6248_v36 = vshll.u32 %v14758_v27, %v6239_v8 }
 0x624   :  { %7689 = vst [vmem:[#allocation2 + $0x180] sm:$0xff] %v7625_v32  ;;  %v6180_v15 = vsel %vm6178_vm11, %v6179_v26, %v13566_v9  ;;  %v6249_v34 = vshrl.u32 %v14759_v37, %v6240_v56  ;;  %v6251_v16 = vshll.u32 %v14759_v37, %v6239_v8  ;;  %v6252_v53 = vshrl.u32 %v14760_v45, %v6240_v56 }
 0x625   :  { %v6101_v20 = vxor.u32 2147483648, %v6100_v30  ;;  %v6181_v31 = vadd.s32 %v6180_v15, %v6176_v39  ;;  %v6244_v25 = vor.u32 %v6243_v12, %v6242_v41  ;;  %v6247_v4 = vor.u32 %v6246_v10, %v6245_v1  ;;  %v679_v41 = vpop.permute.xlu0 %678 }
 0x626   :  { %v6250_v59 = vor.u32 %v6249_v34, %v6248_v36  ;;  %v6253_v46 = vor.u32 %v6252_v53, %v6251_v16  ;;  %v6254_v3 = vshll.u32 %v14760_v45, %v6239_v8  ;;  %v6255_v17 = vshrl.u32 %v14761_v57, %v6240_v56 }
 0x627   :  { %v6102_v58 = vsel %vm6019_vm0, %v6101_v20, %v6100_v30  ;;  %v6110_v5 = vadd.s32 3, %v6106_v24  ;;  %v6182_v11 = vadd.s32 536870912, %v6181_v31  ;;  %v6233_v6 = vor.u32 8388608, %v6232_v51 }
 0x628   :  { %v6105_v47 = vsel %vm13548_vm5, %v13349_v35, %v6102_v58  ;;  %v6241_v18 = vshrl.u32 %v14756_v44, %v6240_v56  ;;  %v6256_v54 = vor.u32 %v6255_v17, %v6254_v3  ;;  %vm6257_vm14 = vcmp.lt.s32.totalorder %v13579_v43, 1 }
 0x629   :  { %8444 = vcosq.f32 %v6105_v47  ;;  %v6183_v0 = vshrl.u32 %v6182_v11, 30  ;;  %vm6260_vm13 = vcmp.lt.s32.totalorder %v13579_v43, 4  ;;  %v6265_v28 = vsel %vm6257_vm14, %v6244_v25, %v6247_v4 }
 0x62a   :  { %8446 = vsinq.f32 %v6105_v47  ;;  %vm6259_vm15 = vcmp.lt.s32.totalorder %v13579_v43, 3  ;;  %v6262_v49 = vsel %vm6260_vm13, %v6250_v59, 2102212464  ;;  %v6266_v38 = vsel %vm6260_vm13, %v6253_v46, 920167782 }
 0x62b   :  { %v6184_v9 = vshll.u32 %v6183_v0, 30  ;;  %vm6258_vm0 = vcmp.lt.s32.totalorder %v13579_v43, 2  ;;  %v6267_v29 = vsel %vm6259_vm15, %v6250_v59, %v6266_v38  ;;  %v6269_v51 = vsel %vm6257_vm14, %v6247_v4, %v6250_v59 }
 0x62c   :  { %v6268_v21 = vsel %vm6258_vm0, %v6265_v28, %v6267_v29  ;;  %v6270_v42 = vsel %vm6260_vm13, %v6256_v54, 1326507024  ;;  %v6273_v24 = vshll.u32 %v6233_v6, 8  ;;  %v6332_v8 = vand.u32 2139095040, %v13517_v63 }
 0x62d   :  { %v13614_v60 = vsub.s32 %v6181_v31, %v6184_v9  ;;  %v6261_v13 = vsel %vm6257_vm14, %v6241_v18, %v6244_v25  ;;  %v6263_v39 = vsel %vm6259_vm15, %v6247_v4, %v6262_v49  ;;  %v6271_v19 = vsel %vm6259_vm15, %v6253_v46, %v6270_v42 }
 0x62e   :  { %v6111_v22 = vand.u32 3, %v6110_v5  ;;  %v6272_v56 = vsel %vm6258_vm0, %v6269_v51, %v6271_v19  ;;  %v13620_v32 = vmul.u32.u64.low %v6273_v24, %v6268_v21  ;;  %v13621_v26 = vmul.u32.u64.high %v6273_v24, %v6268_v21, %v13620_v32 }
 0x62f   :  { %v6187_v1 = vsub.s32 0, %v13614_v60  ;;  %v6207_v30 = vsub.s32 4, %v6183_v0  ;;  %v13625_v12 = vmul.u32.u64.low %v6273_v24, %v6272_v56  ;;  %v13626_v10 = vmul.u32.u64.high %v6273_v24, %v6272_v56, %v13625_v12 }
 0x630   :  { %vm6109_vm1 = vweird.f32 %v13349_v35  ;;  %v6264_v36 = vsel %vm6258_vm0, %v6261_v13, %v6263_v39  ;;  %v6329_v15 = vand.u32 2147483647, %v13517_v63  ;;  %v6333_v34 = vshrl.u32 %v6332_v8, 23 }
 0x631   :  { %vm13634_vm2 = vcmp.le.f32.partialorder %v6121_v61, 0.7853982  ;;  %vm6123_vm4 = vcmp.lt.s32.totalorder %v13458_v40, 0  ;;  %v7922_v53 = vmin.u32 %v6187_v1, %v13614_v60  ;;  %v778_v20 = vmul.f32 %v9135_v55, %v679_v41 }
 0x632   :  { %vm6112_vm8 = vcmp.lt.s32.totalorder %v6111_v22, 2  ;;  %vm6113_vm5 = vcmp.eq.s32.totalorder %v6111_v22, 0  ;;  %v6283_v43 = vadd.s32 1, %v13621_v26  ;;  %v7929_v31 = vadd.s32 4294967169, %v6333_v34 }
 0x633   :  { %v8445_v25 = vpop.eup %8444  ;;  %vm6116_vm3 = vcmp.eq.s32.totalorder %v6111_v22, 2  ;;  %v6189_v4 = vclz %v7922_v53  ;;  %v6208_v61 = vsel %vm6123_vm4, %v6207_v30, %v6183_v0  ;;  %v6280_v59 = vmul.u32 %v6273_v24, %v6264_v36 }
 0x634   :  { %v8447_v46 = vpop.eup %8446  ;;  %v6117_v3 = vxor.u32 2147483648, %v8445_v25  ;;  %vm6282_vm6 = vc.u32 %v13626_v10, %v13620_v32  ;;  %v6336_v17 = vand.u32 8388607, %v6329_v15  ;;  %v6339_v58 = vadd.s32 1, %v7929_v31 }
 0x635   :  { %v6114_v5 = vxor.u32 2147483648, %v8447_v46  ;;  %v7923_v11 = vadd.s32 4294967294, %v6189_v4  ;;  %v6284_v6 = vsel %vm6282_vm6, %v6283_v43, %v13621_v26  ;;  %v842_v47 = vadd.f32 %v778_v20, %v13504_v23 }
 0x636   :  { %v6118_v18 = vsel %vm6116_vm3, %v6117_v3, %v8447_v46  ;;  %v6177_v54 = vadd.s32 %v13565_v7, %v13560_v14  ;;  %v6285_v0 = vadd.s32 %v6284_v6, %v6280_v59  ;;  %vm6340_vm9 = vcmp.gt.s32.totalorder %v6339_v58, 0  ;;  %v683_v7 = vpop.permute.xlu1 %682 }
 0x637   :  { %v6115_v28 = vsel %vm6113_vm5, %v8445_v25, %v6114_v5  ;;  %vm7924_vm7 = vcmp.lt.s32.totalorder %v7923_v11, 0  ;;  %v6210_v49 = vsel %vm13634_vm2, 0, %v6208_v61  ;;  %v6341_v38 = vsel %vm6340_vm9, %v6339_v58, 0 }
 0x638   :  { %v6119_v9 = vsel %vm6112_vm8, %v6115_v28, %v6118_v18  ;;  %v6192_v29 = vsel %vm7924_vm7, 0, %v7923_v11  ;;  %v6286_v51 = vadd.s32 536870912, %v6285_v0  ;;  %v6337_v21 = vor.u32 8388608, %v6336_v17 }
 0x639   :  { %v6120_v23 = vsel %vm6109_vm1, nan, %v6119_v9  ;;  %v6193_v42 = vsub.s32 32, %v6192_v29  ;;  %v6197_v24 = vsub.s32 4294967266, %v6192_v29  ;;  %v13659_v14 = vadd.f32 %v9137_v52, %v842_v47 }
 0x63a   :  { %v7626_v8 = vmul.f32 1000.0, %v6120_v23  ;;  %v6287_v13 = vshrl.u32 %v6286_v51, 30  ;;  %v13661_v39 = vshrl.u32 %v6341_v38, 5  ;;  %v6343_v19 = vand.u32 31, %v6341_v38 }
 0x63b   :  { %v6194_v22 = vshll.u32 %v13614_v60, %v6192_v29  ;;  %v6195_v56 = vshrl.u32 %v6177_v54, %v6193_v42  ;;  %v6198_v26 = vadd.s32 127, %v6197_v24  ;;  %vm6227_vm12 = vcmp.lt.s32.totalorder %v13496_v2, 0 }
 0x63c   :  { %7690 = vst [vmem:[#allocation2 + $0x188] sm:$0xff] %v7626_v8  ;;  %v13665_v35 = vadd.s32 3, %v6210_v49  ;;  %v6288_v41 = vshll.u32 %v6287_v13, 30  ;;  %v6344_v1 = vsub.s32 32, %v6343_v19  ;;  %v13668_v30 = vmul.f32 %v9135_v55, %v683_v7 }
 0x63d   :  { %v6196_v12 = vor.u32 %v6195_v56, %v6194_v22  ;;  %v6199_v36 = vshll.u32 %v6198_v26, 23  ;;  %v6281_v34 = vadd.s32 %v13620_v32, %v13626_v10  ;;  %v13672_v53 = vshll.u32 %v6337_v21, 8 }
 0x63e   :  { %v13674_v60 = vsub.s32 %v6285_v0, %v6288_v41  ;;  %v6347_v20 = vshrl.u32 %v14757_v62, %v6344_v1  ;;  %vm6361_vm10 = vcmp.lt.s32.totalorder %v13661_v39, 1  ;;  %v6433_v43 = vand.u32 2147483647, %v13659_v14 }
 0x63f   :  { %v6200_v31 = vor.u32 4788187, %v6199_v36  ;;  %v6311_v25 = vsub.s32 4, %v6287_v13  ;;  %v6346_v4 = vshll.u32 %v14756_v44, %v6343_v19  ;;  %v6350_v61 = vshrl.u32 %v14758_v27, %v6344_v1 }
 0x640   :  { %v6291_v59 = vsub.s32 0, %v13674_v60  ;;  %v6349_v32 = vshll.u32 %v14757_v62, %v6343_v19  ;;  %v6352_v10 = vshll.u32 %v14758_v27, %v6343_v19  ;;  %v6353_v46 = vshrl.u32 %v14759_v37, %v6344_v1 }
 0x641   :  { %v6201_v3 = vand.u32 2147483647, %v6200_v31  ;;  %v6203_v17 = vcvt.s32.f32 %v6196_v12  ;;  %v6355_v58 = vshll.u32 %v14759_v37, %v6343_v19  ;;  %v6356_v5 = vshrl.u32 %v14760_v45, %v6344_v1 }
 0x642   :  { %v7926_v11 = vmin.u32 %v6291_v59, %v13674_v60  ;;  %v6348_v6 = vor.u32 %v6347_v20, %v6346_v4  ;;  %v6351_v47 = vor.u32 %v6350_v61, %v6349_v32  ;;  %v6354_v18 = vor.u32 %v6353_v46, %v6352_v10 }
 0x643   :  { %v6204_v54 = vmul.f32 %v6203_v17, %v6201_v3  ;;  %v6357_v0 = vor.u32 %v6356_v5, %v6355_v58  ;;  %v6358_v28 = vshll.u32 %v14760_v45, %v6343_v19  ;;  %v6359_v49 = vshrl.u32 %v14761_v57, %v6344_v1 }
 0x644   :  { %v6293_v38 = vclz %v7926_v11  ;;  %v6312_v9 = vsel %vm6227_vm12, %v6311_v25, %v6287_v13  ;;  %vm6362_vm11 = vcmp.lt.s32.totalorder %v13661_v39, 2  ;;  %vm6363_vm14 = vcmp.lt.s32.totalorder %v13661_v39, 3  ;;  %v687_v11 = vpop.permute.xlu0 %686 }
 0x645   :  { %v6205_v29 = vxor.u32 2147483648, %v6204_v54  ;;  %v6345_v51 = vshrl.u32 %v14756_v44, %v6344_v1  ;;  %v6360_v21 = vor.u32 %v6359_v49, %v6358_v28  ;;  %vm6364_vm13 = vcmp.lt.s32.totalorder %v13661_v39, 4 }
 0x646   :  { %v7927_v23 = vadd.s32 4294967294, %v6293_v38  ;;  %v6366_v42 = vsel %vm6364_vm13, %v6354_v18, 2102212464  ;;  %v6369_v24 = vsel %vm6361_vm10, %v6348_v6, %v6351_v47  ;;  %v6370_v7 = vsel %vm6364_vm13, %v6357_v0, 920167782 }
 0x647   :  { %v6206_v8 = vsel %vm6123_vm4, %v6205_v29, %v6204_v54  ;;  %v6365_v13 = vsel %vm6361_vm10, %v6345_v51, %v6348_v6  ;;  %v6371_v19 = vsel %vm6363_vm14, %v6354_v18, %v6370_v7  ;;  %v6373_v22 = vsel %vm6361_vm10, %v6351_v47, %v6354_v18  ;;  %v14910_v54 = vld [vmem:[#allocation49_spill] sm:$0xff] }
 0x648   :  { %v6209_v56 = vsel %vm13634_vm2, %v13458_v40, %v6206_v8  ;;  %vm7928_vm15 = vcmp.lt.s32.totalorder %v7927_v23, 0  ;;  %v6372_v26 = vsel %vm6362_vm11, %v6369_v24, %v6371_v19  ;;  %v6374_v41 = vsel %vm6364_vm13, %v6360_v21, 1326507024 }
 0x649   :  { %8448 = vcosq.f32 %v6209_v56  ;;  %v6296_v1 = vsel %vm7928_vm15, 0, %v7927_v23  ;;  %v6367_v12 = vsel %vm6363_vm14, %v6351_v47, %v6366_v42  ;;  %v6375_v36 = vsel %vm6363_vm14, %v6357_v0, %v6374_v41 }
 0x64a   :  { %8450 = vsinq.f32 %v6209_v56  ;;  %v6297_v20 = vsub.s32 32, %v6296_v1  ;;  %v6298_v31 = vshll.u32 %v13674_v60, %v6296_v1  ;;  %v6301_v25 = vsub.s32 4294967266, %v6296_v1 }
 0x64b   :  { %v6376_v16 = vsel %vm6362_vm11, %v6373_v22, %v6375_v36  ;;  %v13719_v4 = vmul.u32.u64.low %v13672_v53, %v6372_v26  ;;  %v13720_v61 = vmul.u32.u64.high %v13672_v53, %v6372_v26, %v13719_v4  ;;  %v6436_v59 = vand.u32 2139095040, %v13659_v14 }
 0x64c   :  { %v6299_v32 = vshrl.u32 %v6281_v34, %v6297_v20  ;;  %v6302_v10 = vadd.s32 127, %v6301_v25  ;;  %v13724_v46 = vmul.u32.u64.low %v13672_v53, %v6376_v16  ;;  %v13725_v3 = vmul.u32.u64.high %v13672_v53, %v6376_v16, %v13724_v46 }
 0x64d   :  { %vm13729_vm0 = vcmp.le.f32.partialorder %v6225_v48, 0.7853982  ;;  %v6368_v17 = vsel %vm6362_vm11, %v6365_v13, %v6367_v12  ;;  %v6437_v58 = vshrl.u32 %v6436_v59, 23  ;;  %v843_v5 = vadd.f32 %v13668_v30, %v13508_v33 }
 0x64e   :  { %v6215_v34 = vand.u32 3, %v13665_v35  ;;  %v6300_v6 = vor.u32 %v6299_v32, %v6298_v31  ;;  %v6303_v47 = vshll.u32 %v6302_v10, 23  ;;  %v6314_v18 = vsel %vm13729_vm0, 0, %v6312_v9 }
 0x64f   :  { %v456_v48 = vmul.f32 %v9131_v50, %v14910_v54  ;;  %v6387_v0 = vadd.s32 1, %v13720_v61  ;;  %v7933_v28 = vadd.s32 4294967169, %v6437_v58  ;;  %v6440_v39 = vand.u32 8388607, %v6433_v43 }
 0x650   :  { %vm6213_vm1 = vweird.f32 %v13458_v40  ;;  %v6304_v33 = vor.u32 4788187, %v6303_v47  ;;  %v6384_v30 = vmul.u32 %v13672_v53, %v6368_v17  ;;  %vm6386_vm2 = vc.u32 %v13725_v3, %v13719_v4 }
 0x651   :  { %v780_v35 = vmul.f32 %v9135_v55, %v687_v11  ;;  %v6318_v49 = vadd.s32 3, %v6314_v18  ;;  %v6388_v38 = vsel %vm6386_vm2, %v6387_v0, %v13720_v61  ;;  %v6443_v9 = vadd.s32 1, %v7933_v28 }
 0x652   :  { %v13751_v29 = vadd.f32 %v9137_v52, %v843_v5  ;;  %vm6216_vm4 = vcmp.lt.s32.totalorder %v6215_v34, 2  ;;  %v6305_v51 = vand.u32 2147483647, %v6304_v33  ;;  %v6307_v21 = vcvt.s32.f32 %v6300_v6 }
 0x653   :  { %v6389_v23 = vadd.s32 %v6388_v38, %v6384_v30  ;;  %v8449_v42 = vpop.eup %8448  ;;  %vm6217_vm8 = vcmp.eq.s32.totalorder %v6215_v34, 0  ;;  %vm6220_vm5 = vcmp.eq.s32.totalorder %v6215_v34, 2  ;;  %v6441_v24 = vor.u32 8388608, %v6440_v39 }
 0x654   :  { %vm6444_vm3 = vcmp.gt.s32.totalorder %v6443_v9, 0  ;;  %v8451_v53 = vpop.eup %8450  ;;  %v6221_v7 = vxor.u32 2147483648, %v8449_v42  ;;  %v6308_v8 = vmul.f32 %v6307_v21, %v6305_v51  ;;  %v13753_v56 = vand.u32 3, %v6318_v49 }
 0x655   :  { %v6390_v13 = vadd.s32 536870912, %v6389_v23  ;;  %v6445_v19 = vsel %vm6444_vm3, %v6443_v9, 0  ;;  %v6218_v22 = vxor.u32 2147483648, %v8451_v53  ;;  %v6537_v41 = vand.u32 2147483647, %v13751_v29 }
 0x656   :  { %v6447_v26 = vand.u32 31, %v6445_v19  ;;  %v6222_v1 = vsel %vm6220_vm5, %v6221_v7, %v8451_v53  ;;  %v6309_v12 = vxor.u32 2147483648, %v6308_v8  ;;  %v13756_v20 = vadd.f32 %v780_v35, %v456_v48 }
 0x657   :  { %v6391_v36 = vshrl.u32 %v6390_v13, 30  ;;  %v6219_v31 = vsel %vm6217_vm8, %v8449_v42, %v6218_v22  ;;  %vm6331_vm6 = vcmp.lt.s32.totalorder %v13517_v63, 0  ;;  %v13761_v25 = vadd.s32 %v13719_v4, %v13725_v3 }
 0x658   :  { %v6448_v16 = vsub.s32 32, %v6447_v26  ;;  %v13763_v61 = vshll.u32 %v6441_v24, 8  ;;  %v6223_v59 = vsel %vm6216_vm4, %v6219_v31, %v6222_v1  ;;  %v6310_v32 = vsel %vm6227_vm12, %v6309_v12, %v6308_v8 }
 0x659   :  { %v6392_v10 = vshll.u32 %v6391_v36, 30  ;;  %v6540_v46 = vand.u32 2139095040, %v13751_v29  ;;  %v6224_v17 = vsel %vm6213_vm1, nan, %v6223_v59  ;;  %v6313_v58 = vsel %vm13729_vm0, %v13496_v2, %v6310_v32 }
 0x65a   :  { %v6451_v4 = vshrl.u32 %v14757_v62, %v6448_v16  ;;  %v13777_v3 = vand.u32 8388607, %v6537_v41  ;;  %v7627_v5 = vmul.f32 1000.0, %v6224_v17  ;;  %8452 = vcosq.f32 %v6313_v58 }
 0x65b   :  { %v13779_v11 = vsub.s32 %v6389_v23, %v6392_v10  ;;  %v6446_v34 = vshrl.u32 %v6445_v19, 5  ;;  %8454 = vsinq.f32 %v6313_v58  ;;  %vm13783_vm9 = vcmp.le.f32.partialorder %v6329_v15, 0.7853982 }
 0x65c   :  { %v6450_v60 = vshll.u32 %v14756_v44, %v6447_v26  ;;  %v6453_v6 = vshll.u32 %v14757_v62, %v6447_v26  ;;  %v6454_v47 = vshrl.u32 %v14758_v27, %v6448_v16  ;;  %7691 = vst [vmem:[#allocation2 + $0x190] sm:$0xff] %v7627_v5  ;;  %v6415_v54 = vsub.s32 4, %v6391_v36 }
 0x65d   :  { %v6395_v18 = vsub.s32 0, %v13779_v11  ;;  %v6456_v48 = vshll.u32 %v14758_v27, %v6447_v26  ;;  %v6457_v0 = vshrl.u32 %v14759_v37, %v6448_v16  ;;  %v6459_v15 = vshll.u32 %v14759_v37, %v6447_v26 }
 0x65e   :  { %v6452_v28 = vor.u32 %v6451_v4, %v6450_v60  ;;  %v6455_v39 = vor.u32 %v6454_v47, %v6453_v6  ;;  %v6460_v33 = vshrl.u32 %v14760_v45, %v6448_v16  ;;  %vm6324_vm7 = vcmp.eq.s32.totalorder %v13753_v56, 2 }
 0x65f   :  { %v7930_v30 = vmin.u32 %v6395_v18, %v13779_v11  ;;  %v6458_v35 = vor.u32 %v6457_v0, %v6456_v48  ;;  %v6463_v49 = vshrl.u32 %v14761_v57, %v6448_v16  ;;  %v6541_v38 = vshrl.u32 %v6540_v46, 23 }
 0x660   :  { %vm6321_vm12 = vcmp.eq.s32.totalorder %v13753_v56, 0  ;;  %v6449_v9 = vshrl.u32 %v14756_v44, %v6448_v16  ;;  %v6461_v51 = vor.u32 %v6460_v33, %v6459_v15  ;;  %v6462_v21 = vshll.u32 %v14760_v45, %v6447_v26 }
 0x661   :  { %v6545_v23 = vor.u32 8388608, %v13777_v3  ;;  %vm6320_vm10 = vcmp.lt.s32.totalorder %v13753_v56, 2  ;;  %v6397_v42 = vclz %v7930_v30  ;;  %v6416_v24 = vsel %vm6331_vm6, %v6415_v54, %v6391_v36 }
 0x662   :  { %vm6465_vm11 = vcmp.lt.s32.totalorder %v6446_v34, 1  ;;  %vm6467_vm14 = vcmp.lt.s32.totalorder %v6446_v34, 3  ;;  %vm6317_vm13 = vweird.f32 %v13496_v2  ;;  %v6464_v53 = vor.u32 %v6463_v49, %v6462_v21 }
 0x663   :  { %vm6468_vm15 = vcmp.lt.s32.totalorder %v6446_v34, 4  ;;  %v6469_v7 = vsel %vm6465_vm11, %v6449_v9, %v6452_v28  ;;  %v6473_v8 = vsel %vm6465_vm11, %v6452_v28, %v6455_v39  ;;  %v7931_v13 = vadd.s32 4294967294, %v6397_v42 }
 0x664   :  { %v6470_v19 = vsel %vm6468_vm15, %v6458_v35, 2102212464  ;;  %v6474_v22 = vsel %vm6468_vm15, %v6461_v51, 920167782  ;;  %v6477_v26 = vsel %vm6465_vm11, %v6455_v39, %v6458_v35  ;;  %v6478_v31 = vsel %vm6468_vm15, %v6464_v53, 1326507024  ;;  %v8453_v59 = vpop.eup %8452 }
 0x665   :  { %v6471_v1 = vsel %vm6467_vm14, %v6455_v39, %v6470_v19  ;;  %v6475_v12 = vsel %vm6467_vm14, %v6458_v35, %v6474_v22  ;;  %v7937_v16 = vadd.s32 4294967169, %v6541_v38  ;;  %vm7932_vm0 = vcmp.lt.s32.totalorder %v7931_v13, 0  ;;  %v8455_v10 = vpop.eup %8454 }
 0x666   :  { %v6418_v36 = vsel %vm13783_vm9, 0, %v6416_v24  ;;  %vm6466_vm1 = vcmp.lt.s32.totalorder %v6446_v34, 2  ;;  %v6479_v32 = vsel %vm6467_vm14, %v6461_v51, %v6478_v31  ;;  %v6325_v46 = vxor.u32 2147483648, %v8453_v59 }
 0x667   :  { %v6400_v17 = vsel %vm7932_vm0, 0, %v7931_v13  ;;  %v6472_v58 = vsel %vm6466_vm1, %v6469_v7, %v6471_v1  ;;  %v6480_v4 = vsel %vm6466_vm1, %v6477_v26, %v6479_v32  ;;  %v6322_v3 = vxor.u32 2147483648, %v8455_v10 }
 0x668   :  { %v6401_v5 = vsub.s32 32, %v6400_v17  ;;  %v6405_v60 = vsub.s32 4294967266, %v6400_v17  ;;  %v6476_v6 = vsel %vm6466_vm1, %v6473_v8, %v6475_v12  ;;  %v6326_v47 = vsel %vm6324_vm7, %v6325_v46, %v8455_v10 }
 0x669   :  { %v13814_v18 = vmul.u32.u64.low %v13763_v61, %v6480_v4  ;;  %v13815_v54 = vmul.u32.u64.high %v13763_v61, %v6480_v4, %v13814_v18  ;;  %v6547_v48 = vadd.s32 1, %v7937_v16  ;;  %v6323_v34 = vsel %vm6321_vm12, %v8453_v59, %v6322_v3 }
 0x66a   :  { %v6402_v0 = vshll.u32 %v13779_v11, %v6400_v17  ;;  %v6403_v28 = vshrl.u32 %v13761_v25, %v6401_v5  ;;  %v6406_v39 = vadd.s32 127, %v6405_v60  ;;  %v6327_v15 = vsel %vm6320_vm10, %v6323_v34, %v6326_v47 }
 0x66b   :  { %v13824_v33 = vmul.u32.u64.low %v13763_v61, %v6476_v6  ;;  %v13825_v30 = vmul.u32.u64.high %v13763_v61, %v6476_v6, %v13824_v33  ;;  %vm6548_vm2 = vcmp.gt.s32.totalorder %v6547_v48, 0  ;;  %v6328_v35 = vsel %vm6317_vm13, nan, %v6327_v15 }
 0x66c   :  { %v6404_v49 = vor.u32 %v6403_v28, %v6402_v0  ;;  %v6407_v38 = vshll.u32 %v6406_v39, 23  ;;  %v6549_v9 = vsel %vm6548_vm2, %v6547_v48, 0  ;;  %v7628_v51 = vmul.f32 1000.0, %v6328_v35 }
 0x66d   :  { %v6422_v21 = vadd.s32 3, %v6418_v36  ;;  %vm6490_vm4 = vc.u32 %v13815_v54, %v13824_v33  ;;  %v6551_v56 = vand.u32 31, %v6549_v9  ;;  %v6488_v25 = vmul.u32 %v13763_v61, %v6472_v58 }
 0x66e   :  { %v6408_v11 = vor.u32 4788187, %v6407_v38  ;;  %7692 = vst [vmem:[#allocation2 + $0x198] sm:$0xff] %v7628_v51  ;;  %v6491_v42 = vadd.s32 1, %v13825_v30  ;;  %v6550_v24 = vshrl.u32 %v6549_v9, 5  ;;  %v13834_v53 = vshll.u32 %v6545_v23, 8 }
 0x66f   :  { %v6411_v7 = vcvt.s32.f32 %v6404_v49  ;;  %v6552_v8 = vsub.s32 32, %v6551_v56  ;;  %v13838_v13 = vadd.f32 %v9137_v52, %v13756_v20  ;;  %v6554_v22 = vshll.u32 %v14756_v44, %v6551_v56 }
 0x670   :  { %v6409_v2 = vand.u32 2147483647, %v6408_v11  ;;  %v6492_v19 = vsel %vm6490_vm4, %v6491_v42, %v13825_v30  ;;  %v6557_v26 = vshll.u32 %v14757_v62, %v6551_v56  ;;  %v6560_v61 = vshll.u32 %v14758_v27, %v6551_v56 }
 0x671   :  { %v6493_v12 = vadd.s32 %v6492_v19, %v6488_v25  ;;  %v6555_v23 = vshrl.u32 %v14757_v62, %v6552_v8  ;;  %v6563_v31 = vshll.u32 %v14759_v37, %v6551_v56  ;;  %v6558_v16 = vshrl.u32 %v14758_v27, %v6552_v8 }
 0x672   :  { %v6412_v1 = vmul.f32 %v6411_v7, %v6409_v2  ;;  %v6561_v59 = vshrl.u32 %v14759_v37, %v6552_v8  ;;  %v6564_v20 = vshrl.u32 %v14760_v45, %v6552_v8  ;;  %v6567_v36 = vshrl.u32 %v14761_v57, %v6552_v8  ;;  %v691_v7 = vpop.permute.xlu1 %690 }
 0x673   :  { %v6494_v10 = vadd.s32 536870912, %v6493_v12  ;;  %v6556_v46 = vor.u32 %v6555_v23, %v6554_v22  ;;  %v6566_v17 = vshll.u32 %v14760_v45, %v6551_v56  ;;  %v6559_v58 = vor.u32 %v6558_v16, %v6557_v26 }
 0x674   :  { %v6413_v32 = vxor.u32 2147483648, %v6412_v1  ;;  %v6562_v4 = vor.u32 %v6561_v59, %v6560_v61  ;;  %v6565_v3 = vor.u32 %v6564_v20, %v6563_v31  ;;  %vm6569_vm8 = vcmp.lt.s32.totalorder %v6550_v24, 1  ;;  %v14914_v61 = vld [vmem:[#allocation52_spill] sm:$0xff] }
 0x675   :  { %v6495_v60 = vshrl.u32 %v6494_v10, 30  ;;  %v6568_v6 = vor.u32 %v6567_v36, %v6566_v17  ;;  %vm6572_vm5 = vcmp.lt.s32.totalorder %v6550_v24, 4  ;;  %vm6571_vm3 = vcmp.lt.s32.totalorder %v6550_v24, 3 }
 0x676   :  { %v6414_v5 = vsel %vm6331_vm6, %v6413_v32, %v6412_v1  ;;  %v6577_v18 = vsel %vm6569_vm8, %v6556_v46, %v6559_v58  ;;  %v6578_v48 = vsel %vm6572_vm5, %v6565_v3, 920167782  ;;  %v6553_v0 = vshrl.u32 %v14756_v44, %v6552_v8  ;;  %v14913_v8 = vld [vmem:[#allocation51_spill] sm:$0xff] }
 0x677   :  { %v6417_v47 = vsel %vm13783_vm9, %v13517_v63, %v6414_v5  ;;  %v6496_v34 = vshll.u32 %v6495_v60, 30  ;;  %v6574_v28 = vsel %vm6572_vm5, %v6562_v4, 2102212464  ;;  %vm6570_vm6 = vcmp.lt.s32.totalorder %v6550_v24, 2 }
 0x678   :  { %8456 = vcosq.f32 %v6417_v47  ;;  %v6579_v39 = vsel %vm6571_vm3, %v6562_v4, %v6578_v48  ;;  %v6581_v15 = vsel %vm6569_vm8, %v6559_v58, %v6562_v4  ;;  %v6573_v40 = vsel %vm6569_vm8, %v6553_v0, %v6556_v46 }
 0x679   :  { %8458 = vsinq.f32 %v6417_v47  ;;  %v13862_v30 = vsub.s32 %v6493_v12, %v6496_v34  ;;  %v6580_v35 = vsel %vm6570_vm6, %v6577_v18, %v6579_v39  ;;  %v6582_v49 = vsel %vm6572_vm5, %v6568_v6, 1326507024 }
 0x67a   :  { %v6575_v38 = vsel %vm6571_vm3, %v6559_v58, %v6574_v28  ;;  %v6583_v9 = vsel %vm6571_vm3, %v6565_v3, %v6582_v49  ;;  %v13870_v51 = vmul.u32.u64.low %v13834_v53, %v6580_v35  ;;  %v13871_v11 = vmul.u32.u64.high %v13834_v53, %v6580_v35, %v13870_v51 }
 0x67b   :  { %v6423_v56 = vand.u32 3, %v6422_v21  ;;  %v6499_v25 = vsub.s32 0, %v13862_v30  ;;  %v6519_v42 = vsub.s32 4, %v6495_v60  ;;  %v6584_v2 = vsel %vm6570_vm6, %v6581_v15, %v6583_v9 }
 0x67c   :  { %v13878_v19 = vmul.f32 %v9131_v50, %v14913_v8  ;;  %v13881_v22 = vmul.u32.u64.low %v13834_v53, %v6584_v2  ;;  %v13882_v26 = vmul.u32.u64.high %v13834_v53, %v6584_v2, %v13881_v22  ;;  %v457_v1 = vmul.f32 %v9131_v50, %v14914_v61 }
 0x67d   :  { %v7934_v12 = vmin.u32 %v6499_v25, %v13862_v30  ;;  %v6576_v21 = vsel %vm6570_vm6, %v6573_v40, %v6575_v38  ;;  %v6644_v23 = vand.u32 2139095040, %v13838_v13  ;;  %vm6421_vm9 = vweird.f32 %v13517_v63  ;;  %v695_v22 = vpop.permute.xlu0 %694 }
 0x67e   :  { %vm13892_vm7 = vcmp.le.f32.partialorder %v6433_v43, 0.7853982  ;;  %vm6435_vm12 = vcmp.lt.s32.totalorder %v13659_v14, 0  ;;  %v6595_v16 = vadd.s32 1, %v13871_v11  ;;  %v781_v59 = vmul.f32 %v9135_v55, %v691_v7 }
 0x67f   :  { %vm6424_vm10 = vcmp.lt.s32.totalorder %v6423_v56, 2  ;;  %v6501_v20 = vclz %v7934_v12  ;;  %v6520_v24 = vsel %vm6435_vm12, %v6519_v42, %v6495_v60  ;;  %v6641_v36 = vand.u32 2147483647, %v13838_v13 }
 0x680   :  { %vm6425_vm11 = vcmp.eq.s32.totalorder %v6423_v56, 0  ;;  %v6592_v32 = vmul.u32 %v13834_v53, %v6576_v21  ;;  %vm6594_vm14 = vc.u32 %v13882_v26, %v13870_v51  ;;  %v6645_v43 = vshrl.u32 %v6644_v23, 23 }
 0x681   :  { %vm6428_vm13 = vcmp.eq.s32.totalorder %v6423_v56, 2  ;;  %v6489_v46 = vadd.s32 %v13824_v33, %v13815_v54  ;;  %v7935_v17 = vadd.s32 4294967294, %v6501_v20  ;;  %v6596_v58 = vsel %vm6594_vm14, %v6595_v16, %v13871_v11 }
 0x682   :  { %v8457_v10 = vpop.eup %8456  ;;  %v6522_v5 = vsel %vm13892_vm7, 0, %v6520_v24  ;;  %v6597_v60 = vadd.s32 %v6596_v58, %v6592_v32  ;;  %v7941_v6 = vadd.s32 4294967169, %v6645_v43  ;;  %v6648_v47 = vand.u32 8388607, %v6641_v36 }
 0x683   :  { %v8459_v4 = vpop.eup %8458  ;;  %v6429_v3 = vxor.u32 2147483648, %v8457_v10  ;;  %vm7936_vm15 = vcmp.lt.s32.totalorder %v7935_v17, 0  ;;  %v845_v18 = vadd.f32 %v781_v59, %v457_v1  ;;  %v6526_v15 = vadd.s32 3, %v6522_v5 }
 0x684   :  { %v6426_v53 = vxor.u32 2147483648, %v8459_v4  ;;  %v6504_v34 = vsel %vm7936_vm15, 0, %v7935_v17  ;;  %v6598_v0 = vadd.s32 536870912, %v6597_v60  ;;  %v6651_v54 = vadd.s32 1, %v7941_v6 }
 0x685   :  { %v6430_v48 = vsel %vm6428_vm13, %v6429_v3, %v8459_v4  ;;  %v6505_v28 = vsub.s32 32, %v6504_v34  ;;  %v6509_v39 = vsub.s32 4294967266, %v6504_v34  ;;  %v6506_v35 = vshll.u32 %v13862_v30, %v6504_v34 }
 0x686   :  { %v6427_v33 = vsel %vm6425_vm11, %v8457_v10, %v6426_v53  ;;  %v6599_v49 = vshrl.u32 %v6598_v0, 30  ;;  %vm6652_vm0 = vcmp.gt.s32.totalorder %v6651_v54, 0  ;;  %v6649_v7 = vor.u32 8388608, %v6648_v47 }
 0x687   :  { %v6431_v40 = vsel %vm6424_vm10, %v6427_v33, %v6430_v48  ;;  %v6507_v9 = vshrl.u32 %v6489_v46, %v6505_v28  ;;  %v6510_v11 = vadd.s32 127, %v6509_v39  ;;  %v6653_v25 = vsel %vm6652_vm0, %v6651_v54, 0 }
 0x688   :  { %v6432_v38 = vsel %vm6421_vm9, nan, %v6431_v40  ;;  %v6600_v2 = vshll.u32 %v6599_v49, 30  ;;  %v13918_v8 = vadd.f32 %v9137_v52, %v845_v18  ;;  %v6623_v1 = vsub.s32 4, %v6599_v49 }
 0x689   :  { %v7629_v42 = vmul.f32 1000.0, %v6432_v38  ;;  %v6508_v61 = vor.u32 %v6507_v9, %v6506_v35  ;;  %v6511_v56 = vshll.u32 %v6510_v11, 23  ;;  %v6655_v12 = vand.u32 31, %v6653_v25 }
 0x68a   :  { %v13920_v30 = vand.u32 3, %v6526_v15  ;;  %vm13924_vm1 = vcmp.le.f32.partialorder %v6537_v41, 0.7853982  ;;  %vm6539_vm2 = vcmp.lt.s32.totalorder %v13751_v29, 0  ;;  %v13929_v21 = vsub.s32 %v6597_v60, %v6600_v2 }
 0x68b   :  { %7693 = vst [vmem:[#allocation2 + $0x1a0] sm:$0xff] %v7629_v42  ;;  %v6512_v23 = vor.u32 4788187, %v6511_v56  ;;  %v13931_v16 = vshrl.u32 %v6653_v25, 5  ;;  %v6656_v59 = vsub.s32 32, %v6655_v12  ;;  %v13934_v20 = vmul.f32 %v9135_v55, %v695_v22 }
 0x68c   :  { %v6593_v24 = vadd.s32 %v13870_v51, %v13882_v26  ;;  %v6603_v32 = vsub.s32 0, %v13929_v21  ;;  %v13939_v41 = vshll.u32 %v6649_v7, 8  ;;  %v6745_v43 = vand.u32 2147483647, %v13918_v8 }
 0x68d   :  { %v6513_v10 = vand.u32 2147483647, %v6512_v23  ;;  %v6515_v46 = vcvt.s32.f32 %v6508_v61  ;;  %v6624_v17 = vsel %vm6539_vm2, %v6623_v1, %v6599_v49  ;;  %v6659_v58 = vshrl.u32 %v14757_v62, %v6656_v59 }
 0x68e   :  { %v7938_v4 = vmin.u32 %v6603_v32, %v13929_v21  ;;  %v6658_v3 = vshll.u32 %v14756_v44, %v6655_v12  ;;  %v6662_v5 = vshrl.u32 %v14758_v27, %v6656_v59  ;;  %v6665_v51 = vshrl.u32 %v14759_v37, %v6656_v59 }
 0x68f   :  { %v6516_v26 = vmul.f32 %v6515_v46, %v6513_v10  ;;  %v6664_v60 = vshll.u32 %v14758_v27, %v6655_v12  ;;  %vm6673_vm4 = vcmp.lt.s32.totalorder %v13931_v16, 1  ;;  %v6748_v6 = vand.u32 2139095040, %v13918_v8 }
 0x690   :  { %v6605_v53 = vclz %v7938_v4  ;;  %v6626_v47 = vsel %vm13924_vm1, 0, %v6624_v17  ;;  %v6660_v18 = vor.u32 %v6659_v58, %v6658_v3  ;;  %v6661_v48 = vshll.u32 %v14757_v62, %v6655_v12 }
 0x691   :  { %vm6674_vm8 = vcmp.lt.s32.totalorder %v13931_v16, 2  ;;  %v6517_v34 = vxor.u32 2147483648, %v6516_v26  ;;  %v6666_v0 = vor.u32 %v6665_v51, %v6664_v60  ;;  %v6667_v54 = vshll.u32 %v14759_v37, %v6655_v12 }
 0x692   :  { %v6668_v33 = vshrl.u32 %v14760_v45, %v6656_v59  ;;  %v7939_v28 = vadd.s32 4294967294, %v6605_v53  ;;  %v6663_v39 = vor.u32 %v6662_v5, %v6661_v48  ;;  %v6670_v15 = vshll.u32 %v14760_v45, %v6655_v12 }
 0x693   :  { %v6671_v40 = vshrl.u32 %v14761_v57, %v6656_v59  ;;  %v6518_v35 = vsel %vm6435_vm12, %v6517_v34, %v6516_v26  ;;  %v6657_v49 = vshrl.u32 %v14756_v44, %v6656_v59  ;;  %vm6675_vm5 = vcmp.lt.s32.totalorder %v13931_v16, 3 }
 0x694   :  { %v6669_v38 = vor.u32 %v6668_v33, %v6667_v54  ;;  %v6521_v9 = vsel %vm13892_vm7, %v13659_v14, %v6518_v35  ;;  %vm7940_vm3 = vcmp.lt.s32.totalorder %v7939_v28, 0  ;;  %vm6676_vm6 = vcmp.lt.s32.totalorder %v13931_v16, 4 }
 0x695   :  { %v6672_v11 = vor.u32 %v6671_v40, %v6670_v15  ;;  %8460 = vcosq.f32 %v6521_v9  ;;  %v6608_v25 = vsel %vm7940_vm3, 0, %v7939_v28  ;;  %v6677_v42 = vsel %vm6673_vm4, %v6657_v49, %v6660_v18 }
 0x696   :  { %v6678_v2 = vsel %vm6676_vm6, %v6666_v0, 2102212464  ;;  %8462 = vsinq.f32 %v6521_v9  ;;  %v6609_v7 = vsub.s32 32, %v6608_v25  ;;  %v6613_v22 = vsub.s32 4294967266, %v6608_v25 }
 0x697   :  { %v6681_v61 = vsel %vm6673_vm4, %v6660_v18, %v6663_v39  ;;  %v6610_v56 = vshll.u32 %v13929_v21, %v6608_v25  ;;  %v6682_v31 = vsel %vm6676_vm6, %v6669_v38, 920167782  ;;  %v6685_v1 = vsel %vm6673_vm4, %v6663_v39, %v6666_v0 }
 0x698   :  { %v6686_v12 = vsel %vm6676_vm6, %v6672_v11, 1326507024  ;;  %v6611_v23 = vshrl.u32 %v6593_v24, %v6609_v7  ;;  %v6614_v59 = vadd.s32 127, %v6613_v22  ;;  %v6683_v32 = vsel %vm6675_vm5, %v6666_v0, %v6682_v31 }
 0x699   :  { %v6687_v10 = vsel %vm6675_vm5, %v6669_v38, %v6686_v12  ;;  %v6679_v46 = vsel %vm6675_vm5, %v6663_v39, %v6678_v2  ;;  %v6684_v17 = vsel %vm6674_vm8, %v6681_v61, %v6683_v32  ;;  %v6749_v58 = vshrl.u32 %v6748_v6, 23 }
 0x69a   :  { %v6688_v21 = vsel %vm6674_vm8, %v6685_v1, %v6687_v10  ;;  %v6612_v4 = vor.u32 %v6611_v23, %v6610_v56  ;;  %v6615_v3 = vshll.u32 %v6614_v59, 23  ;;  %v846_v53 = vadd.f32 %v13934_v20, %v13878_v19 }
 0x69b   :  { %v13986_v24 = vmul.u32.u64.low %v13939_v41, %v6688_v21  ;;  %v13987_v5 = vmul.u32.u64.high %v13939_v41, %v6688_v21, %v13986_v24  ;;  %v13990_v51 = vmul.u32.u64.low %v13939_v41, %v6684_v17  ;;  %v13991_v26 = vmul.u32.u64.high %v13939_v41, %v6684_v17, %v13990_v51 }
 0x69c   :  { %v7945_v60 = vadd.s32 4294967169, %v6749_v58  ;;  %vm6525_vm9 = vweird.f32 %v13659_v14  ;;  %vm6528_vm7 = vcmp.lt.s32.totalorder %v13920_v30, 2  ;;  %v6616_v6 = vor.u32 4788187, %v6615_v3 }
 0x69d   :  { %vm6529_vm12 = vcmp.eq.s32.totalorder %v13920_v30, 0  ;;  %v6630_v18 = vadd.s32 3, %v6626_v47  ;;  %v6680_v48 = vsel %vm6674_vm8, %v6677_v42, %v6679_v46  ;;  %v6619_v54 = vcvt.s32.f32 %v6612_v4 }
 0x69e   :  { %v6755_v34 = vadd.s32 1, %v7945_v60  ;;  %v6617_v0 = vand.u32 2147483647, %v6616_v6  ;;  %vm6698_vm10 = vc.u32 %v13987_v5, %v13990_v51  ;;  %v6752_v19 = vand.u32 8388607, %v6745_v43 }
 0x69f   :  { %v8461_v20 = vpop.eup %8460  ;;  %vm6532_vm11 = vcmp.eq.s32.totalorder %v13920_v30, 2  ;;  %v6699_v33 = vadd.s32 1, %v13991_v26  ;;  %v14008_v47 = vadd.f32 %v9137_v52, %v846_v53  ;;  %v6696_v15 = vmul.u32 %v13939_v41, %v6680_v48 }
 0x6a0   :  { %vm6756_vm14 = vcmp.gt.s32.totalorder %v6755_v34, 0  ;;  %v8463_v16 = vpop.eup %8462  ;;  %v6533_v28 = vxor.u32 2147483648, %v8461_v20  ;;  %v6620_v39 = vmul.f32 %v6619_v54, %v6617_v0  ;;  %v14011_v49 = vand.u32 3, %v6630_v18 }
 0x6a1   :  { %v6757_v40 = vsel %vm6756_vm14, %v6755_v34, 0  ;;  %v6530_v35 = vxor.u32 2147483648, %v8463_v16  ;;  %v6700_v38 = vsel %vm6698_vm10, %v6699_v33, %v13991_v26  ;;  %v6753_v2 = vor.u32 8388608, %v6752_v19 }
 0x6a2   :  { %v6759_v9 = vand.u32 31, %v6757_v40  ;;  %v6534_v11 = vsel %vm6532_vm11, %v6533_v28, %v8463_v16  ;;  %v6621_v25 = vxor.u32 2147483648, %v6620_v39  ;;  %v6701_v42 = vadd.s32 %v6700_v38, %v6696_v15 }
 0x6a3   :  { %v6531_v7 = vsel %vm6529_vm12, %v8461_v20, %v6530_v35  ;;  %v14016_v22 = vshrl.u32 %v6757_v40, 5  ;;  %v6852_v56 = vand.u32 2139095040, %v14008_v47  ;;  %vm14034_vm13 = vcmp.le.f32.partialorder %v6641_v36, 0.7853982 }
 0x6a4   :  { %v6760_v61 = vsub.s32 32, %v6759_v9  ;;  %v6535_v41 = vsel %vm6528_vm7, %v6531_v7, %v6534_v11  ;;  %v6622_v31 = vsel %vm6539_vm2, %v6621_v25, %v6620_v39  ;;  %v6702_v1 = vadd.s32 536870912, %v6701_v42 }
 0x6a5   :  { %v6762_v12 = vshll.u32 %v14756_v44, %v6759_v9  ;;  %v6536_v23 = vsel %vm6525_vm9, nan, %v6535_v41  ;;  %v6625_v59 = vsel %vm13924_vm1, %v13751_v29, %v6622_v31  ;;  %v6765_v10 = vshll.u32 %v14757_v62, %v6759_v9 }
 0x6a6   :  { %v6763_v32 = vshrl.u32 %v14757_v62, %v6760_v61  ;;  %v7630_v46 = vmul.f32 1000.0, %v6536_v23  ;;  %8464 = vcosq.f32 %v6625_v59  ;;  %v6703_v30 = vshrl.u32 %v6702_v1, 30 }
 0x6a7   :  { %v6766_v17 = vshrl.u32 %v14758_v27, %v6760_v61  ;;  %8466 = vsinq.f32 %v6625_v59  ;;  %v6768_v63 = vshll.u32 %v14758_v27, %v6759_v9  ;;  %v6769_v58 = vshrl.u32 %v14759_v37, %v6760_v61 }
 0x6a8   :  { %v6764_v14 = vor.u32 %v6763_v32, %v6762_v12  ;;  %7694 = vst [vmem:[#allocation2 + $0x1a8] sm:$0xff] %v7630_v46  ;;  %v6704_v4 = vshll.u32 %v6703_v30, 30  ;;  %v6727_v3 = vsub.s32 4, %v6703_v30  ;;  %v6771_v24 = vshll.u32 %v14759_v37, %v6759_v9 }
 0x6a9   :  { %v6772_v26 = vshrl.u32 %v14760_v45, %v6760_v61  ;;  %v6767_v60 = vor.u32 %v6766_v17, %v6765_v10  ;;  %v6770_v53 = vor.u32 %v6769_v58, %v6768_v63  ;;  %v6774_v6 = vshll.u32 %v14760_v45, %v6759_v9 }
 0x6aa   :  { %v6775_v36 = vshrl.u32 %v14761_v57, %v6760_v61  ;;  %vm6643_vm15 = vcmp.lt.s32.totalorder %v13838_v13, 0  ;;  %v14045_v18 = vsub.s32 %v6701_v42, %v6704_v4  ;;  %v14047_v34 = vshll.u32 %v6753_v2, 8 }
 0x6ab   :  { %v6773_v48 = vor.u32 %v6772_v26, %v6771_v24  ;;  %vm6633_vm0 = vcmp.eq.s32.totalorder %v14011_v49, 0  ;;  %v6761_v0 = vshrl.u32 %v14756_v44, %v6760_v61  ;;  %vm6780_vm1 = vcmp.lt.s32.totalorder %v14016_v22, 4 }
 0x6ac   :  { %v6776_v54 = vor.u32 %v6775_v36, %v6774_v6  ;;  %v6853_v19 = vshrl.u32 %v6852_v56, 23  ;;  %vm6632_vm2 = vcmp.lt.s32.totalorder %v14011_v49, 2  ;;  %v6707_v20 = vsub.s32 0, %v14045_v18 }
 0x6ad   :  { %v6728_v33 = vsel %vm6643_vm15, %v6727_v3, %v6703_v30  ;;  %vm6777_vm4 = vcmp.lt.s32.totalorder %v14016_v22, 1  ;;  %v6782_v16 = vsel %vm6780_vm1, %v6770_v53, 2102212464  ;;  %vm6629_vm8 = vweird.f32 %v13751_v29  ;;  %v699_v29 = vpop.permute.xlu1 %698 }
 0x6ae   :  { %vm6778_vm5 = vcmp.lt.s32.totalorder %v14016_v22, 2  ;;  %vm6779_vm3 = vcmp.lt.s32.totalorder %v14016_v22, 3  ;;  %v6785_v28 = vsel %vm6777_vm4, %v6764_v14, %v6767_v60  ;;  %v6786_v39 = vsel %vm6780_vm1, %v6773_v48, 920167782 }
 0x6af   :  { %v7942_v15 = vmin.u32 %v6707_v20, %v14045_v18  ;;  %v6781_v40 = vsel %vm6777_vm4, %v6761_v0, %v6764_v14  ;;  %v6783_v35 = vsel %vm6779_vm3, %v6767_v60, %v6782_v16  ;;  %v6787_v38 = vsel %vm6779_vm3, %v6770_v53, %v6786_v39  ;;  %v14921_v16 = vld [vmem:[#allocation5_spill] sm:$0xff] }
 0x6b0   :  { %v6788_v9 = vsel %vm6778_vm5, %v6785_v28, %v6787_v38  ;;  %v6789_v11 = vsel %vm6777_vm4, %v6767_v60, %v6770_v53  ;;  %v6790_v25 = vsel %vm6780_vm1, %v6776_v54, 1326507024  ;;  %v7949_v42 = vadd.s32 4294967169, %v6853_v19  ;;  %v8465_v2 = vpop.eup %8464  ;;  %v14922_v28 = vld [vmem:[#allocation53_spill] sm:$0xff] }
 0x6b1   :  { %vm6636_vm6 = vcmp.eq.s32.totalorder %v14011_v49, 2  ;;  %v6709_v7 = vclz %v7942_v15  ;;  %v6730_v61 = vsel %vm14034_vm13, 0, %v6728_v33  ;;  %v6849_v56 = vand.u32 2147483647, %v14008_v47  ;;  %v8467_v41 = vpop.eup %8466 }
 0x6b2   :  { %v6637_v31 = vxor.u32 2147483648, %v8465_v2  ;;  %v6791_v1 = vsel %vm6779_vm3, %v6773_v48, %v6790_v25  ;;  %v14080_v12 = vmul.u32.u64.low %v14047_v34, %v6788_v9  ;;  %v14081_v23 = vmul.u32.u64.high %v14047_v34, %v6788_v9, %v14080_v12 }
 0x6b3   :  { %v6634_v59 = vxor.u32 2147483648, %v8467_v41  ;;  %v7943_v32 = vadd.s32 4294967294, %v6709_v7  ;;  %v6784_v10 = vsel %vm6778_vm5, %v6781_v40, %v6783_v35  ;;  %v6792_v46 = vsel %vm6778_vm5, %v6789_v11, %v6791_v1  ;;  %v14923_v35 = vld [vmem:[#allocation6_spill] sm:$0xff] }
 0x6b4   :  { %v6638_v30 = vsel %vm6636_vm6, %v6637_v31, %v8467_v41  ;;  %v14089_v17 = vmul.u32.u64.low %v14047_v34, %v6792_v46  ;;  %v14090_v14 = vmul.u32.u64.high %v14047_v34, %v6792_v46, %v14089_v17  ;;  %v6859_v63 = vadd.s32 1, %v7949_v42 }
 0x6b5   :  { %v6635_v58 = vsel %vm6633_vm0, %v8465_v2, %v6634_v59  ;;  %v6697_v4 = vadd.s32 %v13990_v51, %v13987_v5  ;;  %vm7944_vm9 = vcmp.lt.s32.totalorder %v7943_v32, 0  ;;  %v6734_v3 = vadd.s32 3, %v6730_v61 }
 0x6b6   :  { %v6639_v24 = vsel %vm6632_vm2, %v6635_v58, %v6638_v30  ;;  %v6712_v26 = vsel %vm7944_vm9, 0, %v7943_v32  ;;  %v6803_v22 = vadd.s32 1, %v14081_v23  ;;  %vm6860_vm7 = vcmp.gt.s32.totalorder %v6859_v63, 0 }
 0x6b7   :  { %v6640_v60 = vsel %vm6629_vm8, nan, %v6639_v24  ;;  %v6713_v53 = vsub.s32 32, %v6712_v26  ;;  %v6717_v6 = vsub.s32 4294967266, %v6712_v26  ;;  %v6800_v36 = vmul.u32 %v14047_v34, %v6784_v10 }
 0x6b8   :  { %v7631_v48 = vmul.f32 1000.0, %v6640_v60  ;;  %vm6802_vm12 = vc.u32 %v14090_v14, %v14080_v12  ;;  %v6856_v5 = vand.u32 8388607, %v6849_v56  ;;  %v6861_v51 = vsel %vm6860_vm7, %v6859_v63, 0 }
 0x6b9   :  { %v6714_v49 = vshll.u32 %v14045_v18, %v6712_v26  ;;  %v6715_v0 = vshrl.u32 %v6697_v4, %v6713_v53  ;;  %v6718_v54 = vadd.s32 127, %v6717_v6  ;;  %v6804_v19 = vsel %vm6802_vm12, %v6803_v22, %v14081_v23 }
 0x6ba   :  { %7695 = vst [vmem:[#allocation2 + $0x1b0] sm:$0xff] %v7631_v48  ;;  %v6805_v20 = vadd.s32 %v6804_v19, %v6800_v36  ;;  %v6863_v33 = vand.u32 31, %v6861_v51  ;;  %v14110_v34 = vmul.f32 %v9131_v50, %v14921_v16  ;;  %v459_v39 = vmul.f32 %v9131_v50, %v14922_v28 }
 0x6bb   :  { %v6716_v15 = vor.u32 %v6715_v0, %v6714_v49  ;;  %v6719_v40 = vshll.u32 %v6718_v54, 23  ;;  %v14116_v18 = vmul.f32 %v9131_v50, %v14923_v35  ;;  %v783_v11 = vmul.f32 %v9135_v55, %v699_v29 }
 0x6bc   :  { %v6806_v38 = vadd.s32 536870912, %v6805_v20  ;;  %v6864_v9 = vsub.s32 32, %v6863_v33  ;;  %v14119_v42 = vand.u32 3, %v6734_v3  ;;  %v6857_v2 = vor.u32 8388608, %v6856_v5 }
 0x6bd   :  { %v6720_v25 = vor.u32 4788187, %v6719_v40  ;;  %v6862_v7 = vshrl.u32 %v6861_v51, 5  ;;  %v6723_v61 = vcvt.s32.f32 %v6716_v15  ;;  %v6875_v32 = vshll.u32 %v14759_v37, %v6863_v33 }
 0x6be   :  { %v14121_v41 = vshrl.u32 %v6806_v38, 30  ;;  %v6867_v31 = vshrl.u32 %v14757_v62, %v6864_v9  ;;  %v6870_v1 = vshrl.u32 %v14758_v27, %v6864_v9  ;;  %v6873_v59 = vshrl.u32 %v14759_v37, %v6864_v9 }
 0x6bf   :  { %v6721_v23 = vand.u32 2147483647, %v6720_v25  ;;  %v6876_v10 = vshrl.u32 %v14760_v45, %v6864_v9  ;;  %v6866_v30 = vshll.u32 %v14756_v44, %v6863_v33  ;;  %v6869_v17 = vshll.u32 %v14757_v62, %v6863_v33 }
 0x6c0   :  { %v6808_v46 = vshll.u32 %v14121_v41, 30  ;;  %v6872_v63 = vshll.u32 %v14758_v27, %v6863_v33  ;;  %v6878_v3 = vshll.u32 %v14760_v45, %v6863_v33  ;;  %v6879_v24 = vshrl.u32 %v14761_v57, %v6864_v9 }
 0x6c1   :  { %v6724_v58 = vmul.f32 %v6723_v61, %v6721_v23  ;;  %v6877_v4 = vor.u32 %v6876_v10, %v6875_v32  ;;  %v6868_v22 = vor.u32 %v6867_v31, %v6866_v30  ;;  %v6871_v60 = vor.u32 %v6870_v1, %v6869_v17  ;;  %v703_v1 = vpop.permute.xlu0 %702 }
 0x6c2   :  { %v14134_v26 = vsub.s32 %v6805_v20, %v6808_v46  ;;  %v6874_v53 = vor.u32 %v6873_v59, %v6872_v63  ;;  %v6880_v36 = vor.u32 %v6879_v24, %v6878_v3  ;;  %v6897_v48 = vshll.u32 %v6857_v2, 8 }
 0x6c3   :  { %v6725_v6 = vxor.u32 2147483648, %v6724_v58  ;;  %v847_v5 = vadd.f32 %v783_v11, %v459_v39  ;;  %vm6881_vm10 = vcmp.lt.s32.totalorder %v6862_v7, 1  ;;  %vm6882_vm11 = vcmp.lt.s32.totalorder %v6862_v7, 2 }
 0x6c4   :  { %v6811_v51 = vsub.s32 0, %v14134_v26  ;;  %vm6884_vm14 = vcmp.lt.s32.totalorder %v6862_v7, 4  ;;  %v6865_v0 = vshrl.u32 %v14756_v44, %v6864_v9  ;;  %vm6883_vm0 = vcmp.lt.s32.totalorder %v6862_v7, 3 }
 0x6c5   :  { %v6726_v49 = vsel %vm6643_vm15, %v6725_v6, %v6724_v58  ;;  %v6890_v54 = vsel %vm6884_vm14, %v6877_v4, 920167782  ;;  %v6886_v20 = vsel %vm6884_vm14, %v6874_v53, 2102212464  ;;  %v6889_v33 = vsel %vm6881_vm10, %v6868_v22, %v6871_v60 }
 0x6c6   :  { %v6729_v19 = vsel %vm14034_vm13, %v13838_v13, %v6726_v49  ;;  %v7946_v29 = vmin.u32 %v6811_v51, %v14134_v26  ;;  %v6891_v16 = vsel %vm6883_vm0, %v6874_v53, %v6890_v54  ;;  %v6893_v28 = vsel %vm6881_vm10, %v6871_v60, %v6874_v53 }
 0x6c7   :  { %8468 = vcosq.f32 %v6729_v19  ;;  %v6894_v39 = vsel %vm6884_vm14, %v6880_v36, 1326507024  ;;  %v6831_v40 = vsub.s32 4, %v14121_v41  ;;  %v6885_v35 = vsel %vm6881_vm10, %v6865_v0, %v6868_v22 }
 0x6c8   :  { %8470 = vsinq.f32 %v6729_v19  ;;  %v6813_v15 = vclz %v7946_v29  ;;  %v6887_v21 = vsel %vm6883_vm0, %v6871_v60, %v6886_v20  ;;  %v6892_v38 = vsel %vm6882_vm11, %v6889_v33, %v6891_v16 }
 0x6c9   :  { %v6895_v9 = vsel %vm6883_vm0, %v6877_v4, %v6894_v39  ;;  %v14153_v11 = vadd.f32 %v9137_v52, %v847_v5  ;;  %v14156_v61 = vmul.u32.u64.low %v6897_v48, %v6892_v38  ;;  %v14157_v31 = vmul.u32.u64.high %v6897_v48, %v6892_v38, %v14156_v61 }
 0x6ca   :  { %v7947_v25 = vadd.s32 4294967294, %v6813_v15  ;;  %v6896_v2 = vsel %vm6882_vm11, %v6893_v28, %v6895_v9  ;;  %vm6747_vm13 = vcmp.lt.s32.totalorder %v13918_v8, 0  ;;  %vm14167_vm15 = vcmp.le.f32.partialorder %v6745_v43, 0.7853982 }
 0x6cb   :  { %v14161_v23 = vmul.u32.u64.low %v6897_v48, %v6896_v2  ;;  %v14162_v59 = vmul.u32.u64.high %v6897_v48, %v6896_v2, %v14161_v23  ;;  %v6953_v32 = vand.u32 2147483647, %v14153_v11  ;;  %v6888_v46 = vsel %vm6882_vm11, %v6885_v35, %v6887_v21 }
 0x6cc   :  { %vm7948_vm1 = vcmp.lt.s32.totalorder %v7947_v25, 0  ;;  %v6956_v30 = vand.u32 2139095040, %v14153_v11  ;;  %vm6736_vm2 = vcmp.lt.s32.totalorder %v14119_v42, 2  ;;  %v6801_v17 = vadd.s32 %v14080_v12, %v14090_v14 }
 0x6cd   :  { %v6816_v63 = vsel %vm7948_vm1, 0, %v7947_v25  ;;  %v784_v58 = vmul.f32 %v9135_v55, %v703_v1  ;;  %vm6733_vm4 = vweird.f32 %v13838_v13  ;;  %v6832_v3 = vsel %vm6747_vm13, %v6831_v40, %v14121_v41  ;;  %v707_v25 = vpop.permute.xlu1 %706 }
 0x6ce   :  { %v6817_v4 = vsub.s32 32, %v6816_v63  ;;  %v6821_v43 = vsub.s32 4294967266, %v6816_v63  ;;  %v6907_v7 = vadd.s32 1, %v14157_v31  ;;  %v6904_v24 = vmul.u32 %v6897_v48, %v6888_v46 }
 0x6cf   :  { %vm6906_vm8 = vc.u32 %v14162_v59, %v14156_v61  ;;  %v6957_v22 = vshrl.u32 %v6956_v30, 23  ;;  %v6960_v12 = vand.u32 8388607, %v6953_v32  ;;  %v6818_v14 = vshll.u32 %v14134_v26, %v6816_v63 }
 0x6d0   :  { %v6819_v60 = vshrl.u32 %v6801_v17, %v6817_v4  ;;  %v6822_v53 = vadd.s32 127, %v6821_v43  ;;  %v6908_v6 = vsel %vm6906_vm8, %v6907_v7, %v14157_v31  ;;  %v6834_v41 = vsel %vm14167_vm15, 0, %v6832_v3 }
 0x6d1   :  { %v8469_v36 = vpop.eup %8468  ;;  %v6909_v5 = vadd.s32 %v6908_v6, %v6904_v24  ;;  %v7953_v51 = vadd.s32 4294967169, %v6957_v22  ;;  %v848_v48 = vadd.f32 %v784_v58, %v14110_v34  ;;  %vm6737_vm5 = vcmp.eq.s32.totalorder %v14119_v42, 0 }
 0x6d2   :  { %v8471_v49 = vpop.eup %8470  ;;  %v6741_v0 = vxor.u32 2147483648, %v8469_v36  ;;  %v6820_v54 = vor.u32 %v6819_v60, %v6818_v14  ;;  %v6823_v19 = vshll.u32 %v6822_v53, 23  ;;  %vm6740_vm3 = vcmp.eq.s32.totalorder %v14119_v42, 2 }
 0x6d3   :  { %v6738_v29 = vxor.u32 2147483648, %v8471_v49  ;;  %v6910_v26 = vadd.s32 536870912, %v6909_v5  ;;  %v6963_v20 = vadd.s32 1, %v7953_v51  ;;  %v6838_v28 = vadd.s32 3, %v6834_v41 }
 0x6d4   :  { %v6742_v33 = vsel %vm6740_vm3, %v6741_v0, %v8471_v49  ;;  %v6824_v16 = vor.u32 4788187, %v6823_v19  ;;  %v6961_v39 = vor.u32 8388608, %v6960_v12  ;;  %v14194_v34 = vadd.f32 %v9137_v52, %v848_v48 }
 0x6d5   :  { %v6739_v15 = vsel %vm6737_vm5, %v8469_v36, %v6738_v29  ;;  %v6911_v40 = vshrl.u32 %v6910_v26, 30  ;;  %vm6964_vm6 = vcmp.gt.s32.totalorder %v6963_v20, 0  ;;  %v6827_v38 = vcvt.s32.f32 %v6820_v54 }
 0x6d6   :  { %v6743_v35 = vsel %vm6736_vm2, %v6739_v15, %v6742_v33  ;;  %v6825_v21 = vand.u32 2147483647, %v6824_v16  ;;  %v6965_v9 = vsel %vm6964_vm6, %v6963_v20, 0  ;;  %vm6851_vm9 = vcmp.lt.s32.totalorder %v14008_v47, 0 }
 0x6d7   :  { %v6744_v2 = vsel %vm6733_vm4, nan, %v6743_v35  ;;  %v6912_v31 = vshll.u32 %v6911_v40, 30  ;;  %v6935_v1 = vsub.s32 4, %v6911_v40  ;;  %vm14203_vm7 = vcmp.le.f32.partialorder %v6849_v56, 0.7853982 }
 0x6d8   :  { %v7632_v23 = vmul.f32 1000.0, %v6744_v2  ;;  %v6828_v46 = vmul.f32 %v6827_v38, %v6825_v21  ;;  %v6967_v42 = vand.u32 31, %v6965_v9  ;;  %v14207_v17 = vand.u32 3, %v6838_v28 }
 0x6d9   :  { %v6905_v63 = vadd.s32 %v14156_v61, %v14162_v59  ;;  %v14211_v13 = vsub.s32 %v6909_v5, %v6912_v31  ;;  %v14214_v58 = vmul.f32 %v9135_v55, %v707_v25  ;;  %v14216_v3 = vshll.u32 %v6961_v39, 8 }
 0x6da   :  { %7696 = vst [vmem:[#allocation2 + $0x1b8] sm:$0xff] %v7632_v23  ;;  %v6829_v4 = vxor.u32 2147483648, %v6828_v46  ;;  %v6968_v43 = vsub.s32 32, %v6967_v42  ;;  %v7060_v56 = vand.u32 2139095040, %v14194_v34  ;;  %v6936_v24 = vsel %vm6851_vm9, %v6935_v1, %v6911_v40 }
 0x6db   :  { %v6915_v7 = vsub.s32 0, %v14211_v13  ;;  %v14222_v22 = vshrl.u32 %v6965_v9, 5  ;;  %v7057_v61 = vand.u32 2147483647, %v14194_v34  ;;  %v6970_v12 = vshll.u32 %v14756_v44, %v6967_v42 }
 0x6dc   :  { %v6830_v59 = vsel %vm6747_vm13, %v6829_v4, %v6828_v46  ;;  %v6971_v14 = vshrl.u32 %v14757_v62, %v6968_v43  ;;  %v6974_v60 = vshrl.u32 %v14758_v27, %v6968_v43  ;;  %v6973_v36 = vshll.u32 %v14757_v62, %v6967_v42 }
 0x6dd   :  { %v6833_v53 = vsel %vm14167_vm15, %v13918_v8, %v6830_v59  ;;  %v7950_v6 = vmin.u32 %v6915_v7, %v14211_v13  ;;  %v6977_v41 = vshrl.u32 %v14759_v37, %v6968_v43  ;;  %v6938_v5 = vsel %vm14203_vm7, 0, %v6936_v24 }
 0x6de   :  { %8472 = vcosq.f32 %v6833_v53  ;;  %v6976_v51 = vshll.u32 %v14758_v27, %v6967_v42  ;;  %v7061_v48 = vshrl.u32 %v7060_v56, 23  ;;  %v6972_v0 = vor.u32 %v6971_v14, %v6970_v12 }
 0x6df   :  { %8474 = vsinq.f32 %v6833_v53  ;;  %v6917_v49 = vclz %v7950_v6  ;;  %v6975_v54 = vor.u32 %v6974_v60, %v6973_v36  ;;  %v6979_v10 = vshll.u32 %v14759_v37, %v6967_v42 }
 0x6e0   :  { %v6978_v19 = vor.u32 %v6977_v41, %v6976_v51  ;;  %v6980_v29 = vshrl.u32 %v14760_v45, %v6968_v43  ;;  %vm6985_vm12 = vcmp.lt.s32.totalorder %v14222_v22, 1  ;;  %v6982_v20 = vshll.u32 %v14760_v45, %v6967_v42 }
 0x6e1   :  { %v7951_v26 = vadd.s32 4294967294, %v6917_v49  ;;  %v6983_v33 = vshrl.u32 %v14761_v57, %v6968_v43  ;;  %vm6986_vm10 = vcmp.lt.s32.totalorder %v14222_v22, 2  ;;  %vm6844_vm11 = vcmp.eq.s32.totalorder %v14207_v17, 2 }
 0x6e2   :  { %v6942_v16 = vadd.s32 3, %v6938_v5  ;;  %v6969_v28 = vshrl.u32 %v14756_v44, %v6968_v43  ;;  %v6981_v39 = vor.u32 %v6980_v29, %v6979_v10  ;;  %vm6987_vm14 = vcmp.lt.s32.totalorder %v14222_v22, 3 }
 0x6e3   :  { %vm6841_vm0 = vcmp.eq.s32.totalorder %v14207_v17, 0  ;;  %vm7952_vm13 = vcmp.lt.s32.totalorder %v7951_v26, 0  ;;  %v6984_v15 = vor.u32 %v6983_v33, %v6982_v20  ;;  %vm6988_vm15 = vcmp.lt.s32.totalorder %v14222_v22, 4 }
 0x6e4   :  { %v6993_v40 = vsel %vm6985_vm12, %v6972_v0, %v6975_v54  ;;  %vm6840_vm1 = vcmp.lt.s32.totalorder %v14207_v17, 2  ;;  %v6920_v35 = vsel %vm7952_vm13, 0, %v7951_v26  ;;  %v6990_v21 = vsel %vm6988_vm15, %v6978_v19, 2102212464 }
 0x6e5   :  { %v6994_v38 = vsel %vm6988_vm15, %v6981_v39, 920167782  ;;  %v7957_v9 = vadd.s32 4294967169, %v7061_v48  ;;  %vm6837_vm2 = vweird.f32 %v13918_v8  ;;  %v6921_v25 = vsub.s32 32, %v6920_v35 }
 0x6e6   :  { %v6925_v2 = vsub.s32 4294967266, %v6920_v35  ;;  %v6995_v31 = vsel %vm6987_vm14, %v6978_v19, %v6994_v38  ;;  %v6997_v1 = vsel %vm6985_vm12, %v6975_v54, %v6978_v19  ;;  %v6922_v23 = vshll.u32 %v14211_v13, %v6920_v35 }
 0x6e7   :  { %v6989_v46 = vsel %vm6985_vm12, %v6969_v28, %v6972_v0  ;;  %v6996_v42 = vsel %vm6986_vm10, %v6993_v40, %v6995_v31  ;;  %v6998_v4 = vsel %vm6988_vm15, %v6984_v15, 1326507024  ;;  %v6923_v43 = vshrl.u32 %v6905_v63, %v6921_v25 }
 0x6e8   :  { %v6926_v56 = vadd.s32 127, %v6925_v2  ;;  %v6999_v7 = vsel %vm6987_vm14, %v6981_v39, %v6998_v4  ;;  %v7067_v24 = vadd.s32 1, %v7957_v9  ;;  %v8473_v59 = vpop.eup %8472  ;;  %v6991_v12 = vsel %vm6987_vm14, %v6975_v54, %v6990_v21 }
 0x6e9   :  { %v7000_v13 = vsel %vm6986_vm10, %v6997_v1, %v6999_v7  ;;  %v14270_v14 = vmul.u32.u64.low %v14216_v3, %v6996_v42  ;;  %v14271_v60 = vmul.u32.u64.high %v14216_v3, %v6996_v42, %v14270_v14  ;;  %v8475_v53 = vpop.eup %8474  ;;  %v6845_v6 = vxor.u32 2147483648, %v8473_v59 }
 0x6ea   :  { %v6924_v63 = vor.u32 %v6923_v43, %v6922_v23  ;;  %v6927_v36 = vshll.u32 %v6926_v56, 23  ;;  %vm7068_vm4 = vcmp.gt.s32.totalorder %v7067_v24, 0  ;;  %v6842_v41 = vxor.u32 2147483648, %v8475_v53 }
 0x6eb   :  { %v14275_v5 = vmul.u32.u64.low %v14216_v3, %v7000_v13  ;;  %v14276_v51 = vmul.u32.u64.high %v14216_v3, %v7000_v13, %v14275_v5  ;;  %v7069_v48 = vsel %vm7068_vm4, %v7067_v24, 0  ;;  %v6846_v49 = vsel %vm6844_vm11, %v6845_v6, %v8475_v53 }
 0x6ec   :  { %v6928_v0 = vor.u32 4788187, %v6927_v36  ;;  %v6992_v54 = vsel %vm6986_vm10, %v6989_v46, %v6991_v12  ;;  %v14284_v19 = vadd.f32 %v14214_v58, %v14116_v18  ;;  %v6843_v10 = vsel %vm6841_vm0, %v8473_v59, %v6842_v41 }
 0x6ed   :  { %v7011_v29 = vadd.s32 1, %v14271_v60  ;;  %v7064_v26 = vand.u32 8388607, %v7057_v61  ;;  %v7071_v20 = vand.u32 31, %v7069_v48  ;;  %v6847_v33 = vsel %vm6840_vm1, %v6843_v10, %v6846_v49 }
 0x6ee   :  { %v6929_v28 = vand.u32 2147483647, %v6928_v0  ;;  %v6931_v39 = vcvt.s32.f32 %v6924_v63  ;;  %v14293_v22 = vand.u32 3, %v6942_v16  ;;  %v6848_v18 = vsel %vm6837_vm2, nan, %v6847_v33 }
 0x6ef   :  { %v7008_v58 = vmul.u32 %v14216_v3, %v6992_v54  ;;  %vm7010_vm8 = vc.u32 %v14276_v51, %v14270_v14  ;;  %v7072_v15 = vsub.s32 32, %v7071_v20  ;;  %v7633_v40 = vmul.f32 1000.0, %v6848_v18 }
 0x6f0   :  { %v6932_v35 = vmul.f32 %v6931_v39, %v6929_v28  ;;  %v7012_v21 = vsel %vm7010_vm8, %v7011_v29, %v14271_v60  ;;  %v7070_v38 = vshrl.u32 %v7069_v48, 5  ;;  %v7074_v9 = vshll.u32 %v14756_v44, %v7071_v20 }
 0x6f1   :  { %v7013_v17 = vadd.s32 %v7012_v21, %v7008_v58  ;;  %v7075_v16 = vshrl.u32 %v14757_v62, %v7072_v15  ;;  %v7077_v25 = vshll.u32 %v14757_v62, %v7071_v20  ;;  %7697 = vst [vmem:[#allocation2 + $0x1c0] sm:$0xff] %v7633_v40  ;;  %v7078_v3 = vshrl.u32 %v14758_v27, %v7072_v15 }
 0x6f2   :  { %v6933_v8 = vxor.u32 2147483648, %v6932_v35  ;;  %v7080_v2 = vshll.u32 %v14758_v27, %v7071_v20  ;;  %v7081_v31 = vshrl.u32 %v14759_v37, %v7072_v15  ;;  %v7083_v46 = vshll.u32 %v14759_v37, %v7071_v20 }
 0x6f3   :  { %v7014_v1 = vadd.s32 536870912, %v7013_v17  ;;  %v7076_v23 = vor.u32 %v7075_v16, %v7074_v9  ;;  %v7084_v42 = vshrl.u32 %v14760_v45, %v7072_v15  ;;  %v7079_v43 = vor.u32 %v7078_v3, %v7077_v25 }
 0x6f4   :  { %v6934_v4 = vsel %vm6851_vm9, %v6933_v8, %v6932_v35  ;;  %v7082_v56 = vor.u32 %v7081_v31, %v7080_v2  ;;  %v7086_v7 = vshll.u32 %v14760_v45, %v7071_v20  ;;  %v7087_v13 = vshrl.u32 %v14761_v57, %v7072_v15 }
 0x6f5   :  { %v6937_v24 = vsel %vm14203_vm7, %v14008_v47, %v6934_v4  ;;  %v7015_v59 = vshrl.u32 %v7014_v1, 30  ;;  %v7085_v12 = vor.u32 %v7084_v42, %v7083_v46  ;;  %v7065_v60 = vor.u32 8388608, %v7064_v26 }
 0x6f6   :  { %8476 = vcosq.f32 %v6937_v24  ;;  %v7073_v53 = vshrl.u32 %v14756_v44, %v7072_v15  ;;  %vm7089_vm5 = vcmp.lt.s32.totalorder %v7070_v38, 1  ;;  %v7088_v63 = vor.u32 %v7087_v13, %v7086_v7 }
 0x6f7   :  { %8478 = vsinq.f32 %v6937_v24  ;;  %v7016_v6 = vshll.u32 %v7015_v59, 30  ;;  %vm7092_vm3 = vcmp.lt.s32.totalorder %v7070_v38, 4  ;;  %vm7091_vm6 = vcmp.lt.s32.totalorder %v7070_v38, 3 }
 0x6f8   :  { %v7094_v36 = vsel %vm7092_vm3, %v7082_v56, 2102212464  ;;  %v7097_v41 = vsel %vm7089_vm5, %v7076_v23, %v7079_v43  ;;  %v7098_v5 = vsel %vm7092_vm3, %v7085_v12, 920167782  ;;  %vm7090_vm9 = vcmp.lt.s32.totalorder %v7070_v38, 2 }
 0x6f9   :  { %v14317_v48 = vsub.s32 %v7013_v17, %v7016_v6  ;;  %v7099_v30 = vsel %vm7091_vm6, %v7082_v56, %v7098_v5  ;;  %v7101_v49 = vsel %vm7089_vm5, %v7079_v43, %v7082_v56  ;;  %v7093_v0 = vsel %vm7089_vm5, %v7073_v53, %v7076_v23 }
 0x6fa   :  { %v7100_v54 = vsel %vm7090_vm9, %v7097_v41, %v7099_v30  ;;  %v7102_v10 = vsel %vm7092_vm3, %v7088_v63, 1326507024  ;;  %v7105_v29 = vshll.u32 %v7065_v60, 8  ;;  %v7039_v20 = vsub.s32 4, %v7015_v59  ;;  %v711_v41 = vpop.permute.xlu0 %710 }
 0x6fb   :  { %v7019_v26 = vsub.s32 0, %v14317_v48  ;;  %v7095_v33 = vsel %vm7091_vm6, %v7079_v43, %v7094_v36  ;;  %v7103_v28 = vsel %vm7091_vm6, %v7085_v12, %v7102_v10  ;;  %v14327_v15 = vadd.f32 %v9137_v52, %v14284_v19 }
 0x6fc   :  { %v7104_v39 = vsel %vm7090_vm9, %v7101_v49, %v7103_v28  ;;  %v14322_v18 = vmul.u32.u64.low %v7105_v29, %v7100_v54  ;;  %v14323_v58 = vmul.u32.u64.high %v7105_v29, %v7100_v54, %v14322_v18  ;;  %vm6941_vm7 = vweird.f32 %v14008_v47  ;;  %v14930_v28 = vld [vmem:[#allocation7_spill] sm:$0xff] }
 0x6fd   :  { %v7954_v40 = vmin.u32 %v7019_v26, %v14317_v48  ;;  %v14331_v35 = vmul.u32.u64.low %v7105_v29, %v7104_v39  ;;  %v14332_v21 = vmul.u32.u64.high %v7105_v29, %v7104_v39, %v14331_v35  ;;  %vm14336_vm12 = vcmp.le.f32.partialorder %v6953_v32, 0.7853982 }
 0x6fe   :  { %vm6955_vm10 = vcmp.lt.s32.totalorder %v14153_v11, 0  ;;  %v7096_v9 = vsel %vm7090_vm9, %v7093_v0, %v7095_v33  ;;  %v7164_v19 = vand.u32 2139095040, %v14327_v15  ;;  %vm6944_vm11 = vcmp.lt.s32.totalorder %v14293_v22, 2 }
 0x6ff   :  { %vm6945_vm14 = vcmp.eq.s32.totalorder %v14293_v22, 0  ;;  %v7021_v16 = vclz %v7954_v40  ;;  %v7040_v25 = vsel %vm6955_vm10, %v7039_v20, %v7015_v59  ;;  %vm6948_vm0 = vcmp.eq.s32.totalorder %v14293_v22, 2 }
 0x700   :  { %v8477_v8 = vpop.eup %8476  ;;  %v7115_v32 = vadd.s32 1, %v14323_v58  ;;  %v7161_v3 = vand.u32 2147483647, %v14327_v15  ;;  %v7165_v2 = vshrl.u32 %v7164_v19, 23  ;;  %v7112_v23 = vmul.u32 %v7105_v29, %v7096_v9 }
 0x701   :  { %v8479_v38 = vpop.eup %8478  ;;  %v6949_v31 = vxor.u32 2147483648, %v8477_v8  ;;  %v7955_v1 = vadd.s32 4294967294, %v7021_v16  ;;  %vm7114_vm13 = vc.u32 %v14332_v21, %v14322_v18  ;;  %v7042_v42 = vsel %vm14336_vm12, 0, %v7040_v25 }
 0x702   :  { %v6946_v46 = vxor.u32 2147483648, %v8479_v38  ;;  %v7116_v4 = vsel %vm7114_vm13, %v7115_v32, %v14323_v58  ;;  %v7961_v43 = vadd.s32 4294967169, %v7165_v2  ;;  %v7009_v7 = vadd.s32 %v14270_v14, %v14276_v51 }
 0x703   :  { %v6950_v56 = vsel %vm6948_vm0, %v6949_v31, %v8479_v38  ;;  %vm7956_vm15 = vcmp.lt.s32.totalorder %v7955_v1, 0  ;;  %v7117_v24 = vadd.s32 %v7116_v4, %v7112_v23  ;;  %v7168_v13 = vand.u32 8388607, %v7161_v3 }
 0x704   :  { %v6947_v59 = vsel %vm6945_vm14, %v8477_v8, %v6946_v46  ;;  %v7024_v12 = vsel %vm7956_vm15, 0, %v7955_v1  ;;  %v7171_v60 = vadd.s32 1, %v7961_v43  ;;  %v7046_v36 = vadd.s32 3, %v7042_v42 }
 0x705   :  { %v6951_v53 = vsel %vm6944_vm11, %v6947_v59, %v6950_v56  ;;  %v7025_v6 = vsub.s32 32, %v7024_v12  ;;  %v7029_v63 = vsub.s32 4294967266, %v7024_v12  ;;  %v7026_v51 = vshll.u32 %v14317_v48, %v7024_v12 }
 0x706   :  { %v6952_v14 = vsel %vm6941_vm7, nan, %v6951_v53  ;;  %v7118_v5 = vadd.s32 536870912, %v7117_v24  ;;  %vm7172_vm1 = vcmp.gt.s32.totalorder %v7171_v60, 0  ;;  %v7169_v29 = vor.u32 8388608, %v7168_v13 }
 0x707   :  { %v7634_v30 = vmul.f32 1000.0, %v6952_v14  ;;  %v7027_v49 = vshrl.u32 %v7009_v7, %v7025_v6  ;;  %v7030_v0 = vadd.s32 127, %v7029_v63  ;;  %v7173_v54 = vsel %vm7172_vm1, %v7171_v60, 0 }
 0x708   :  { %v14365_v10 = vshrl.u32 %v7118_v5, 30  ;;  %v7175_v22 = vand.u32 31, %v7173_v54  ;;  %v786_v26 = vmul.f32 %v9135_v55, %v711_v41  ;;  %v462_v47 = vmul.f32 %v9131_v50, %v14930_v28 }
 0x709   :  { %7698 = vst [vmem:[#allocation2 + $0x1c8] sm:$0xff] %v7634_v30  ;;  %v7028_v20 = vor.u32 %v7027_v49, %v7026_v51  ;;  %v7031_v33 = vshll.u32 %v7030_v0, 23  ;;  %v14371_v40 = vand.u32 3, %v7046_v36  ;;  %v7113_v35 = vadd.s32 %v14322_v18, %v14332_v21 }
 0x70a   :  { %v7120_v48 = vshll.u32 %v14365_v10, 30  ;;  %v7176_v39 = vsub.s32 32, %v7175_v22  ;;  %v14377_v16 = vshll.u32 %v7169_v29, 8  ;;  %v850_v25 = vadd.f32 %v786_v26, %v462_v47 }
 0x70b   :  { %v7032_v58 = vor.u32 4788187, %v7031_v33  ;;  %v7035_v32 = vcvt.s32.f32 %v7028_v20  ;;  %v7174_v1 = vshrl.u32 %v7173_v54, 5  ;;  %v7178_v23 = vshll.u32 %v14756_v44, %v7175_v22 }
 0x70c   :  { %v14374_v9 = vsub.s32 %v7117_v24, %v7120_v48  ;;  %v7179_v19 = vshrl.u32 %v14757_v62, %v7176_v39  ;;  %v7182_v2 = vshrl.u32 %v14758_v27, %v7176_v39  ;;  %v7185_v38 = vshrl.u32 %v14759_v37, %v7176_v39 }
 0x70d   :  { %v7033_v8 = vand.u32 2147483647, %v7032_v58  ;;  %v7181_v18 = vshll.u32 %v14757_v62, %v7175_v22  ;;  %v7184_v46 = vshll.u32 %v14758_v27, %v7175_v22  ;;  %v7187_v42 = vshll.u32 %v14759_v37, %v7175_v22 }
 0x70e   :  { %v7123_v31 = vsub.s32 0, %v14374_v9  ;;  %v7188_v4 = vshrl.u32 %v14760_v45, %v7176_v39  ;;  %v7180_v56 = vor.u32 %v7179_v19, %v7178_v23  ;;  %v7191_v24 = vshrl.u32 %v14761_v57, %v7176_v39 }
 0x70f   :  { %v7036_v21 = vmul.f32 %v7035_v32, %v7033_v8  ;;  %v7183_v7 = vor.u32 %v7182_v2, %v7181_v18  ;;  %v7186_v12 = vor.u32 %v7185_v38, %v7184_v46  ;;  %v7190_v60 = vshll.u32 %v14760_v45, %v7175_v22  ;;  %v14931_v46 = vld [vmem:[#allocation8_spill] sm:$0xff] }
 0x710   :  { %v7958_v43 = vmin.u32 %v7123_v31, %v14374_v9  ;;  %v7189_v13 = vor.u32 %v7188_v4, %v7187_v42  ;;  %vm7059_vm2 = vcmp.lt.s32.totalorder %v14194_v34, 0  ;;  %v7143_v6 = vsub.s32 4, %v14365_v10 }
 0x711   :  { %v7037_v59 = vxor.u32 2147483648, %v7036_v21  ;;  %v7177_v63 = vshrl.u32 %v14756_v44, %v7176_v39  ;;  %v14394_v36 = vadd.f32 %v9137_v52, %v850_v25  ;;  %v7192_v14 = vor.u32 %v7191_v24, %v7190_v60  ;;  %v715_v39 = vpop.permute.xlu1 %714 }
 0x712   :  { %v7125_v53 = vclz %v7958_v43  ;;  %vm7193_vm4 = vcmp.lt.s32.totalorder %v7174_v1, 1  ;;  %vm7194_vm8 = vcmp.lt.s32.totalorder %v7174_v1, 2  ;;  %vm7195_vm5 = vcmp.lt.s32.totalorder %v7174_v1, 3 }
 0x713   :  { %v7038_v41 = vsel %vm6955_vm10, %v7037_v59, %v7036_v21  ;;  %vm7196_vm3 = vcmp.lt.s32.totalorder %v7174_v1, 4  ;;  %v7201_v49 = vsel %vm7193_vm4, %v7180_v56, %v7183_v7  ;;  %v7197_v54 = vsel %vm7193_vm4, %v7177_v63, %v7180_v56 }
 0x714   :  { %v7041_v51 = vsel %vm14336_vm12, %v14153_v11, %v7038_v41  ;;  %v7959_v5 = vadd.s32 4294967294, %v7125_v53  ;;  %v7198_v30 = vsel %vm7196_vm3, %v7186_v12, 2102212464  ;;  %v7202_v0 = vsel %vm7196_vm3, %v7189_v13, 920167782 }
 0x715   :  { %8480 = vcosq.f32 %v7041_v51  ;;  %v7203_v29 = vsel %vm7195_vm5, %v7186_v12, %v7202_v0  ;;  %v7205_v17 = vsel %vm7193_vm4, %v7183_v7, %v7186_v12  ;;  %v7206_v20 = vsel %vm7196_vm3, %v7192_v14, 1326507024 }
 0x716   :  { %8482 = vsinq.f32 %v7041_v51  ;;  %vm7960_vm6 = vcmp.lt.s32.totalorder %v7959_v5, 0  ;;  %v7204_v26 = vsel %vm7194_vm8, %v7201_v49, %v7203_v29  ;;  %v7199_v47 = vsel %vm7195_vm5, %v7183_v7, %v7198_v30 }
 0x717   :  { %v7128_v22 = vsel %vm7960_vm6, 0, %v7959_v5  ;;  %v7207_v48 = vsel %vm7195_vm5, %v7189_v13, %v7206_v20  ;;  %v14411_v25 = vmul.u32.u64.low %v14377_v16, %v7204_v26  ;;  %v14412_v8 = vmul.u32.u64.high %v14377_v16, %v7204_v26, %v14411_v25  ;;  %v719_v26 = vpop.permute.xlu0 %718 }
 0x718   :  { %v7129_v33 = vsub.s32 32, %v7128_v22  ;;  %v7133_v28 = vsub.s32 4294967266, %v7128_v22  ;;  %v7130_v58 = vshll.u32 %v14374_v9, %v7128_v22  ;;  %v7208_v19 = vsel %vm7194_vm8, %v7205_v17, %v7207_v48 }
 0x719   :  { %v14415_v38 = vmul.u32.u64.low %v14377_v16, %v7208_v19  ;;  %v14416_v31 = vmul.u32.u64.high %v14377_v16, %v7208_v19, %v14415_v38  ;;  %v7144_v23 = vsel %vm7059_vm2, %v7143_v6, %v14365_v10  ;;  %v7200_v18 = vsel %vm7194_vm8, %v7197_v54, %v7199_v47  ;;  %v14934_v47 = vld [vmem:[#allocation9_spill] sm:$0xff] }
 0x71a   :  { %v7131_v32 = vshrl.u32 %v7113_v35, %v7129_v33  ;;  %v7134_v2 = vadd.s32 127, %v7133_v28  ;;  %v7268_v9 = vand.u32 2139095040, %v14394_v36  ;;  %v787_v21 = vmul.f32 %v9135_v55, %v715_v39 }
 0x71b   :  { %v463_v42 = vmul.f32 %v9131_v50, %v14931_v46  ;;  %vm7045_vm9 = vweird.f32 %v14153_v11  ;;  %vm7048_vm7 = vcmp.lt.s32.totalorder %v14371_v40, 2  ;;  %vm14430_vm12 = vcmp.le.f32.partialorder %v7057_v61, 0.7853982 }
 0x71c   :  { %v7132_v35 = vor.u32 %v7131_v32, %v7130_v58  ;;  %v7135_v4 = vshll.u32 %v7134_v2, 23  ;;  %v7219_v10 = vadd.s32 1, %v14412_v8  ;;  %v7269_v1 = vshrl.u32 %v7268_v9, 23 }
 0x71d   :  { %v7146_v7 = vsel %vm14430_vm12, 0, %v7144_v23  ;;  %v7216_v24 = vmul.u32 %v14377_v16, %v7200_v18  ;;  %vm7218_vm10 = vc.u32 %v14416_v31, %v14411_v25  ;;  %v7265_v13 = vand.u32 2147483647, %v14394_v36 }
 0x71e   :  { %v7136_v56 = vor.u32 4788187, %v7135_v4  ;;  %v7220_v12 = vsel %vm7218_vm10, %v7219_v10, %v14412_v8  ;;  %v7965_v61 = vadd.s32 4294967169, %v7269_v1  ;;  %v851_v60 = vadd.f32 %v787_v21, %v463_v42 }
 0x71f   :  { %v8481_v59 = vpop.eup %8480  ;;  %v7139_v41 = vcvt.s32.f32 %v7132_v35  ;;  %v7221_v14 = vadd.s32 %v7220_v12, %v7216_v24  ;;  %vm7049_vm11 = vcmp.eq.s32.totalorder %v14371_v40, 0  ;;  %vm7052_vm14 = vcmp.eq.s32.totalorder %v14371_v40, 2 }
 0x720   :  { %v8483_v53 = vpop.eup %8482  ;;  %v7053_v6 = vxor.u32 2147483648, %v8481_v59  ;;  %v7137_v63 = vand.u32 2147483647, %v7136_v56  ;;  %v7275_v16 = vadd.s32 1, %v7965_v61  ;;  %v7150_v49 = vadd.s32 3, %v7146_v7 }
 0x721   :  { %v7050_v51 = vxor.u32 2147483648, %v8483_v53  ;;  %v7222_v0 = vadd.s32 536870912, %v7221_v14  ;;  %v7272_v29 = vand.u32 8388607, %v7265_v13  ;;  %v14446_v22 = vadd.f32 %v9137_v52, %v851_v60 }
 0x722   :  { %v7054_v5 = vsel %vm7052_vm14, %v7053_v6, %v8483_v53  ;;  %v7140_v30 = vmul.f32 %v7139_v41, %v7137_v63  ;;  %vm7276_vm0 = vcmp.gt.s32.totalorder %v7275_v16, 0  ;;  %v14452_v48 = vmul.f32 %v9131_v50, %v14934_v47 }
 0x723   :  { %v7051_v54 = vsel %vm7049_vm11, %v8481_v59, %v7050_v51  ;;  %v7223_v33 = vshrl.u32 %v7222_v0, 30  ;;  %v7277_v28 = vsel %vm7276_vm0, %v7275_v16, 0  ;;  %vm7163_vm13 = vcmp.lt.s32.totalorder %v14327_v15, 0 }
 0x724   :  { %v7055_v17 = vsel %vm7048_vm7, %v7051_v54, %v7054_v5  ;;  %v7141_v20 = vxor.u32 2147483648, %v7140_v30  ;;  %v7279_v58 = vand.u32 31, %v7277_v28  ;;  %v14460_v40 = vmul.f32 %v9135_v55, %v719_v26 }
 0x725   :  { %v7056_v39 = vsel %vm7045_vm9, nan, %v7055_v17  ;;  %v7224_v32 = vshll.u32 %v7223_v33, 30  ;;  %v14465_v50 = vand.u32 3, %v7150_v49  ;;  %v14468_v11 = vadd.s32 %v14411_v25, %v14416_v31 }
 0x726   :  { %v7635_v19 = vmul.f32 1000.0, %v7056_v39  ;;  %v7142_v8 = vsel %vm7059_vm2, %v7141_v20, %v7140_v30  ;;  %v7280_v38 = vsub.s32 32, %v7279_v58  ;;  %v7273_v18 = vor.u32 8388608, %v7272_v29 }
 0x727   :  { %v7145_v2 = vsel %vm14430_vm12, %v14194_v34, %v7142_v8  ;;  %v14470_v23 = vsub.s32 %v7221_v14, %v7224_v32  ;;  %v7372_v9 = vand.u32 2139095040, %v14446_v22  ;;  %v7247_v55 = vsub.s32 4, %v7223_v33 }
 0x728   :  { %7699 = vst [vmem:[#allocation2 + $0x1d0] sm:$0xff] %v7635_v19  ;;  %8484 = vcosq.f32 %v7145_v2  ;;  %v7282_v21 = vshll.u32 %v14756_v44, %v7279_v58  ;;  %v7283_v46 = vshrl.u32 %v14757_v62, %v7280_v38  ;;  %v7286_v35 = vshrl.u32 %v14758_v27, %v7280_v38 }
 0x729   :  { %8486 = vsinq.f32 %v7145_v2  ;;  %v7227_v42 = vsub.s32 0, %v14470_v23  ;;  %v7288_v25 = vshll.u32 %v14758_v27, %v7279_v58  ;;  %v7289_v31 = vshrl.u32 %v14759_v37, %v7280_v38 }
 0x72a   :  { %v14479_v4 = vshrl.u32 %v7277_v28, 5  ;;  %v7285_v43 = vshll.u32 %v14757_v62, %v7279_v58  ;;  %v7291_v10 = vshll.u32 %v14759_v37, %v7279_v58  ;;  %v7292_v1 = vshrl.u32 %v14760_v45, %v7280_v38 }
 0x72b   :  { %vm7156_vm15 = vcmp.eq.s32.totalorder %v14465_v50, 2  ;;  %v7962_v56 = vmin.u32 %v7227_v42, %v14470_v23  ;;  %v7284_v7 = vor.u32 %v7283_v46, %v7282_v21  ;;  %v7290_v24 = vor.u32 %v7289_v31, %v7288_v25 }
 0x72c   :  { %v14486_v59 = vshll.u32 %v7273_v18, 8  ;;  %vm7153_vm1 = vcmp.eq.s32.totalorder %v14465_v50, 0  ;;  %v7287_v12 = vor.u32 %v7286_v35, %v7285_v43  ;;  %v7293_v61 = vor.u32 %v7292_v1, %v7291_v10 }
 0x72d   :  { %v7294_v60 = vshll.u32 %v14760_v45, %v7279_v58  ;;  %v7295_v53 = vshrl.u32 %v14761_v57, %v7280_v38  ;;  %vm7152_vm2 = vcmp.lt.s32.totalorder %v14465_v50, 2  ;;  %v7229_v6 = vclz %v7962_v56 }
 0x72e   :  { %v7248_v63 = vsel %vm7163_vm13, %v7247_v55, %v7223_v33  ;;  %v7369_v41 = vand.u32 2147483647, %v14446_v22  ;;  %v7373_v14 = vshrl.u32 %v7372_v9, 23  ;;  %vm7149_vm4 = vweird.f32 %v14194_v34 }
 0x72f   :  { %vm14498_vm8 = vcmp.le.f32.partialorder %v7161_v3, 0.7853982  ;;  %v7281_v16 = vshrl.u32 %v14756_v44, %v7280_v38  ;;  %v7296_v5 = vor.u32 %v7295_v53, %v7294_v60  ;;  %vm7297_vm5 = vcmp.lt.s32.totalorder %v14479_v4, 1 }
 0x730   :  { %vm7300_vm3 = vcmp.lt.s32.totalorder %v14479_v4, 4  ;;  %v7963_v30 = vadd.s32 4294967294, %v7229_v6  ;;  %vm7299_vm6 = vcmp.lt.s32.totalorder %v14479_v4, 3  ;;  %v7305_v54 = vsel %vm7297_vm5, %v7284_v7, %v7287_v12 }
 0x731   :  { %v7302_v49 = vsel %vm7300_vm3, %v7290_v24, 2102212464  ;;  %v7306_v0 = vsel %vm7300_vm3, %v7293_v61, 920167782  ;;  %v7309_v26 = vsel %vm7297_vm5, %v7287_v12, %v7290_v24  ;;  %v7310_v17 = vsel %vm7300_vm3, %v7296_v5, 1326507024 }
 0x732   :  { %v7307_v29 = vsel %vm7299_vm6, %v7290_v24, %v7306_v0  ;;  %v8485_v3 = vpop.eup %8484  ;;  %vm7964_vm9 = vcmp.lt.s32.totalorder %v7963_v30, 0  ;;  %vm7298_vm7 = vcmp.lt.s32.totalorder %v14479_v4, 2  ;;  %v7301_v20 = vsel %vm7297_vm5, %v7281_v16, %v7284_v7 }
 0x733   :  { %v7311_v33 = vsel %vm7299_vm6, %v7293_v61, %v7310_v17  ;;  %v8487_v28 = vpop.eup %8486  ;;  %v7157_v47 = vxor.u32 2147483648, %v8485_v3  ;;  %v7232_v39 = vsel %vm7964_vm9, 0, %v7963_v30  ;;  %v7303_v58 = vsel %vm7299_vm6, %v7287_v12, %v7302_v49 }
 0x734   :  { %v7312_v19 = vsel %vm7298_vm7, %v7309_v26, %v7311_v33  ;;  %v7154_v8 = vxor.u32 2147483648, %v8487_v28  ;;  %v7233_v32 = vsub.s32 32, %v7232_v39  ;;  %v7237_v2 = vsub.s32 4294967266, %v7232_v39 }
 0x735   :  { %v7308_v38 = vsel %vm7298_vm7, %v7305_v54, %v7307_v29  ;;  %v7158_v18 = vsel %vm7156_vm15, %v7157_v47, %v8487_v28  ;;  %v14514_v9 = vmul.u32.u64.low %v14486_v59, %v7312_v19  ;;  %v14515_v55 = vmul.u32.u64.high %v14486_v59, %v7312_v19, %v14514_v9 }
 0x736   :  { %v7969_v21 = vadd.s32 4294967169, %v7373_v14  ;;  %v7155_v46 = vsel %vm7153_vm1, %v8485_v3, %v7154_v8  ;;  %v7234_v42 = vshll.u32 %v14470_v23, %v7232_v39  ;;  %v7235_v35 = vshrl.u32 %v14468_v11, %v7233_v32 }
 0x737   :  { %v7238_v25 = vadd.s32 127, %v7237_v2  ;;  %v7159_v31 = vsel %vm7152_vm2, %v7155_v46, %v7158_v18  ;;  %v14524_v43 = vmul.u32.u64.low %v14486_v59, %v7308_v38  ;;  %v14525_v10 = vmul.u32.u64.high %v14486_v59, %v7308_v38, %v14524_v43 }
 0x738   :  { %v7379_v1 = vadd.s32 1, %v7969_v21  ;;  %v7160_v56 = vsel %vm7149_vm4, nan, %v7159_v31  ;;  %v7236_v7 = vor.u32 %v7235_v35, %v7234_v42  ;;  %v7250_v23 = vsel %vm14498_vm8, 0, %v7248_v63 }
 0x739   :  { %v7239_v24 = vshll.u32 %v7238_v25, 23  ;;  %v7636_v12 = vmul.f32 1000.0, %v7160_v56  ;;  %v7304_v11 = vsel %vm7298_vm7, %v7301_v20, %v7303_v58  ;;  %v7376_v50 = vand.u32 8388607, %v7369_v41 }
 0x73a   :  { %vm7380_vm12 = vcmp.gt.s32.totalorder %v7379_v1, 0  ;;  %vm7322_vm10 = vc.u32 %v14515_v55, %v14524_v43  ;;  %v7323_v34 = vadd.s32 1, %v14525_v10  ;;  %v852_v6 = vadd.f32 %v14460_v40, %v14452_v48 }
 0x73b   :  { %v7240_v61 = vor.u32 4788187, %v7239_v24  ;;  %v7381_v60 = vsel %vm7380_vm12, %v7379_v1, 0  ;;  %7700 = vst [vmem:[#allocation2 + $0x1d8] sm:$0xff] %v7636_v12  ;;  %v7243_v14 = vcvt.s32.f32 %v7236_v7  ;;  %v7254_v4 = vadd.s32 3, %v7250_v23 }
 0x73c   :  { %v7383_v53 = vand.u32 31, %v7381_v60  ;;  %v7320_v16 = vmul.u32 %v14486_v59, %v7304_v11  ;;  %v7324_v5 = vsel %vm7322_vm10, %v7323_v34, %v14525_v10  ;;  %v7377_v30 = vor.u32 8388608, %v7376_v50 }
 0x73d   :  { %v7241_v63 = vand.u32 2147483647, %v7240_v61  ;;  %v7382_v49 = vshrl.u32 %v7381_v60, 5  ;;  %v14558_v21 = vand.u32 3, %v7254_v4  ;;  %v14561_v42 = vadd.f32 %v9137_v52, %v852_v6 }
 0x73e   :  { %v7384_v0 = vsub.s32 32, %v7383_v53  ;;  %v7325_v29 = vadd.s32 %v7324_v5, %v7320_v16  ;;  %v7386_v26 = vshll.u32 %v14756_v44, %v7383_v53  ;;  %v7389_v17 = vshll.u32 %v14757_v62, %v7383_v53 }
 0x73f   :  { %v7244_v54 = vmul.f32 %v7243_v14, %v7241_v63  ;;  %v7392_v40 = vshll.u32 %v14758_v27, %v7383_v53  ;;  %v7395_v28 = vshll.u32 %v14759_v37, %v7383_v53  ;;  %v7398_v19 = vshll.u32 %v14760_v45, %v7383_v53 }
 0x740   :  { %v7387_v3 = vshrl.u32 %v14757_v62, %v7384_v0  ;;  %v7390_v48 = vshrl.u32 %v14758_v27, %v7384_v0  ;;  %v7393_v20 = vshrl.u32 %v14759_v37, %v7384_v0  ;;  %v7326_v33 = vadd.s32 536870912, %v7325_v29 }
 0x741   :  { %v7245_v59 = vxor.u32 2147483648, %v7244_v54  ;;  %v7396_v47 = vshrl.u32 %v14760_v45, %v7384_v0  ;;  %v7399_v8 = vshrl.u32 %v14761_v57, %v7384_v0  ;;  %v7417_v46 = vshll.u32 %v7377_v30, 8 }
 0x742   :  { %v7388_v39 = vor.u32 %v7387_v3, %v7386_v26  ;;  %v7391_v58 = vor.u32 %v7390_v48, %v7389_v17  ;;  %v7327_v2 = vshrl.u32 %v7326_v33, 30  ;;  %v7394_v38 = vor.u32 %v7393_v20, %v7392_v40 }
 0x743   :  { %v7246_v32 = vsel %vm7163_vm13, %v7245_v59, %v7244_v54  ;;  %v7397_v18 = vor.u32 %v7396_v47, %v7395_v28  ;;  %v7400_v25 = vor.u32 %v7399_v8, %v7398_v19  ;;  %vm7401_vm11 = vcmp.lt.s32.totalorder %v7382_v49, 1 }
 0x744   :  { %v7249_v9 = vsel %vm14498_vm8, %v14327_v15, %v7246_v32  ;;  %v7328_v35 = vshll.u32 %v7327_v2, 30  ;;  %v7385_v31 = vshrl.u32 %v14756_v44, %v7384_v0  ;;  %vm7404_vm14 = vcmp.lt.s32.totalorder %v7382_v49, 4 }
 0x745   :  { %8488 = vcosq.f32 %v7249_v9  ;;  %v7409_v10 = vsel %vm7401_vm11, %v7388_v39, %v7391_v58  ;;  %vm7403_vm0 = vcmp.lt.s32.totalorder %v7382_v49, 3  ;;  %v7406_v51 = vsel %vm7404_vm14, %v7394_v38, 2102212464 }
 0x746   :  { %8490 = vsinq.f32 %v7249_v9  ;;  %v14564_v1 = vsub.s32 %v7325_v29, %v7328_v35  ;;  %v7410_v56 = vsel %vm7404_vm14, %v7397_v18, 920167782  ;;  %vm7402_vm13 = vcmp.lt.s32.totalorder %v7382_v49, 2 }
 0x747   :  { %v7411_v7 = vsel %vm7403_vm0, %v7394_v38, %v7410_v56  ;;  %v7413_v24 = vsel %vm7401_vm11, %v7391_v58, %v7394_v38  ;;  %v7476_v52 = vand.u32 2139095040, %v14561_v42  ;;  %v7405_v12 = vsel %vm7401_vm11, %v7385_v31, %v7388_v39 }
 0x748   :  { %v7331_v23 = vsub.s32 0, %v14564_v1  ;;  %v7412_v11 = vsel %vm7402_vm13, %v7409_v10, %v7411_v7  ;;  %v7414_v50 = vsel %vm7404_vm14, %v7400_v25, 1326507024  ;;  %v7407_v61 = vsel %vm7403_vm0, %v7391_v58, %v7406_v51 }
 0x749   :  { %v7415_v60 = vsel %vm7403_vm0, %v7397_v18, %v7414_v50  ;;  %v14569_v34 = vmul.u32.u64.low %v7417_v46, %v7412_v11  ;;  %v14570_v53 = vmul.u32.u64.high %v7417_v46, %v7412_v11, %v14569_v34  ;;  %vm7253_vm15 = vweird.f32 %v14327_v15 }
 0x74a   :  { %v7966_v6 = vmin.u32 %v7331_v23, %v14564_v1  ;;  %v7416_v63 = vsel %vm7402_vm13, %v7413_v24, %v7415_v60  ;;  %v7477_v16 = vshrl.u32 %v7476_v52, 23  ;;  %vm7267_vm1 = vcmp.lt.s32.totalorder %v14394_v36, 0 }
 0x74b   :  { %v14575_v14 = vmul.u32.u64.low %v7417_v46, %v7416_v63  ;;  %v14576_v4 = vmul.u32.u64.high %v7417_v46, %v7416_v63, %v14575_v14  ;;  %v7351_v30 = vsub.s32 4, %v7327_v2  ;;  %v7408_v0 = vsel %vm7402_vm13, %v7405_v12, %v7407_v61 }
 0x74c   :  { %v7333_v5 = vclz %v7966_v6  ;;  %vm7256_vm2 = vcmp.lt.s32.totalorder %v14558_v21, 2  ;;  %vm14583_vm4 = vcmp.le.f32.partialorder %v7265_v13, 0.7853982  ;;  %v7427_v29 = vadd.s32 1, %v14570_v53 }
 0x74d   :  { %v7973_v26 = vadd.s32 4294967169, %v7477_v16  ;;  %vm7257_vm8 = vcmp.eq.s32.totalorder %v14558_v21, 0  ;;  %vm7260_vm5 = vcmp.eq.s32.totalorder %v14558_v21, 2  ;;  %v7473_v49 = vand.u32 2147483647, %v14561_v42 }
 0x74e   :  { %v7967_v3 = vadd.s32 4294967294, %v7333_v5  ;;  %v7424_v20 = vmul.u32 %v7417_v46, %v7408_v0  ;;  %vm7426_vm3 = vc.u32 %v14576_v4, %v14569_v34  ;;  %v7352_v33 = vsel %vm7267_vm1, %v7351_v30, %v7327_v2 }
 0x74f   :  { %v8489_v17 = vpop.eup %8488  ;;  %v7483_v13 = vadd.s32 1, %v7973_v26  ;;  %v7428_v28 = vsel %vm7426_vm3, %v7427_v29, %v14570_v53  ;;  %v7321_v8 = vadd.s32 %v14524_v43, %v14515_v55  ;;  %v7354_v2 = vsel %vm14583_vm4, 0, %v7352_v33 }
 0x750   :  { %v8491_v48 = vpop.eup %8490  ;;  %v7261_v40 = vxor.u32 2147483648, %v8489_v17  ;;  %vm7968_vm6 = vcmp.lt.s32.totalorder %v7967_v3, 0  ;;  %v7429_v58 = vadd.s32 %v7428_v28, %v7424_v20  ;;  %v7480_v55 = vand.u32 8388607, %v7473_v49 }
 0x751   :  { %v7258_v59 = vxor.u32 2147483648, %v8491_v48  ;;  %v7336_v39 = vsel %vm7968_vm6, 0, %v7967_v3  ;;  %vm7484_vm9 = vcmp.gt.s32.totalorder %v7483_v13, 0  ;;  %v7358_v15 = vadd.s32 3, %v7354_v2 }
 0x752   :  { %v7262_v47 = vsel %vm7260_vm5, %v7261_v40, %v8491_v48  ;;  %v7337_v32 = vsub.s32 32, %v7336_v39  ;;  %v7341_v38 = vsub.s32 4294967266, %v7336_v39  ;;  %v7430_v9 = vadd.s32 536870912, %v7429_v58 }
 0x753   :  { %v7259_v19 = vsel %vm7257_vm8, %v8489_v17, %v7258_v59  ;;  %v7485_v46 = vsel %vm7484_vm9, %v7483_v13, 0  ;;  %v7338_v25 = vshll.u32 %v14564_v1, %v7336_v39  ;;  %v7425_v12 = vadd.s32 %v14569_v34, %v14576_v4 }
 0x754   :  { %v7263_v18 = vsel %vm7256_vm2, %v7259_v19, %v7262_v47  ;;  %v7339_v31 = vshrl.u32 %v7321_v8, %v7337_v32  ;;  %v7342_v10 = vadd.s32 127, %v7341_v38  ;;  %v14606_v56 = vshrl.u32 %v7430_v9, 30 }
 0x755   :  { %v7264_v35 = vsel %vm7253_vm15, nan, %v7263_v18  ;;  %v7487_v43 = vand.u32 31, %v7485_v46  ;;  %v7481_v11 = vor.u32 8388608, %v7480_v55  ;;  %v7486_v14 = vshrl.u32 %v7485_v46, 5 }
 0x756   :  { %v7637_v51 = vmul.f32 1000.0, %v7264_v35  ;;  %v7340_v21 = vor.u32 %v7339_v31, %v7338_v25  ;;  %v7343_v7 = vshll.u32 %v7342_v10, 23  ;;  %v7432_v24 = vshll.u32 %v14606_v56, 30 }
 0x757   :  { %v7488_v52 = vsub.s32 32, %v7487_v43  ;;  %v7490_v16 = vshll.u32 %v14756_v44, %v7487_v43  ;;  %v7493_v5 = vshll.u32 %v14757_v62, %v7487_v43  ;;  %v7496_v0 = vshll.u32 %v14758_v27, %v7487_v43 }
 0x758   :  { %7701 = vst [vmem:[#allocation2 + $0x1e0] sm:$0xff] %v7637_v51  ;;  %v7344_v23 = vor.u32 4788187, %v7343_v7  ;;  %v7433_v1 = vsub.s32 %v7429_v58, %v7432_v24  ;;  %v7347_v60 = vcvt.s32.f32 %v7340_v21  ;;  %v7499_v34 = vshll.u32 %v14759_v37, %v7487_v43 }
 0x759   :  { %v7491_v50 = vshrl.u32 %v14757_v62, %v7488_v52  ;;  %v7494_v53 = vshrl.u32 %v14758_v27, %v7488_v52  ;;  %v7497_v6 = vshrl.u32 %v14759_v37, %v7488_v52  ;;  %v7500_v4 = vshrl.u32 %v14760_v45, %v7488_v52 }
 0x75a   :  { %v7345_v61 = vand.u32 2147483647, %v7344_v23  ;;  %v7435_v63 = vsub.s32 0, %v7433_v1  ;;  %v7503_v3 = vshrl.u32 %v14761_v57, %v7488_v52  ;;  %v7502_v13 = vshll.u32 %v14760_v45, %v7487_v43 }
 0x75b   :  { %v7492_v26 = vor.u32 %v7491_v50, %v7490_v16  ;;  %v7495_v17 = vor.u32 %v7494_v53, %v7493_v5  ;;  %v7498_v40 = vor.u32 %v7497_v6, %v7496_v0  ;;  %v7501_v20 = vor.u32 %v7500_v4, %v7499_v34 }
 0x75c   :  { %v7348_v30 = vmul.f32 %v7347_v60, %v7345_v61  ;;  %v7970_v29 = vmin.u32 %v7435_v63, %v7433_v1  ;;  %vm7505_vm7 = vcmp.lt.s32.totalorder %v7486_v14, 1  ;;  %vm7506_vm12 = vcmp.lt.s32.totalorder %v7486_v14, 2 }
 0x75d   :  { %v7521_v62 = vshll.u32 %v7481_v11, 8  ;;  %v7489_v37 = vshrl.u32 %v14756_v44, %v7488_v52  ;;  %v7504_v33 = vor.u32 %v7503_v3, %v7502_v13  ;;  %vm7507_vm10 = vcmp.lt.s32.totalorder %v7486_v14, 3 }
 0x75e   :  { %v7349_v48 = vxor.u32 2147483648, %v7348_v30  ;;  %v7437_v59 = vclz %v7970_v29  ;;  %vm7508_vm11 = vcmp.lt.s32.totalorder %v7486_v14, 4  ;;  %v7513_v47 = vsel %vm7505_vm7, %v7492_v26, %v7495_v17 }
 0x75f   :  { %v7510_v45 = vsel %vm7508_vm11, %v7498_v40, 2102212464  ;;  %v7514_v39 = vsel %vm7508_vm11, %v7501_v20, 920167782  ;;  %v7517_v58 = vsel %vm7505_vm7, %v7495_v17, %v7498_v40  ;;  %v7518_v44 = vsel %vm7508_vm11, %v7504_v33, 1326507024 }
 0x760   :  { %v7350_v27 = vsel %vm7267_vm1, %v7349_v48, %v7348_v30  ;;  %v7971_v28 = vadd.s32 4294967294, %v7437_v59  ;;  %v7515_v19 = vsel %vm7507_vm10, %v7498_v40, %v7514_v39  ;;  %v7509_v32 = vsel %vm7505_vm7, %v7489_v37, %v7492_v26 }
 0x761   :  { %v7353_v57 = vsel %vm14583_vm4, %v14394_v36, %v7350_v27  ;;  %v7516_v54 = vsel %vm7506_vm12, %v7513_v47, %v7515_v19  ;;  %v7519_v38 = vsel %vm7507_vm10, %v7501_v20, %v7518_v44  ;;  %v7511_v9 = vsel %vm7507_vm10, %v7495_v17, %v7510_v45 }
 0x762   :  { %8492 = vcosq.f32 %v7353_v57  ;;  %vm7972_vm14 = vcmp.lt.s32.totalorder %v7971_v28, 0  ;;  %v7520_v46 = vsel %vm7506_vm12, %v7517_v58, %v7519_v38  ;;  %v7512_v21 = vsel %vm7506_vm12, %v7509_v32, %v7511_v9 }
 0x763   :  { %8494 = vsinq.f32 %v7353_v57  ;;  %v7440_v8 = vsel %vm7972_vm14, 0, %v7971_v28  ;;  %v14636_v35 = vmul.u32.u64.low %v7521_v62, %v7520_v46  ;;  %v14637_v25 = vmul.u32.u64.high %v7521_v62, %v7520_v46, %v14636_v35 }
 0x764   :  { %v7441_v18 = vsub.s32 32, %v7440_v8  ;;  %v7445_v2 = vsub.s32 4294967266, %v7440_v8  ;;  %v14639_v31 = vmul.u32.u64.low %v7521_v62, %v7516_v54  ;;  %v14640_v10 = vmul.u32.u64.high %v7521_v62, %v7516_v54, %v14639_v31 }
 0x765   :  { %v7442_v51 = vshll.u32 %v7433_v1, %v7440_v8  ;;  %v7359_v52 = vand.u32 3, %v7358_v15  ;;  %v7528_v50 = vmul.u32 %v7521_v62, %v7512_v21  ;;  %v7455_v14 = vsub.s32 4, %v14606_v56 }
 0x766   :  { %v7443_v55 = vshrl.u32 %v7425_v12, %v7441_v18  ;;  %v7446_v43 = vadd.s32 127, %v7445_v2  ;;  %vm7530_vm0 = vc.u32 %v14637_v25, %v14639_v31  ;;  %v7531_v23 = vadd.s32 1, %v14640_v10 }
 0x767   :  { %vm7364_vm13 = vcmp.eq.s32.totalorder %v7359_v52, 2  ;;  %vm7361_vm15 = vcmp.eq.s32.totalorder %v7359_v52, 0  ;;  %vm7357_vm1 = vweird.f32 %v14394_v36  ;;  %vm7360_vm2 = vcmp.lt.s32.totalorder %v7359_v52, 2 }
 0x768   :  { %v7444_v7 = vor.u32 %v7443_v55, %v7442_v51  ;;  %v7447_v24 = vshll.u32 %v7446_v43, 23  ;;  %v7532_v60 = vsel %vm7530_vm0, %v7531_v23, %v14640_v10  ;;  %vm7371_vm4 = vcmp.lt.s32.totalorder %v14446_v22, 0 }
 0x769   :  { %v7533_v12 = vadd.s32 %v7532_v60, %v7528_v50  ;;  %v7456_v17 = vsel %vm7371_vm4, %v7455_v14, %v14606_v56  ;;  %vm7370_vm8 = vcmp.le.f32.partialorder %v7369_v41, 0.7853982  ;;  %v7529_v39 = vadd.s32 %v14639_v31, %v14637_v25 }
 0x76a   :  { %v7448_v11 = vor.u32 4788187, %v7447_v24  ;;  %v7451_v1 = vcvt.s32.f32 %v7444_v7  ;;  %v7458_v36 = vsel %vm7370_vm8, 0, %v7456_v17  ;;  %vm7461_vm7 = vweird.f32 %v14446_v22 }
 0x76b   :  { %v7534_v30 = vadd.s32 536870912, %v7533_v12  ;;  %v7462_v62 = vadd.s32 3, %v7458_v36  ;;  %vm7475_vm12 = vcmp.lt.s32.totalorder %v14561_v42, 0  ;;  %vm7474_vm10 = vcmp.le.f32.partialorder %v7473_v49, 0.7853982 }
 0x76c   :  { %v8493_v61 = vpop.eup %8492  ;;  %v7449_v63 = vand.u32 2147483647, %v7448_v11 }
 0x76d   :  { %v8495_v53 = vpop.eup %8494  ;;  %v7365_v6 = vxor.u32 2147483648, %v8493_v61  ;;  %v7535_v29 = vshrl.u32 %v7534_v30, 30  ;;  %v7463_v33 = vand.u32 3, %v7462_v62 }
 0x76e   :  { %v7362_v16 = vxor.u32 2147483648, %v8495_v53  ;;  %v7452_v5 = vmul.f32 %v7451_v1, %v7449_v63 }
 0x76f   :  { %v7366_v15 = vsel %vm7364_vm13, %v7365_v6, %v8495_v53  ;;  %v7536_v40 = vshll.u32 %v7535_v29, 30  ;;  %vm7468_vm3 = vcmp.eq.s32.totalorder %v7463_v33, 2  ;;  %vm7464_vm6 = vcmp.lt.s32.totalorder %v7463_v33, 2 }
 0x770   :  { %v7363_v0 = vsel %vm7361_vm15, %v8493_v61, %v7362_v16  ;;  %v7453_v4 = vxor.u32 2147483648, %v7452_v5  ;;  %vm7465_vm9 = vcmp.eq.s32.totalorder %v7463_v33, 0  ;;  %v7559_v55 = vsub.s32 4, %v7535_v29 }
 0x771   :  { %v7367_v34 = vsel %vm7360_vm2, %v7363_v0, %v7366_v15  ;;  %v7537_v13 = vsub.s32 %v7533_v12, %v7536_v40  ;;  %vm7565_vm13 = vweird.f32 %v14561_v42 }
 0x772   :  { %v7368_v26 = vsel %vm7357_vm1, nan, %v7367_v34  ;;  %v7454_v48 = vsel %vm7371_vm4, %v7453_v4, %v7452_v5  ;;  %v7560_v7 = vsel %vm7475_vm12, %v7559_v55, %v7535_v29 }
 0x773   :  { %v7638_v3 = vmul.f32 1000.0, %v7368_v26  ;;  %v7457_v20 = vsel %vm7370_vm8, %v14446_v22, %v7454_v48  ;;  %v7539_v59 = vsub.s32 0, %v7537_v13  ;;  %v7562_v24 = vsel %vm7474_vm10, 0, %v7560_v7 }
 0x774   :  { %8496 = vcosq.f32 %v7457_v20  ;;  %v7566_v52 = vadd.s32 3, %v7562_v24 }
 0x775   :  { %7702 = vst [vmem:[#allocation2 + $0x1e8] sm:$0xff] %v7638_v3  ;;  %8498 = vsinq.f32 %v7457_v20  ;;  %v7974_v27 = vmin.u32 %v7539_v59, %v7537_v13 }
 0x776   :  { %v7567_v23 = vand.u32 3, %v7566_v52 }
 0x777   :  { %v7541_v37 = vclz %v7974_v27 }
 0x778   :  { %vm7572_vm11 = vcmp.eq.s32.totalorder %v7567_v23, 2  ;;  %vm7569_vm14 = vcmp.eq.s32.totalorder %v7567_v23, 0  ;;  %vm7568_vm0 = vcmp.lt.s32.totalorder %v7567_v23, 2 }
 0x779   :  { %v7975_v57 = vadd.s32 4294967294, %v7541_v37 }
 0x77b   :  { %vm7976_vm5 = vcmp.lt.s32.totalorder %v7975_v57, 0 }
 0x77c   :  { %v7544_v47 = vsel %vm7976_vm5, 0, %v7975_v57 }
 0x77d   :  { %v7545_v58 = vsub.s32 32, %v7544_v47  ;;  %v7549_v19 = vsub.s32 4294967266, %v7544_v47  ;;  %v7546_v32 = vshll.u32 %v7537_v13, %v7544_v47 }
 0x77e   :  { %v8497_v56 = vpop.eup %8496 }
 0x77f   :  { %v8499_v28 = vpop.eup %8498  ;;  %v7469_v41 = vxor.u32 2147483648, %v8497_v56  ;;  %v7547_v54 = vshrl.u32 %v7529_v39, %v7545_v58  ;;  %v7550_v38 = vadd.s32 127, %v7549_v19 }
 0x780   :  { %v7466_v45 = vxor.u32 2147483648, %v8499_v28 }
 0x781   :  { %v7470_v44 = vsel %vm7468_vm3, %v7469_v41, %v8499_v28  ;;  %v7548_v9 = vor.u32 %v7547_v54, %v7546_v32  ;;  %v7551_v46 = vshll.u32 %v7550_v38, 23 }
 0x782   :  { %v7467_v8 = vsel %vm7465_vm9, %v8497_v56, %v7466_v45 }
 0x783   :  { %v7471_v18 = vsel %vm7464_vm6, %v7467_v8, %v7470_v44  ;;  %v7552_v10 = vor.u32 4788187, %v7551_v46  ;;  %v7555_v25 = vcvt.s32.f32 %v7548_v9 }
 0x784   :  { %v7472_v2 = vsel %vm7461_vm7, nan, %v7471_v18 }
 0x785   :  { %v7639_v35 = vmul.f32 1000.0, %v7472_v2  ;;  %v7553_v51 = vand.u32 2147483647, %v7552_v10 }
 0x787   :  { %7703 = vst [vmem:[#allocation2 + $0x1f0] sm:$0xff] %v7639_v35  ;;  %v7556_v31 = vmul.f32 %v7555_v25, %v7553_v51 }
 0x789   :  { %v7557_v43 = vxor.u32 2147483648, %v7556_v31 }
 0x78b   :  { %v7558_v21 = vsel %vm7475_vm12, %v7557_v43, %v7556_v31 }
 0x78c   :  { %v7561_v22 = vsel %vm7474_vm10, %v14561_v42, %v7558_v21 }
 0x78d   :  { %8500 = vcosq.f32 %v7561_v22 }
 0x78e   :  { %8502 = vsinq.f32 %v7561_v22 }
 0x797   :  { %v8501_v11 = vpop.eup %8500 }
 0x798   :  { %v8503_v50 = vpop.eup %8502  ;;  %v7573_v61 = vxor.u32 2147483648, %v8501_v11 }
 0x799   :  { %v7570_v60 = vxor.u32 2147483648, %v8503_v50 }
 0x79a   :  { %v7574_v53 = vsel %vm7572_vm11, %v7573_v61, %v8503_v50 }
 0x79b   :  { %v7571_v49 = vsel %vm7569_vm14, %v8501_v11, %v7570_v60 }
 0x79c   :  { %v7575_v6 = vsel %vm7568_vm0, %v7571_v49, %v7574_v53 }
 0x79d   :  { %v7576_v63 = vsel %vm7565_vm13, nan, %v7575_v6 }
 0x79e   :  { %v7640_v1 = vmul.f32 1000.0, %v7576_v63 }
 0x7a0   :  { %7704 = vst [vmem:[#allocation2 + $0x1f8] sm:$0xff] %v7640_v1 }
 0x7a1   :  { %8515 = shalt.err (!%p8512_p4)
}
 0x7a2   :  { %s8516_s30 = scalar_lea.hbm %s14674_s2, 8192 }
 0x7a3   :  { %p8517_p5 = scmp.ne.s32.totalorder %s14674_s2, %s8516_s30  ;;  %p8520_p6 = scmp.lt.u32.totalorder %s8516_s30, %s14674_s2 }
 0x7a5   :  { %p8522_p7 = pnand %p8520_p6, %p8517_p5 }
 0x7a7   :  { %8525 = shalt.err (!%p8522_p7)
}
 0x7a8   :  { %s8537_s7 = smov 128   ;;  %s8538_s8 = smov 8  }
 0x7a9   :  { %7716 = dma.vmem_to_hbm [thread:$0]  %s7711_s26, 8192, %s14674_s2, [#allocation3], %s8537_s7, %s8537_s7, %s8538_s8  }
 0x7aa   :  { %8526 = dma.done.wait [#allocation3], 8192  }
 0x7ab   :  { %8527 = vsyncadd [#allocation3], 4294959104 }
 0x7ac   :  { %7720 = vsyncpa [#allocation3], 1 }

</bundles_post_ra>
